<compile_context>
chip_gen: v7x
topology: tpu7x:2x2x1
jax: 0.10.0
libtpu: 0.0.40
codegen_flags: <defaults>
</compile_context>

<pallas_src>
import functools

import jax
import jax.numpy as jnp
import numpy as np
from jax.experimental import pallas as pl
from jax.experimental.pallas import tpu as pltpu

# ---- module hyper-parameters (from MLPNet.__init__ defaults) ----------------
D = 8
W = 256
INPUT_CH = 3
INPUT_CH_VIEWDIRS = 3
SKIPS = [4]


# -----------------------------------------------------------------------------
# Pallas kernel: full MLP forward for one tile of TM points.
# -----------------------------------------------------------------------------
def mlp_kernel(x_ref, wbig_ref, bbig_ref, w0_ref, w5p_ref, ws_ref, bs_ref,
               wvr_ref, wvv_ref, bv_ref, wo_ref, bo_ref, rgb_ref, sigma_ref):
    x = x_ref[...].astype(jnp.float32)                     # (TM, 6)
    pts = x[:, :INPUT_CH]                                  # (TM, 3)
    view = x[:, INPUT_CH:INPUT_CH + INPUT_CH_VIEWDIRS]     # (TM, 3)

    def bias(k):
        return bbig_ref[pl.ds(k, 1), :]                    # (1, 256) f32

    def mxu(h_f32, li):
        # bf16 operands, f32 accumulation on the MXU.
        return jnp.dot(h_f32.astype(jnp.bfloat16), wbig_ref[li],
                       preferred_element_type=jnp.float32)

    def mac3(x3, w_ref):
        # K=3 "matmul" as 3 broadcast multiply-adds on the VPU
        # (a K=3 MXU push leaves the systolic array ~99% idle).
        w = w_ref[...]                                      # (3, C) f32
        return (x3[:, 0:1] * w[0:1, :]
                + x3[:, 1:2] * w[1:2, :]
                + x3[:, 2:3] * w[2:3, :])

    def relu(v):
        return jnp.maximum(v, 0.0)

    # base layers 0..7 (skip connection feeds layer 5)
    h = relu(mac3(pts, w0_ref) + bias(0))                   # layer 0
    h = relu(mxu(h, 0) + bias(1))                           # layer 1
    h = relu(mxu(h, 1) + bias(2))                           # layer 2
    h = relu(mxu(h, 2) + bias(3))                           # layer 3
    h = relu(mxu(h, 3) + bias(4))                           # layer 4
    h = relu(mxu(h, 4) + mac3(pts, w5p_ref) + bias(5))      # layer 5 (skip)
    h = relu(mxu(h, 5) + bias(6))                           # layer 6
    h = relu(mxu(h, 6) + bias(7))                           # layer 7  (TM, 256)

    # sigma head: abs(Linear(W -> 1)) done as VPU multiply + lane reduction.
    sigma = jnp.abs(jnp.sum(h * ws_ref[...], axis=-1, keepdims=True)
                    + bs_ref[...])                          # (TM, 1)

    # base remap (no activation)
    remap = mxu(h, 7) + bias(8)                             # (TM, 256)

    # rgb head on cat(remap, viewdirs): split matmul + VPU MAC
    h2 = relu(jnp.dot(remap.astype(jnp.bfloat16), wvr_ref[...],
                      preferred_element_type=jnp.float32)
              + mac3(view, wvv_ref) + bv_ref[...])          # (TM, 128)
    rgb = jax.nn.sigmoid(jnp.dot(h2.astype(jnp.bfloat16), wo_ref[...],
                                 preferred_element_type=jnp.float32)
                         + bo_ref[...])                     # (TM, 3)

    rgb_ref[...] = rgb.astype(rgb_ref.dtype)
    sigma_ref[...] = sigma.astype(sigma_ref.dtype)


# -----------------------------------------------------------------------------
# Parameter setup (mimics nn.Linear default init; weights stored as (in, out)).
# -----------------------------------------------------------------------------
def init_params(key):
    params = {}

    def linear(key, fan_in, fan_out):
        kw, kb = jax.random.split(key)
        k = 1.0 / np.sqrt(fan_in)
        w = jax.random.uniform(kw, (fan_in, fan_out), jnp.float32, -k, k)
        b = jax.random.uniform(kb, (1, fan_out), jnp.float32, -k, k)
        return w, b

    keys = jax.random.split(key, D + 4)

    dims = []
    dim = INPUT_CH
    for i in range(D):
        dims.append(dim)
        dim = W
        if i in SKIPS and i != D - 1:
            dim += INPUT_CH
    base_w, base_b = [], []
    for i in range(D):
        w, b = linear(keys[i], dims[i], W)
        base_w.append(w)
        base_b.append(b)
    params["base_w"] = base_w
    params["base_b"] = base_b

    params["ws"], params["bs"] = linear(keys[D], W, 1)            # sigma head
    params["wr"], params["br"] = linear(keys[D + 1], W, 256)       # base remap
    params["wv"], params["bv"] = linear(keys[D + 2], 256 + INPUT_CH_VIEWDIRS, W // 2)
    params["wo"], params["bo"] = linear(keys[D + 3], W // 2, 3)
    return params


def pack_params(p):
    """Pack params for the kernel: 8x(256,256) weights -> one bf16 (8,256,256),
    nine 256-wide biases -> one f32 (9,256); split concat-fed weights."""
    bw, bb = p["base_w"], p["base_b"]
    w5 = bw[5]                                   # (3 + 256, 256)
    w5p, w5h = w5[:INPUT_CH], w5[INPUT_CH:]
    wv = p["wv"]                                 # (256 + 3, 128)
    wvr, wvv = wv[:256], wv[256:]

    wbig = jnp.stack([bw[1], bw[2], bw[3], bw[4], w5h, bw[6], bw[7],
                      p["wr"]]).astype(jnp.bfloat16)          # (8, 256, 256)
    bbig = jnp.concatenate(list(bb) + [p["br"]], axis=0)      # (9, 256) f32
    ws_row = p["ws"].T                                        # (1, 256) f32

    return [
        wbig, bbig,
        bw[0],                                   # (3, 256) f32  (layer 0, VPU)
        w5p,                                     # (3, 256) f32  (skip, VPU)
        ws_row, p["bs"].reshape(1, 1),           # sigma head
        wvr.astype(jnp.bfloat16),                # (256, 128) bf16
        wvv,                                     # (3, 128) f32 (VPU)
        p["bv"],                                 # (1, 128) f32
        p["wo"].astype(jnp.bfloat16),            # (128, 3) bf16
        p["bo"],                                 # (1, 3) f32
    ]


# -----------------------------------------------------------------------------
# Wrapper: pad N, tile rows, call the kernel.
# -----------------------------------------------------------------------------
def _round_up(n, m):
    return ((n + m - 1) // m) * m


@functools.partial(jax.jit, static_argnames=("tm",))
def mlp_net_forward(inp, params, *, tm=1024):
    """inp: [..., INPUT_CH + INPUT_CH_VIEWDIRS] -> (rgb [..., 3], sigma [...])."""
    batch_shape = inp.shape[:-1]
    cin = INPUT_CH + INPUT_CH_VIEWDIRS
    x = inp.reshape(-1, cin).astype(jnp.float32)
    n = x.shape[0]

    # Row tile: multiple of 256 (fills v6e/v7x MXU; also a multiple of 128 for
    # v5e), shrunk for tiny inputs so the demo doesn't over-pad.
    tm_eff = min(tm, _round_up(n, 256))
    n_pad = _round_up(n, tm_eff)
    if n_pad != n:
        x = jnp.pad(x, ((0, n_pad - n), (0, 0)))

    packed = pack_params(params)

    def full_spec(a):
        return pl.BlockSpec(a.shape, lambda i: (0,) * a.ndim)

    in_specs = [pl.BlockSpec((tm_eff, cin), lambda i: (i, 0))] + \
               [full_spec(a) for a in packed]
    out_specs = [
        pl.BlockSpec((tm_eff, 3), lambda i: (i, 0)),
        pl.BlockSpec((tm_eff, 1), lambda i: (i, 0)),
    ]

    rgb, sigma = pl.pallas_call(
        mlp_kernel,
        out_shape=(
            jax.ShapeDtypeStruct((n_pad, 3), jnp.float32),
            jax.ShapeDtypeStruct((n_pad, 1), jnp.float32),
        ),
        grid_spec=pltpu.PrefetchScalarGridSpec(
            num_scalar_prefetch=0,
            grid=(n_pad // tm_eff,),
            in_specs=in_specs,
            out_specs=out_specs,
        ),
        compiler_params=pltpu.CompilerParams(
            dimension_semantics=("parallel",),
            vmem_limit_bytes=32 * 1024 * 1024,
        ),
    )(x, *packed)

    rgb = rgb[:n].reshape(*batch_shape, 3)
    sigma = sigma[:n, 0].reshape(batch_shape)
    return rgb, sigma


# -----------------------------------------------------------------------------
# Pure-JAX reference (mirrors the PyTorch forward exactly) for verification.
# -----------------------------------------------------------------------------
def mlp_net_reference(inp, params):
    pts = inp[..., :INPUT_CH]
    view = inp[..., -INPUT_CH_VIEWDIRS:]
    bw, bb = params["base_w"], params["base_b"]
    base = jnp.maximum(pts @ bw[0] + bb[0], 0.0)
    for i in range(D - 1):
        if i in SKIPS:
            base = jnp.concatenate([pts, base], axis=-1)
        base = jnp.maximum(base @ bw[i + 1] + bb[i + 1], 0.0)
    sigma = jnp.abs(base @ params["ws"] + params["bs"])
    remap = base @ params["wr"] + params["br"]
    h = jnp.concatenate([remap, view], axis=-1)
    h = jnp.maximum(h @ params["wv"] + params["bv"], 0.0)
    rgb = jax.nn.sigmoid(h @ params["wo"] + params["bo"])
    return rgb, jnp.squeeze(sigma, -1)


if __name__ == "__main__":
    key = jax.random.PRNGKey(0)
    kp, kx = jax.random.split(key)
    params = init_params(kp)

    # small input: batch=2, seq=32, channels = input_ch + input_ch_viewdirs = 6
    inp = jax.random.normal(kx, (2, 32, INPUT_CH + INPUT_CH_VIEWDIRS), jnp.float32)

    rgb, sigma = mlp_net_forward(inp, params)
    rgb, sigma = jax.block_until_ready((rgb, sigma))

    rgb_ref, sigma_ref = mlp_net_reference(inp, params)
    assert rgb.shape == (2, 32, 3) and sigma.shape == (2, 32)
    # bf16 matmul chain (f32 accumulation): relax tolerance vs. the f32 reference.
    np.testing.assert_allclose(np.asarray(rgb), np.asarray(rgb_ref),
                               atol=1.5e-2, rtol=1.5e-2)
    np.testing.assert_allclose(np.asarray(sigma), np.asarray(sigma_ref),
                               atol=1.5e-2, rtol=1.5e-2)

    print("KERNEL_OK")
</pallas_src>

<mosaic_0001>
module attributes {stable_mosaic.version = 11 : i64} {
  func.func @mlp_kernel(%arg0: i32, %arg1: memref<256x6xf32, #tpu.memory_space<vmem>>, %arg2: memref<8x256x256xbf16, #tpu.memory_space<vmem>>, %arg3: memref<9x256xf32, #tpu.memory_space<vmem>>, %arg4: memref<3x256xf32, #tpu.memory_space<vmem>>, %arg5: memref<3x256xf32, #tpu.memory_space<vmem>>, %arg6: memref<1x256xf32, #tpu.memory_space<vmem>>, %arg7: memref<1x1xf32, #tpu.memory_space<vmem>>, %arg8: memref<256x128xbf16, #tpu.memory_space<vmem>>, %arg9: memref<3x128xf32, #tpu.memory_space<vmem>>, %arg10: memref<1x128xf32, #tpu.memory_space<vmem>>, %arg11: memref<128x3xbf16, #tpu.memory_space<vmem>>, %arg12: memref<1x3xf32, #tpu.memory_space<vmem>>, %arg13: memref<256x3xf32, #tpu.memory_space<vmem>>, %arg14: memref<256x1xf32, #tpu.memory_space<vmem>>) attributes {dimension_semantics = [#tpu.dimension_semantics<parallel>], iteration_bounds = array<i64: 1>, scalar_prefetch = 0 : i64, scratch_operands = 0 : i64, tpu.core_type = #tpu.core_type<tc>, window_params = [{transform_indices = @transform_0, window_bounds = array<i64: 256, 6>}, {pipeline_mode = #tpu.pipeline_mode<synchronous>, transform_indices = @transform_1, window_bounds = array<i64: 8, 256, 256>}, {pipeline_mode = #tpu.pipeline_mode<synchronous>, transform_indices = @transform_2, window_bounds = array<i64: 9, 256>}, {pipeline_mode = #tpu.pipeline_mode<synchronous>, transform_indices = @transform_3, window_bounds = array<i64: 3, 256>}, {pipeline_mode = #tpu.pipeline_mode<synchronous>, transform_indices = @transform_4, window_bounds = array<i64: 3, 256>}, {pipeline_mode = #tpu.pipeline_mode<synchronous>, transform_indices = @transform_5, window_bounds = array<i64: 1, 256>}, {pipeline_mode = #tpu.pipeline_mode<synchronous>, transform_indices = @transform_6, window_bounds = array<i64: 1, 1>}, {pipeline_mode = #tpu.pipeline_mode<synchronous>, transform_indices = @transform_7, window_bounds = array<i64: 256, 128>}, {pipeline_mode = #tpu.pipeline_mode<synchronous>, transform_indices = @transform_8, window_bounds = array<i64: 3, 128>}, {pipeline_mode = #tpu.pipeline_mode<synchronous>, transform_indices = @transform_9, window_bounds = array<i64: 1, 128>}, {pipeline_mode = #tpu.pipeline_mode<synchronous>, transform_indices = @transform_10, window_bounds = array<i64: 128, 3>}, {pipeline_mode = #tpu.pipeline_mode<synchronous>, transform_indices = @transform_11, window_bounds = array<i64: 1, 3>}, {transform_indices = @transform_12, window_bounds = array<i64: 256, 3>}, {transform_indices = @transform_13, window_bounds = array<i64: 256, 1>}]} {
    %c0 = arith.constant 0 : index
    %c0_0 = arith.constant 0 : index
    %0 = vector.load %arg1[%c0, %c0_0] : memref<256x6xf32, #tpu.memory_space<vmem>>, vector<256x6xf32>
    %1 = vector.extract_strided_slice %0 {offsets = [0, 0], sizes = [256, 3], strides = [1, 1]} : vector<256x6xf32> to vector<256x3xf32>
    %2 = vector.extract_strided_slice %0 {offsets = [0, 3], sizes = [256, 3], strides = [1, 1]} : vector<256x6xf32> to vector<256x3xf32>
    %c0_1 = arith.constant 0 : index
    %c0_2 = arith.constant 0 : index
    %3 = vector.load %arg4[%c0_1, %c0_2] : memref<3x256xf32, #tpu.memory_space<vmem>>, vector<3x256xf32>
    %4 = vector.extract_strided_slice %1 {offsets = [0, 0], sizes = [256, 1], strides = [1, 1]} : vector<256x3xf32> to vector<256x1xf32>
    %5 = vector.extract_strided_slice %3 {offsets = [0, 0], sizes = [1, 256], strides = [1, 1]} : vector<3x256xf32> to vector<1x256xf32>
    %6 = vector.broadcast %4 : vector<256x1xf32> to vector<256x256xf32>
    %7 = vector.broadcast %5 : vector<1x256xf32> to vector<256x256xf32>
    %8 = arith.mulf %6, %7 : vector<256x256xf32>
    %9 = vector.extract_strided_slice %1 {offsets = [0, 1], sizes = [256, 1], strides = [1, 1]} : vector<256x3xf32> to vector<256x1xf32>
    %10 = vector.extract_strided_slice %3 {offsets = [1, 0], sizes = [1, 256], strides = [1, 1]} : vector<3x256xf32> to vector<1x256xf32>
    %11 = vector.broadcast %9 : vector<256x1xf32> to vector<256x256xf32>
    %12 = vector.broadcast %10 : vector<1x256xf32> to vector<256x256xf32>
    %13 = arith.mulf %11, %12 : vector<256x256xf32>
    %14 = arith.addf %8, %13 : vector<256x256xf32>
    %15 = vector.extract_strided_slice %1 {offsets = [0, 2], sizes = [256, 1], strides = [1, 1]} : vector<256x3xf32> to vector<256x1xf32>
    %16 = vector.extract_strided_slice %3 {offsets = [2, 0], sizes = [1, 256], strides = [1, 1]} : vector<3x256xf32> to vector<1x256xf32>
    %17 = vector.broadcast %15 : vector<256x1xf32> to vector<256x256xf32>
    %18 = vector.broadcast %16 : vector<1x256xf32> to vector<256x256xf32>
    %19 = arith.mulf %17, %18 : vector<256x256xf32>
    %20 = arith.addf %14, %19 : vector<256x256xf32>
    %c0_3 = arith.constant 0 : index
    %c0_4 = arith.constant 0 : index
    %21 = vector.load %arg3[%c0_3, %c0_4] : memref<9x256xf32, #tpu.memory_space<vmem>>, vector<1x256xf32>
    %22 = vector.broadcast %21 : vector<1x256xf32> to vector<256x256xf32>
    %23 = arith.addf %20, %22 : vector<256x256xf32>
    %cst = arith.constant 0.000000e+00 : f32
    %24 = vector.broadcast %cst : f32 to vector<256x256xf32>
    %25 = arith.maximumf %23, %24 : vector<256x256xf32>
    %26 = arith.truncf %25 : vector<256x256xf32> to vector<256x256xbf16>
    %c0_5 = arith.constant 0 : index
    %c0_6 = arith.constant 0 : index
    %c0_7 = arith.constant 0 : index
    %27 = vector.load %arg2[%c0_5, %c0_6, %c0_7] : memref<8x256x256xbf16, #tpu.memory_space<vmem>>, vector<1x256x256xbf16>
    %28 = vector.shape_cast %27 : vector<1x256x256xbf16> to vector<256x256xbf16>
    %cst_8 = arith.constant dense<0.000000e+00> : vector<256x256xf32>
    %29 = tpu.matmul %26, %28, %cst_8 {dimension_numbers = #tpu.dot_dimension_numbers<[1], [0], [0], [1], [0, 0, 1, 1], [], []>} : vector<256x256xbf16>, vector<256x256xbf16>, vector<256x256xf32> -> vector<256x256xf32>
    %c1 = arith.constant 1 : index
    %c0_9 = arith.constant 0 : index
    %30 = vector.load %arg3[%c1, %c0_9] : memref<9x256xf32, #tpu.memory_space<vmem>>, vector<1x256xf32>
    %31 = vector.broadcast %30 : vector<1x256xf32> to vector<256x256xf32>
    %32 = arith.addf %29, %31 : vector<256x256xf32>
    %cst_10 = arith.constant 0.000000e+00 : f32
    %33 = vector.broadcast %cst_10 : f32 to vector<256x256xf32>
    %34 = arith.maximumf %32, %33 : vector<256x256xf32>
    %35 = arith.truncf %34 : vector<256x256xf32> to vector<256x256xbf16>
    %c1_11 = arith.constant 1 : index
    %c0_12 = arith.constant 0 : index
    %c0_13 = arith.constant 0 : index
    %36 = vector.load %arg2[%c1_11, %c0_12, %c0_13] : memref<8x256x256xbf16, #tpu.memory_space<vmem>>, vector<1x256x256xbf16>
    %37 = vector.shape_cast %36 : vector<1x256x256xbf16> to vector<256x256xbf16>
    %cst_14 = arith.constant dense<0.000000e+00> : vector<256x256xf32>
    %38 = tpu.matmul %35, %37, %cst_14 {dimension_numbers = #tpu.dot_dimension_numbers<[1], [0], [0], [1], [0, 0, 1, 1], [], []>} : vector<256x256xbf16>, vector<256x256xbf16>, vector<256x256xf32> -> vector<256x256xf32>
    %c2 = arith.constant 2 : index
    %c0_15 = arith.constant 0 : index
    %39 = vector.load %arg3[%c2, %c0_15] : memref<9x256xf32, #tpu.memory_space<vmem>>, vector<1x256xf32>
    %40 = vector.broadcast %39 : vector<1x256xf32> to vector<256x256xf32>
    %41 = arith.addf %38, %40 : vector<256x256xf32>
    %cst_16 = arith.constant 0.000000e+00 : f32
    %42 = vector.broadcast %cst_16 : f32 to vector<256x256xf32>
    %43 = arith.maximumf %41, %42 : vector<256x256xf32>
    %44 = arith.truncf %43 : vector<256x256xf32> to vector<256x256xbf16>
    %c2_17 = arith.constant 2 : index
    %c0_18 = arith.constant 0 : index
    %c0_19 = arith.constant 0 : index
    %45 = vector.load %arg2[%c2_17, %c0_18, %c0_19] : memref<8x256x256xbf16, #tpu.memory_space<vmem>>, vector<1x256x256xbf16>
    %46 = vector.shape_cast %45 : vector<1x256x256xbf16> to vector<256x256xbf16>
    %cst_20 = arith.constant dense<0.000000e+00> : vector<256x256xf32>
    %47 = tpu.matmul %44, %46, %cst_20 {dimension_numbers = #tpu.dot_dimension_numbers<[1], [0], [0], [1], [0, 0, 1, 1], [], []>} : vector<256x256xbf16>, vector<256x256xbf16>, vector<256x256xf32> -> vector<256x256xf32>
    %c3 = arith.constant 3 : index
    %c0_21 = arith.constant 0 : index
    %48 = vector.load %arg3[%c3, %c0_21] : memref<9x256xf32, #tpu.memory_space<vmem>>, vector<1x256xf32>
    %49 = vector.broadcast %48 : vector<1x256xf32> to vector<256x256xf32>
    %50 = arith.addf %47, %49 : vector<256x256xf32>
    %cst_22 = arith.constant 0.000000e+00 : f32
    %51 = vector.broadcast %cst_22 : f32 to vector<256x256xf32>
    %52 = arith.maximumf %50, %51 : vector<256x256xf32>
    %53 = arith.truncf %52 : vector<256x256xf32> to vector<256x256xbf16>
    %c3_23 = arith.constant 3 : index
    %c0_24 = arith.constant 0 : index
    %c0_25 = arith.constant 0 : index
    %54 = vector.load %arg2[%c3_23, %c0_24, %c0_25] : memref<8x256x256xbf16, #tpu.memory_space<vmem>>, vector<1x256x256xbf16>
    %55 = vector.shape_cast %54 : vector<1x256x256xbf16> to vector<256x256xbf16>
    %cst_26 = arith.constant dense<0.000000e+00> : vector<256x256xf32>
    %56 = tpu.matmul %53, %55, %cst_26 {dimension_numbers = #tpu.dot_dimension_numbers<[1], [0], [0], [1], [0, 0, 1, 1], [], []>} : vector<256x256xbf16>, vector<256x256xbf16>, vector<256x256xf32> -> vector<256x256xf32>
    %c4 = arith.constant 4 : index
    %c0_27 = arith.constant 0 : index
    %57 = vector.load %arg3[%c4, %c0_27] : memref<9x256xf32, #tpu.memory_space<vmem>>, vector<1x256xf32>
    %58 = vector.broadcast %57 : vector<1x256xf32> to vector<256x256xf32>
    %59 = arith.addf %56, %58 : vector<256x256xf32>
    %cst_28 = arith.constant 0.000000e+00 : f32
    %60 = vector.broadcast %cst_28 : f32 to vector<256x256xf32>
    %61 = arith.maximumf %59, %60 : vector<256x256xf32>
    %62 = arith.truncf %61 : vector<256x256xf32> to vector<256x256xbf16>
    %c4_29 = arith.constant 4 : index
    %c0_30 = arith.constant 0 : index
    %c0_31 = arith.constant 0 : index
    %63 = vector.load %arg2[%c4_29, %c0_30, %c0_31] : memref<8x256x256xbf16, #tpu.memory_space<vmem>>, vector<1x256x256xbf16>
    %64 = vector.shape_cast %63 : vector<1x256x256xbf16> to vector<256x256xbf16>
    %cst_32 = arith.constant dense<0.000000e+00> : vector<256x256xf32>
    %65 = tpu.matmul %62, %64, %cst_32 {dimension_numbers = #tpu.dot_dimension_numbers<[1], [0], [0], [1], [0, 0, 1, 1], [], []>} : vector<256x256xbf16>, vector<256x256xbf16>, vector<256x256xf32> -> vector<256x256xf32>
    %c0_33 = arith.constant 0 : index
    %c0_34 = arith.constant 0 : index
    %66 = vector.load %arg5[%c0_33, %c0_34] : memref<3x256xf32, #tpu.memory_space<vmem>>, vector<3x256xf32>
    %67 = vector.extract_strided_slice %1 {offsets = [0, 0], sizes = [256, 1], strides = [1, 1]} : vector<256x3xf32> to vector<256x1xf32>
    %68 = vector.extract_strided_slice %66 {offsets = [0, 0], sizes = [1, 256], strides = [1, 1]} : vector<3x256xf32> to vector<1x256xf32>
    %69 = vector.broadcast %67 : vector<256x1xf32> to vector<256x256xf32>
    %70 = vector.broadcast %68 : vector<1x256xf32> to vector<256x256xf32>
    %71 = arith.mulf %69, %70 : vector<256x256xf32>
    %72 = vector.extract_strided_slice %1 {offsets = [0, 1], sizes = [256, 1], strides = [1, 1]} : vector<256x3xf32> to vector<256x1xf32>
    %73 = vector.extract_strided_slice %66 {offsets = [1, 0], sizes = [1, 256], strides = [1, 1]} : vector<3x256xf32> to vector<1x256xf32>
    %74 = vector.broadcast %72 : vector<256x1xf32> to vector<256x256xf32>
    %75 = vector.broadcast %73 : vector<1x256xf32> to vector<256x256xf32>
    %76 = arith.mulf %74, %75 : vector<256x256xf32>
    %77 = arith.addf %71, %76 : vector<256x256xf32>
    %78 = vector.extract_strided_slice %1 {offsets = [0, 2], sizes = [256, 1], strides = [1, 1]} : vector<256x3xf32> to vector<256x1xf32>
    %79 = vector.extract_strided_slice %66 {offsets = [2, 0], sizes = [1, 256], strides = [1, 1]} : vector<3x256xf32> to vector<1x256xf32>
    %80 = vector.broadcast %78 : vector<256x1xf32> to vector<256x256xf32>
    %81 = vector.broadcast %79 : vector<1x256xf32> to vector<256x256xf32>
    %82 = arith.mulf %80, %81 : vector<256x256xf32>
    %83 = arith.addf %77, %82 : vector<256x256xf32>
    %84 = arith.addf %65, %83 : vector<256x256xf32>
    %c5 = arith.constant 5 : index
    %c0_35 = arith.constant 0 : index
    %85 = vector.load %arg3[%c5, %c0_35] : memref<9x256xf32, #tpu.memory_space<vmem>>, vector<1x256xf32>
    %86 = vector.broadcast %85 : vector<1x256xf32> to vector<256x256xf32>
    %87 = arith.addf %84, %86 : vector<256x256xf32>
    %cst_36 = arith.constant 0.000000e+00 : f32
    %88 = vector.broadcast %cst_36 : f32 to vector<256x256xf32>
    %89 = arith.maximumf %87, %88 : vector<256x256xf32>
    %90 = arith.truncf %89 : vector<256x256xf32> to vector<256x256xbf16>
    %c5_37 = arith.constant 5 : index
    %c0_38 = arith.constant 0 : index
    %c0_39 = arith.constant 0 : index
    %91 = vector.load %arg2[%c5_37, %c0_38, %c0_39] : memref<8x256x256xbf16, #tpu.memory_space<vmem>>, vector<1x256x256xbf16>
    %92 = vector.shape_cast %91 : vector<1x256x256xbf16> to vector<256x256xbf16>
    %cst_40 = arith.constant dense<0.000000e+00> : vector<256x256xf32>
    %93 = tpu.matmul %90, %92, %cst_40 {dimension_numbers = #tpu.dot_dimension_numbers<[1], [0], [0], [1], [0, 0, 1, 1], [], []>} : vector<256x256xbf16>, vector<256x256xbf16>, vector<256x256xf32> -> vector<256x256xf32>
    %c6 = arith.constant 6 : index
    %c0_41 = arith.constant 0 : index
    %94 = vector.load %arg3[%c6, %c0_41] : memref<9x256xf32, #tpu.memory_space<vmem>>, vector<1x256xf32>
    %95 = vector.broadcast %94 : vector<1x256xf32> to vector<256x256xf32>
    %96 = arith.addf %93, %95 : vector<256x256xf32>
    %cst_42 = arith.constant 0.000000e+00 : f32
    %97 = vector.broadcast %cst_42 : f32 to vector<256x256xf32>
    %98 = arith.maximumf %96, %97 : vector<256x256xf32>
    %99 = arith.truncf %98 : vector<256x256xf32> to vector<256x256xbf16>
    %c6_43 = arith.constant 6 : index
    %c0_44 = arith.constant 0 : index
    %c0_45 = arith.constant 0 : index
    %100 = vector.load %arg2[%c6_43, %c0_44, %c0_45] : memref<8x256x256xbf16, #tpu.memory_space<vmem>>, vector<1x256x256xbf16>
    %101 = vector.shape_cast %100 : vector<1x256x256xbf16> to vector<256x256xbf16>
    %cst_46 = arith.constant dense<0.000000e+00> : vector<256x256xf32>
    %102 = tpu.matmul %99, %101, %cst_46 {dimension_numbers = #tpu.dot_dimension_numbers<[1], [0], [0], [1], [0, 0, 1, 1], [], []>} : vector<256x256xbf16>, vector<256x256xbf16>, vector<256x256xf32> -> vector<256x256xf32>
    %c7 = arith.constant 7 : index
    %c0_47 = arith.constant 0 : index
    %103 = vector.load %arg3[%c7, %c0_47] : memref<9x256xf32, #tpu.memory_space<vmem>>, vector<1x256xf32>
    %104 = vector.broadcast %103 : vector<1x256xf32> to vector<256x256xf32>
    %105 = arith.addf %102, %104 : vector<256x256xf32>
    %cst_48 = arith.constant 0.000000e+00 : f32
    %106 = vector.broadcast %cst_48 : f32 to vector<256x256xf32>
    %107 = arith.maximumf %105, %106 : vector<256x256xf32>
    %c0_49 = arith.constant 0 : index
    %c0_50 = arith.constant 0 : index
    %108 = vector.load %arg6[%c0_49, %c0_50] : memref<1x256xf32, #tpu.memory_space<vmem>>, vector<1x256xf32>
    %109 = vector.broadcast %108 : vector<1x256xf32> to vector<256x256xf32>
    %110 = arith.mulf %107, %109 : vector<256x256xf32>
    %cst_51 = arith.constant dense<0.000000e+00> : vector<256xf32>
    %111 = vector.multi_reduction <add>, %110, %cst_51 [1] : vector<256x256xf32> to vector<256xf32>
    %112 = vector.shape_cast %111 : vector<256xf32> to vector<256x1xf32>
    %c0_52 = arith.constant 0 : index
    %c0_53 = arith.constant 0 : index
    %113 = vector.load %arg7[%c0_52, %c0_53] : memref<1x1xf32, #tpu.memory_space<vmem>>, vector<1x1xf32>
    %114 = vector.broadcast %113 : vector<1x1xf32> to vector<256x1xf32>
    %115 = arith.addf %112, %114 : vector<256x1xf32>
    %116 = math.absf %115 : vector<256x1xf32>
    %117 = arith.truncf %107 : vector<256x256xf32> to vector<256x256xbf16>
    %c7_54 = arith.constant 7 : index
    %c0_55 = arith.constant 0 : index
    %c0_56 = arith.constant 0 : index
    %118 = vector.load %arg2[%c7_54, %c0_55, %c0_56] : memref<8x256x256xbf16, #tpu.memory_space<vmem>>, vector<1x256x256xbf16>
    %119 = vector.shape_cast %118 : vector<1x256x256xbf16> to vector<256x256xbf16>
    %cst_57 = arith.constant dense<0.000000e+00> : vector<256x256xf32>
    %120 = tpu.matmul %117, %119, %cst_57 {dimension_numbers = #tpu.dot_dimension_numbers<[1], [0], [0], [1], [0, 0, 1, 1], [], []>} : vector<256x256xbf16>, vector<256x256xbf16>, vector<256x256xf32> -> vector<256x256xf32>
    %c8 = arith.constant 8 : index
    %c0_58 = arith.constant 0 : index
    %121 = vector.load %arg3[%c8, %c0_58] : memref<9x256xf32, #tpu.memory_space<vmem>>, vector<1x256xf32>
    %122 = vector.broadcast %121 : vector<1x256xf32> to vector<256x256xf32>
    %123 = arith.addf %120, %122 : vector<256x256xf32>
    %124 = arith.truncf %123 : vector<256x256xf32> to vector<256x256xbf16>
    %c0_59 = arith.constant 0 : index
    %c0_60 = arith.constant 0 : index
    %125 = vector.load %arg8[%c0_59, %c0_60] : memref<256x128xbf16, #tpu.memory_space<vmem>>, vector<256x128xbf16>
    %cst_61 = arith.constant dense<0.000000e+00> : vector<256x128xf32>
    %126 = tpu.matmul %124, %125, %cst_61 {dimension_numbers = #tpu.dot_dimension_numbers<[1], [0], [0], [1], [0, 0, 1, 1], [], []>} : vector<256x256xbf16>, vector<256x128xbf16>, vector<256x128xf32> -> vector<256x128xf32>
    %c0_62 = arith.constant 0 : index
    %c0_63 = arith.constant 0 : index
    %127 = vector.load %arg9[%c0_62, %c0_63] : memref<3x128xf32, #tpu.memory_space<vmem>>, vector<3x128xf32>
    %128 = vector.extract_strided_slice %2 {offsets = [0, 0], sizes = [256, 1], strides = [1, 1]} : vector<256x3xf32> to vector<256x1xf32>
    %129 = vector.extract_strided_slice %127 {offsets = [0, 0], sizes = [1, 128], strides = [1, 1]} : vector<3x128xf32> to vector<1x128xf32>
    %130 = vector.broadcast %128 : vector<256x1xf32> to vector<256x128xf32>
    %131 = vector.broadcast %129 : vector<1x128xf32> to vector<256x128xf32>
    %132 = arith.mulf %130, %131 : vector<256x128xf32>
    %133 = vector.extract_strided_slice %2 {offsets = [0, 1], sizes = [256, 1], strides = [1, 1]} : vector<256x3xf32> to vector<256x1xf32>
    %134 = vector.extract_strided_slice %127 {offsets = [1, 0], sizes = [1, 128], strides = [1, 1]} : vector<3x128xf32> to vector<1x128xf32>
    %135 = vector.broadcast %133 : vector<256x1xf32> to vector<256x128xf32>
    %136 = vector.broadcast %134 : vector<1x128xf32> to vector<256x128xf32>
    %137 = arith.mulf %135, %136 : vector<256x128xf32>
    %138 = arith.addf %132, %137 : vector<256x128xf32>
    %139 = vector.extract_strided_slice %2 {offsets = [0, 2], sizes = [256, 1], strides = [1, 1]} : vector<256x3xf32> to vector<256x1xf32>
    %140 = vector.extract_strided_slice %127 {offsets = [2, 0], sizes = [1, 128], strides = [1, 1]} : vector<3x128xf32> to vector<1x128xf32>
    %141 = vector.broadcast %139 : vector<256x1xf32> to vector<256x128xf32>
    %142 = vector.broadcast %140 : vector<1x128xf32> to vector<256x128xf32>
    %143 = arith.mulf %141, %142 : vector<256x128xf32>
    %144 = arith.addf %138, %143 : vector<256x128xf32>
    %145 = arith.addf %126, %144 : vector<256x128xf32>
    %c0_64 = arith.constant 0 : index
    %c0_65 = arith.constant 0 : index
    %146 = vector.load %arg10[%c0_64, %c0_65] : memref<1x128xf32, #tpu.memory_space<vmem>>, vector<1x128xf32>
    %147 = vector.broadcast %146 : vector<1x128xf32> to vector<256x128xf32>
    %148 = arith.addf %145, %147 : vector<256x128xf32>
    %cst_66 = arith.constant 0.000000e+00 : f32
    %149 = vector.broadcast %cst_66 : f32 to vector<256x128xf32>
    %150 = arith.maximumf %148, %149 : vector<256x128xf32>
    %151 = arith.truncf %150 : vector<256x128xf32> to vector<256x128xbf16>
    %c0_67 = arith.constant 0 : index
    %c0_68 = arith.constant 0 : index
    %152 = vector.load %arg11[%c0_67, %c0_68] : memref<128x3xbf16, #tpu.memory_space<vmem>>, vector<128x3xbf16>
    %cst_69 = arith.constant dense<0.000000e+00> : vector<256x3xf32>
    %153 = tpu.matmul %151, %152, %cst_69 {dimension_numbers = #tpu.dot_dimension_numbers<[1], [0], [0], [1], [0, 0, 1, 1], [], []>} : vector<256x128xbf16>, vector<128x3xbf16>, vector<256x3xf32> -> vector<256x3xf32>
    %c0_70 = arith.constant 0 : index
    %c0_71 = arith.constant 0 : index
    %154 = vector.load %arg12[%c0_70, %c0_71] : memref<1x3xf32, #tpu.memory_space<vmem>>, vector<1x3xf32>
    %155 = vector.broadcast %154 : vector<1x3xf32> to vector<256x3xf32>
    %156 = arith.addf %153, %155 : vector<256x3xf32>
    %157 = arith.negf %156 : vector<256x3xf32>
    %158 = math.exp %157 : vector<256x3xf32>
    %cst_72 = arith.constant 1.000000e+00 : f32
    %159 = vector.broadcast %cst_72 : f32 to vector<256x3xf32>
    %160 = arith.addf %159, %158 : vector<256x3xf32>
    %161 = arith.divf %159, %160 : vector<256x3xf32>
    %c0_73 = arith.constant 0 : index
    %c0_74 = arith.constant 0 : index
    %162 = vector.load %arg13[%c0_73, %c0_74] : memref<256x3xf32, #tpu.memory_space<vmem>>, vector<256x3xf32>
    tpu.vector_store %arg13[%c0_73, %c0_74], %161 {strides = array<i32>} : memref<256x3xf32, #tpu.memory_space<vmem>>, vector<256x3xf32>,
    %c0_75 = arith.constant 0 : index
    %c0_76 = arith.constant 0 : index
    %163 = vector.load %arg14[%c0_75, %c0_76] : memref<256x1xf32, #tpu.memory_space<vmem>>, vector<256x1xf32>
    tpu.vector_store %arg14[%c0_75, %c0_76], %116 {strides = array<i32>} : memref<256x1xf32, #tpu.memory_space<vmem>>, vector<256x1xf32>,
    return
  }
  func.func @transform_0(%arg0: i32) -> (i32, i32) {
    %c0_i32 = arith.constant 0 : i32
    %c0_i32_0 = arith.constant 0 : i32
    return %arg0, %c0_i32 : i32, i32
  }
  func.func @transform_1(%arg0: i32) -> (i32, i32, i32) {
    %c0_i32 = arith.constant 0 : i32
    %c0_i32_0 = arith.constant 0 : i32
    %c0_i32_1 = arith.constant 0 : i32
    %c0_i32_2 = arith.constant 0 : i32
    return %c0_i32, %c0_i32_0, %c0_i32_1 : i32, i32, i32
  }
  func.func @transform_2(%arg0: i32) -> (i32, i32) {
    %c0_i32 = arith.constant 0 : i32
    %c0_i32_0 = arith.constant 0 : i32
    %c0_i32_1 = arith.constant 0 : i32
    return %c0_i32, %c0_i32_0 : i32, i32
  }
  func.func @transform_3(%arg0: i32) -> (i32, i32) {
    %c0_i32 = arith.constant 0 : i32
    %c0_i32_0 = arith.constant 0 : i32
    %c0_i32_1 = arith.constant 0 : i32
    return %c0_i32, %c0_i32_0 : i32, i32
  }
  func.func @transform_4(%arg0: i32) -> (i32, i32) {
    %c0_i32 = arith.constant 0 : i32
    %c0_i32_0 = arith.constant 0 : i32
    %c0_i32_1 = arith.constant 0 : i32
    return %c0_i32, %c0_i32_0 : i32, i32
  }
  func.func @transform_5(%arg0: i32) -> (i32, i32) {
    %c0_i32 = arith.constant 0 : i32
    %c0_i32_0 = arith.constant 0 : i32
    %c0_i32_1 = arith.constant 0 : i32
    return %c0_i32, %c0_i32_0 : i32, i32
  }
  func.func @transform_6(%arg0: i32) -> (i32, i32) {
    %c0_i32 = arith.constant 0 : i32
    %c0_i32_0 = arith.constant 0 : i32
    %c0_i32_1 = arith.constant 0 : i32
    return %c0_i32, %c0_i32_0 : i32, i32
  }
  func.func @transform_7(%arg0: i32) -> (i32, i32) {
    %c0_i32 = arith.constant 0 : i32
    %c0_i32_0 = arith.constant 0 : i32
    %c0_i32_1 = arith.constant 0 : i32
    return %c0_i32, %c0_i32_0 : i32, i32
  }
  func.func @transform_8(%arg0: i32) -> (i32, i32) {
    %c0_i32 = arith.constant 0 : i32
    %c0_i32_0 = arith.constant 0 : i32
    %c0_i32_1 = arith.constant 0 : i32
    return %c0_i32, %c0_i32_0 : i32, i32
  }
  func.func @transform_9(%arg0: i32) -> (i32, i32) {
    %c0_i32 = arith.constant 0 : i32
    %c0_i32_0 = arith.constant 0 : i32
    %c0_i32_1 = arith.constant 0 : i32
    return %c0_i32, %c0_i32_0 : i32, i32
  }
  func.func @transform_10(%arg0: i32) -> (i32, i32) {
    %c0_i32 = arith.constant 0 : i32
    %c0_i32_0 = arith.constant 0 : i32
    %c0_i32_1 = arith.constant 0 : i32
    return %c0_i32, %c0_i32_0 : i32, i32
  }
  func.func @transform_11(%arg0: i32) -> (i32, i32) {
    %c0_i32 = arith.constant 0 : i32
    %c0_i32_0 = arith.constant 0 : i32
    %c0_i32_1 = arith.constant 0 : i32
    return %c0_i32, %c0_i32_0 : i32, i32
  }
  func.func @transform_12(%arg0: i32) -> (i32, i32) {
    %c0_i32 = arith.constant 0 : i32
    %c0_i32_0 = arith.constant 0 : i32
    return %arg0, %c0_i32 : i32, i32
  }
  func.func @transform_13(%arg0: i32) -> (i32, i32) {
    %c0_i32 = arith.constant 0 : i32
    %c0_i32_0 = arith.constant 0 : i32
    return %arg0, %c0_i32 : i32, i32
  }
}

</mosaic_0001>

<bundles_post_ra>
// kernel: squeeze.1
= control target key start
LH: loop header
LB: loop body
LE: loop exit
PB: predicated region body
PF: predicated region fallthrough
CT: control target
= control target key end

     0   :  { %s85_s0 = inlined_call_operand.vmem [shape: f32[64], index: 0, kind: input, shape index: {}]   ;;  %s86_s1 = inlined_call_operand.hbm [shape: f32[2,32], index: 1, kind: output, shape index: {}]  }
   0x1   :  { %v5_v0 = vld [vmem:[%s85_s0] sm:$0x1] }
   0x2   :  { %2 = vsyncpa [#allocation1], 0  ;;  %6 = vst [vmem:[#allocation3] sm:$0x1] %v5_v0  ;;  %vm8_vm0 = vcmask 261120   ;;  %s58_s0 = smov 96  }
   0x3   :  { %s59_s8 = smov [#allocation0]  }
   0x4   :  { %s26_s9 = sshll.u32 %s59_s8, 4  ;;  %s27_s9 = int_to_ptr.vmem [resolvable:$true] %s26_s9 }
   0x5   :  { %s34_s10 = scalar_lea.vmem %s27_s9, 32  ;;  %p39_p1 = scmp.lt.s32.totalorder %s27_s9, %s27_s9 }
   0x6   :  { %p35_p0 = scmp.ne.s32.totalorder %s27_s9, %s34_s10  ;;  %p40_p2 = scmp.lt.s32.totalorder %s34_s10, %s34_s10 }
   0x8   :  { %p41_p3 = por %p40_p2, %p39_p1 }
   0x9   :  { %v10_v1 = vld [vmem:[#allocation3] sm:$0x1]  }
   0xa   :  { %v7_v2 = vld [vmem:[#allocation3] sm:$0x1]   ;;  %11 = vrot.lane.b32.xlu0 %v10_v1, %s58_s0  ;;  %p42_p4 = pnand %p41_p3, %p35_p0 }
   0xb   :  { %9 = vst.msk [vmem:[#allocation2] sm:$0x1] %vm8_vm0, %v7_v2  }
  0x7c   :  { %v12_v3 = vpop.permute.xlu0 %11  }
  0x7d   :  { %15 = vst.msk [vmem:[#allocation2 + $0x1] sm:$0x1] %vm8_vm0, %v12_v3  }
  0x84   :  { %v19_v4 = vld [vmem:[#allocation2] sm:$0x3] }
  0x85   :  { %21 = vst [vmem:[#allocation0] sm:$0x3] %v19_v4 }
  0x86   :  { %45 = shalt.err (!%p42_p4)
}
  0x87   :  { %s46_s13 = scalar_lea.hbm %s86_s1, 32 }
  0x88   :  { %p47_p5 = scmp.ne.s32.totalorder %s86_s1, %s46_s13  ;;  %p50_p6 = scmp.lt.u32.totalorder %s46_s13, %s86_s1 }
  0x8a   :  { %p52_p7 = pnand %p50_p6, %p47_p5 }
  0x8c   :  { %55 = shalt.err (!%p52_p7)
}
  0x8d   :  { %29 = dma.vmem_to_hbm [thread:$0]  %s27_s9, 32, %s86_s1, [#allocation1]  }
  0x8e   :  { %56 = dma.done.wait [#allocation1], 32  }
  0x8f   :  { %57 = vsyncadd [#allocation1], 4294967264 }
  0x90   :  { %31 = vsyncpa [#allocation1], 1 }

// kernel: mlp_net_forward.1
= control target key start
LH: loop header
LB: loop body
LE: loop exit
PB: predicated region body
PF: predicated region fallthrough
CT: control target
= control target key end

     0   :  { %v12472_v0 = vmov 2   ;;  %v12468_v1 = vmov 1   ;;  %v12470_v12 = vmov 0   ;;  %v240_v63 = vlaneseq  ;;  %s12451_s0 = inlined_call_operand.vmem [shape: f32[256,6], index: 0, kind: input, shape index: {}]   ;;  %s12452_s1 = inlined_call_operand.vmem [shape: bf16[8,256,256], index: 1, kind: input, shape index: {}]   ;;  %s12453_s3 = inlined_call_operand.vmem [shape: f32[3,256], index: 3, kind: input, shape index: {}]   ;;  %s12454_s2 = inlined_call_operand.vmem [shape: f32[9,256], index: 2, kind: input, shape index: {}]   ;;  %s12455_s4 = inlined_call_operand.vmem [shape: f32[3,256], index: 4, kind: input, shape index: {}]   ;;  %s12456_s8 = inlined_call_operand.vmem [shape: f32[3,128], index: 8, kind: input, shape index: {}]   ;;  %s12457_s5 = inlined_call_operand.vmem [shape: f32[1,256], index: 5, kind: input, shape index: {}]   ;;  %s12458_s6 = inlined_call_operand.<no memory space> [shape: f32[1,1], index: 6, kind: input, shape index: {}]   ;;  %s12459_s7 = inlined_call_operand.vmem [shape: bf16[256,128], index: 7, kind: input, shape index: {}]   ;;  %s12460_s13 = inlined_call_operand.vmem [shape: f32[256,1], index: 13, kind: output, shape index: {1}]   ;;  %s12461_s10 = inlined_call_operand.vmem [shape: bf16[128,3], index: 10, kind: input, shape index: {}]   ;;  %s12462_s9 = inlined_call_operand.vmem [shape: f32[1,128], index: 9, kind: input, shape index: {}]   ;;  %s12463_s11 = inlined_call_operand.vmem [shape: f32[1,3], index: 11, kind: input, shape index: {}]   ;;  %s12464_s12 = inlined_call_operand.vmem [shape: f32[256,3], index: 12, kind: output, shape index: {0}]  }
   0x1   :  { %7805 = vset.pattern.permute.xlu0 %v12472_v0  ;;  %7804 = vset.pattern.permute.xlu1 %v12468_v1  ;;  %v46_v2 = vld [vmem:[%s12451_s0] sm:$0xff]  ;;  %v48_v3 = vld [vmem:[%s12451_s0 + $0x10] sm:$0xff]  ;;  %v47_v4 = vld [vmem:[%s12451_s0 + $0x8] sm:$0xff]  ;;  %vm7010_vm0 = vcmask 7168   ;;  %vm6977_vm1 = vcmask 23552  }
   0x2   :  { %597 = vperm.xlu0 %7805, %v46_v2   ;;  %323 = vperm.xlu1 %7804, %v46_v2   ;;  %v8568_v5 = vld [vmem:[%s12451_s0 + $0x20] sm:$0xff]  ;;  %v7904_v8 = vld [vmem:[%s12452_s1 + $0x14] ss:$8 sps:$4 sm:$0xff]   ;;  %v7906_v9 = vld [vmem:[%s12452_s1 + $0x10] ss:$8 sps:$4 sm:$0xff]  }
   0x3   :  { %v7901_v6 = vld [vmem:[%s12452_s1 + $0x4] ss:$8 sps:$4 sm:$0xff]   ;;  %v7903_v7 = vld [vmem:[%s12452_s1] ss:$8 sps:$4 sm:$0xff]   ;;  %v7910_v13 = vld [vmem:[%s12452_s1 + $0x34] ss:$8 sps:$4 sm:$0xff]  }
   0x4   :  { %1247 = vmatprep.subr.bf16.mxu0 %v7901_v6  ;;  %v7907_v10 = vld [vmem:[%s12452_s1 + $0x24] ss:$8 sps:$4 sm:$0xff]   ;;  %v7909_v11 = vld [vmem:[%s12452_s1 + $0x20] ss:$8 sps:$4 sm:$0xff]   ;;  %v7912_v14 = vld [vmem:[%s12452_s1 + $0x30] ss:$8 sps:$4 sm:$0xff]  }
   0x5   :  { %1248 = vmatpush1.bf16.msra.mxu0 %v7903_v7  ;;  %v7913_v15 = vld [vmem:[%s12452_s1 + $0x44] ss:$8 sps:$4 sm:$0xff]   ;;  %v49_v16 = vld [vmem:[%s12451_s0 + $0x18] sm:$0xff]  ;;  %v7915_v17 = vld [vmem:[%s12452_s1 + $0x40] ss:$8 sps:$4 sm:$0xff]  }
   0x6   :  { %605 = vperm.xlu0 %7805, %v48_v3   ;;  %327 = vperm.xlu1 %7804, %v47_v4   ;;  %v7916_v18 = vld [vmem:[%s12452_s1 + $0x54] ss:$8 sps:$4 sm:$0xff]   ;;  %v51_v19 = vld [vmem:[%s12451_s0 + $0x28] sm:$0xff]  ;;  %v7918_v20 = vld [vmem:[%s12452_s1 + $0x50] ss:$8 sps:$4 sm:$0xff]  }
   0x7   :  { %1249 = vmatprep.subr.bf16.mxu0 %v7904_v8  ;;  %v7919_v21 = vld [vmem:[%s12452_s1 + $0x64] ss:$8 sps:$4 sm:$0xff]   ;;  %v8623_v22 = vld [vmem:[%s12451_s0 + $0x38] sm:$0xff]  ;;  %v7921_v23 = vld [vmem:[%s12452_s1 + $0x60] ss:$8 sps:$4 sm:$0xff]  }
   0x8   :  { %v7922_v24 = vld [vmem:[%s12452_s1 + $0x74] ss:$8 sps:$4 sm:$0xff]   ;;  %v8635_v25 = vld [vmem:[%s12451_s0 + $0x48] sm:$0xff]  ;;  %v7924_v26 = vld [vmem:[%s12452_s1 + $0x70] ss:$8 sps:$4 sm:$0xff]  }
   0x9   :  { %1250 = vmatpush1.bf16.msra.mxu0 %v7906_v9  ;;  %v7925_v27 = vld [vmem:[%s12452_s1 + $0x84] ss:$8 sps:$4 sm:$0xff]   ;;  %v8648_v28 = vld [vmem:[%s12451_s0 + $0x58] sm:$0xff]  ;;  %v7927_v29 = vld [vmem:[%s12452_s1 + $0x80] ss:$8 sps:$4 sm:$0xff]  }
   0xa   :  { %613 = vperm.xlu0 %7805, %v8568_v5   ;;  %7806 = vset.pattern.permute.xlu1 %v12472_v0  ;;  %v7928_v30 = vld [vmem:[%s12452_s1 + $0x94] ss:$8 sps:$4 sm:$0xff]   ;;  %v8661_v31 = vld [vmem:[%s12451_s0 + $0x68] sm:$0xff]  ;;  %v7930_v32 = vld [vmem:[%s12452_s1 + $0x90] ss:$8 sps:$4 sm:$0xff]  }
   0xb   :  { %601 = vperm.xlu1 %7806, %v47_v4   ;;  %1251 = vmatprep.subr.bf16.mxu0 %v7907_v10  ;;  %v7931_v33 = vld [vmem:[%s12452_s1 + $0xa4] ss:$8 sps:$4 sm:$0xff]   ;;  %v8675_v34 = vld [vmem:[%s12451_s0 + $0x78] sm:$0xff]  ;;  %v7933_v35 = vld [vmem:[%s12452_s1 + $0xa0] ss:$8 sps:$4 sm:$0xff]  }
   0xc   :  { %v7934_v36 = vld [vmem:[%s12452_s1 + $0xb4] ss:$8 sps:$4 sm:$0xff]   ;;  %v7936_v37 = vld [vmem:[%s12452_s1 + $0xb0] ss:$8 sps:$4 sm:$0xff]   ;;  %v7937_v39 = vld [vmem:[%s12452_s1 + $0xc4] ss:$8 sps:$4 sm:$0xff]  }
   0xd   :  { %1252 = vmatpush1.bf16.msra.mxu0 %v7909_v11  ;;  %v52_v38 = vld [vmem:[%s12451_s0 + $0x30] sm:$0xff]  ;;  %v7939_v40 = vld [vmem:[%s12452_s1 + $0xc0] ss:$8 sps:$4 sm:$0xff]   ;;  %v7943_v44 = vld [vmem:[%s12452_s1 + $0xe4] ss:$8 sps:$4 sm:$0xff]  }
   0xe   :  { %7812 = vset.pattern.permute.xlu0 %v12470_v12  ;;  %1253 = vmatprep.subr.bf16.mxu0 %v7910_v13  ;;  %v7940_v41 = vld [vmem:[%s12452_s1 + $0xd4] ss:$8 sps:$4 sm:$0xff]   ;;  %v54_v42 = vld [vmem:[%s12451_s0 + $0x40] sm:$0xff]  ;;  %v7942_v43 = vld [vmem:[%s12452_s1 + $0xd0] ss:$8 sps:$4 sm:$0xff]  }
   0xf   :  { %81 = vperm.xlu0 %7812, %v46_v2   ;;  %7807 = vset.pattern.permute.xlu1 %v12470_v12  ;;  %v56_v45 = vld [vmem:[%s12451_s0 + $0x50] sm:$0xff]  ;;  %v7945_v46 = vld [vmem:[%s12452_s1 + $0xe0] ss:$8 sps:$4 sm:$0xff]   ;;  %v8767_v55 = vld [vmem:[%s12451_s0 + $0x98] sm:$0xff]  ;;  %v8826_v2 = vshrl.u32 %v240_v63, 7 }
  0x10   :  { %91 = vperm.xlu1 %7807, %v48_v3   ;;  %v7946_v47 = vld [vmem:[%s12452_s1 + $0xf4] ss:$8 sps:$4 sm:$0xff]   ;;  %v58_v48 = vld [vmem:[%s12451_s0 + $0x60] sm:$0xff]  ;;  %v7948_v49 = vld [vmem:[%s12452_s1 + $0xf0] ss:$8 sps:$4 sm:$0xff]  }
  0x11   :  { %1254 = vmatpush1.bf16.msra.mxu0 %v7912_v14  ;;  %v8732_v50 = vld [vmem:[%s12451_s0 + $0x70] sm:$0xff]  ;;  %v8740_v51 = vld [vmem:[%s12451_s0 + $0x80] sm:$0xff]  ;;  %v8760_v54 = vld [vmem:[%s12451_s0 + $0x88] sm:$0xff]  ;;  %v8841_v7 = vsub.s32 0, %v8826_v2  ;;  %v12467_v8 = vsub.s32 4, %v8826_v2  ;;  %v12466_v9 = vsub.s32 5, %v8826_v2 }
  0x12   :  { %1255 = vmatprep.subr.bf16.mxu0 %v7913_v15  ;;  %v8747_v52 = vld [vmem:[%s12451_s0 + $0x90] sm:$0xff]  ;;  %v8752_v53 = vld [vmem:[%s12451_s0 + $0xa0] sm:$0xff]  ;;  %v8775_v56 = vld [vmem:[%s12451_s0 + $0xa8] sm:$0xff]  ;;  %v12465_v11 = vsub.s32 6, %v8826_v2  ;;  %v8852_v15 = vsub.s32 2, %v8826_v2 }
  0x13   :  { %86 = vperm.xlu0 %7812, %v47_v4   ;;  %v8782_v57 = vld [vmem:[%s12451_s0 + $0xb8] sm:$0xff]  ;;  %v8790_v58 = vld [vmem:[%s12451_s0 + $0xc8] sm:$0xff]  ;;  %v8805_v60 = vld [vmem:[%s12451_s0 + $0xb0] sm:$0xff] }
  0x14   :  { %7808 = vset.pattern.permute.xlu1 %v12468_v1  ;;  %v8795_v59 = vld [vmem:[%s12451_s0 + $0xd8] sm:$0xff]  ;;  %v8813_v61 = vld [vmem:[%s12451_s0 + $0xc0] sm:$0xff]  ;;  %v8820_v62 = vld [vmem:[%s12451_s0 + $0xd0] sm:$0xff] }
  0x15   :  { %331 = vperm.xlu1 %7808, %v48_v3   ;;  %1256 = vmatpush1.bf16.msra.mxu0 %v7915_v17  ;;  %v78_v6 = vld [vmem:[%s12453_s3] sm:$0x77] }
  0x16   :  { %1257 = vmatprep.subr.bf16.mxu0 %v7916_v18  ;;  %v247_v17 = vrot.slane %v78_v6, %v12467_v8  ;;  %v457_v18 = vrot.slane %v78_v6, %v12466_v9 }
  0x17   :  { %96 = vperm.xlu0 %7812, %v49_v16  }
  0x19   :  { %335 = vperm.xlu1 %7808, %v49_v16   ;;  %1258 = vmatpush1.bf16.msra.mxu0 %v7918_v20  ;;  %v731_v20 = vrot.slane %v78_v6, %v12465_v11 }
  0x1a   :  { %1259 = vmatprep.subr.bf16.mxu0 %v7919_v21 }
  0x1b   :  { %106 = vperm.xlu0 %7812, %v51_v19  }
  0x1d   :  { %7809 = vset.pattern.permute.xlu1 %v12472_v0  ;;  %1260 = vmatpush1.bf16.msra.mxu0 %v7921_v23  ;;  %v727_v23 = vrot.slane %v78_v6, %v8852_v15 }
  0x1e   :  { %609 = vperm.xlu1 %7809, %v49_v16   ;;  %1261 = vmatprep.subr.bf16.mxu0 %v7922_v24  ;;  %v243_v16 = vrot.slane %v78_v6, %v8841_v7 }
  0x1f   :  { %116 = vperm.xlu0 %7812, %v8623_v22  }
  0x21   :  { %1262 = vmatpush1.bf16.msra.mxu0 %v7924_v26  ;;  %v8882_v26 = vrot.slane %v247_v17, %v8841_v7 }
  0x22   :  { %7810 = vset.pattern.permute.xlu1 %v12470_v12  ;;  %1263 = vmatprep.subr.bf16.mxu0 %v7925_v27 }
  0x23   :  { %101 = vperm.xlu1 %7810, %v8568_v5   ;;  %126 = vperm.xlu0 %7812, %v8635_v25  }
  0x25   :  { %1264 = vmatpush1.bf16.msra.mxu0 %v7927_v29 }
  0x26   :  { %1265 = vmatprep.subr.bf16.mxu0 %v7928_v30  ;;  %v8894_v30 = vrot.slane %v727_v23, %v8852_v15 }
  0x27   :  { %7811 = vset.pattern.permute.xlu1 %v12468_v1  ;;  %136 = vperm.xlu0 %7812, %v8648_v28  }
  0x28   :  { %339 = vperm.xlu1 %7811, %v8568_v5   ;;  %v8834_v5 = vsub.s32 1, %v8826_v2 }
  0x29   :  { %1266 = vmatpush1.bf16.msra.mxu0 %v7930_v32 }
  0x2a   :  { %1267 = vmatprep.subr.bf16.mxu0 %v7931_v33  ;;  %v453_v14 = vrot.slane %v78_v6, %v8834_v5  ;;  %v8885_v27 = vrot.slane %v457_v18, %v8834_v5 }
  0x2b   :  { %146 = vperm.xlu0 %7812, %v8661_v31  }
  0x2c   :  { %343 = vperm.xlu1 %7811, %v51_v19  }
  0x2d   :  { %1268 = vmatpush1.bf16.msra.mxu0 %v7933_v35 }
  0x2e   :  { %1269 = vmatprep.subr.bf16.mxu0 %v7934_v36 }
  0x2f   :  { %156 = vperm.xlu0 %7812, %v8675_v34  }
  0x30   :  { %7813 = vset.pattern.permute.xlu1 %v12472_v0 }
  0x31   :  { %617 = vperm.xlu1 %7813, %v51_v19   ;;  %1270 = vmatpush1.bf16.msra.mxu0 %v7936_v37  ;;  %v8864_v19 = vld [vmem:[%s12451_s0 + $0xe0] sm:$0xff] }
  0x32   :  { %1271 = vmatprep.subr.bf16.mxu0 %v7937_v39 }
  0x33   :  { %7827 = vset.pattern.permute.xlu0 %v12472_v0 }
  0x34   :  { %621 = vperm.xlu0 %7827, %v52_v38  }
  0x35   :  { %7814 = vset.pattern.permute.xlu1 %v12470_v12  ;;  %1272 = vmatpush1.bf16.msra.mxu0 %v7939_v40  ;;  %v8918_v40 = vld [vmem:[%s12451_s0 + $0xe8] sm:$0xff] }
  0x36   :  { %111 = vperm.xlu1 %7814, %v52_v38   ;;  %1273 = vmatprep.subr.bf16.mxu0 %v7940_v41 }
  0x38   :  { %629 = vperm.xlu0 %7827, %v54_v42  }
  0x39   :  { %1274 = vmatpush1.bf16.msra.mxu0 %v7942_v43 }
  0x3a   :  { %7815 = vset.pattern.permute.xlu1 %v12468_v1  ;;  %1275 = vmatprep.subr.bf16.mxu0 %v7943_v44 }
  0x3b   :  { %347 = vperm.xlu1 %7815, %v52_v38   ;;  %v870_v38 = vld [vmem:[%s12454_s2] ss:$8 sm:$0x3] }
  0x3c   :  { %637 = vperm.xlu0 %7827, %v56_v45   ;;  %v8924_v44 = vrot.slane %v870_v38, %v8834_v5 }
  0x3d   :  { %1276 = vmatpush1.bf16.msra.mxu0 %v7945_v46 }
  0x3e   :  { %1277 = vmatprep.subr.bf16.mxu0 %v7946_v47 }
  0x3f   :  { %351 = vperm.xlu1 %7815, %v8623_v22  }
  0x40   :  { %645 = vperm.xlu0 %7827, %v58_v48  }
  0x41   :  { %1278 = vmatpush1.bf16.msra.mxu0 %v7948_v49 }
  0x43   :  { %7816 = vset.pattern.permute.xlu1 %v12472_v0 }
  0x44   :  { %625 = vperm.xlu1 %7816, %v8623_v22   ;;  %653 = vperm.xlu0 %7827, %v8732_v50   ;;  %v8872_v22 = vrot.slane %v453_v14, %v8834_v5 }
  0x48   :  { %7817 = vset.pattern.permute.xlu1 %v12470_v12  ;;  %661 = vperm.xlu0 %7827, %v8740_v51  }
  0x49   :  { %121 = vperm.xlu1 %7817, %v54_v42  }
  0x4c   :  { %669 = vperm.xlu0 %7827, %v8747_v52  }
  0x4d   :  { %7818 = vset.pattern.permute.xlu1 %v12468_v1 }
  0x4e   :  { %355 = vperm.xlu1 %7818, %v54_v42  }
  0x50   :  { %677 = vperm.xlu0 %7827, %v8752_v53  }
  0x52   :  { %359 = vperm.xlu1 %7818, %v8635_v25  }
  0x54   :  { %7838 = vset.pattern.permute.xlu0 %v12470_v12 }
  0x55   :  { %166 = vperm.xlu0 %7838, %v8760_v54  }
  0x56   :  { %7819 = vset.pattern.permute.xlu1 %v12472_v0 }
  0x57   :  { %633 = vperm.xlu1 %7819, %v8635_v25   ;;  %v8879_v25 = vrot.slane %v243_v16, %v8841_v7 }
  0x59   :  { %176 = vperm.xlu0 %7838, %v8767_v55  }
  0x5b   :  { %7820 = vset.pattern.permute.xlu1 %v12470_v12 }
  0x5c   :  { %131 = vperm.xlu1 %7820, %v56_v45  }
  0x5d   :  { %186 = vperm.xlu0 %7838, %v8775_v56  }
  0x60   :  { %7821 = vset.pattern.permute.xlu1 %v12468_v1 }
  0x61   :  { %363 = vperm.xlu1 %7821, %v56_v45   ;;  %196 = vperm.xlu0 %7838, %v8782_v57  }
  0x65   :  { %367 = vperm.xlu1 %7821, %v8648_v28   ;;  %206 = vperm.xlu0 %7838, %v8790_v58  }
  0x69   :  { %7822 = vset.pattern.permute.xlu1 %v12472_v0  ;;  %216 = vperm.xlu0 %7838, %v8795_v59  }
  0x6a   :  { %641 = vperm.xlu1 %7822, %v8648_v28   ;;  %v8889_v28 = vrot.slane %v731_v20, %v8852_v15 }
  0x6d   :  { %7847 = vset.pattern.permute.xlu0 %v12472_v0 }
  0x6e   :  { %7823 = vset.pattern.permute.xlu1 %v12470_v12  ;;  %685 = vperm.xlu0 %7847, %v8805_v60  }
  0x6f   :  { %141 = vperm.xlu1 %7823, %v58_v48  }
  0x72   :  { %693 = vperm.xlu0 %7847, %v8813_v61  }
  0x73   :  { %7824 = vset.pattern.permute.xlu1 %v12468_v1 }
  0x74   :  { %371 = vperm.xlu1 %7824, %v58_v48  }
  0x76   :  { %701 = vperm.xlu0 %7847, %v8820_v62  }
  0x78   :  { %375 = vperm.xlu1 %7824, %v8661_v31  }
  0x7a   :  { %709 = vperm.xlu0 %7847, %v8864_v19  }
  0x7c   :  { %7825 = vset.pattern.permute.xlu1 %v12472_v0 }
  0x7d   :  { %649 = vperm.xlu1 %7825, %v8661_v31  }
  0x7e   :  { %7852 = vset.pattern.permute.xlu0 %v12470_v12 }
  0x7f   :  { %226 = vperm.xlu0 %7852, %v8918_v40  }
  0x81   :  { %7826 = vset.pattern.permute.xlu1 %v12470_v12  ;;  %v8829_v3 = vpop.permute.xlu1 %323  ;;  %v8831_v4 = vpop.permute.xlu0 %597 }
  0x82   :  { %151 = vperm.xlu1 %7826, %v8732_v50   ;;  %v468_v29 = vmul.f32 %v8872_v22, %v8829_v3  ;;  %v469_v36 = vmul.f32 %v8885_v27, %v8829_v3  ;;  %v743_v37 = vmul.f32 %v8889_v28, %v8831_v4  ;;  %v742_v39 = vmul.f32 %v8894_v30, %v8831_v4 }
  0x85   :  { %v8845_v10 = vpop.permute.xlu1 %327  ;;  %v8848_v13 = vpop.permute.xlu0 %605 }
  0x86   :  { %7828 = vset.pattern.permute.xlu1 %v12468_v1  ;;  %v471_v46 = vmul.f32 %v8885_v27, %v8845_v10  ;;  %v470_v48 = vmul.f32 %v8872_v22, %v8845_v10 }
  0x87   :  { %379 = vperm.xlu1 %7828, %v8732_v50   ;;  %v8938_v50 = vrot.slane %v870_v38, %v8841_v7 }
  0x89   :  { %v8869_v21 = vpop.permute.xlu0 %613 }
  0x8a   :  { %v8875_v24 = vpop.permute.xlu1 %601 }
  0x8b   :  { %383 = vperm.xlu1 %7828, %v8675_v34   ;;  %v745_v17 = vmul.f32 %v8889_v28, %v8875_v24  ;;  %v744_v18 = vmul.f32 %v8894_v30, %v8875_v24 }
  0x8e   :  { %v8896_v31 = vpop.permute.xlu0 %81 }
  0x8f   :  { %v258_v32 = vmul.f32 %v8879_v25, %v8896_v31  ;;  %7829 = vset.pattern.permute.xlu1 %v12472_v0  ;;  %v8901_v33 = vpop.permute.xlu1 %91  ;;  %v259_v35 = vmul.f32 %v8882_v26, %v8896_v31 }
  0x90   :  { %657 = vperm.xlu1 %7829, %v8675_v34   ;;  %v262_v20 = vmul.f32 %v8879_v25, %v8901_v33  ;;  %v263_v23 = vmul.f32 %v8882_v26, %v8901_v33 }
  0x91   :  { %v533_v41 = vadd.f32 %v469_v36, %v259_v35  ;;  %v532_v42 = vadd.f32 %v468_v29, %v258_v32  ;;  %v746_v35 = vmul.f32 %v8894_v30, %v8848_v13  ;;  %v747_v36 = vmul.f32 %v8889_v28, %v8848_v13 }
  0x92   :  { %v8921_v43 = vpop.permute.xlu0 %86 }
  0x93   :  { %v260_v45 = vmul.f32 %v8879_v25, %v8921_v43  ;;  %v261_v34 = vmul.f32 %v8882_v26, %v8921_v43  ;;  %v807_v47 = vadd.f32 %v743_v37, %v533_v41  ;;  %v806_v63 = vadd.f32 %v742_v39, %v532_v42 }
  0x94   :  { %7830 = vset.pattern.permute.xlu1 %v12470_v12  ;;  %v8935_v49 = vpop.permute.xlu1 %331 }
  0x95   :  { %v472_v6 = vmul.f32 %v8872_v22, %v8935_v49  ;;  %v473_v14 = vmul.f32 %v8885_v27, %v8935_v49  ;;  %161 = vperm.xlu1 %7830, %v8740_v51   ;;  %v535_v16 = vadd.f32 %v471_v46, %v261_v34  ;;  %v534_v32 = vadd.f32 %v470_v48, %v260_v45 }
  0x96   :  { %v8953_v29 = vpop.permute.xlu0 %96  ;;  %v883_v38 = vadd.f32 %v8924_v44, %v807_v47  ;;  %v882_v42 = vadd.f32 %v8938_v50, %v806_v63 }
  0x97   :  { %v809_v37 = vadd.f32 %v745_v17, %v535_v16  ;;  %v808_v41 = vadd.f32 %v744_v18, %v534_v32  ;;  %v537_v34 = vadd.f32 %v473_v14, %v263_v23  ;;  %v536_v46 = vadd.f32 %v472_v6, %v262_v20  ;;  %v8980_v20 = vld [vmem:[%s12451_s0 + $0xf8] sm:$0xff] }
  0x98   :  { %v8960_v39 = vpop.permute.xlu1 %335  ;;  %v265_v11 = vmul.f32 %v8882_v26, %v8953_v29  ;;  %v264_v47 = vmul.f32 %v8879_v25, %v8953_v29  ;;  %v947_v14 = vmax.f32 %v883_v38, 0.0  ;;  %v946_v23 = vmax.f32 %v882_v42, 0.0  ;;  %236 = vperm.xlu0 %7852, %v8980_v20  }
  0x99   :  { %v475_v45 = vmul.f32 %v8885_v27, %v8960_v39  ;;  %7831 = vset.pattern.permute.xlu1 %v12468_v1  ;;  %v885_v48 = vadd.f32 %v8924_v44, %v809_v37  ;;  %v474_v16 = vmul.f32 %v8872_v22, %v8960_v39  ;;  %v884_v63 = vadd.f32 %v8938_v50, %v808_v41 }
  0x9a   :  { %387 = vperm.xlu1 %7831, %v8740_v51   ;;  %v8975_v6 = vpop.permute.xlu0 %106  ;;  %v811_v18 = vadd.f32 %v747_v36, %v537_v34  ;;  %v810_v37 = vadd.f32 %v746_v35, %v536_v46 }
  0x9b   :  { %v949_v17 = vmax.f32 %v885_v48, 0.0  ;;  %v948_v32 = vmax.f32 %v884_v63, 0.0  ;;  %v539_v8 = vadd.f32 %v475_v45, %v265_v11  ;;  %v538_v42 = vadd.f32 %v474_v16, %v264_v47  ;;  %v8997_v45 = vld [vmem:[%s12451_s0 + $0xf0] sm:$0xff] }
  0x9c   :  { %v887_v35 = vadd.f32 %v8924_v44, %v811_v18  ;;  %v886_v11 = vadd.f32 %v8938_v50, %v810_v37  ;;  %7856 = vset.pattern.permute.xlu0 %v12472_v0 }
  0x9d   :  { %v8983_v9 = vpop.permute.xlu1 %609  ;;  %v1011_v51 = vpack.c.bf16 %v949_v17, %v947_v14  ;;  %v1010_v38 = vpack.c.bf16 %v948_v32, %v946_v23  ;;  %717 = vperm.xlu0 %7856, %v8997_v45  }
  0x9e   :  { %v748_v41 = vmul.f32 %v8894_v30, %v8983_v9  ;;  %v749_v36 = vmul.f32 %v8889_v28, %v8983_v9  ;;  %391 = vperm.xlu1 %7831, %v8760_v54   ;;  %v8990_v34 = vpop.permute.xlu0 %116  ;;  %v951_v14 = vmax.f32 %v887_v35, 0.0  ;;  %v950_v18 = vmax.f32 %v886_v11, 0.0 }
  0x9f   :  { %12610 = vst [vmem:[#allocation3_spill] sm:$0xff] %v8990_v34  ;;  %1279 = vmatprep.mubr.bf16.mxu0 %v1011_v51  ;;  %v750_v35 = vmul.f32 %v8894_v30, %v8869_v21 }
  0xa0   :  { %1280 = vmatmul.mubr.bf16.vlgmr.msra.gmra.mrb[0].mxu0 %v1010_v38  ;;  %v813_v46 = vadd.f32 %v749_v36, %v539_v8  ;;  %v812_v48 = vadd.f32 %v748_v41, %v538_v42 }
  0xa2   :  { %7832 = vset.pattern.permute.xlu1 %v12472_v0  ;;  %v9002_v47 = vpop.permute.xlu1 %101  ;;  %v889_v16 = vadd.f32 %v8924_v44, %v813_v46  ;;  %v888_v8 = vadd.f32 %v8938_v50, %v812_v48  ;;  %v9007_v63 = vpop.permute.xlu0 %126  ;;  %v751_v46 = vmul.f32 %v8889_v28, %v8869_v21 }
  0xa3   :  { %665 = vperm.xlu1 %7832, %v8760_v54   ;;  %12611 = vst [vmem:[#allocation4_spill] sm:$0xff] %v9007_v63  ;;  %v266_v54 = vmul.f32 %v8879_v25, %v9002_v47  ;;  %v267_v38 = vmul.f32 %v8882_v26, %v9002_v47 }
  0xa4   :  { %v953_v17 = vmax.f32 %v889_v16, 0.0  ;;  %v952_v23 = vmax.f32 %v888_v8, 0.0  ;;  %v268_v8 = vmul.f32 %v8879_v25, %v8975_v6 }
  0xa6   :  { %v1013_v32 = vpack.c.bf16 %v953_v17, %v951_v14  ;;  %v1012_v37 = vpack.c.bf16 %v952_v23, %v950_v18  ;;  %v9021_v42 = vpop.permute.xlu0 %136  ;;  %v269_v14 = vmul.f32 %v8882_v26, %v8975_v6 }
  0xa7   :  { %7833 = vset.pattern.permute.xlu1 %v12470_v12  ;;  %v9010_v51 = vpop.permute.xlu1 %339  ;;  %12612 = vst [vmem:[#allocation5_spill] sm:$0xff] %v9021_v42 }
  0xa8   :  { %v476_v41 = vmul.f32 %v8872_v22, %v9010_v51  ;;  %v477_v36 = vmul.f32 %v8885_v27, %v9010_v51  ;;  %171 = vperm.xlu1 %7833, %v8747_v52   ;;  %1289 = vmatprep.mubr.bf16.mxu0 %v1013_v32 }
  0xa9   :  { %1290 = vmatmul.mubr.bf16.gmra.mrb[4].mxu0 %v1012_v37 }
  0xaa   :  { %v541_v11 = vadd.f32 %v477_v36, %v267_v38  ;;  %v540_v16 = vadd.f32 %v476_v41, %v266_v54  ;;  %v9039_v23 = vpop.permute.xlu0 %146 }
  0xab   :  { %v9027_v48 = vpop.permute.xlu1 %343  ;;  %12614 = vst [vmem:[#allocation7_spill] sm:$0xff] %v9039_v23 }
  0xac   :  { %12613 = vst [vmem:[#allocation6_spill] sm:$0xff] %v9027_v48  ;;  %7834 = vset.pattern.permute.xlu1 %v12468_v1  ;;  %v478_v17 = vmul.f32 %v8872_v22, %v9027_v48  ;;  %v479_v18 = vmul.f32 %v8885_v27, %v9027_v48  ;;  %v815_v32 = vadd.f32 %v751_v46, %v541_v11  ;;  %v12616_v46 = vmov 2  }
  0xad   :  { %395 = vperm.xlu1 %7834, %v8747_v52   ;;  %v814_v37 = vadd.f32 %v750_v35, %v540_v16 }
  0xae   :  { %v543_v38 = vadd.f32 %v479_v18, %v269_v14  ;;  %v542_v1 = vadd.f32 %v478_v17, %v268_v8  ;;  %v891_v0 = vadd.f32 %v8924_v44, %v815_v32  ;;  %v9053_v11 = vpop.permute.xlu0 %156 }
  0xaf   :  { %v890_v48 = vadd.f32 %v8938_v50, %v814_v37  ;;  %12618 = vst [vmem:[#allocation10_spill] sm:$0xff] %v9053_v11 }
  0xb0   :  { %v9041_v41 = vpop.permute.xlu1 %617  ;;  %v955_v14 = vmax.f32 %v891_v0, 0.0  ;;  %v7949_v0 = vld [vmem:[%s12452_s1 + $0x104] ss:$8 sps:$4 sm:$0xff]  }
  0xb1   :  { %12615 = vst [vmem:[#allocation8_spill] sm:$0xff] %v9041_v41  ;;  %v752_v36 = vmul.f32 %v8894_v30, %v9041_v41  ;;  %v753_v54 = vmul.f32 %v8889_v28, %v9041_v41  ;;  %399 = vperm.xlu1 %7834, %v8767_v55   ;;  %v954_v17 = vmax.f32 %v890_v48, 0.0  ;;  %v7951_v48 = vld [vmem:[%s12452_s1 + $0x100] ss:$8 sps:$4 sm:$0xff]   ;;  %1742 = vmatprep.subr.bf16.mxu1 %v7949_v0 }
  0xb2   :  { %1743 = vmatpush1.bf16.msra.mxu1 %v7951_v48 }
  0xb3   :  { %v817_v12 = vadd.f32 %v753_v54, %v543_v38  ;;  %v816_v52 = vadd.f32 %v752_v36, %v542_v1  ;;  %v12619_v36 = vmov 0  }
  0xb5   :  { %7835 = vset.pattern.permute.xlu1 %v12616_v46  ;;  %v9051_v35 = vpop.permute.xlu1 %111  ;;  %v893_v16 = vadd.f32 %v8924_v44, %v817_v12  ;;  %v892_v41 = vadd.f32 %v8938_v50, %v816_v52 }
  0xb6   :  { %12617 = vst [vmem:[#allocation9_spill] sm:$0xff] %v9051_v35  ;;  %673 = vperm.xlu1 %7835, %v8767_v55   ;;  %v9066_v55 = vpop.permute.xlu0 %621  ;;  %v271_v38 = vmul.f32 %v8882_v26, %v9051_v35 }
  0xb7   :  { %v957_v8 = vmax.f32 %v893_v16, 0.0  ;;  %v956_v18 = vmax.f32 %v892_v41, 0.0  ;;  %12621 = vst [vmem:[#allocation12_spill] sm:$0xff] %v9066_v55  ;;  %v270_v41 = vmul.f32 %v8879_v25, %v9051_v35  ;;  %v754_v52 = vmul.f32 %v8894_v30, %v9066_v55 }
  0xb8   :  { %v755_v16 = vmul.f32 %v8889_v28, %v9066_v55 }
  0xb9   :  { %v1015_v32 = vpack.c.bf16 %v957_v8, %v955_v14  ;;  %v1014_v1 = vpack.c.bf16 %v956_v18, %v954_v17  ;;  %v12623_v18 = vmov 1  }
  0xba   :  { %7836 = vset.pattern.permute.xlu1 %v12619_v36  ;;  %v9059_v37 = vpop.permute.xlu1 %347 }
  0xbb   :  { %12620 = vst [vmem:[#allocation11_spill] sm:$0xff] %v9059_v37  ;;  %v480_v54 = vmul.f32 %v8872_v22, %v9059_v37  ;;  %v481_v12 = vmul.f32 %v8885_v27, %v9059_v37  ;;  %181 = vperm.xlu1 %7836, %v8752_v53   ;;  %1299 = vmatprep.mubr.bf16.mxu0 %v1015_v32  ;;  %v7955_v37 = vld [vmem:[%s12452_s1 + $0x124] ss:$8 sps:$4 sm:$0xff]  }
  0xbc   :  { %1300 = vmatmul.mubr.bf16.gmra.mrb[8].mxu0 %v1014_v1  ;;  %v272_v32 = vmul.f32 %v8879_v25, %v8990_v34  ;;  %v273_v1 = vmul.f32 %v8882_v26, %v8990_v34 }
  0xbd   :  { %v545_v8 = vadd.f32 %v481_v12, %v271_v38  ;;  %v544_v17 = vadd.f32 %v480_v54, %v270_v41  ;;  %v7952_v54 = vld [vmem:[%s12452_s1 + $0x114] ss:$8 sps:$4 sm:$0xff]   ;;  %v7954_v12 = vld [vmem:[%s12452_s1 + $0x110] ss:$8 sps:$4 sm:$0xff]  }
  0xbe   :  { %v9082_v14 = vpop.permute.xlu1 %351  ;;  %1744 = vmatprep.subr.bf16.mxu1 %v7952_v54 }
  0xbf   :  { %12622 = vst [vmem:[#allocation13_spill] sm:$0xff] %v9082_v14  ;;  %7837 = vset.pattern.permute.xlu1 %v12623_v18  ;;  %v482_v0 = vmul.f32 %v8872_v22, %v9082_v14  ;;  %v483_v35 = vmul.f32 %v8885_v27, %v9082_v14  ;;  %v819_v48 = vadd.f32 %v755_v16, %v545_v8 }
  0xc0   :  { %403 = vperm.xlu1 %7837, %v8752_v53   ;;  %v818_v41 = vadd.f32 %v754_v52, %v544_v17  ;;  %1745 = vmatpush1.bf16.msra.mxu1 %v7954_v12  ;;  %v7957_v52 = vld [vmem:[%s12452_s1 + $0x120] ss:$8 sps:$4 sm:$0xff]  }
  0xc1   :  { %v547_v53 = vadd.f32 %v483_v35, %v273_v1  ;;  %v546_v34 = vadd.f32 %v482_v0, %v272_v32  ;;  %v895_v8 = vadd.f32 %v8924_v44, %v819_v48  ;;  %1746 = vmatprep.subr.bf16.mxu1 %v7955_v37 }
  0xc2   :  { %v894_v54 = vadd.f32 %v8938_v50, %v818_v41 }
  0xc3   :  { %v9100_v38 = vpop.permute.xlu1 %625  ;;  %v959_v37 = vmax.f32 %v895_v8, 0.0  ;;  %v7961_v8 = vld [vmem:[%s12452_s1 + $0x144] ss:$8 sps:$4 sm:$0xff]  }
  0xc4   :  { %v756_v55 = vmul.f32 %v8894_v30, %v9100_v38  ;;  %v757_v14 = vmul.f32 %v8889_v28, %v9100_v38  ;;  %407 = vperm.xlu1 %7837, %v8775_v56   ;;  %1747 = vmatpush1.bf16.msra.mxu1 %v7957_v52  ;;  %v958_v0 = vmax.f32 %v894_v54, 0.0 }
  0xc6   :  { %v821_v16 = vadd.f32 %v757_v14, %v547_v53  ;;  %v820_v17 = vadd.f32 %v756_v55, %v546_v34  ;;  %v7958_v14 = vld [vmem:[%s12452_s1 + $0x134] ss:$8 sps:$4 sm:$0xff]   ;;  %v7960_v34 = vld [vmem:[%s12452_s1 + $0x130] ss:$8 sps:$4 sm:$0xff]  }
  0xc7   :  { %1748 = vmatprep.subr.bf16.mxu1 %v7958_v14 }
  0xc8   :  { %7839 = vset.pattern.permute.xlu1 %v12616_v46  ;;  %v9116_v35 = vpop.permute.xlu1 %121  ;;  %v897_v32 = vadd.f32 %v8924_v44, %v821_v16  ;;  %v896_v1 = vadd.f32 %v8938_v50, %v820_v17  ;;  %1749 = vmatpush1.bf16.msra.mxu1 %v7960_v34  ;;  %v9135_v16 = vpop.permute.xlu0 %629  ;;  %v7963_v17 = vld [vmem:[%s12452_s1 + $0x140] ss:$8 sps:$4 sm:$0xff]  }
  0xc9   :  { %681 = vperm.xlu1 %7839, %v8775_v56   ;;  %12624 = vst [vmem:[#allocation14_spill] sm:$0xff] %v9135_v16  ;;  %v274_v54 = vmul.f32 %v8879_v25, %v9116_v35  ;;  %1750 = vmatprep.subr.bf16.mxu1 %v7961_v8  ;;  %v758_v14 = vmul.f32 %v8894_v30, %v9135_v16 }
  0xca   :  { %v961_v55 = vmax.f32 %v897_v32, 0.0  ;;  %v960_v12 = vmax.f32 %v896_v1, 0.0  ;;  %v275_v32 = vmul.f32 %v8882_v26, %v9116_v35  ;;  %v7964_v1 = vld [vmem:[%s12452_s1 + $0x154] ss:$8 sps:$4 sm:$0xff]   ;;  %v759_v34 = vmul.f32 %v8889_v28, %v9135_v16 }
  0xcc   :  { %v1017_v48 = vpack.c.bf16 %v961_v55, %v959_v37  ;;  %v1016_v41 = vpack.c.bf16 %v960_v12, %v958_v0  ;;  %1751 = vmatpush1.bf16.msra.mxu1 %v7963_v17  ;;  %v276_v12 = vmul.f32 %v8879_v25, %v9007_v63 }
  0xcd   :  { %7840 = vset.pattern.permute.xlu1 %v12619_v36  ;;  %v9128_v53 = vpop.permute.xlu1 %355  ;;  %1752 = vmatprep.subr.bf16.mxu1 %v7964_v1 }
  0xce   :  { %v484_v56 = vmul.f32 %v8872_v22, %v9128_v53  ;;  %v485_v52 = vmul.f32 %v8885_v27, %v9128_v53  ;;  %191 = vperm.xlu1 %7840, %v8805_v60   ;;  %1309 = vmatprep.mubr.bf16.mxu0 %v1017_v48  ;;  %v277_v48 = vmul.f32 %v8882_v26, %v9007_v63  ;;  %v7969_v63 = vld [vmem:[%s12452_s1 + $0x160] ss:$8 sps:$4 sm:$0xff]  }
  0xcf   :  { %1310 = vmatmul.mubr.bf16.gmra.mrb[12].mxu0 %v1016_v41 }
  0xd0   :  { %v549_v55 = vadd.f32 %v485_v52, %v275_v32  ;;  %v548_v0 = vadd.f32 %v484_v56, %v274_v54  ;;  %v7966_v56 = vld [vmem:[%s12452_s1 + $0x150] ss:$8 sps:$4 sm:$0xff]   ;;  %v7967_v52 = vld [vmem:[%s12452_s1 + $0x164] ss:$8 sps:$4 sm:$0xff]  }
  0xd1   :  { %v9154_v37 = vpop.permute.xlu1 %359  ;;  %1753 = vmatpush1.bf16.msra.mxu1 %v7966_v56 }
  0xd2   :  { %12625 = vst [vmem:[#allocation15_spill] sm:$0xff] %v9154_v37  ;;  %7841 = vset.pattern.permute.xlu1 %v12623_v18  ;;  %v486_v41 = vmul.f32 %v8872_v22, %v9154_v37  ;;  %v487_v8 = vmul.f32 %v8885_v27, %v9154_v37  ;;  %v823_v17 = vadd.f32 %v759_v34, %v549_v55 }
  0xd3   :  { %411 = vperm.xlu1 %7841, %v8805_v60   ;;  %v822_v54 = vadd.f32 %v758_v14, %v548_v0  ;;  %1754 = vmatprep.subr.bf16.mxu1 %v7967_v52  ;;  %v7970_v14 = vld [vmem:[%s12452_s1 + $0x174] ss:$8 sps:$4 sm:$0xff]  }
  0xd4   :  { %v551_v1 = vadd.f32 %v487_v8, %v277_v48  ;;  %v550_v16 = vadd.f32 %v486_v41, %v276_v12  ;;  %v899_v55 = vadd.f32 %v8924_v44, %v823_v17  ;;  %v7972_v48 = vld [vmem:[%s12452_s1 + $0x170] ss:$8 sps:$4 sm:$0xff]  }
  0xd5   :  { %v898_v56 = vadd.f32 %v8938_v50, %v822_v54  ;;  %1755 = vmatpush1.bf16.msra.mxu1 %v7969_v63  ;;  %v7975_v54 = vld [vmem:[%s12452_s1 + $0x180] ss:$8 sps:$4 sm:$0xff]  }
  0xd6   :  { %v9172_v32 = vpop.permute.xlu1 %633  ;;  %1756 = vmatprep.subr.bf16.mxu1 %v7970_v14  ;;  %v963_v63 = vmax.f32 %v899_v55, 0.0  ;;  %v9210_v55 = vpop.permute.xlu0 %637 }
  0xd7   :  { %v760_v37 = vmul.f32 %v8894_v30, %v9172_v32  ;;  %v761_v60 = vmul.f32 %v8889_v28, %v9172_v32  ;;  %415 = vperm.xlu1 %7841, %v8782_v57   ;;  %v962_v52 = vmax.f32 %v898_v56, 0.0  ;;  %12626 = vst [vmem:[#allocation16_spill] sm:$0xff] %v9210_v55 }
  0xd9   :  { %v825_v34 = vadd.f32 %v761_v60, %v551_v1  ;;  %v824_v0 = vadd.f32 %v760_v37, %v550_v16  ;;  %v7973_v16 = vld [vmem:[%s12452_s1 + $0x184] ss:$8 sps:$4 sm:$0xff]   ;;  %1757 = vmatpush1.bf16.msra.mxu1 %v7972_v48 }
  0xda   :  { %1758 = vmatprep.subr.bf16.mxu1 %v7973_v16  ;;  %v763_v16 = vmul.f32 %v8889_v28, %v9210_v55 }
  0xdb   :  { %7842 = vset.pattern.permute.xlu1 %v12616_v46  ;;  %v9191_v12 = vpop.permute.xlu1 %131  ;;  %v901_v41 = vadd.f32 %v8924_v44, %v825_v34  ;;  %v900_v8 = vadd.f32 %v8938_v50, %v824_v0  ;;  %v7976_v0 = vld [vmem:[%s12452_s1 + $0x194] ss:$8 sps:$4 sm:$0xff]  }
  0xdc   :  { %689 = vperm.xlu1 %7842, %v8782_v57   ;;  %v278_v56 = vmul.f32 %v8879_v25, %v9191_v12  ;;  %v279_v48 = vmul.f32 %v8882_v26, %v9191_v12 }
  0xdd   :  { %v965_v37 = vmax.f32 %v901_v41, 0.0  ;;  %v964_v17 = vmax.f32 %v900_v8, 0.0  ;;  %1759 = vmatpush1.bf16.msra.mxu1 %v7975_v54  ;;  %v7978_v41 = vld [vmem:[%s12452_s1 + $0x190] ss:$8 sps:$4 sm:$0xff]   ;;  %v762_v8 = vmul.f32 %v8894_v30, %v9210_v55 }
  0xde   :  { %1760 = vmatprep.subr.bf16.mxu1 %v7976_v0 }
  0xdf   :  { %v1019_v60 = vpack.c.bf16 %v965_v37, %v963_v63  ;;  %v1018_v1 = vpack.c.bf16 %v964_v17, %v962_v52  ;;  %v281_v17 = vmul.f32 %v8882_v26, %v9021_v42 }
  0xe0   :  { %7843 = vset.pattern.permute.xlu1 %v12619_v36  ;;  %v9203_v14 = vpop.permute.xlu1 %363 }
  0xe1   :  { %v488_v57 = vmul.f32 %v8872_v22, %v9203_v14  ;;  %v489_v34 = vmul.f32 %v8885_v27, %v9203_v14  ;;  %201 = vperm.xlu1 %7843, %v8813_v61   ;;  %1319 = vmatprep.mubr.bf16.mxu0 %v1019_v60  ;;  %v280_v60 = vmul.f32 %v8879_v25, %v9021_v42  ;;  %v7982_v42 = vld [vmem:[%s12452_s1 + $0x1b4] ss:$8 sps:$4 sm:$0xff]  }
  0xe2   :  { %1320 = vmatmul.mubr.bf16.gmra.mrb[16].mxu0 %v1018_v1  ;;  %1761 = vmatpush1.bf16.msra.mxu1 %v7978_v41 }
  0xe3   :  { %v553_v37 = vadd.f32 %v489_v34, %v279_v48  ;;  %v552_v52 = vadd.f32 %v488_v57, %v278_v56  ;;  %v7979_v57 = vld [vmem:[%s12452_s1 + $0x1a4] ss:$8 sps:$4 sm:$0xff]   ;;  %v7981_v34 = vld [vmem:[%s12452_s1 + $0x1a0] ss:$8 sps:$4 sm:$0xff]  }
  0xe4   :  { %v9226_v63 = vpop.permute.xlu1 %367  ;;  %1762 = vmatprep.subr.bf16.mxu1 %v7979_v57 }
  0xe5   :  { %12627 = vst [vmem:[#allocation17_spill] sm:$0xff] %v9226_v63  ;;  %v491_v54 = vmul.f32 %v8885_v27, %v9226_v63  ;;  %7844 = vset.pattern.permute.xlu1 %v12623_v18  ;;  %v490_v1 = vmul.f32 %v8872_v22, %v9226_v63  ;;  %v827_v0 = vadd.f32 %v763_v16, %v553_v37 }
  0xe6   :  { %419 = vperm.xlu1 %7844, %v8813_v61   ;;  %v826_v56 = vadd.f32 %v762_v8, %v552_v52  ;;  %1763 = vmatpush1.bf16.msra.mxu1 %v7981_v34  ;;  %v7984_v8 = vld [vmem:[%s12452_s1 + $0x1b0] ss:$8 sps:$4 sm:$0xff]  }
  0xe7   :  { %v555_v55 = vadd.f32 %v491_v54, %v281_v17  ;;  %v554_v41 = vadd.f32 %v490_v1, %v280_v60  ;;  %v903_v37 = vadd.f32 %v8924_v44, %v827_v0  ;;  %1764 = vmatprep.subr.bf16.mxu1 %v7982_v42  ;;  %v7985_v54 = vld [vmem:[%s12452_s1 + $0x1c4] ss:$8 sps:$4 sm:$0xff]  }
  0xe8   :  { %v902_v17 = vadd.f32 %v8938_v50, %v826_v56  ;;  %v7988_v56 = vld [vmem:[%s12452_s1 + $0x1d4] ss:$8 sps:$4 sm:$0xff]  }
  0xe9   :  { %v9244_v48 = vpop.permute.xlu1 %641  ;;  %v967_v42 = vmax.f32 %v903_v37, 0.0 }
  0xea   :  { %v764_v63 = vmul.f32 %v8894_v30, %v9244_v48  ;;  %v765_v61 = vmul.f32 %v8889_v28, %v9244_v48  ;;  %423 = vperm.xlu1 %7844, %v8790_v58   ;;  %1765 = vmatpush1.bf16.msra.mxu1 %v7984_v8  ;;  %v966_v34 = vmax.f32 %v902_v17, 0.0 }
  0xeb   :  { %1766 = vmatprep.subr.bf16.mxu1 %v7985_v54 }
  0xec   :  { %v829_v16 = vadd.f32 %v765_v61, %v555_v55  ;;  %v828_v52 = vadd.f32 %v764_v63, %v554_v41  ;;  %v7987_v55 = vld [vmem:[%s12452_s1 + $0x1c0] ss:$8 sps:$4 sm:$0xff]  }
  0xee   :  { %7845 = vset.pattern.permute.xlu1 %v12616_v46  ;;  %v9263_v60 = vpop.permute.xlu1 %141  ;;  %v905_v1 = vadd.f32 %v8924_v44, %v829_v16  ;;  %v904_v57 = vadd.f32 %v8938_v50, %v828_v52  ;;  %1767 = vmatpush1.bf16.msra.mxu1 %v7987_v55  ;;  %v9285_v52 = vpop.permute.xlu0 %645 }
  0xef   :  { %12628 = vst [vmem:[#allocation18_spill] sm:$0xff] %v9263_v60  ;;  %697 = vperm.xlu1 %7845, %v8790_v58   ;;  %v7990_v58 = vld [vmem:[%s12452_s1 + $0x1d0] ss:$8 sps:$4 sm:$0xff]   ;;  %12629 = vst [vmem:[#allocation19_spill] sm:$0xff] %v9285_v52  ;;  %v282_v17 = vmul.f32 %v8879_v25, %v9263_v60  ;;  %v283_v54 = vmul.f32 %v8882_v26, %v9263_v60  ;;  %1768 = vmatprep.subr.bf16.mxu1 %v7988_v56 }
  0xf0   :  { %v969_v63 = vmax.f32 %v905_v1, 0.0  ;;  %v968_v0 = vmax.f32 %v904_v57, 0.0  ;;  %v7991_v1 = vld [vmem:[%s12452_s1 + $0x1e4] ss:$8 sps:$4 sm:$0xff]   ;;  %v766_v57 = vmul.f32 %v8894_v30, %v9285_v52  ;;  %v767_v55 = vmul.f32 %v8889_v28, %v9285_v52 }
  0xf1   :  { %v284_v56 = vmul.f32 %v8879_v25, %v9039_v23 }
  0xf2   :  { %v1021_v61 = vpack.c.bf16 %v969_v63, %v967_v42  ;;  %v1020_v41 = vpack.c.bf16 %v968_v0, %v966_v34  ;;  %1769 = vmatpush1.bf16.msra.mxu1 %v7990_v58  ;;  %v7993_v0 = vld [vmem:[%s12452_s1 + $0x1e0] ss:$8 sps:$4 sm:$0xff]   ;;  %v7994_v58 = vld [vmem:[%s12452_s1 + $0x1f4] ss:$8 sps:$4 sm:$0xff]  }
  0xf3   :  { %7846 = vset.pattern.permute.xlu1 %v12619_v36  ;;  %v9275_v16 = vpop.permute.xlu1 %371  ;;  %1770 = vmatprep.subr.bf16.mxu1 %v7991_v1 }
  0xf4   :  { %v492_v8 = vmul.f32 %v8872_v22, %v9275_v16  ;;  %v493_v37 = vmul.f32 %v8885_v27, %v9275_v16  ;;  %211 = vperm.xlu1 %7846, %v8820_v62   ;;  %1329 = vmatprep.mubr.bf16.mxu0 %v1021_v61  ;;  %v285_v61 = vmul.f32 %v8882_v26, %v9039_v23 }
  0xf5   :  { %1330 = vmatmul.mubr.bf16.gmra.mrb[20].mxu0 %v1020_v41 }
  0xf6   :  { %v557_v63 = vadd.f32 %v493_v37, %v283_v54  ;;  %v556_v34 = vadd.f32 %v492_v8, %v282_v17  ;;  %1771 = vmatpush1.bf16.msra.mxu1 %v7993_v0  ;;  %v7996_v54 = vld [vmem:[%s12452_s1 + $0x1f0] ss:$8 sps:$4 sm:$0xff]  }
  0xf7   :  { %v9298_v42 = vpop.permute.xlu1 %375  ;;  %1772 = vmatprep.subr.bf16.mxu1 %v7994_v58 }
  0xf8   :  { %12630 = vst [vmem:[#allocation20_spill] sm:$0xff] %v9298_v42  ;;  %7848 = vset.pattern.permute.xlu1 %v12623_v18  ;;  %v494_v41 = vmul.f32 %v8872_v22, %v9298_v42  ;;  %v495_v37 = vmul.f32 %v8885_v27, %v9298_v42  ;;  %v831_v8 = vadd.f32 %v767_v55, %v557_v63 }
  0xf9   :  { %427 = vperm.xlu1 %7848, %v8820_v62   ;;  %v830_v17 = vadd.f32 %v766_v57, %v556_v34 }
  0xfa   :  { %v559_v1 = vadd.f32 %v495_v37, %v285_v61  ;;  %v558_v23 = vadd.f32 %v494_v41, %v284_v56  ;;  %v907_v57 = vadd.f32 %v8924_v44, %v831_v8  ;;  %1773 = vmatpush1.bf16.msra.mxu1 %v7996_v54 }
  0xfb   :  { %v906_v34 = vadd.f32 %v8938_v50, %v830_v17 }
  0xfc   :  { %v9319_v52 = vpop.permute.xlu1 %649 }
  0xfd   :  { %12631 = vst [vmem:[#allocation21_spill] sm:$0xff] %v9319_v52  ;;  %v768_v42 = vmul.f32 %v8894_v30, %v9319_v52  ;;  %v769_v62 = vmul.f32 %v8889_v28, %v9319_v52  ;;  %431 = vperm.xlu1 %7848, %v8795_v59   ;;  %v971_v52 = vmax.f32 %v907_v57, 0.0  ;;  %v970_v56 = vmax.f32 %v906_v34, 0.0 }
  0xfe   :  { %v288_v34 = vmul.f32 %v8879_v25, %v9053_v11 }
  0xff   :  { %v833_v55 = vadd.f32 %v769_v62, %v559_v1  ;;  %v832_v63 = vadd.f32 %v768_v42, %v558_v23  ;;  %v9337_v42 = vpop.permute.xlu0 %653 }
 0x100   :  { %12633 = vst [vmem:[#allocation23_spill] sm:$0xff] %v9337_v42  ;;  %v771_v62 = vmul.f32 %v8889_v28, %v9337_v42 }
 0x101   :  { %7849 = vset.pattern.permute.xlu1 %v12616_v46  ;;  %v9329_v0 = vpop.permute.xlu1 %151  ;;  %v909_v58 = vadd.f32 %v8924_v44, %v833_v55  ;;  %v908_v60 = vadd.f32 %v8938_v50, %v832_v63 }
 0x102   :  { %12632 = vst [vmem:[#allocation22_spill] sm:$0xff] %v9329_v0  ;;  %705 = vperm.xlu1 %7849, %v8795_v59   ;;  %v286_v59 = vmul.f32 %v8879_v25, %v9329_v0 }
 0x103   :  { %v973_v61 = vmax.f32 %v909_v58, 0.0  ;;  %v972_v41 = vmax.f32 %v908_v60, 0.0  ;;  %v287_v60 = vmul.f32 %v8882_v26, %v9329_v0  ;;  %v9354_v55 = vpop.permute.xlu0 %661  ;;  %v289_v58 = vmul.f32 %v8882_v26, %v9053_v11 }
 0x104   :  { %12635 = vst [vmem:[#allocation25_spill] sm:$0xff] %v9354_v55 }
 0x105   :  { %v1023_v37 = vpack.c.bf16 %v973_v61, %v971_v52  ;;  %v1022_v8 = vpack.c.bf16 %v972_v41, %v970_v56  ;;  %v770_v52 = vmul.f32 %v8894_v30, %v9337_v42 }
 0x106   :  { %7850 = vset.pattern.permute.xlu1 %v12619_v36  ;;  %v9335_v23 = vpop.permute.xlu1 %379 }
 0x107   :  { %v496_v17 = vmul.f32 %v8872_v22, %v9335_v23  ;;  %v497_v54 = vmul.f32 %v8885_v27, %v9335_v23  ;;  %221 = vperm.xlu1 %7850, %v8864_v19   ;;  %1339 = vmatprep.mubr.bf16.mxu0 %v1023_v37 }
 0x108   :  { %1340 = vmatmul.mubr.bf16.gmra.mrb[24].mxu0 %v1022_v8 }
 0x109   :  { %v561_v57 = vadd.f32 %v497_v54, %v287_v60  ;;  %v560_v63 = vadd.f32 %v496_v17, %v286_v59  ;;  %v9373_v59 = vpop.permute.xlu0 %669 }
 0x10a   :  { %v9352_v1 = vpop.permute.xlu1 %383  ;;  %12637 = vst [vmem:[#allocation27_spill] sm:$0xff] %v9373_v59 }
 0x10b   :  { %12634 = vst [vmem:[#allocation24_spill] sm:$0xff] %v9352_v1  ;;  %7851 = vset.pattern.permute.xlu1 %v12623_v18  ;;  %v498_v61 = vmul.f32 %v8872_v22, %v9352_v1  ;;  %v499_v56 = vmul.f32 %v8885_v27, %v9352_v1  ;;  %v835_v41 = vadd.f32 %v771_v62, %v561_v57 }
 0x10c   :  { %435 = vperm.xlu1 %7851, %v8864_v19   ;;  %v834_v37 = vadd.f32 %v770_v52, %v560_v63 }
 0x10d   :  { %v563_v60 = vadd.f32 %v499_v56, %v289_v58  ;;  %v562_v11 = vadd.f32 %v498_v61, %v288_v34  ;;  %v911_v1 = vadd.f32 %v8924_v44, %v835_v41 }
 0x10e   :  { %v910_v52 = vadd.f32 %v8938_v50, %v834_v37 }
 0x10f   :  { %v9366_v8 = vpop.permute.xlu1 %657  ;;  %v975_v58 = vmax.f32 %v911_v1, 0.0 }
 0x110   :  { %12636 = vst [vmem:[#allocation26_spill] sm:$0xff] %v9366_v8  ;;  %v772_v17 = vmul.f32 %v8894_v30, %v9366_v8  ;;  %v773_v54 = vmul.f32 %v8889_v28, %v9366_v8  ;;  %439 = vperm.xlu1 %7851, %v8918_v40   ;;  %v9383_v8 = vpop.permute.xlu0 %677  ;;  %v974_v61 = vmax.f32 %v910_v52, 0.0 }
 0x111   :  { %12639 = vst [vmem:[#allocation29_spill] sm:$0xff] %v9383_v8 }
 0x112   :  { %v837_v42 = vadd.f32 %v773_v54, %v563_v60  ;;  %v836_v19 = vadd.f32 %v772_v17, %v562_v11  ;;  %v775_v60 = vmul.f32 %v8889_v28, %v9354_v55 }
 0x114   :  { %7853 = vset.pattern.permute.xlu1 %v12616_v46  ;;  %v9378_v62 = vpop.permute.xlu1 %161  ;;  %v913_v57 = vadd.f32 %v8924_v44, %v837_v42  ;;  %v912_v63 = vadd.f32 %v8938_v50, %v836_v19  ;;  %v9397_v54 = vpop.permute.xlu0 %166 }
 0x115   :  { %12638 = vst [vmem:[#allocation28_spill] sm:$0xff] %v9378_v62  ;;  %713 = vperm.xlu1 %7853, %v8918_v40   ;;  %v290_v40 = vmul.f32 %v8879_v25, %v9378_v62  ;;  %v291_v1 = vmul.f32 %v8882_v26, %v9378_v62  ;;  %12641 = vst [vmem:[#allocation31_spill] sm:$0xff] %v9397_v54 }
 0x116   :  { %v977_v34 = vmax.f32 %v913_v57, 0.0  ;;  %v976_v56 = vmax.f32 %v912_v63, 0.0  ;;  %v292_v63 = vmul.f32 %v8879_v25, %v9397_v54 }
 0x118   :  { %v1025_v41 = vpack.c.bf16 %v977_v34, %v975_v58  ;;  %v1024_v11 = vpack.c.bf16 %v976_v56, %v974_v61  ;;  %v293_v58 = vmul.f32 %v8882_v26, %v9397_v54 }
 0x119   :  { %7854 = vset.pattern.permute.xlu1 %v12619_v36  ;;  %v9386_v37 = vpop.permute.xlu1 %387  ;;  %v774_v36 = vmul.f32 %v8894_v30, %v9354_v55 }
 0x11a   :  { %12640 = vst [vmem:[#allocation30_spill] sm:$0xff] %v9386_v37  ;;  %v500_v17 = vmul.f32 %v8872_v22, %v9386_v37  ;;  %v501_v42 = vmul.f32 %v8885_v27, %v9386_v37  ;;  %231 = vperm.xlu1 %7854, %v8997_v45   ;;  %1349 = vmatprep.mubr.bf16.mxu0 %v1025_v41 }
 0x11b   :  { %1350 = vmatmul.mubr.bf16.gmra.mrb[28].mxu0 %v1024_v11 }
 0x11c   :  { %v565_v52 = vadd.f32 %v501_v42, %v291_v1  ;;  %v564_v57 = vadd.f32 %v500_v17, %v290_v40 }
 0x11d   :  { %v9403_v19 = vpop.permute.xlu1 %391 }
 0x11e   :  { %12642 = vst [vmem:[#allocation32_spill] sm:$0xff] %v9403_v19  ;;  %7855 = vset.pattern.permute.xlu1 %v12623_v18  ;;  %v502_v34 = vmul.f32 %v8872_v22, %v9403_v19  ;;  %v503_v61 = vmul.f32 %v8885_v27, %v9403_v19  ;;  %v839_v56 = vadd.f32 %v775_v60, %v565_v52 }
 0x11f   :  { %443 = vperm.xlu1 %7855, %v8997_v45   ;;  %v838_v41 = vadd.f32 %v774_v36, %v564_v57 }
 0x120   :  { %v567_v42 = vadd.f32 %v503_v61, %v293_v58  ;;  %v566_v40 = vadd.f32 %v502_v34, %v292_v63  ;;  %v915_v54 = vadd.f32 %v8924_v44, %v839_v56 }
 0x121   :  { %v914_v45 = vadd.f32 %v8938_v50, %v838_v41 }
 0x122   :  { %v9415_v11 = vpop.permute.xlu1 %665  ;;  %v979_v57 = vmax.f32 %v915_v54, 0.0  ;;  %v9440_v54 = vpop.permute.xlu0 %176 }
 0x123   :  { %12643 = vst [vmem:[#allocation33_spill] sm:$0xff] %v9415_v11  ;;  %v776_v18 = vmul.f32 %v8894_v30, %v9415_v11  ;;  %v777_v17 = vmul.f32 %v8889_v28, %v9415_v11  ;;  %447 = vperm.xlu1 %7855, %v8980_v20   ;;  %v978_v58 = vmax.f32 %v914_v45, 0.0  ;;  %12646 = vst [vmem:[#allocation36_spill] sm:$0xff] %v9440_v54 }
 0x124   :  { %v297_v45 = vmul.f32 %v8882_v26, %v9440_v54 }
 0x125   :  { %v841_v1 = vadd.f32 %v777_v17, %v567_v42  ;;  %v840_v19 = vadd.f32 %v776_v18, %v566_v40  ;;  %v779_v18 = vmul.f32 %v8889_v28, %v9373_v59 }
 0x127   :  { %7857 = vset.pattern.permute.xlu1 %v12616_v46  ;;  %v9425_v36 = vpop.permute.xlu1 %171  ;;  %v917_v60 = vadd.f32 %v8924_v44, %v841_v1  ;;  %v916_v52 = vadd.f32 %v8938_v50, %v840_v19  ;;  %v296_v1 = vmul.f32 %v8879_v25, %v9440_v54 }
 0x128   :  { %12644 = vst [vmem:[#allocation34_spill] sm:$0xff] %v9425_v36  ;;  %721 = vperm.xlu1 %7857, %v8980_v20   ;;  %v294_v19 = vmul.f32 %v8879_v25, %v9425_v36  ;;  %v295_v20 = vmul.f32 %v8882_v26, %v9425_v36 }
 0x129   :  { %v981_v11 = vmax.f32 %v917_v60, 0.0  ;;  %v980_v63 = vmax.f32 %v916_v52, 0.0 }
 0x12b   :  { %v1027_v34 = vpack.c.bf16 %v981_v11, %v979_v57  ;;  %v1026_v61 = vpack.c.bf16 %v980_v63, %v978_v58  ;;  %v778_v11 = vmul.f32 %v8894_v30, %v9373_v59 }
 0x12c   :  { %v9430_v56 = vpop.permute.xlu1 %395 }
 0x12d   :  { %12645 = vst [vmem:[#allocation35_spill] sm:$0xff] %v9430_v56  ;;  %v504_v41 = vmul.f32 %v8872_v22, %v9430_v56  ;;  %v505_v46 = vmul.f32 %v8885_v27, %v9430_v56  ;;  %1359 = vmatprep.mubr.bf16.mxu0 %v1027_v34 }
 0x12e   :  { %1360 = vmatmul.mubr.bf16.gmra.mrb[32].mxu0 %v1026_v61 }
 0x12f   :  { %v569_v42 = vadd.f32 %v505_v46, %v295_v20  ;;  %v568_v40 = vadd.f32 %v504_v41, %v294_v19 }
 0x130   :  { %v9446_v17 = vpop.permute.xlu1 %399 }
 0x131   :  { %12647 = vst [vmem:[#allocation37_spill] sm:$0xff] %v9446_v17  ;;  %v506_v60 = vmul.f32 %v8872_v22, %v9446_v17  ;;  %v507_v52 = vmul.f32 %v8885_v27, %v9446_v17  ;;  %v843_v57 = vadd.f32 %v779_v18, %v569_v42  ;;  %v842_v58 = vadd.f32 %v778_v11, %v568_v40  ;;  %v9468_v42 = vpop.permute.xlu0 %186 }
 0x132   :  { %12650 = vst [vmem:[#allocation40_spill] sm:$0xff] %v9468_v42 }
 0x133   :  { %v571_v41 = vadd.f32 %v507_v52, %v297_v45  ;;  %v570_v46 = vadd.f32 %v506_v60, %v296_v1  ;;  %v919_v20 = vadd.f32 %v8924_v44, %v843_v57  ;;  %v918_v59 = vadd.f32 %v8938_v50, %v842_v58 }
 0x135   :  { %v9456_v63 = vpop.permute.xlu1 %673  ;;  %v983_v40 = vmax.f32 %v919_v20, 0.0  ;;  %v982_v56 = vmax.f32 %v918_v59, 0.0  ;;  %v9480_v59 = vpop.permute.xlu0 %196 }
 0x136   :  { %12648 = vst [vmem:[#allocation38_spill] sm:$0xff] %v9456_v63  ;;  %v780_v34 = vmul.f32 %v8894_v30, %v9456_v63  ;;  %v781_v61 = vmul.f32 %v8889_v28, %v9456_v63  ;;  %12652 = vst [vmem:[#allocation42_spill] sm:$0xff] %v9480_v59 }
 0x138   :  { %v845_v19 = vadd.f32 %v781_v61, %v571_v41  ;;  %v844_v54 = vadd.f32 %v780_v34, %v570_v46  ;;  %v300_v41 = vmul.f32 %v8879_v25, %v9468_v42  ;;  %v301_v46 = vmul.f32 %v8882_v26, %v9468_v42 }
 0x13a   :  { %v9464_v36 = vpop.permute.xlu1 %181  ;;  %v921_v11 = vadd.f32 %v8924_v44, %v845_v19  ;;  %v920_v18 = vadd.f32 %v8938_v50, %v844_v54 }
 0x13b   :  { %12649 = vst [vmem:[#allocation39_spill] sm:$0xff] %v9464_v36  ;;  %v298_v54 = vmul.f32 %v8879_v25, %v9464_v36  ;;  %v299_v58 = vmul.f32 %v8882_v26, %v9464_v36 }
 0x13c   :  { %v985_v17 = vmax.f32 %v921_v11, 0.0  ;;  %v984_v63 = vmax.f32 %v920_v18, 0.0  ;;  %v9496_v11 = vpop.permute.xlu0 %206 }
 0x13d   :  { %12654 = vst [vmem:[#allocation44_spill] sm:$0xff] %v9496_v11 }
 0x13e   :  { %v1029_v45 = vpack.c.bf16 %v985_v17, %v983_v40  ;;  %v1028_v1 = vpack.c.bf16 %v984_v63, %v982_v56  ;;  %v782_v56 = vmul.f32 %v8894_v30, %v9383_v8  ;;  %v783_v17 = vmul.f32 %v8889_v28, %v9383_v8 }
 0x13f   :  { %v9470_v60 = vpop.permute.xlu1 %403 }
 0x140   :  { %12651 = vst [vmem:[#allocation41_spill] sm:$0xff] %v9470_v60  ;;  %v508_v52 = vmul.f32 %v8872_v22, %v9470_v60  ;;  %v509_v57 = vmul.f32 %v8885_v27, %v9470_v60  ;;  %1369 = vmatprep.mubr.bf16.mxu0 %v1029_v45 }
 0x141   :  { %1370 = vmatmul.mubr.bf16.gmra.mrb[36].mxu0 %v1028_v1 }
 0x142   :  { %v573_v34 = vadd.f32 %v509_v57, %v299_v58  ;;  %v572_v61 = vadd.f32 %v508_v52, %v298_v54 }
 0x143   :  { %v9486_v63 = vpop.permute.xlu1 %407 }
 0x144   :  { %12653 = vst [vmem:[#allocation43_spill] sm:$0xff] %v9486_v63  ;;  %v510_v19 = vmul.f32 %v8872_v22, %v9486_v63  ;;  %v511_v20 = vmul.f32 %v8885_v27, %v9486_v63  ;;  %v847_v18 = vadd.f32 %v783_v17, %v573_v34  ;;  %v846_v40 = vadd.f32 %v782_v56, %v572_v61  ;;  %v9508_v17 = vpop.permute.xlu0 %216 }
 0x145   :  { %12657 = vst [vmem:[#allocation47_spill] sm:$0xff] %v9508_v17 }
 0x146   :  { %v575_v57 = vadd.f32 %v511_v20, %v301_v46  ;;  %v574_v54 = vadd.f32 %v510_v19, %v300_v41  ;;  %v923_v42 = vadd.f32 %v8924_v44, %v847_v18  ;;  %v922_v63 = vadd.f32 %v8938_v50, %v846_v40 }
 0x148   :  { %v9498_v45 = vpop.permute.xlu1 %681  ;;  %v987_v61 = vmax.f32 %v923_v42, 0.0  ;;  %v986_v55 = vmax.f32 %v922_v63, 0.0  ;;  %v9518_v40 = vpop.permute.xlu0 %685 }
 0x149   :  { %12655 = vst [vmem:[#allocation45_spill] sm:$0xff] %v9498_v45  ;;  %v784_v1 = vmul.f32 %v8894_v30, %v9498_v45  ;;  %v785_v52 = vmul.f32 %v8889_v28, %v9498_v45  ;;  %12659 = vst [vmem:[#allocation49_spill] sm:$0xff] %v9518_v40 }
 0x14b   :  { %v849_v58 = vadd.f32 %v785_v52, %v575_v57  ;;  %v848_v8 = vadd.f32 %v784_v1, %v574_v54  ;;  %v304_v52 = vmul.f32 %v8879_v25, %v9480_v59  ;;  %v305_v57 = vmul.f32 %v8882_v26, %v9480_v59 }
 0x14d   :  { %v9506_v36 = vpop.permute.xlu1 %191  ;;  %v925_v56 = vadd.f32 %v8924_v44, %v849_v58  ;;  %v924_v34 = vadd.f32 %v8938_v50, %v848_v8 }
 0x14e   :  { %12656 = vst [vmem:[#allocation46_spill] sm:$0xff] %v9506_v36  ;;  %v302_v8 = vmul.f32 %v8879_v25, %v9506_v36  ;;  %v303_v42 = vmul.f32 %v8882_v26, %v9506_v36 }
 0x14f   :  { %v989_v60 = vmax.f32 %v925_v56, 0.0  ;;  %v988_v45 = vmax.f32 %v924_v34, 0.0 }
 0x151   :  { %v1031_v46 = vpack.c.bf16 %v989_v60, %v987_v61  ;;  %v1030_v41 = vpack.c.bf16 %v988_v45, %v986_v55  ;;  %v786_v55 = vmul.f32 %v8894_v30, %v9518_v40  ;;  %v787_v60 = vmul.f32 %v8889_v28, %v9518_v40 }
 0x152   :  { %v9512_v19 = vpop.permute.xlu1 %411 }
 0x153   :  { %12658 = vst [vmem:[#allocation48_spill] sm:$0xff] %v9512_v19  ;;  %v512_v20 = vmul.f32 %v8872_v22, %v9512_v19  ;;  %v513_v18 = vmul.f32 %v8885_v27, %v9512_v19  ;;  %1379 = vmatprep.mubr.bf16.mxu0 %v1031_v46 }
 0x154   :  { %1380 = vmatmul.mubr.bf16.gmra.mrb[40].mxu0 %v1030_v41 }
 0x155   :  { %v577_v45 = vadd.f32 %v513_v18, %v303_v42  ;;  %v576_v1 = vadd.f32 %v512_v20, %v302_v8 }
 0x156   :  { %v9528_v63 = vpop.permute.xlu1 %415 }
 0x157   :  { %12660 = vst [vmem:[#allocation50_spill] sm:$0xff] %v9528_v63  ;;  %v514_v54 = vmul.f32 %v8872_v22, %v9528_v63  ;;  %v515_v58 = vmul.f32 %v8885_v27, %v9528_v63  ;;  %v851_v56 = vadd.f32 %v787_v60, %v577_v45  ;;  %v850_v34 = vadd.f32 %v786_v55, %v576_v1 }
 0x159   :  { %v579_v20 = vadd.f32 %v515_v58, %v305_v57  ;;  %v578_v18 = vadd.f32 %v514_v54, %v304_v52  ;;  %v927_v42 = vadd.f32 %v8924_v44, %v851_v56  ;;  %v926_v40 = vadd.f32 %v8938_v50, %v850_v34  ;;  %v9552_v52 = vpop.permute.xlu0 %693 }
 0x15a   :  { %12664 = vst [vmem:[#allocation54_spill] sm:$0xff] %v9552_v52 }
 0x15b   :  { %v9538_v61 = vpop.permute.xlu1 %689  ;;  %v991_v45 = vmax.f32 %v927_v42, 0.0  ;;  %v990_v63 = vmax.f32 %v926_v40, 0.0 }
 0x15c   :  { %12661 = vst [vmem:[#allocation51_spill] sm:$0xff] %v9538_v61  ;;  %v788_v46 = vmul.f32 %v8894_v30, %v9538_v61  ;;  %v789_v41 = vmul.f32 %v8889_v28, %v9538_v61 }
 0x15e   :  { %v853_v8 = vadd.f32 %v789_v41, %v579_v20  ;;  %v852_v59 = vadd.f32 %v788_v46, %v578_v18  ;;  %v308_v41 = vmul.f32 %v8879_v25, %v9496_v11 }
 0x160   :  { %v9546_v36 = vpop.permute.xlu1 %201  ;;  %v929_v55 = vadd.f32 %v8924_v44, %v853_v8  ;;  %v928_v60 = vadd.f32 %v8938_v50, %v852_v59  ;;  %v7051_v8 = vld [vmem:[%s12454_s2 + $0x1] ss:$8 sm:$0x3] }
 0x161   :  { %12662 = vst [vmem:[#allocation52_spill] sm:$0xff] %v9546_v36  ;;  %v307_v54 = vmul.f32 %v8882_v26, %v9546_v36  ;;  %v306_v59 = vmul.f32 %v8879_v25, %v9546_v36 }
 0x162   :  { %v993_v1 = vmax.f32 %v929_v55, 0.0  ;;  %v992_v19 = vmax.f32 %v928_v60, 0.0 }
 0x164   :  { %v1033_v62 = vpack.c.bf16 %v993_v1, %v991_v45  ;;  %v1032_v61 = vpack.c.bf16 %v992_v19, %v990_v63  ;;  %v791_v19 = vmul.f32 %v8889_v28, %v9552_v52  ;;  %v790_v63 = vmul.f32 %v8894_v30, %v9552_v52 }
 0x165   :  { %v9550_v57 = vpop.permute.xlu1 %419 }
 0x166   :  { %12663 = vst [vmem:[#allocation53_spill] sm:$0xff] %v9550_v57  ;;  %v516_v58 = vmul.f32 %v8872_v22, %v9550_v57  ;;  %v517_v56 = vmul.f32 %v8885_v27, %v9550_v57  ;;  %1389 = vmatprep.mubr.bf16.mxu0 %v1033_v62  ;;  %v309_v62 = vmul.f32 %v8882_v26, %v9496_v11 }
 0x167   :  { %1390 = vmatmul.mubr.bf16.gmra.mrb[44].mxu0 %v1032_v61 }
 0x168   :  { %v581_v40 = vadd.f32 %v517_v56, %v307_v54  ;;  %v580_v46 = vadd.f32 %v516_v58, %v306_v59  ;;  %v9586_v58 = vrot.slane %v7051_v8, %v8841_v7 }
 0x169   :  { %v9566_v34 = vpop.permute.xlu1 %423 }
 0x16a   :  { %12665 = vst [vmem:[#allocation55_spill] sm:$0xff] %v9566_v34  ;;  %v518_v20 = vmul.f32 %v8872_v22, %v9566_v34  ;;  %v519_v61 = vmul.f32 %v8885_v27, %v9566_v34  ;;  %v855_v18 = vadd.f32 %v791_v19, %v581_v40  ;;  %v854_v42 = vadd.f32 %v790_v63, %v580_v46 }
 0x16b   :  { %v9591_v63 = vrot.slane %v7051_v8, %v8834_v5 }
 0x16c   :  { %v583_v1 = vadd.f32 %v519_v61, %v309_v62  ;;  %v582_v54 = vadd.f32 %v518_v20, %v308_v41  ;;  %v931_v56 = vadd.f32 %v8924_v44, %v855_v18  ;;  %v930_v40 = vadd.f32 %v8938_v50, %v854_v42 }
 0x16e   :  { %v9579_v55 = vpop.permute.xlu1 %697  ;;  %v995_v61 = vmax.f32 %v931_v56, 0.0  ;;  %v9605_v56 = vpop.permute.xlu0 %701 }
 0x16f   :  { %12666 = vst [vmem:[#allocation56_spill] sm:$0xff] %v9579_v55  ;;  %v792_v60 = vmul.f32 %v8894_v30, %v9579_v55  ;;  %v793_v45 = vmul.f32 %v8889_v28, %v9579_v55  ;;  %12669 = vst [vmem:[#allocation59_spill] sm:$0xff] %v9605_v56 }
 0x171   :  { %v857_v59 = vadd.f32 %v793_v45, %v583_v1  ;;  %v856_v19 = vadd.f32 %v792_v60, %v582_v54  ;;  %v994_v45 = vmax.f32 %v930_v40, 0.0 }
 0x173   :  { %v1281_v46 = vpop.f32.mrb[0].mxu0  ;;  %v9593_v34 = vpop.permute.xlu1 %211  ;;  %v933_v11 = vadd.f32 %v8924_v44, %v857_v59  ;;  %v932_v62 = vadd.f32 %v8938_v50, %v856_v19 }
 0x174   :  { %12667 = vst [vmem:[#allocation57_spill] sm:$0xff] %v9593_v34  ;;  %v1282_v41 = vadd.f32 %v1281_v46, %v9586_v58  ;;  %v1283_v20 = vpop.f32.mrb[1].mxu0  ;;  %v311_v19 = vmul.f32 %v8882_v26, %v9593_v34 }
 0x175   :  { %v1285_v55 = vpop.f32.mrb[2].mxu0  ;;  %v997_v18 = vmax.f32 %v933_v11, 0.0  ;;  %v996_v60 = vmax.f32 %v932_v62, 0.0  ;;  %v1284_v42 = vadd.f32 %v1283_v20, %v9591_v63 }
 0x176   :  { %v1286_v8 = vadd.f32 %v1285_v55, %v9586_v58  ;;  %v1287_v1 = vpop.f32.mrb[3].mxu0  ;;  %v1440_v59 = vmax.f32 %v1282_v41, 0.0  ;;  %v310_v41 = vmul.f32 %v8879_v25, %v9593_v34 }
 0x177   :  { %v1035_v54 = vpack.c.bf16 %v997_v18, %v995_v61  ;;  %v1034_v52 = vpack.c.bf16 %v996_v60, %v994_v45  ;;  %v1288_v36 = vadd.f32 %v1287_v1, %v9591_v63  ;;  %v1441_v40 = vmax.f32 %v1284_v42, 0.0 }
 0x178   :  { %v1442_v46 = vmax.f32 %v1286_v8, 0.0  ;;  %v9603_v57 = vpop.permute.xlu1 %427  ;;  %v795_v61 = vmul.f32 %v8889_v28, %v9605_v56  ;;  %v794_v60 = vmul.f32 %v8894_v30, %v9605_v56 }
 0x179   :  { %12668 = vst [vmem:[#allocation58_spill] sm:$0xff] %v9603_v57  ;;  %v520_v11 = vmul.f32 %v8872_v22, %v9603_v57  ;;  %v521_v55 = vmul.f32 %v8885_v27, %v9603_v57  ;;  %1399 = vmatprep.mubr.bf16.mxu0 %v1035_v54  ;;  %v1443_v62 = vmax.f32 %v1288_v36, 0.0 }
 0x17a   :  { %1400 = vmatmul.mubr.bf16.gmra.mrb[48].mxu0 %v1034_v52  ;;  %v1504_v20 = vpack.c.bf16 %v1442_v46, %v1440_v59  ;;  %v313_v46 = vmul.f32 %v8882_v26, %v9508_v17 }
 0x17b   :  { %v1505_v18 = vpack.c.bf16 %v1443_v62, %v1441_v40  ;;  %v585_v45 = vadd.f32 %v521_v55, %v311_v19  ;;  %v584_v57 = vadd.f32 %v520_v11, %v310_v41  ;;  %v312_v62 = vmul.f32 %v8879_v25, %v9508_v17 }
 0x17c   :  { %v1291_v8 = vpop.f32.mrb[4].mxu0  ;;  %v9617_v1 = vpop.permute.xlu1 %431 }
 0x17d   :  { %12670 = vst [vmem:[#allocation60_spill] sm:$0xff] %v9617_v1  ;;  %v1292_v42 = vadd.f32 %v1291_v8, %v9586_v58  ;;  %v523_v36 = vmul.f32 %v8885_v27, %v9617_v1  ;;  %v1293_v54 = vpop.f32.mrb[5].mxu0  ;;  %1774 = vmatprep.mubr.bf16.mxu1 %v1505_v18  ;;  %v522_v52 = vmul.f32 %v8872_v22, %v9617_v1 }
 0x17e   :  { %v1294_v59 = vadd.f32 %v1293_v54, %v9591_v63  ;;  %v1295_v19 = vpop.f32.mrb[6].mxu0  ;;  %1775 = vmatmul.mubr.bf16.vlgmr.msra.gmra.mrb[0].mxu1 %v1504_v20  ;;  %v859_v40 = vadd.f32 %v795_v61, %v585_v45  ;;  %v858_v18 = vadd.f32 %v794_v60, %v584_v57 }
 0x17f   :  { %v1296_v55 = vadd.f32 %v1295_v19, %v9586_v58  ;;  %v1297_v11 = vpop.f32.mrb[7].mxu0  ;;  %v1444_v8 = vmax.f32 %v1292_v42, 0.0  ;;  %v587_v54 = vadd.f32 %v523_v36, %v313_v46  ;;  %v586_v61 = vadd.f32 %v522_v52, %v312_v62 }
 0x180   :  { %v1298_v41 = vadd.f32 %v1297_v11, %v9591_v63  ;;  %v1445_v56 = vmax.f32 %v1294_v59, 0.0  ;;  %v935_v17 = vadd.f32 %v8924_v44, %v859_v40  ;;  %v934_v60 = vadd.f32 %v8938_v50, %v858_v18 }
 0x181   :  { %v1446_v1 = vmax.f32 %v1296_v55, 0.0  ;;  %v9631_v34 = vpop.permute.xlu1 %705 }
 0x182   :  { %12671 = vst [vmem:[#allocation61_spill] sm:$0xff] %v9631_v34  ;;  %v1447_v20 = vmax.f32 %v1298_v41, 0.0  ;;  %v796_v37 = vmul.f32 %v8894_v30, %v9631_v34  ;;  %v797_v19 = vmul.f32 %v8889_v28, %v9631_v34  ;;  %v999_v46 = vmax.f32 %v935_v17, 0.0 }
 0x183   :  { %v1506_v45 = vpack.c.bf16 %v1446_v1, %v1444_v8  ;;  %v998_v41 = vmax.f32 %v934_v60, 0.0  ;;  %v9643_v1 = vpop.permute.xlu0 %709 }
 0x184   :  { %v1507_v0 = vpack.c.bf16 %v1447_v20, %v1445_v56  ;;  %v861_v11 = vadd.f32 %v797_v19, %v587_v54  ;;  %v860_v57 = vadd.f32 %v796_v37, %v586_v61  ;;  %12673 = vst [vmem:[#allocation63_spill] sm:$0xff] %v9643_v1 }
 0x186   :  { %1784 = vmatprep.mubr.bf16.mxu1 %v1507_v0  ;;  %v9639_v42 = vpop.permute.xlu1 %221  ;;  %v937_v36 = vadd.f32 %v8924_v44, %v861_v11  ;;  %v936_v59 = vadd.f32 %v8938_v50, %v860_v57 }
 0x187   :  { %12672 = vst [vmem:[#allocation62_spill] sm:$0xff] %v9639_v42  ;;  %1785 = vmatmul.mubr.bf16.gmra.mrb[4].mxu1 %v1506_v45  ;;  %v315_v0 = vmul.f32 %v8882_v26, %v9639_v42  ;;  %v314_v17 = vmul.f32 %v8879_v25, %v9639_v42  ;;  %v9655_v8 = vpop.permute.xlu0 %226  ;;  %v799_v45 = vmul.f32 %v8889_v28, %v9643_v1 }
 0x188   :  { %v1001_v55 = vmax.f32 %v937_v36, 0.0  ;;  %v1000_v52 = vmax.f32 %v936_v59, 0.0  ;;  %12675 = vst [vmem:[#allocation65_spill] sm:$0xff] %v9655_v8  ;;  %v317_v11 = vmul.f32 %v8882_v26, %v9655_v8  ;;  %v798_v59 = vmul.f32 %v8894_v30, %v9643_v1 }
 0x18a   :  { %v1037_v40 = vpack.c.bf16 %v1001_v55, %v999_v46  ;;  %v1036_v56 = vpack.c.bf16 %v1000_v52, %v998_v41  ;;  %v316_v46 = vmul.f32 %v8879_v25, %v9655_v8 }
 0x18b   :  { %v9645_v62 = vpop.permute.xlu1 %435 }
 0x18c   :  { %12674 = vst [vmem:[#allocation64_spill] sm:$0xff] %v9645_v62  ;;  %v524_v37 = vmul.f32 %v8872_v22, %v9645_v62  ;;  %v525_v18 = vmul.f32 %v8885_v27, %v9645_v62  ;;  %1409 = vmatprep.mubr.bf16.mxu0 %v1037_v40 }
 0x18d   :  { %1410 = vmatmul.mubr.bf16.gmra.mrb[52].mxu0 %v1036_v56 }
 0x18e   :  { %v589_v54 = vadd.f32 %v525_v18, %v315_v0  ;;  %v588_v61 = vadd.f32 %v524_v37, %v314_v17 }
 0x18f   :  { %v1301_v20 = vpop.f32.mrb[8].mxu0  ;;  %v9657_v19 = vpop.permute.xlu1 %439 }
 0x190   :  { %12676 = vst [vmem:[#allocation66_spill] sm:$0xff] %v9657_v19  ;;  %v1302_v57 = vadd.f32 %v1301_v20, %v9586_v58  ;;  %v527_v60 = vmul.f32 %v8885_v27, %v9657_v19  ;;  %v1303_v36 = vpop.f32.mrb[9].mxu0  ;;  %v526_v55 = vmul.f32 %v8872_v22, %v9657_v19  ;;  %v863_v0 = vadd.f32 %v799_v45, %v589_v54 }
 0x191   :  { %v1304_v41 = vadd.f32 %v1303_v36, %v9591_v63  ;;  %v1305_v52 = vpop.f32.mrb[10].mxu0  ;;  %v862_v18 = vadd.f32 %v798_v59, %v588_v61  ;;  %v9683_v59 = vpop.permute.xlu0 %236 }
 0x192   :  { %v1306_v40 = vadd.f32 %v1305_v52, %v9586_v58  ;;  %v1307_v56 = vpop.f32.mrb[11].mxu0  ;;  %v1448_v17 = vmax.f32 %v1302_v57, 0.0  ;;  %v591_v62 = vadd.f32 %v527_v60, %v317_v11  ;;  %v590_v34 = vadd.f32 %v526_v55, %v316_v46  ;;  %12677 = vst [vmem:[#allocation67_spill] sm:$0xff] %v9683_v59 }
 0x193   :  { %v1308_v37 = vadd.f32 %v1307_v56, %v9591_v63  ;;  %v1449_v20 = vmax.f32 %v1304_v41, 0.0  ;;  %v939_v54 = vadd.f32 %v8924_v44, %v863_v0  ;;  %v938_v57 = vadd.f32 %v8938_v50, %v862_v18 }
 0x194   :  { %v1450_v42 = vmax.f32 %v1306_v40, 0.0  ;;  %v9675_v1 = vpop.permute.xlu1 %713 }
 0x195   :  { %v1451_v8 = vmax.f32 %v1308_v37, 0.0  ;;  %v800_v19 = vmul.f32 %v8894_v30, %v9675_v1  ;;  %v801_v36 = vmul.f32 %v8889_v28, %v9675_v1  ;;  %v9697_v37 = vpop.permute.xlu0 %717 }
 0x196   :  { %v1508_v52 = vpack.c.bf16 %v1450_v42, %v1448_v17  ;;  %v7997_v42 = vld [vmem:[%s12452_s1 + $0x200] ss:$8 sps:$4 sm:$0xff]   ;;  %12678 = vst [vmem:[#allocation68_spill] sm:$0xff] %v9697_v37 }
 0x197   :  { %v1509_v45 = vpack.c.bf16 %v1451_v8, %v1449_v20  ;;  %v865_v56 = vadd.f32 %v801_v36, %v591_v62  ;;  %v864_v61 = vadd.f32 %v800_v19, %v590_v34  ;;  %v7999_v34 = vld [vmem:[%s12452_s1 + $0x204] ss:$8 sps:$4 sm:$0xff]   ;;  %v1003_v62 = vmax.f32 %v939_v54, 0.0  ;;  %v8000_v36 = vld [vmem:[%s12452_s1 + $0x210] ss:$8 sps:$4 sm:$0xff]  }
 0x198   :  { %v1002_v19 = vmax.f32 %v938_v57, 0.0  ;;  %2237 = vmatprep.subr.bf16.mxu0 %v7999_v34  ;;  %v802_v57 = vmul.f32 %v8894_v30, %v9697_v37  ;;  %v8003_v34 = vld [vmem:[%s12452_s1 + $0x220] ss:$8 sps:$4 sm:$0xff]  }
 0x199   :  { %1794 = vmatprep.mubr.bf16.mxu1 %v1509_v45  ;;  %v9685_v11 = vpop.permute.xlu1 %231  ;;  %v941_v60 = vadd.f32 %v8924_v44, %v865_v56  ;;  %v940_v41 = vadd.f32 %v8938_v50, %v864_v61  ;;  %2238 = vmatpush1.bf16.msra.mxu0 %v7997_v42  ;;  %v8005_v45 = vld [vmem:[%s12452_s1 + $0x224] ss:$8 sps:$4 sm:$0xff]   ;;  %v803_v56 = vmul.f32 %v8889_v28, %v9697_v37 }
 0x19a   :  { %1795 = vmatmul.mubr.bf16.gmra.mrb[8].mxu1 %v1508_v52  ;;  %v319_v18 = vmul.f32 %v8882_v26, %v9685_v11  ;;  %v8002_v52 = vld [vmem:[%s12452_s1 + $0x214] ss:$8 sps:$4 sm:$0xff]   ;;  %v318_v54 = vmul.f32 %v8879_v25, %v9685_v11 }
 0x19b   :  { %v1005_v8 = vmax.f32 %v941_v60, 0.0  ;;  %v1004_v46 = vmax.f32 %v940_v41, 0.0  ;;  %2239 = vmatprep.subr.bf16.mxu0 %v8002_v52  ;;  %v320_v52 = vmul.f32 %v8879_v25, %v9683_v59  ;;  %v8008_v25 = vld [vmem:[%s12452_s1 + $0x234] ss:$8 sps:$4 sm:$0xff]  }
 0x19d   :  { %v1039_v55 = vpack.c.bf16 %v1005_v8, %v1003_v62  ;;  %v1038_v40 = vpack.c.bf16 %v1004_v46, %v1002_v19  ;;  %2240 = vmatpush1.bf16.msra.mxu0 %v8000_v36 }
 0x19e   :  { %v9695_v0 = vpop.permute.xlu1 %443  ;;  %2241 = vmatprep.subr.bf16.mxu0 %v8005_v45 }
 0x19f   :  { %v528_v17 = vmul.f32 %v8872_v22, %v9695_v0  ;;  %v529_v20 = vmul.f32 %v8885_v27, %v9695_v0  ;;  %1419 = vmatprep.mubr.bf16.mxu0 %v1039_v55 }
 0x1a0   :  { %1420 = vmatmul.mubr.bf16.gmra.mrb[56].mxu0 %v1038_v40 }
 0x1a1   :  { %v593_v61 = vadd.f32 %v529_v20, %v319_v18  ;;  %v592_v42 = vadd.f32 %v528_v17, %v318_v54  ;;  %v321_v18 = vmul.f32 %v8882_v26, %v9683_v59  ;;  %2242 = vmatpush1.bf16.msra.mxu0 %v8003_v34  ;;  %v8006_v34 = vld [vmem:[%s12452_s1 + $0x230] ss:$8 sps:$4 sm:$0xff]  }
 0x1a2   :  { %v1311_v60 = vpop.f32.mrb[12].mxu0  ;;  %v9720_v41 = vpop.permute.xlu1 %447  ;;  %2243 = vmatprep.subr.bf16.mxu0 %v8008_v25 }
 0x1a3   :  { %12679 = vst [vmem:[#allocation69_spill] sm:$0xff] %v9720_v41  ;;  %v1312_v62 = vadd.f32 %v1311_v60, %v9586_v58  ;;  %v531_v8 = vmul.f32 %v8885_v27, %v9720_v41  ;;  %v1313_v19 = vpop.f32.mrb[13].mxu0  ;;  %v530_v46 = vmul.f32 %v8872_v22, %v9720_v41  ;;  %v867_v36 = vadd.f32 %v803_v56, %v593_v61 }
 0x1a4   :  { %v1314_v55 = vadd.f32 %v1313_v19, %v9591_v63  ;;  %v1315_v40 = vpop.f32.mrb[14].mxu0  ;;  %v866_v54 = vadd.f32 %v802_v57, %v592_v42 }
 0x1a5   :  { %v1316_v17 = vadd.f32 %v1315_v40, %v9586_v58  ;;  %v1317_v20 = vpop.f32.mrb[15].mxu0  ;;  %v1452_v45 = vmax.f32 %v1312_v62, 0.0  ;;  %v595_v19 = vadd.f32 %v531_v8, %v321_v18  ;;  %v594_v61 = vadd.f32 %v530_v46, %v320_v52  ;;  %2244 = vmatpush1.bf16.msra.mxu0 %v8006_v34  ;;  %v8011_v40 = vld [vmem:[%s12452_s1 + $0x244] ss:$8 sps:$4 sm:$0xff]   ;;  %v8014_v18 = vld [vmem:[%s12452_s1 + $0x254] ss:$8 sps:$4 sm:$0xff]  }
 0x1a6   :  { %v1318_v27 = vadd.f32 %v1317_v20, %v9591_v63  ;;  %v1453_v60 = vmax.f32 %v1314_v55, 0.0  ;;  %v943_v42 = vadd.f32 %v8924_v44, %v867_v36  ;;  %2245 = vmatprep.subr.bf16.mxu0 %v8011_v40 }
 0x1a7   :  { %v1454_v22 = vmax.f32 %v1316_v17, 0.0  ;;  %v9737_v41 = vpop.permute.xlu1 %721 }
 0x1a8   :  { %12680 = vst [vmem:[#allocation70_spill] sm:$0xff] %v9737_v41  ;;  %v1455_v37 = vmax.f32 %v1318_v27, 0.0  ;;  %v804_v26 = vmul.f32 %v8894_v30, %v9737_v41  ;;  %v805_v56 = vmul.f32 %v8889_v28, %v9737_v41  ;;  %v942_v30 = vadd.f32 %v8938_v50, %v866_v54  ;;  %v8012_v27 = vld [vmem:[%s12452_s1 + $0x250] ss:$8 sps:$4 sm:$0xff]   ;;  %v8017_v54 = vld [vmem:[%s12452_s1 + $0x264] ss:$8 sps:$4 sm:$0xff]  }
 0x1a9   :  { %v1510_v57 = vpack.c.bf16 %v1454_v22, %v1452_v45  ;;  %v1007_v17 = vmax.f32 %v943_v42, 0.0  ;;  %v8015_v45 = vld [vmem:[%s12452_s1 + $0x260] ss:$8 sps:$4 sm:$0xff]   ;;  %v8020_v22 = vld [vmem:[%s12452_s1 + $0x274] ss:$8 sps:$4 sm:$0xff]  }
 0x1aa   :  { %v1511_v62 = vpack.c.bf16 %v1455_v37, %v1453_v60  ;;  %v869_v8 = vadd.f32 %v805_v56, %v595_v19  ;;  %v868_v55 = vadd.f32 %v804_v26, %v594_v61  ;;  %v8009_v37 = vld [vmem:[%s12452_s1 + $0x240] ss:$8 sps:$4 sm:$0xff]   ;;  %v1006_v36 = vmax.f32 %v942_v30, 0.0  ;;  %v8018_v42 = vld [vmem:[%s12452_s1 + $0x270] ss:$8 sps:$4 sm:$0xff]  }
 0x1ab   :  { %2246 = vmatpush1.bf16.msra.mxu0 %v8009_v37  ;;  %v8021_v37 = vld [vmem:[%s12452_s1 + $0x280] ss:$8 sps:$4 sm:$0xff]  }
 0x1ac   :  { %1804 = vmatprep.mubr.bf16.mxu1 %v1511_v62  ;;  %v945_v28 = vadd.f32 %v8924_v44, %v869_v8  ;;  %v944_v46 = vadd.f32 %v8938_v50, %v868_v55  ;;  %2247 = vmatprep.subr.bf16.mxu0 %v8014_v18  ;;  %v8024_v18 = vld [vmem:[%s12452_s1 + $0x290] ss:$8 sps:$4 sm:$0xff]  }
 0x1ad   :  { %1805 = vmatmul.mubr.bf16.gmra.mrb[12].mxu1 %v1510_v57 }
 0x1ae   :  { %v1009_v20 = vmax.f32 %v945_v28, 0.0  ;;  %v1008_v52 = vmax.f32 %v944_v46, 0.0  ;;  %v8023_v46 = vld [vmem:[%s12452_s1 + $0x284] ss:$8 sps:$4 sm:$0xff]  }
 0x1af   :  { %2248 = vmatpush1.bf16.msra.mxu0 %v8012_v27 }
 0x1b0   :  { %v1041_v44 = vpack.c.bf16 %v1009_v20, %v1007_v17  ;;  %v1040_v50 = vpack.c.bf16 %v1008_v52, %v1006_v36  ;;  %2249 = vmatprep.subr.bf16.mxu0 %v8017_v54  ;;  %v8026_v17 = vld [vmem:[%s12452_s1 + $0x294] ss:$8 sps:$4 sm:$0xff]   ;;  %v8027_v20 = vld [vmem:[%s12452_s1 + $0x2a0] ss:$8 sps:$4 sm:$0xff]   ;;  %v8029_v36 = vld [vmem:[%s12452_s1 + $0x2a4] ss:$8 sps:$4 sm:$0xff]  }
 0x1b1   :  { %v8032_v52 = vld [vmem:[%s12452_s1 + $0x2b4] ss:$8 sps:$4 sm:$0xff]  }
 0x1b2   :  { %1429 = vmatprep.mubr.bf16.mxu0 %v1041_v44 }
 0x1b3   :  { %1430 = vmatmul.mubr.bf16.gmra.mrb[60].mxu0 %v1040_v50  ;;  %v8030_v50 = vld [vmem:[%s12452_s1 + $0x2b0] ss:$8 sps:$4 sm:$0xff]  }
 0x1b4   :  { %2250 = vmatpush1.bf16.msra.mxu0 %v8015_v45  ;;  %v8035_v45 = vld [vmem:[%s12452_s1 + $0x2c4] ss:$8 sps:$4 sm:$0xff]  }
 0x1b5   :  { %v1321_v60 = vpop.f32.mrb[16].mxu0  ;;  %2251 = vmatprep.subr.bf16.mxu0 %v8020_v22 }
 0x1b6   :  { %v1322_v19 = vadd.f32 %v1321_v60, %v9586_v58  ;;  %v1323_v26 = vpop.f32.mrb[17].mxu0 }
 0x1b7   :  { %v1324_v56 = vadd.f32 %v1323_v26, %v9591_v63  ;;  %v1325_v61 = vpop.f32.mrb[18].mxu0 }
 0x1b8   :  { %v1326_v25 = vadd.f32 %v1325_v61, %v9586_v58  ;;  %v1327_v57 = vpop.f32.mrb[19].mxu0  ;;  %v1456_v62 = vmax.f32 %v1322_v19, 0.0  ;;  %2252 = vmatpush1.bf16.msra.mxu0 %v8018_v42  ;;  %v8033_v61 = vld [vmem:[%s12452_s1 + $0x2c0] ss:$8 sps:$4 sm:$0xff]  }
 0x1b9   :  { %v1328_v34 = vadd.f32 %v1327_v57, %v9591_v63  ;;  %v1457_v55 = vmax.f32 %v1324_v56, 0.0  ;;  %2253 = vmatprep.subr.bf16.mxu0 %v8023_v46  ;;  %v8039_v46 = vld [vmem:[%s12452_s1 + $0x2e0] ss:$8 sps:$4 sm:$0xff]  }
 0x1ba   :  { %v1458_v8 = vmax.f32 %v1326_v25, 0.0 }
 0x1bb   :  { %v1459_v30 = vmax.f32 %v1328_v34, 0.0 }
 0x1bc   :  { %v1512_v28 = vpack.c.bf16 %v1458_v8, %v1456_v62  ;;  %2254 = vmatpush1.bf16.msra.mxu0 %v8021_v37  ;;  %v8044_v37 = vld [vmem:[%s12452_s1 + $0x2f4] ss:$8 sps:$4 sm:$0xff]  }
 0x1bd   :  { %v1513_v40 = vpack.c.bf16 %v1459_v30, %v1457_v55  ;;  %2255 = vmatprep.subr.bf16.mxu0 %v8026_v17  ;;  %v8038_v55 = vld [vmem:[%s12452_s1 + $0x2d4] ss:$8 sps:$4 sm:$0xff]   ;;  %v8036_v30 = vld [vmem:[%s12452_s1 + $0x2d0] ss:$8 sps:$4 sm:$0xff]  }
 0x1bf   :  { %1814 = vmatprep.mubr.bf16.mxu1 %v1513_v40  ;;  %v8042_v40 = vld [vmem:[%s12452_s1 + $0x2f0] ss:$8 sps:$4 sm:$0xff]  }
 0x1c0   :  { %1815 = vmatmul.mubr.bf16.gmra.mrb[16].mxu1 %v1512_v28  ;;  %2256 = vmatpush1.bf16.msra.mxu0 %v8024_v18  ;;  %v8041_v28 = vld [vmem:[%s12452_s1 + $0x2e4] ss:$8 sps:$4 sm:$0xff]  }
 0x1c1   :  { %2257 = vmatprep.subr.bf16.mxu0 %v8029_v36 }
 0x1c4   :  { %2258 = vmatpush1.bf16.msra.mxu0 %v8027_v20 }
 0x1c5   :  { %2259 = vmatprep.subr.bf16.mxu0 %v8032_v52 }
 0x1c8   :  { %v1331_v44 = vpop.f32.mrb[20].mxu0  ;;  %2260 = vmatpush1.bf16.msra.mxu0 %v8030_v50 }
 0x1c9   :  { %v1332_v27 = vadd.f32 %v1331_v44, %v9586_v58  ;;  %v1333_v54 = vpop.f32.mrb[21].mxu0  ;;  %2261 = vmatprep.subr.bf16.mxu0 %v8035_v45 }
 0x1ca   :  { %v1334_v60 = vadd.f32 %v1333_v54, %v9591_v63  ;;  %v1335_v22 = vpop.f32.mrb[22].mxu0 }
 0x1cb   :  { %v1336_v19 = vadd.f32 %v1335_v22, %v9586_v58  ;;  %v1337_v26 = vpop.f32.mrb[23].mxu0  ;;  %v1460_v25 = vmax.f32 %v1332_v27, 0.0 }
 0x1cc   :  { %v1338_v56 = vadd.f32 %v1337_v26, %v9591_v63  ;;  %v1461_v42 = vmax.f32 %v1334_v60, 0.0  ;;  %2262 = vmatpush1.bf16.msra.mxu0 %v8033_v61 }
 0x1cd   :  { %v1462_v57 = vmax.f32 %v1336_v19, 0.0  ;;  %2263 = vmatprep.subr.bf16.mxu0 %v8038_v55 }
 0x1ce   :  { %v1463_v34 = vmax.f32 %v1338_v56, 0.0 }
 0x1cf   :  { %v1514_v62 = vpack.c.bf16 %v1462_v57, %v1460_v25 }
 0x1d0   :  { %v1515_v8 = vpack.c.bf16 %v1463_v34, %v1461_v42  ;;  %2264 = vmatpush1.bf16.msra.mxu0 %v8036_v30 }
 0x1d1   :  { %2265 = vmatprep.subr.bf16.mxu0 %v8041_v28 }
 0x1d2   :  { %1824 = vmatprep.mubr.bf16.mxu1 %v1515_v8 }
 0x1d3   :  { %1825 = vmatmul.mubr.bf16.gmra.mrb[20].mxu1 %v1514_v62 }
 0x1d4   :  { %2266 = vmatpush1.bf16.msra.mxu0 %v8039_v46 }
 0x1d5   :  { %2267 = vmatprep.subr.bf16.mxu0 %v8044_v37 }
 0x1d8   :  { %2268 = vmatpush1.bf16.msra.mxu0 %v8042_v40 }
 0x1db   :  { %v1341_v18 = vpop.f32.mrb[24].mxu0 }
 0x1dc   :  { %v1342_v17 = vadd.f32 %v1341_v18, %v9586_v58  ;;  %v1343_v20 = vpop.f32.mrb[25].mxu0 }
 0x1dd   :  { %v1344_v36 = vadd.f32 %v1343_v20, %v9591_v63  ;;  %v1345_v52 = vpop.f32.mrb[26].mxu0 }
 0x1de   :  { %v1346_v44 = vadd.f32 %v1345_v52, %v9586_v58  ;;  %v1347_v50 = vpop.f32.mrb[27].mxu0  ;;  %v1464_v54 = vmax.f32 %v1342_v17, 0.0 }
 0x1df   :  { %v1348_v27 = vadd.f32 %v1347_v50, %v9591_v63  ;;  %v1465_v60 = vmax.f32 %v1344_v36, 0.0 }
 0x1e0   :  { %v1466_v45 = vmax.f32 %v1346_v44, 0.0 }
 0x1e1   :  { %v1467_v22 = vmax.f32 %v1348_v27, 0.0 }
 0x1e2   :  { %v1516_v19 = vpack.c.bf16 %v1466_v45, %v1464_v54 }
 0x1e3   :  { %v1517_v26 = vpack.c.bf16 %v1467_v22, %v1465_v60 }
 0x1e5   :  { %1834 = vmatprep.mubr.bf16.mxu1 %v1517_v26 }
 0x1e6   :  { %1835 = vmatmul.mubr.bf16.gmra.mrb[24].mxu1 %v1516_v19 }
 0x1ee   :  { %v1351_v56 = vpop.f32.mrb[28].mxu0 }
 0x1ef   :  { %v1352_v61 = vadd.f32 %v1351_v56, %v9586_v58  ;;  %v1353_v25 = vpop.f32.mrb[29].mxu0 }
 0x1f0   :  { %v1354_v57 = vadd.f32 %v1353_v25, %v9591_v63  ;;  %v1355_v42 = vpop.f32.mrb[30].mxu0 }
 0x1f1   :  { %v1356_v34 = vadd.f32 %v1355_v42, %v9586_v58  ;;  %v1357_v62 = vpop.f32.mrb[31].mxu0  ;;  %v1468_v55 = vmax.f32 %v1352_v61, 0.0 }
 0x1f2   :  { %v1358_v8 = vadd.f32 %v1357_v62, %v9591_v63  ;;  %v1469_v28 = vmax.f32 %v1354_v57, 0.0 }
 0x1f3   :  { %v1470_v30 = vmax.f32 %v1356_v34, 0.0 }
 0x1f4   :  { %v1471_v46 = vmax.f32 %v1358_v8, 0.0 }
 0x1f5   :  { %v1518_v40 = vpack.c.bf16 %v1470_v30, %v1468_v55 }
 0x1f6   :  { %v1519_v37 = vpack.c.bf16 %v1471_v46, %v1469_v28 }
 0x1f8   :  { %1844 = vmatprep.mubr.bf16.mxu1 %v1519_v37 }
 0x1f9   :  { %1845 = vmatmul.mubr.bf16.gmra.mrb[28].mxu1 %v1518_v40 }
 0x201   :  { %v1361_v18 = vpop.f32.mrb[32].mxu0 }
 0x202   :  { %v1362_v17 = vadd.f32 %v1361_v18, %v9586_v58  ;;  %v1363_v20 = vpop.f32.mrb[33].mxu0 }
 0x203   :  { %v1364_v36 = vadd.f32 %v1363_v20, %v9591_v63  ;;  %v1365_v52 = vpop.f32.mrb[34].mxu0 }
 0x204   :  { %v1366_v44 = vadd.f32 %v1365_v52, %v9586_v58  ;;  %v1367_v50 = vpop.f32.mrb[35].mxu0  ;;  %v1472_v54 = vmax.f32 %v1362_v17, 0.0 }
 0x205   :  { %v1368_v27 = vadd.f32 %v1367_v50, %v9591_v63  ;;  %v1473_v60 = vmax.f32 %v1364_v36, 0.0 }
 0x206   :  { %v1474_v45 = vmax.f32 %v1366_v44, 0.0 }
 0x207   :  { %v1475_v22 = vmax.f32 %v1368_v27, 0.0 }
 0x208   :  { %v1520_v19 = vpack.c.bf16 %v1474_v45, %v1472_v54 }
 0x209   :  { %v1521_v26 = vpack.c.bf16 %v1475_v22, %v1473_v60 }
 0x20b   :  { %1854 = vmatprep.mubr.bf16.mxu1 %v1521_v26 }
 0x20c   :  { %1855 = vmatmul.mubr.bf16.gmra.mrb[32].mxu1 %v1520_v19 }
 0x214   :  { %v1371_v56 = vpop.f32.mrb[36].mxu0 }
 0x215   :  { %v1372_v61 = vadd.f32 %v1371_v56, %v9586_v58  ;;  %v1373_v25 = vpop.f32.mrb[37].mxu0 }
 0x216   :  { %v1374_v57 = vadd.f32 %v1373_v25, %v9591_v63  ;;  %v1375_v42 = vpop.f32.mrb[38].mxu0 }
 0x217   :  { %v1376_v34 = vadd.f32 %v1375_v42, %v9586_v58  ;;  %v1377_v62 = vpop.f32.mrb[39].mxu0  ;;  %v1476_v55 = vmax.f32 %v1372_v61, 0.0 }
 0x218   :  { %v1378_v8 = vadd.f32 %v1377_v62, %v9591_v63  ;;  %v1477_v28 = vmax.f32 %v1374_v57, 0.0 }
 0x219   :  { %v1478_v30 = vmax.f32 %v1376_v34, 0.0 }
 0x21a   :  { %v1479_v46 = vmax.f32 %v1378_v8, 0.0 }
 0x21b   :  { %v1522_v40 = vpack.c.bf16 %v1478_v30, %v1476_v55 }
 0x21c   :  { %v1523_v37 = vpack.c.bf16 %v1479_v46, %v1477_v28 }
 0x21e   :  { %1864 = vmatprep.mubr.bf16.mxu1 %v1523_v37 }
 0x21f   :  { %1865 = vmatmul.mubr.bf16.gmra.mrb[36].mxu1 %v1522_v40 }
 0x227   :  { %v1381_v18 = vpop.f32.mrb[40].mxu0 }
 0x228   :  { %v1382_v17 = vadd.f32 %v1381_v18, %v9586_v58  ;;  %v1383_v20 = vpop.f32.mrb[41].mxu0  ;;  %v7116_v18 = vld [vmem:[%s12454_s2 + $0x2] ss:$8 sm:$0x3] }
 0x229   :  { %v1384_v36 = vadd.f32 %v1383_v20, %v9591_v63  ;;  %v1385_v52 = vpop.f32.mrb[42].mxu0 }
 0x22a   :  { %v1386_v44 = vadd.f32 %v1385_v52, %v9586_v58  ;;  %v1387_v50 = vpop.f32.mrb[43].mxu0  ;;  %v1480_v54 = vmax.f32 %v1382_v17, 0.0  ;;  %v9862_v52 = vrot.slane %v7116_v18, %v8841_v7 }
 0x22b   :  { %v1388_v27 = vadd.f32 %v1387_v50, %v9591_v63  ;;  %v1481_v60 = vmax.f32 %v1384_v36, 0.0 }
 0x22c   :  { %v1482_v45 = vmax.f32 %v1386_v44, 0.0 }
 0x22d   :  { %v1483_v22 = vmax.f32 %v1388_v27, 0.0  ;;  %v9866_v27 = vrot.slane %v7116_v18, %v8834_v5 }
 0x22e   :  { %v1524_v19 = vpack.c.bf16 %v1482_v45, %v1480_v54 }
 0x22f   :  { %v1525_v26 = vpack.c.bf16 %v1483_v22, %v1481_v60 }
 0x231   :  { %1874 = vmatprep.mubr.bf16.mxu1 %v1525_v26 }
 0x232   :  { %1875 = vmatmul.mubr.bf16.gmra.mrb[40].mxu1 %v1524_v19 }
 0x23a   :  { %v1391_v56 = vpop.f32.mrb[44].mxu0 }
 0x23b   :  { %v1392_v61 = vadd.f32 %v1391_v56, %v9586_v58  ;;  %v1393_v25 = vpop.f32.mrb[45].mxu0 }
 0x23c   :  { %v1394_v57 = vadd.f32 %v1393_v25, %v9591_v63  ;;  %v1395_v42 = vpop.f32.mrb[46].mxu0 }
 0x23d   :  { %v1396_v34 = vadd.f32 %v1395_v42, %v9586_v58  ;;  %v1397_v62 = vpop.f32.mrb[47].mxu0  ;;  %v1484_v55 = vmax.f32 %v1392_v61, 0.0 }
 0x23e   :  { %v1398_v8 = vadd.f32 %v1397_v62, %v9591_v63  ;;  %v1485_v28 = vmax.f32 %v1394_v57, 0.0 }
 0x23f   :  { %v1486_v30 = vmax.f32 %v1396_v34, 0.0 }
 0x240   :  { %v1487_v46 = vmax.f32 %v1398_v8, 0.0 }
 0x241   :  { %v1526_v40 = vpack.c.bf16 %v1486_v30, %v1484_v55 }
 0x242   :  { %v1527_v37 = vpack.c.bf16 %v1487_v46, %v1485_v28 }
 0x244   :  { %1884 = vmatprep.mubr.bf16.mxu1 %v1527_v37 }
 0x245   :  { %1885 = vmatmul.mubr.bf16.gmra.mrb[44].mxu1 %v1526_v40 }
 0x24d   :  { %v1401_v17 = vpop.f32.mrb[48].mxu0 }
 0x24e   :  { %v1402_v20 = vadd.f32 %v1401_v17, %v9586_v58  ;;  %v1403_v36 = vpop.f32.mrb[49].mxu0 }
 0x24f   :  { %v1404_v44 = vadd.f32 %v1403_v36, %v9591_v63  ;;  %v1405_v50 = vpop.f32.mrb[50].mxu0 }
 0x250   :  { %v1406_v54 = vadd.f32 %v1405_v50, %v9586_v58  ;;  %v1407_v45 = vpop.f32.mrb[51].mxu0  ;;  %v1488_v19 = vmax.f32 %v1402_v20, 0.0 }
 0x251   :  { %v1408_v60 = vadd.f32 %v1407_v45, %v9591_v63  ;;  %v1776_v22 = vpop.f32.mrb[0].mxu1  ;;  %v1489_v25 = vmax.f32 %v1404_v44, 0.0 }
 0x252   :  { %v1490_v26 = vmax.f32 %v1406_v54, 0.0  ;;  %v1777_v56 = vadd.f32 %v1776_v22, %v9862_v52  ;;  %v1778_v61 = vpop.f32.mrb[1].mxu1 }
 0x253   :  { %v1491_v57 = vmax.f32 %v1408_v60, 0.0  ;;  %v1779_v42 = vadd.f32 %v1778_v61, %v9866_v27  ;;  %v1780_v34 = vpop.f32.mrb[2].mxu1 }
 0x254   :  { %v1528_v62 = vpack.c.bf16 %v1490_v26, %v1488_v19  ;;  %v1781_v8 = vadd.f32 %v1780_v34, %v9862_v52  ;;  %v1782_v55 = vpop.f32.mrb[3].mxu1  ;;  %v1935_v46 = vmax.f32 %v1777_v56, 0.0 }
 0x255   :  { %v1529_v30 = vpack.c.bf16 %v1491_v57, %v1489_v25  ;;  %v1783_v28 = vadd.f32 %v1782_v55, %v9866_v27  ;;  %v1936_v37 = vmax.f32 %v1779_v42, 0.0 }
 0x256   :  { %v1937_v40 = vmax.f32 %v1781_v8, 0.0 }
 0x257   :  { %v1938_v18 = vmax.f32 %v1783_v28, 0.0  ;;  %1894 = vmatprep.mubr.bf16.mxu1 %v1529_v30 }
 0x258   :  { %v1999_v17 = vpack.c.bf16 %v1937_v40, %v1935_v46  ;;  %1895 = vmatmul.mubr.bf16.gmra.mrb[48].mxu1 %v1528_v62 }
 0x259   :  { %v2000_v20 = vpack.c.bf16 %v1938_v18, %v1936_v37 }
 0x25a   :  { %v1786_v36 = vpop.f32.mrb[4].mxu1 }
 0x25b   :  { %v1787_v44 = vadd.f32 %v1786_v36, %v9862_v52  ;;  %v1788_v50 = vpop.f32.mrb[5].mxu1  ;;  %2269 = vmatprep.mubr.bf16.mxu0 %v2000_v20 }
 0x25c   :  { %v1789_v54 = vadd.f32 %v1788_v50, %v9866_v27  ;;  %v1790_v45 = vpop.f32.mrb[6].mxu1  ;;  %2270 = vmatmul.mubr.bf16.vlgmr.msra.gmra.mrb[64].mxu0 %v1999_v17 }
 0x25d   :  { %v1791_v60 = vadd.f32 %v1790_v45, %v9862_v52  ;;  %v1792_v22 = vpop.f32.mrb[7].mxu1  ;;  %v1939_v26 = vmax.f32 %v1787_v44, 0.0 }
 0x25e   :  { %v1793_v19 = vadd.f32 %v1792_v22, %v9866_v27  ;;  %v1940_v61 = vmax.f32 %v1789_v54, 0.0 }
 0x25f   :  { %v1941_v56 = vmax.f32 %v1791_v60, 0.0 }
 0x260   :  { %v1942_v25 = vmax.f32 %v1793_v19, 0.0  ;;  %v1411_v57 = vpop.f32.mrb[52].mxu0 }
 0x261   :  { %v1412_v42 = vadd.f32 %v1411_v57, %v9586_v58  ;;  %v1413_v34 = vpop.f32.mrb[53].mxu0  ;;  %v2001_v62 = vpack.c.bf16 %v1941_v56, %v1939_v26 }
 0x262   :  { %v1414_v8 = vadd.f32 %v1413_v34, %v9591_v63  ;;  %v1415_v55 = vpop.f32.mrb[54].mxu0  ;;  %v2002_v30 = vpack.c.bf16 %v1942_v25, %v1940_v61 }
 0x263   :  { %v1416_v28 = vadd.f32 %v1415_v55, %v9586_v58  ;;  %v1417_v46 = vpop.f32.mrb[55].mxu0  ;;  %v1492_v37 = vmax.f32 %v1412_v42, 0.0 }
 0x264   :  { %v1418_v40 = vadd.f32 %v1417_v46, %v9591_v63  ;;  %2279 = vmatprep.mubr.bf16.mxu0 %v2002_v30  ;;  %v1493_v17 = vmax.f32 %v1414_v8, 0.0 }
 0x265   :  { %v1494_v18 = vmax.f32 %v1416_v28, 0.0  ;;  %2280 = vmatmul.mubr.bf16.gmra.mrb[68].mxu0 %v2001_v62 }
 0x266   :  { %v1495_v20 = vmax.f32 %v1418_v40, 0.0 }
 0x267   :  { %v1530_v36 = vpack.c.bf16 %v1494_v18, %v1492_v37 }
 0x268   :  { %v1531_v44 = vpack.c.bf16 %v1495_v20, %v1493_v17 }
 0x26a   :  { %1904 = vmatprep.mubr.bf16.mxu1 %v1531_v44  ;;  %v8047_v44 = vld [vmem:[%s12452_s1 + $0x304] ss:$8 sps:$4 sm:$0xff]  }
 0x26b   :  { %1905 = vmatmul.mubr.bf16.gmra.mrb[52].mxu1 %v1530_v36  ;;  %v8045_v36 = vld [vmem:[%s12452_s1 + $0x300] ss:$8 sps:$4 sm:$0xff]   ;;  %2732 = vmatprep.subr.bf16.mxu1 %v8047_v44  ;;  %v8054_v44 = vld [vmem:[%s12452_s1 + $0x330] ss:$8 sps:$4 sm:$0xff]  }
 0x26c   :  { %2733 = vmatpush1.bf16.msra.mxu1 %v8045_v36 }
 0x26d   :  { %v1796_v50 = vpop.f32.mrb[8].mxu1 }
 0x26e   :  { %v1797_v54 = vadd.f32 %v1796_v50, %v9862_v52  ;;  %v1798_v45 = vpop.f32.mrb[9].mxu1 }
 0x26f   :  { %v1799_v60 = vadd.f32 %v1798_v45, %v9866_v27  ;;  %v1800_v22 = vpop.f32.mrb[10].mxu1 }
 0x270   :  { %v1801_v19 = vadd.f32 %v1800_v22, %v9862_v52  ;;  %v1802_v26 = vpop.f32.mrb[11].mxu1  ;;  %v1943_v61 = vmax.f32 %v1797_v54, 0.0  ;;  %v8048_v22 = vld [vmem:[%s12452_s1 + $0x310] ss:$8 sps:$4 sm:$0xff]  }
 0x271   :  { %v1803_v56 = vadd.f32 %v1802_v26, %v9866_v27  ;;  %v1944_v57 = vmax.f32 %v1799_v60, 0.0  ;;  %v8053_v26 = vld [vmem:[%s12452_s1 + $0x324] ss:$8 sps:$4 sm:$0xff]  }
 0x272   :  { %v1945_v25 = vmax.f32 %v1801_v19, 0.0  ;;  %v8050_v19 = vld [vmem:[%s12452_s1 + $0x314] ss:$8 sps:$4 sm:$0xff]  }
 0x273   :  { %v1946_v42 = vmax.f32 %v1803_v56, 0.0  ;;  %v1421_v34 = vpop.f32.mrb[56].mxu0  ;;  %2734 = vmatprep.subr.bf16.mxu1 %v8050_v19 }
 0x274   :  { %v1422_v62 = vadd.f32 %v1421_v34, %v9586_v58  ;;  %v1423_v8 = vpop.f32.mrb[57].mxu0  ;;  %v2003_v55 = vpack.c.bf16 %v1945_v25, %v1943_v61  ;;  %2735 = vmatpush1.bf16.msra.mxu1 %v8048_v22  ;;  %v8051_v61 = vld [vmem:[%s12452_s1 + $0x320] ss:$8 sps:$4 sm:$0xff]  }
 0x275   :  { %v1424_v30 = vadd.f32 %v1423_v8, %v9591_v63  ;;  %v1425_v28 = vpop.f32.mrb[58].mxu0  ;;  %v2004_v46 = vpack.c.bf16 %v1946_v42, %v1944_v57  ;;  %2736 = vmatprep.subr.bf16.mxu1 %v8053_v26  ;;  %v8059_v26 = vld [vmem:[%s12452_s1 + $0x344] ss:$8 sps:$4 sm:$0xff]  }
 0x276   :  { %v1426_v40 = vadd.f32 %v1425_v28, %v9586_v58  ;;  %v1427_v37 = vpop.f32.mrb[59].mxu0  ;;  %v1496_v17 = vmax.f32 %v1422_v62, 0.0 }
 0x277   :  { %v1428_v18 = vadd.f32 %v1427_v37, %v9591_v63  ;;  %2289 = vmatprep.mubr.bf16.mxu0 %v2004_v46  ;;  %v1497_v50 = vmax.f32 %v1424_v30, 0.0 }
 0x278   :  { %v1498_v20 = vmax.f32 %v1426_v40, 0.0  ;;  %2290 = vmatmul.mubr.bf16.gmra.mrb[72].mxu0 %v2003_v55  ;;  %2737 = vmatpush1.bf16.msra.mxu1 %v8051_v61 }
 0x279   :  { %v1499_v54 = vmax.f32 %v1428_v18, 0.0  ;;  %v8056_v18 = vld [vmem:[%s12452_s1 + $0x334] ss:$8 sps:$4 sm:$0xff]  }
 0x27a   :  { %v1532_v45 = vpack.c.bf16 %v1498_v20, %v1496_v17  ;;  %2738 = vmatprep.subr.bf16.mxu1 %v8056_v18 }
 0x27b   :  { %v1533_v60 = vpack.c.bf16 %v1499_v54, %v1497_v50 }
 0x27c   :  { %2739 = vmatpush1.bf16.msra.mxu1 %v8054_v44 }
 0x27d   :  { %1914 = vmatprep.mubr.bf16.mxu1 %v1533_v60  ;;  %2740 = vmatprep.subr.bf16.mxu1 %v8059_v26 }
 0x27e   :  { %1915 = vmatmul.mubr.bf16.gmra.mrb[56].mxu1 %v1532_v45 }
 0x280   :  { %v1806_v56 = vpop.f32.mrb[12].mxu1 }
 0x281   :  { %v1807_v25 = vadd.f32 %v1806_v56, %v9862_v52  ;;  %v1808_v57 = vpop.f32.mrb[13].mxu1 }
 0x282   :  { %v1809_v42 = vadd.f32 %v1808_v57, %v9866_v27  ;;  %v1810_v34 = vpop.f32.mrb[14].mxu1 }
 0x283   :  { %v1811_v62 = vadd.f32 %v1810_v34, %v9862_v52  ;;  %v1812_v8 = vpop.f32.mrb[15].mxu1  ;;  %v1947_v30 = vmax.f32 %v1807_v25, 0.0  ;;  %v8057_v25 = vld [vmem:[%s12452_s1 + $0x340] ss:$8 sps:$4 sm:$0xff]  }
 0x284   :  { %v1813_v55 = vadd.f32 %v1812_v8, %v9866_v27  ;;  %v1948_v46 = vmax.f32 %v1809_v42, 0.0  ;;  %2741 = vmatpush1.bf16.msra.mxu1 %v8057_v25  ;;  %v8065_v8 = vld [vmem:[%s12452_s1 + $0x364] ss:$8 sps:$4 sm:$0xff]   ;;  %v8074_v25 = vld [vmem:[%s12452_s1 + $0x394] ss:$8 sps:$4 sm:$0xff]  }
 0x285   :  { %v1949_v28 = vmax.f32 %v1811_v62, 0.0  ;;  %v8060_v62 = vld [vmem:[%s12452_s1 + $0x350] ss:$8 sps:$4 sm:$0xff]  }
 0x286   :  { %v1950_v40 = vmax.f32 %v1813_v55, 0.0  ;;  %v1431_v37 = vpop.f32.mrb[60].mxu0  ;;  %v8063_v55 = vld [vmem:[%s12452_s1 + $0x360] ss:$8 sps:$4 sm:$0xff]  }
 0x287   :  { %v1432_v17 = vadd.f32 %v1431_v37, %v9586_v58  ;;  %v1433_v20 = vpop.f32.mrb[61].mxu0  ;;  %v2005_v36 = vpack.c.bf16 %v1949_v28, %v1947_v30  ;;  %v8068_v28 = vld [vmem:[%s12452_s1 + $0x374] ss:$8 sps:$4 sm:$0xff]  }
 0x288   :  { %v1434_v50 = vadd.f32 %v1433_v20, %v9591_v63  ;;  %v1435_v54 = vpop.f32.mrb[62].mxu0  ;;  %v2006_v45 = vpack.c.bf16 %v1950_v40, %v1948_v46 }
 0x289   :  { %v1436_v60 = vadd.f32 %v1435_v54, %v9586_v58  ;;  %v1437_v22 = vpop.f32.mrb[63].mxu0  ;;  %v1500_v56 = vmax.f32 %v1432_v17, 0.0  ;;  %v8062_v58 = vld [vmem:[%s12452_s1 + $0x354] ss:$8 sps:$4 sm:$0xff]  }
 0x28a   :  { %v1438_v19 = vadd.f32 %v1437_v22, %v9591_v63  ;;  %2299 = vmatprep.mubr.bf16.mxu0 %v2006_v45  ;;  %v1501_v57 = vmax.f32 %v1434_v50, 0.0  ;;  %2742 = vmatprep.subr.bf16.mxu1 %v8062_v58  ;;  %v8080_v58 = vld [vmem:[%s12452_s1 + $0x3b4] ss:$8 sps:$4 sm:$0xff]  }
 0x28b   :  { %v1502_v61 = vmax.f32 %v1436_v60, 0.0  ;;  %2300 = vmatmul.mubr.bf16.gmra.mrb[76].mxu0 %v2005_v36  ;;  %2743 = vmatpush1.bf16.msra.mxu1 %v8060_v62  ;;  %v8066_v36 = vld [vmem:[%s12452_s1 + $0x370] ss:$8 sps:$4 sm:$0xff]  }
 0x28c   :  { %v1503_v42 = vmax.f32 %v1438_v19, 0.0  ;;  %2744 = vmatprep.subr.bf16.mxu1 %v8065_v8  ;;  %v8071_v19 = vld [vmem:[%s12452_s1 + $0x384] ss:$8 sps:$4 sm:$0xff]  }
 0x28d   :  { %v1534_v63 = vpack.c.bf16 %v1502_v61, %v1500_v56  ;;  %v8069_v56 = vld [vmem:[%s12452_s1 + $0x380] ss:$8 sps:$4 sm:$0xff]   ;;  %v8072_v61 = vld [vmem:[%s12452_s1 + $0x390] ss:$8 sps:$4 sm:$0xff]  }
 0x28e   :  { %v1535_v34 = vpack.c.bf16 %v1503_v42, %v1501_v57  ;;  %v8075_v57 = vld [vmem:[%s12452_s1 + $0x3a0] ss:$8 sps:$4 sm:$0xff]   ;;  %v8077_v42 = vld [vmem:[%s12452_s1 + $0x3a4] ss:$8 sps:$4 sm:$0xff]  }
 0x28f   :  { %2745 = vmatpush1.bf16.msra.mxu1 %v8063_v55  ;;  %v8083_v55 = vld [vmem:[%s12452_s1 + $0x3c4] ss:$8 sps:$4 sm:$0xff]  }
 0x290   :  { %1924 = vmatprep.mubr.bf16.mxu1 %v1535_v34  ;;  %2746 = vmatprep.subr.bf16.mxu1 %v8068_v28  ;;  %v8078_v34 = vld [vmem:[%s12452_s1 + $0x3b0] ss:$8 sps:$4 sm:$0xff]  }
 0x291   :  { %1925 = vmatmul.mubr.bf16.gmra.mrb[60].mxu1 %v1534_v63 }
 0x293   :  { %v1816_v30 = vpop.f32.mrb[16].mxu1  ;;  %2747 = vmatpush1.bf16.msra.mxu1 %v8066_v36 }
 0x294   :  { %v1817_v46 = vadd.f32 %v1816_v30, %v9862_v52  ;;  %v1818_v40 = vpop.f32.mrb[17].mxu1  ;;  %2748 = vmatprep.subr.bf16.mxu1 %v8071_v19  ;;  %v8087_v19 = vld [vmem:[%s12452_s1 + $0x3e0] ss:$8 sps:$4 sm:$0xff]  }
 0x295   :  { %v1819_v37 = vadd.f32 %v1818_v40, %v9866_v27  ;;  %v1820_v18 = vpop.f32.mrb[18].mxu1 }
 0x296   :  { %v1821_v17 = vadd.f32 %v1820_v18, %v9862_v52  ;;  %v1822_v20 = vpop.f32.mrb[19].mxu1  ;;  %v1951_v50 = vmax.f32 %v1817_v46, 0.0  ;;  %v8081_v18 = vld [vmem:[%s12452_s1 + $0x3c0] ss:$8 sps:$4 sm:$0xff]  }
 0x297   :  { %v1823_v44 = vadd.f32 %v1822_v20, %v9866_v27  ;;  %v1952_v45 = vmax.f32 %v1819_v37, 0.0  ;;  %2749 = vmatpush1.bf16.msra.mxu1 %v8069_v56  ;;  %v8090_v56 = vld [vmem:[%s12452_s1 + $0x3f0] ss:$8 sps:$4 sm:$0xff]  }
 0x298   :  { %v1953_v54 = vmax.f32 %v1821_v17, 0.0  ;;  %2750 = vmatprep.subr.bf16.mxu1 %v8074_v25 }
 0x299   :  { %v1954_v60 = vmax.f32 %v1823_v44, 0.0 }
 0x29a   :  { %v2007_v22 = vpack.c.bf16 %v1953_v54, %v1951_v50 }
 0x29b   :  { %v2008_v26 = vpack.c.bf16 %v1954_v60, %v1952_v45  ;;  %2751 = vmatpush1.bf16.msra.mxu1 %v8072_v61  ;;  %v8086_v45 = vld [vmem:[%s12452_s1 + $0x3d4] ss:$8 sps:$4 sm:$0xff]   ;;  %v8084_v60 = vld [vmem:[%s12452_s1 + $0x3d0] ss:$8 sps:$4 sm:$0xff]  }
 0x29c   :  { %2752 = vmatprep.subr.bf16.mxu1 %v8077_v42 }
 0x29d   :  { %2309 = vmatprep.mubr.bf16.mxu0 %v2008_v26  ;;  %v8092_v26 = vld [vmem:[%s12452_s1 + $0x3f4] ss:$8 sps:$4 sm:$0xff]  }
 0x29e   :  { %2310 = vmatmul.mubr.bf16.gmra.mrb[80].mxu0 %v2007_v22  ;;  %v8089_v22 = vld [vmem:[%s12452_s1 + $0x3e4] ss:$8 sps:$4 sm:$0xff]  }
 0x29f   :  { %2753 = vmatpush1.bf16.msra.mxu1 %v8075_v57 }
 0x2a0   :  { %2754 = vmatprep.subr.bf16.mxu1 %v8080_v58 }
 0x2a3   :  { %2755 = vmatpush1.bf16.msra.mxu1 %v8078_v34 }
 0x2a4   :  { %2756 = vmatprep.subr.bf16.mxu1 %v8083_v55 }
 0x2a6   :  { %v1826_v63 = vpop.f32.mrb[20].mxu1 }
 0x2a7   :  { %v1827_v62 = vadd.f32 %v1826_v63, %v9862_v52  ;;  %v1828_v8 = vpop.f32.mrb[21].mxu1  ;;  %2757 = vmatpush1.bf16.msra.mxu1 %v8081_v18 }
 0x2a8   :  { %v1829_v30 = vadd.f32 %v1828_v8, %v9866_v27  ;;  %v1830_v28 = vpop.f32.mrb[22].mxu1  ;;  %2758 = vmatprep.subr.bf16.mxu1 %v8086_v45 }
 0x2a9   :  { %v1831_v46 = vadd.f32 %v1830_v28, %v9862_v52  ;;  %v1832_v40 = vpop.f32.mrb[23].mxu1  ;;  %v1955_v17 = vmax.f32 %v1827_v62, 0.0 }
 0x2aa   :  { %v1833_v37 = vadd.f32 %v1832_v40, %v9866_v27  ;;  %v1956_v36 = vmax.f32 %v1829_v30, 0.0 }
 0x2ab   :  { %v1957_v20 = vmax.f32 %v1831_v46, 0.0  ;;  %2759 = vmatpush1.bf16.msra.mxu1 %v8084_v60 }
 0x2ac   :  { %v1958_v44 = vmax.f32 %v1833_v37, 0.0  ;;  %2760 = vmatprep.subr.bf16.mxu1 %v8089_v22 }
 0x2ad   :  { %v2009_v50 = vpack.c.bf16 %v1957_v20, %v1955_v17 }
 0x2ae   :  { %v2010_v54 = vpack.c.bf16 %v1958_v44, %v1956_v36 }
 0x2af   :  { %2761 = vmatpush1.bf16.msra.mxu1 %v8087_v19 }
 0x2b0   :  { %2319 = vmatprep.mubr.bf16.mxu0 %v2010_v54  ;;  %2762 = vmatprep.subr.bf16.mxu1 %v8092_v26 }
 0x2b1   :  { %2320 = vmatmul.mubr.bf16.gmra.mrb[84].mxu0 %v2009_v50 }
 0x2b3   :  { %2763 = vmatpush1.bf16.msra.mxu1 %v8090_v56 }
 0x2b9   :  { %v1836_v61 = vpop.f32.mrb[24].mxu1 }
 0x2ba   :  { %v1837_v25 = vadd.f32 %v1836_v61, %v9862_v52  ;;  %v1838_v57 = vpop.f32.mrb[25].mxu1 }
 0x2bb   :  { %v1839_v42 = vadd.f32 %v1838_v57, %v9866_v27  ;;  %v1840_v58 = vpop.f32.mrb[26].mxu1 }
 0x2bc   :  { %v1841_v63 = vadd.f32 %v1840_v58, %v9862_v52  ;;  %v1842_v34 = vpop.f32.mrb[27].mxu1  ;;  %v1959_v8 = vmax.f32 %v1837_v25, 0.0 }
 0x2bd   :  { %v1843_v62 = vadd.f32 %v1842_v34, %v9866_v27  ;;  %v1960_v30 = vmax.f32 %v1839_v42, 0.0 }
 0x2be   :  { %v1961_v55 = vmax.f32 %v1841_v63, 0.0 }
 0x2bf   :  { %v1962_v28 = vmax.f32 %v1843_v62, 0.0 }
 0x2c0   :  { %v2011_v46 = vpack.c.bf16 %v1961_v55, %v1959_v8 }
 0x2c1   :  { %v2012_v40 = vpack.c.bf16 %v1962_v28, %v1960_v30 }
 0x2c3   :  { %2329 = vmatprep.mubr.bf16.mxu0 %v2012_v40 }
 0x2c4   :  { %2330 = vmatmul.mubr.bf16.gmra.mrb[88].mxu0 %v2011_v46 }
 0x2cc   :  { %v1846_v37 = vpop.f32.mrb[28].mxu1 }
 0x2cd   :  { %v1847_v18 = vadd.f32 %v1846_v37, %v9862_v52  ;;  %v1848_v17 = vpop.f32.mrb[29].mxu1 }
 0x2ce   :  { %v1849_v20 = vadd.f32 %v1848_v17, %v9866_v27  ;;  %v1850_v36 = vpop.f32.mrb[30].mxu1 }
 0x2cf   :  { %v1851_v44 = vadd.f32 %v1850_v36, %v9862_v52  ;;  %v1852_v50 = vpop.f32.mrb[31].mxu1  ;;  %v1963_v45 = vmax.f32 %v1847_v18, 0.0 }
 0x2d0   :  { %v1853_v54 = vadd.f32 %v1852_v50, %v9866_v27  ;;  %v1964_v22 = vmax.f32 %v1849_v20, 0.0 }
 0x2d1   :  { %v1965_v60 = vmax.f32 %v1851_v44, 0.0 }
 0x2d2   :  { %v1966_v19 = vmax.f32 %v1853_v54, 0.0 }
 0x2d3   :  { %v2013_v26 = vpack.c.bf16 %v1965_v60, %v1963_v45 }
 0x2d4   :  { %v2014_v56 = vpack.c.bf16 %v1966_v19, %v1964_v22 }
 0x2d6   :  { %2339 = vmatprep.mubr.bf16.mxu0 %v2014_v56 }
 0x2d7   :  { %2340 = vmatmul.mubr.bf16.gmra.mrb[92].mxu0 %v2013_v26 }
 0x2df   :  { %v1856_v61 = vpop.f32.mrb[32].mxu1 }
 0x2e0   :  { %v1857_v25 = vadd.f32 %v1856_v61, %v9862_v52  ;;  %v1858_v57 = vpop.f32.mrb[33].mxu1 }
 0x2e1   :  { %v1859_v42 = vadd.f32 %v1858_v57, %v9866_v27  ;;  %v1860_v58 = vpop.f32.mrb[34].mxu1 }
 0x2e2   :  { %v1861_v63 = vadd.f32 %v1860_v58, %v9862_v52  ;;  %v1862_v34 = vpop.f32.mrb[35].mxu1  ;;  %v1967_v8 = vmax.f32 %v1857_v25, 0.0 }
 0x2e3   :  { %v1863_v62 = vadd.f32 %v1862_v34, %v9866_v27  ;;  %v1968_v30 = vmax.f32 %v1859_v42, 0.0 }
 0x2e4   :  { %v1969_v55 = vmax.f32 %v1861_v63, 0.0 }
 0x2e5   :  { %v1970_v28 = vmax.f32 %v1863_v62, 0.0 }
 0x2e6   :  { %v2015_v46 = vpack.c.bf16 %v1969_v55, %v1967_v8 }
 0x2e7   :  { %v2016_v40 = vpack.c.bf16 %v1970_v28, %v1968_v30 }
 0x2e9   :  { %2349 = vmatprep.mubr.bf16.mxu0 %v2016_v40 }
 0x2ea   :  { %2350 = vmatmul.mubr.bf16.gmra.mrb[96].mxu0 %v2015_v46 }
 0x2f2   :  { %v1866_v37 = vpop.f32.mrb[36].mxu1 }
 0x2f3   :  { %v1867_v18 = vadd.f32 %v1866_v37, %v9862_v52  ;;  %v1868_v17 = vpop.f32.mrb[37].mxu1 }
 0x2f4   :  { %v1869_v20 = vadd.f32 %v1868_v17, %v9866_v27  ;;  %v1870_v36 = vpop.f32.mrb[38].mxu1 }
 0x2f5   :  { %v1871_v44 = vadd.f32 %v1870_v36, %v9862_v52  ;;  %v1872_v50 = vpop.f32.mrb[39].mxu1  ;;  %v1971_v45 = vmax.f32 %v1867_v18, 0.0 }
 0x2f6   :  { %v1873_v54 = vadd.f32 %v1872_v50, %v9866_v27  ;;  %v1972_v22 = vmax.f32 %v1869_v20, 0.0 }
 0x2f7   :  { %v1973_v60 = vmax.f32 %v1871_v44, 0.0 }
 0x2f8   :  { %v1974_v19 = vmax.f32 %v1873_v54, 0.0 }
 0x2f9   :  { %v2017_v26 = vpack.c.bf16 %v1973_v60, %v1971_v45 }
 0x2fa   :  { %v2018_v56 = vpack.c.bf16 %v1974_v19, %v1972_v22 }
 0x2fc   :  { %2359 = vmatprep.mubr.bf16.mxu0 %v2018_v56 }
 0x2fd   :  { %2360 = vmatmul.mubr.bf16.gmra.mrb[100].mxu0 %v2017_v26 }
 0x305   :  { %v1876_v61 = vpop.f32.mrb[40].mxu1 }
 0x306   :  { %v1877_v25 = vadd.f32 %v1876_v61, %v9862_v52  ;;  %v1878_v57 = vpop.f32.mrb[41].mxu1  ;;  %v7181_v61 = vld [vmem:[%s12454_s2 + $0x3] ss:$8 sm:$0x3] }
 0x307   :  { %v1879_v42 = vadd.f32 %v1878_v57, %v9866_v27  ;;  %v1880_v58 = vpop.f32.mrb[42].mxu1 }
 0x308   :  { %v1881_v63 = vadd.f32 %v1880_v58, %v9862_v52  ;;  %v1882_v34 = vpop.f32.mrb[43].mxu1  ;;  %v1975_v8 = vmax.f32 %v1877_v25, 0.0  ;;  %v10031_v58 = vrot.slane %v7181_v61, %v8841_v7 }
 0x309   :  { %v1883_v62 = vadd.f32 %v1882_v34, %v9866_v27  ;;  %v1976_v30 = vmax.f32 %v1879_v42, 0.0 }
 0x30a   :  { %v1977_v55 = vmax.f32 %v1881_v63, 0.0 }
 0x30b   :  { %v1978_v28 = vmax.f32 %v1883_v62, 0.0  ;;  %v10035_v62 = vrot.slane %v7181_v61, %v8834_v5 }
 0x30c   :  { %v2019_v46 = vpack.c.bf16 %v1977_v55, %v1975_v8 }
 0x30d   :  { %v2020_v40 = vpack.c.bf16 %v1978_v28, %v1976_v30 }
 0x30f   :  { %2369 = vmatprep.mubr.bf16.mxu0 %v2020_v40 }
 0x310   :  { %2370 = vmatmul.mubr.bf16.gmra.mrb[104].mxu0 %v2019_v46 }
 0x318   :  { %v1886_v37 = vpop.f32.mrb[44].mxu1 }
 0x319   :  { %v1887_v18 = vadd.f32 %v1886_v37, %v9862_v52  ;;  %v1888_v17 = vpop.f32.mrb[45].mxu1 }
 0x31a   :  { %v1889_v20 = vadd.f32 %v1888_v17, %v9866_v27  ;;  %v1890_v36 = vpop.f32.mrb[46].mxu1 }
 0x31b   :  { %v1891_v44 = vadd.f32 %v1890_v36, %v9862_v52  ;;  %v1892_v50 = vpop.f32.mrb[47].mxu1  ;;  %v1979_v45 = vmax.f32 %v1887_v18, 0.0 }
 0x31c   :  { %v1893_v54 = vadd.f32 %v1892_v50, %v9866_v27  ;;  %v1980_v22 = vmax.f32 %v1889_v20, 0.0 }
 0x31d   :  { %v1981_v60 = vmax.f32 %v1891_v44, 0.0 }
 0x31e   :  { %v1982_v19 = vmax.f32 %v1893_v54, 0.0 }
 0x31f   :  { %v2021_v26 = vpack.c.bf16 %v1981_v60, %v1979_v45 }
 0x320   :  { %v2022_v56 = vpack.c.bf16 %v1982_v19, %v1980_v22 }
 0x322   :  { %2379 = vmatprep.mubr.bf16.mxu0 %v2022_v56 }
 0x323   :  { %2380 = vmatmul.mubr.bf16.gmra.mrb[108].mxu0 %v2021_v26 }
 0x32b   :  { %v1896_v25 = vpop.f32.mrb[48].mxu1 }
 0x32c   :  { %v1897_v57 = vadd.f32 %v1896_v25, %v9862_v52  ;;  %v1898_v42 = vpop.f32.mrb[49].mxu1 }
 0x32d   :  { %v1899_v63 = vadd.f32 %v1898_v42, %v9866_v27  ;;  %v1900_v34 = vpop.f32.mrb[50].mxu1 }
 0x32e   :  { %v1901_v8 = vadd.f32 %v1900_v34, %v9862_v52  ;;  %v1902_v55 = vpop.f32.mrb[51].mxu1  ;;  %v1983_v46 = vmax.f32 %v1897_v57, 0.0 }
 0x32f   :  { %v1903_v30 = vadd.f32 %v1902_v55, %v9866_v27  ;;  %v2271_v28 = vpop.f32.mrb[64].mxu0  ;;  %v1984_v17 = vmax.f32 %v1899_v63, 0.0 }
 0x330   :  { %v1985_v40 = vmax.f32 %v1901_v8, 0.0  ;;  %v2272_v37 = vadd.f32 %v2271_v28, %v10031_v58  ;;  %v2273_v18 = vpop.f32.mrb[65].mxu0 }
 0x331   :  { %v1986_v20 = vmax.f32 %v1903_v30, 0.0  ;;  %v2274_v36 = vadd.f32 %v2273_v18, %v10035_v62  ;;  %v2275_v44 = vpop.f32.mrb[66].mxu0 }
 0x332   :  { %v2023_v50 = vpack.c.bf16 %v1985_v40, %v1983_v46  ;;  %v2276_v54 = vadd.f32 %v2275_v44, %v10031_v58  ;;  %v2277_v45 = vpop.f32.mrb[67].mxu0  ;;  %v2430_v19 = vmax.f32 %v2272_v37, 0.0 }
 0x333   :  { %v2024_v60 = vpack.c.bf16 %v1986_v20, %v1984_v17  ;;  %v2278_v22 = vadd.f32 %v2277_v45, %v10035_v62  ;;  %v2431_v56 = vmax.f32 %v2274_v36, 0.0 }
 0x334   :  { %v2432_v26 = vmax.f32 %v2276_v54, 0.0 }
 0x335   :  { %v2433_v61 = vmax.f32 %v2278_v22, 0.0  ;;  %2389 = vmatprep.mubr.bf16.mxu0 %v2024_v60 }
 0x336   :  { %v2494_v25 = vpack.c.bf16 %v2432_v26, %v2430_v19  ;;  %2390 = vmatmul.mubr.bf16.gmra.mrb[112].mxu0 %v2023_v50 }
 0x337   :  { %v2495_v57 = vpack.c.bf16 %v2433_v61, %v2431_v56 }
 0x338   :  { %v2281_v42 = vpop.f32.mrb[68].mxu0 }
 0x339   :  { %v2282_v63 = vadd.f32 %v2281_v42, %v10031_v58  ;;  %v2283_v34 = vpop.f32.mrb[69].mxu0  ;;  %2764 = vmatprep.mubr.bf16.mxu1 %v2495_v57 }
 0x33a   :  { %v2284_v8 = vadd.f32 %v2283_v34, %v10035_v62  ;;  %v2285_v55 = vpop.f32.mrb[70].mxu0  ;;  %2765 = vmatmul.mubr.bf16.vlgmr.msra.gmra.mrb[64].mxu1 %v2494_v25 }
 0x33b   :  { %v2286_v30 = vadd.f32 %v2285_v55, %v10031_v58  ;;  %v2287_v28 = vpop.f32.mrb[71].mxu0  ;;  %v2434_v40 = vmax.f32 %v2282_v63, 0.0 }
 0x33c   :  { %v2288_v46 = vadd.f32 %v2287_v28, %v10035_v62  ;;  %v2435_v18 = vmax.f32 %v2284_v8, 0.0 }
 0x33d   :  { %v2436_v37 = vmax.f32 %v2286_v30, 0.0 }
 0x33e   :  { %v2437_v17 = vmax.f32 %v2288_v46, 0.0  ;;  %v1906_v20 = vpop.f32.mrb[52].mxu1 }
 0x33f   :  { %v2496_v36 = vpack.c.bf16 %v2436_v37, %v2434_v40  ;;  %v1907_v44 = vadd.f32 %v1906_v20, %v9862_v52  ;;  %v1908_v50 = vpop.f32.mrb[53].mxu1 }
 0x340   :  { %v2497_v54 = vpack.c.bf16 %v2437_v17, %v2435_v18  ;;  %v1909_v45 = vadd.f32 %v1908_v50, %v9866_v27  ;;  %v1910_v60 = vpop.f32.mrb[54].mxu1 }
 0x341   :  { %v1911_v22 = vadd.f32 %v1910_v60, %v9862_v52  ;;  %v1912_v19 = vpop.f32.mrb[55].mxu1  ;;  %v1987_v56 = vmax.f32 %v1907_v44, 0.0 }
 0x342   :  { %v1913_v26 = vadd.f32 %v1912_v19, %v9866_v27  ;;  %2774 = vmatprep.mubr.bf16.mxu1 %v2497_v54  ;;  %v1988_v25 = vmax.f32 %v1909_v45, 0.0 }
 0x343   :  { %v1989_v61 = vmax.f32 %v1911_v22, 0.0  ;;  %2775 = vmatmul.mubr.bf16.gmra.mrb[68].mxu1 %v2496_v36 }
 0x344   :  { %v1990_v57 = vmax.f32 %v1913_v26, 0.0 }
 0x345   :  { %v2025_v42 = vpack.c.bf16 %v1989_v61, %v1987_v56 }
 0x346   :  { %v2026_v63 = vpack.c.bf16 %v1990_v57, %v1988_v25 }
 0x348   :  { %2399 = vmatprep.mubr.bf16.mxu0 %v2026_v63 }
 0x349   :  { %2400 = vmatmul.mubr.bf16.gmra.mrb[116].mxu0 %v2025_v42 }
 0x34b   :  { %v2291_v34 = vpop.f32.mrb[72].mxu0 }
 0x34c   :  { %v2292_v8 = vadd.f32 %v2291_v34, %v10031_v58  ;;  %v2293_v55 = vpop.f32.mrb[73].mxu0 }
 0x34d   :  { %v2294_v30 = vadd.f32 %v2293_v55, %v10035_v62  ;;  %v2295_v28 = vpop.f32.mrb[74].mxu0  ;;  %v8095_v55 = vld [vmem:[%s12452_s1 + $0x404] ss:$8 sps:$4 sm:$0xff]  }
 0x34e   :  { %v2296_v46 = vadd.f32 %v2295_v28, %v10031_v58  ;;  %v2297_v40 = vpop.f32.mrb[75].mxu0  ;;  %v2438_v18 = vmax.f32 %v2292_v8, 0.0  ;;  %v8093_v8 = vld [vmem:[%s12452_s1 + $0x400] ss:$8 sps:$4 sm:$0xff]   ;;  %3590 = vmatprep.subr.bf16.mxu0 %v8095_v55  ;;  %v8096_v28 = vld [vmem:[%s12452_s1 + $0x410] ss:$8 sps:$4 sm:$0xff]  }
 0x34f   :  { %v2298_v37 = vadd.f32 %v2297_v40, %v10035_v62  ;;  %v2439_v20 = vmax.f32 %v2294_v30, 0.0  ;;  %3591 = vmatpush1.bf16.msra.mxu0 %v8093_v8  ;;  %v8101_v40 = vld [vmem:[%s12452_s1 + $0x424] ss:$8 sps:$4 sm:$0xff]  }
 0x350   :  { %v2440_v17 = vmax.f32 %v2296_v46, 0.0  ;;  %v8098_v46 = vld [vmem:[%s12452_s1 + $0x414] ss:$8 sps:$4 sm:$0xff]  }
 0x351   :  { %v2441_v36 = vmax.f32 %v2298_v37, 0.0  ;;  %v1916_v44 = vpop.f32.mrb[56].mxu1  ;;  %3592 = vmatprep.subr.bf16.mxu0 %v8098_v46 }
 0x352   :  { %v2498_v50 = vpack.c.bf16 %v2440_v17, %v2438_v18  ;;  %v1917_v54 = vadd.f32 %v1916_v44, %v9862_v52  ;;  %v1918_v45 = vpop.f32.mrb[57].mxu1 }
 0x353   :  { %v2499_v60 = vpack.c.bf16 %v2441_v36, %v2439_v20  ;;  %v1919_v22 = vadd.f32 %v1918_v45, %v9866_v27  ;;  %v1920_v19 = vpop.f32.mrb[58].mxu1  ;;  %3593 = vmatpush1.bf16.msra.mxu0 %v8096_v28  ;;  %v8099_v20 = vld [vmem:[%s12452_s1 + $0x420] ss:$8 sps:$4 sm:$0xff]  }
 0x354   :  { %v1921_v26 = vadd.f32 %v1920_v19, %v9862_v52  ;;  %v1922_v56 = vpop.f32.mrb[59].mxu1  ;;  %v1991_v25 = vmax.f32 %v1917_v54, 0.0  ;;  %3594 = vmatprep.subr.bf16.mxu0 %v8101_v40  ;;  %v8107_v40 = vld [vmem:[%s12452_s1 + $0x444] ss:$8 sps:$4 sm:$0xff]  }
 0x355   :  { %v1923_v61 = vadd.f32 %v1922_v56, %v9866_v27  ;;  %2784 = vmatprep.mubr.bf16.mxu1 %v2499_v60  ;;  %v1992_v42 = vmax.f32 %v1919_v22, 0.0 }
 0x356   :  { %v1993_v57 = vmax.f32 %v1921_v26, 0.0  ;;  %2785 = vmatmul.mubr.bf16.gmra.mrb[72].mxu1 %v2498_v50 }
 0x357   :  { %v1994_v63 = vmax.f32 %v1923_v61, 0.0  ;;  %3595 = vmatpush1.bf16.msra.mxu0 %v8099_v20  ;;  %v8104_v61 = vld [vmem:[%s12452_s1 + $0x434] ss:$8 sps:$4 sm:$0xff]  }
 0x358   :  { %v2027_v34 = vpack.c.bf16 %v1993_v57, %v1991_v25  ;;  %3596 = vmatprep.subr.bf16.mxu0 %v8104_v61 }
 0x359   :  { %v2028_v30 = vpack.c.bf16 %v1994_v63, %v1992_v42  ;;  %v8102_v63 = vld [vmem:[%s12452_s1 + $0x430] ss:$8 sps:$4 sm:$0xff]  }
 0x35b   :  { %2409 = vmatprep.mubr.bf16.mxu0 %v2028_v30  ;;  %3597 = vmatpush1.bf16.msra.mxu0 %v8102_v63 }
 0x35c   :  { %2410 = vmatmul.mubr.bf16.gmra.mrb[120].mxu0 %v2027_v34  ;;  %3598 = vmatprep.subr.bf16.mxu0 %v8107_v40 }
 0x35e   :  { %v2301_v37 = vpop.f32.mrb[76].mxu0 }
 0x35f   :  { %v2302_v18 = vadd.f32 %v2301_v37, %v10031_v58  ;;  %v2303_v17 = vpop.f32.mrb[77].mxu0 }
 0x360   :  { %v2304_v36 = vadd.f32 %v2303_v17, %v10035_v62  ;;  %v2305_v44 = vpop.f32.mrb[78].mxu0  ;;  %v8105_v17 = vld [vmem:[%s12452_s1 + $0x440] ss:$8 sps:$4 sm:$0xff]  }
 0x361   :  { %v2306_v50 = vadd.f32 %v2305_v44, %v10031_v58  ;;  %v2307_v54 = vpop.f32.mrb[79].mxu0  ;;  %v2442_v60 = vmax.f32 %v2302_v18, 0.0  ;;  %3599 = vmatpush1.bf16.msra.mxu0 %v8105_v17  ;;  %v8120_v17 = vld [vmem:[%s12452_s1 + $0x490] ss:$8 sps:$4 sm:$0xff]  }
 0x362   :  { %v2308_v45 = vadd.f32 %v2307_v54, %v10035_v62  ;;  %v2443_v19 = vmax.f32 %v2304_v36, 0.0  ;;  %v8113_v54 = vld [vmem:[%s12452_s1 + $0x464] ss:$8 sps:$4 sm:$0xff]  }
 0x363   :  { %v2444_v22 = vmax.f32 %v2306_v50, 0.0  ;;  %v8108_v50 = vld [vmem:[%s12452_s1 + $0x450] ss:$8 sps:$4 sm:$0xff]  }
 0x364   :  { %v2445_v26 = vmax.f32 %v2308_v45, 0.0  ;;  %v1926_v56 = vpop.f32.mrb[60].mxu1  ;;  %v8111_v45 = vld [vmem:[%s12452_s1 + $0x460] ss:$8 sps:$4 sm:$0xff]  }
 0x365   :  { %v2500_v25 = vpack.c.bf16 %v2444_v22, %v2442_v60  ;;  %v1927_v57 = vadd.f32 %v1926_v56, %v9862_v52  ;;  %v1928_v42 = vpop.f32.mrb[61].mxu1  ;;  %v8116_v22 = vld [vmem:[%s12452_s1 + $0x474] ss:$8 sps:$4 sm:$0xff]  }
 0x366   :  { %v2501_v34 = vpack.c.bf16 %v2445_v26, %v2443_v19  ;;  %v1929_v8 = vadd.f32 %v1928_v42, %v9866_v27  ;;  %v1930_v55 = vpop.f32.mrb[62].mxu1  ;;  %v8114_v42 = vld [vmem:[%s12452_s1 + $0x470] ss:$8 sps:$4 sm:$0xff]  }
 0x367   :  { %v1931_v30 = vadd.f32 %v1930_v55, %v9862_v52  ;;  %v1932_v28 = vpop.f32.mrb[63].mxu1  ;;  %v1995_v37 = vmax.f32 %v1927_v57, 0.0 }
 0x368   :  { %v1933_v46 = vadd.f32 %v1932_v28, %v9866_v27  ;;  %2794 = vmatprep.mubr.bf16.mxu1 %v2501_v34  ;;  %v1996_v20 = vmax.f32 %v1929_v8, 0.0  ;;  %v8110_v27 = vld [vmem:[%s12452_s1 + $0x454] ss:$8 sps:$4 sm:$0xff]  }
 0x369   :  { %v1997_v18 = vmax.f32 %v1931_v30, 0.0  ;;  %2795 = vmatmul.mubr.bf16.gmra.mrb[76].mxu1 %v2500_v25  ;;  %3600 = vmatprep.subr.bf16.mxu0 %v8110_v27 }
 0x36a   :  { %v1998_v36 = vmax.f32 %v1933_v46, 0.0  ;;  %3601 = vmatpush1.bf16.msra.mxu0 %v8108_v50  ;;  %v8119_v46 = vld [vmem:[%s12452_s1 + $0x484] ss:$8 sps:$4 sm:$0xff]  }
 0x36b   :  { %v2029_v52 = vpack.c.bf16 %v1997_v18, %v1995_v37  ;;  %3602 = vmatprep.subr.bf16.mxu0 %v8113_v54  ;;  %v8117_v37 = vld [vmem:[%s12452_s1 + $0x480] ss:$8 sps:$4 sm:$0xff]   ;;  %v8122_v18 = vld [vmem:[%s12452_s1 + $0x494] ss:$8 sps:$4 sm:$0xff]  }
 0x36c   :  { %v2030_v44 = vpack.c.bf16 %v1998_v36, %v1996_v20  ;;  %v8123_v20 = vld [vmem:[%s12452_s1 + $0x4a0] ss:$8 sps:$4 sm:$0xff]   ;;  %v8125_v36 = vld [vmem:[%s12452_s1 + $0x4a4] ss:$8 sps:$4 sm:$0xff]  }
 0x36e   :  { %2419 = vmatprep.mubr.bf16.mxu0 %v2030_v44  ;;  %3603 = vmatpush1.bf16.msra.mxu0 %v8111_v45  ;;  %v8126_v44 = vld [vmem:[%s12452_s1 + $0x4b0] ss:$8 sps:$4 sm:$0xff]   ;;  %v8131_v45 = vld [vmem:[%s12452_s1 + $0x4c4] ss:$8 sps:$4 sm:$0xff]  }
 0x36f   :  { %2420 = vmatmul.mubr.bf16.gmra.mrb[124].mxu0 %v2029_v52  ;;  %3604 = vmatprep.subr.bf16.mxu0 %v8116_v22  ;;  %v8128_v52 = vld [vmem:[%s12452_s1 + $0x4b4] ss:$8 sps:$4 sm:$0xff]  }
 0x371   :  { %v2311_v60 = vpop.f32.mrb[80].mxu0 }
 0x372   :  { %v2312_v19 = vadd.f32 %v2311_v60, %v10031_v58  ;;  %v2313_v26 = vpop.f32.mrb[81].mxu0  ;;  %3605 = vmatpush1.bf16.msra.mxu0 %v8114_v42 }
 0x373   :  { %v2314_v56 = vadd.f32 %v2313_v26, %v10035_v62  ;;  %v2315_v61 = vpop.f32.mrb[82].mxu0  ;;  %3606 = vmatprep.subr.bf16.mxu0 %v8119_v46  ;;  %v8135_v46 = vld [vmem:[%s12452_s1 + $0x4e0] ss:$8 sps:$4 sm:$0xff]  }
 0x374   :  { %v2316_v25 = vadd.f32 %v2315_v61, %v10031_v58  ;;  %v2317_v57 = vpop.f32.mrb[83].mxu0  ;;  %v2446_v34 = vmax.f32 %v2312_v19, 0.0  ;;  %v8129_v61 = vld [vmem:[%s12452_s1 + $0x4c0] ss:$8 sps:$4 sm:$0xff]  }
 0x375   :  { %v2318_v63 = vadd.f32 %v2317_v57, %v10035_v62  ;;  %v2447_v55 = vmax.f32 %v2314_v56, 0.0 }
 0x376   :  { %v2448_v8 = vmax.f32 %v2316_v25, 0.0  ;;  %3607 = vmatpush1.bf16.msra.mxu0 %v8117_v37  ;;  %v8138_v37 = vld [vmem:[%s12452_s1 + $0x4f0] ss:$8 sps:$4 sm:$0xff]  }
 0x377   :  { %v2449_v30 = vmax.f32 %v2318_v63, 0.0  ;;  %3608 = vmatprep.subr.bf16.mxu0 %v8122_v18 }
 0x378   :  { %v2502_v28 = vpack.c.bf16 %v2448_v8, %v2446_v34 }
 0x379   :  { %v2503_v40 = vpack.c.bf16 %v2449_v30, %v2447_v55  ;;  %v8134_v55 = vld [vmem:[%s12452_s1 + $0x4d4] ss:$8 sps:$4 sm:$0xff]   ;;  %v8132_v30 = vld [vmem:[%s12452_s1 + $0x4d0] ss:$8 sps:$4 sm:$0xff]  }
 0x37a   :  { %3609 = vmatpush1.bf16.msra.mxu0 %v8120_v17 }
 0x37b   :  { %2804 = vmatprep.mubr.bf16.mxu1 %v2503_v40  ;;  %3610 = vmatprep.subr.bf16.mxu0 %v8125_v36  ;;  %v8140_v40 = vld [vmem:[%s12452_s1 + $0x4f4] ss:$8 sps:$4 sm:$0xff]  }
 0x37c   :  { %2805 = vmatmul.mubr.bf16.gmra.mrb[80].mxu1 %v2502_v28  ;;  %v8137_v28 = vld [vmem:[%s12452_s1 + $0x4e4] ss:$8 sps:$4 sm:$0xff]  }
 0x37e   :  { %3611 = vmatpush1.bf16.msra.mxu0 %v8123_v20 }
 0x37f   :  { %3612 = vmatprep.subr.bf16.mxu0 %v8128_v52 }
 0x382   :  { %3613 = vmatpush1.bf16.msra.mxu0 %v8126_v44 }
 0x383   :  { %3614 = vmatprep.subr.bf16.mxu0 %v8131_v45 }
 0x384   :  { %v2321_v27 = vpop.f32.mrb[84].mxu0 }
 0x385   :  { %v2322_v50 = vadd.f32 %v2321_v27, %v10031_v58  ;;  %v2323_v54 = vpop.f32.mrb[85].mxu0 }
 0x386   :  { %v2324_v60 = vadd.f32 %v2323_v54, %v10035_v62  ;;  %v2325_v22 = vpop.f32.mrb[86].mxu0  ;;  %3615 = vmatpush1.bf16.msra.mxu0 %v8129_v61 }
 0x387   :  { %v2326_v19 = vadd.f32 %v2325_v22, %v10031_v58  ;;  %v2327_v26 = vpop.f32.mrb[87].mxu0  ;;  %v2450_v25 = vmax.f32 %v2322_v50, 0.0  ;;  %3616 = vmatprep.subr.bf16.mxu0 %v8134_v55 }
 0x388   :  { %v2328_v56 = vadd.f32 %v2327_v26, %v10035_v62  ;;  %v2451_v42 = vmax.f32 %v2324_v60, 0.0 }
 0x389   :  { %v2452_v57 = vmax.f32 %v2326_v19, 0.0 }
 0x38a   :  { %v2453_v63 = vmax.f32 %v2328_v56, 0.0  ;;  %3617 = vmatpush1.bf16.msra.mxu0 %v8132_v30 }
 0x38b   :  { %v2504_v34 = vpack.c.bf16 %v2452_v57, %v2450_v25  ;;  %3618 = vmatprep.subr.bf16.mxu0 %v8137_v28 }
 0x38c   :  { %v2505_v8 = vpack.c.bf16 %v2453_v63, %v2451_v42 }
 0x38e   :  { %2814 = vmatprep.mubr.bf16.mxu1 %v2505_v8  ;;  %3619 = vmatpush1.bf16.msra.mxu0 %v8135_v46 }
 0x38f   :  { %2815 = vmatmul.mubr.bf16.gmra.mrb[84].mxu1 %v2504_v34  ;;  %3620 = vmatprep.subr.bf16.mxu0 %v8140_v40 }
 0x392   :  { %3621 = vmatpush1.bf16.msra.mxu0 %v8138_v37 }
 0x397   :  { %v2331_v18 = vpop.f32.mrb[88].mxu0 }
 0x398   :  { %v2332_v17 = vadd.f32 %v2331_v18, %v10031_v58  ;;  %v2333_v20 = vpop.f32.mrb[89].mxu0 }
 0x399   :  { %v2334_v36 = vadd.f32 %v2333_v20, %v10035_v62  ;;  %v2335_v52 = vpop.f32.mrb[90].mxu0 }
 0x39a   :  { %v2336_v27 = vadd.f32 %v2335_v52, %v10031_v58  ;;  %v2337_v44 = vpop.f32.mrb[91].mxu0  ;;  %v2454_v54 = vmax.f32 %v2332_v17, 0.0 }
 0x39b   :  { %v2338_v50 = vadd.f32 %v2337_v44, %v10035_v62  ;;  %v2455_v60 = vmax.f32 %v2334_v36, 0.0 }
 0x39c   :  { %v2456_v45 = vmax.f32 %v2336_v27, 0.0 }
 0x39d   :  { %v2457_v22 = vmax.f32 %v2338_v50, 0.0 }
 0x39e   :  { %v2506_v19 = vpack.c.bf16 %v2456_v45, %v2454_v54 }
 0x39f   :  { %v2507_v26 = vpack.c.bf16 %v2457_v22, %v2455_v60 }
 0x3a1   :  { %2824 = vmatprep.mubr.bf16.mxu1 %v2507_v26 }
 0x3a2   :  { %2825 = vmatmul.mubr.bf16.gmra.mrb[88].mxu1 %v2506_v19 }
 0x3aa   :  { %v2341_v56 = vpop.f32.mrb[92].mxu0 }
 0x3ab   :  { %v2342_v61 = vadd.f32 %v2341_v56, %v10031_v58  ;;  %v2343_v25 = vpop.f32.mrb[93].mxu0 }
 0x3ac   :  { %v2344_v57 = vadd.f32 %v2343_v25, %v10035_v62  ;;  %v2345_v42 = vpop.f32.mrb[94].mxu0 }
 0x3ad   :  { %v2346_v63 = vadd.f32 %v2345_v42, %v10031_v58  ;;  %v2347_v34 = vpop.f32.mrb[95].mxu0  ;;  %v2458_v55 = vmax.f32 %v2342_v61, 0.0 }
 0x3ae   :  { %v2348_v8 = vadd.f32 %v2347_v34, %v10035_v62  ;;  %v2459_v28 = vmax.f32 %v2344_v57, 0.0 }
 0x3af   :  { %v2460_v30 = vmax.f32 %v2346_v63, 0.0 }
 0x3b0   :  { %v2461_v46 = vmax.f32 %v2348_v8, 0.0 }
 0x3b1   :  { %v2508_v40 = vpack.c.bf16 %v2460_v30, %v2458_v55 }
 0x3b2   :  { %v2509_v37 = vpack.c.bf16 %v2461_v46, %v2459_v28 }
 0x3b4   :  { %2834 = vmatprep.mubr.bf16.mxu1 %v2509_v37 }
 0x3b5   :  { %2835 = vmatmul.mubr.bf16.gmra.mrb[92].mxu1 %v2508_v40 }
 0x3bd   :  { %v2351_v18 = vpop.f32.mrb[96].mxu0 }
 0x3be   :  { %v2352_v17 = vadd.f32 %v2351_v18, %v10031_v58  ;;  %v2353_v20 = vpop.f32.mrb[97].mxu0 }
 0x3bf   :  { %v2354_v36 = vadd.f32 %v2353_v20, %v10035_v62  ;;  %v2355_v52 = vpop.f32.mrb[98].mxu0 }
 0x3c0   :  { %v2356_v27 = vadd.f32 %v2355_v52, %v10031_v58  ;;  %v2357_v44 = vpop.f32.mrb[99].mxu0  ;;  %v2462_v54 = vmax.f32 %v2352_v17, 0.0 }
 0x3c1   :  { %v2358_v50 = vadd.f32 %v2357_v44, %v10035_v62  ;;  %v2463_v60 = vmax.f32 %v2354_v36, 0.0 }
 0x3c2   :  { %v2464_v45 = vmax.f32 %v2356_v27, 0.0 }
 0x3c3   :  { %v2465_v22 = vmax.f32 %v2358_v50, 0.0 }
 0x3c4   :  { %v2510_v19 = vpack.c.bf16 %v2464_v45, %v2462_v54 }
 0x3c5   :  { %v2511_v26 = vpack.c.bf16 %v2465_v22, %v2463_v60 }
 0x3c7   :  { %2844 = vmatprep.mubr.bf16.mxu1 %v2511_v26 }
 0x3c8   :  { %2845 = vmatmul.mubr.bf16.gmra.mrb[96].mxu1 %v2510_v19 }
 0x3d0   :  { %v2361_v56 = vpop.f32.mrb[100].mxu0 }
 0x3d1   :  { %v2362_v61 = vadd.f32 %v2361_v56, %v10031_v58  ;;  %v2363_v25 = vpop.f32.mrb[101].mxu0 }
 0x3d2   :  { %v2364_v57 = vadd.f32 %v2363_v25, %v10035_v62  ;;  %v2365_v42 = vpop.f32.mrb[102].mxu0 }
 0x3d3   :  { %v2366_v63 = vadd.f32 %v2365_v42, %v10031_v58  ;;  %v2367_v34 = vpop.f32.mrb[103].mxu0  ;;  %v2466_v55 = vmax.f32 %v2362_v61, 0.0 }
 0x3d4   :  { %v2368_v8 = vadd.f32 %v2367_v34, %v10035_v62  ;;  %v2467_v28 = vmax.f32 %v2364_v57, 0.0 }
 0x3d5   :  { %v2468_v30 = vmax.f32 %v2366_v63, 0.0 }
 0x3d6   :  { %v2469_v46 = vmax.f32 %v2368_v8, 0.0 }
 0x3d7   :  { %v2512_v40 = vpack.c.bf16 %v2468_v30, %v2466_v55 }
 0x3d8   :  { %v2513_v37 = vpack.c.bf16 %v2469_v46, %v2467_v28 }
 0x3da   :  { %2854 = vmatprep.mubr.bf16.mxu1 %v2513_v37 }
 0x3db   :  { %2855 = vmatmul.mubr.bf16.gmra.mrb[100].mxu1 %v2512_v40 }
 0x3e3   :  { %v2371_v18 = vpop.f32.mrb[104].mxu0 }
 0x3e4   :  { %v2372_v17 = vadd.f32 %v2371_v18, %v10031_v58  ;;  %v2373_v20 = vpop.f32.mrb[105].mxu0  ;;  %v7246_v18 = vld [vmem:[%s12454_s2 + $0x4] ss:$8 sm:$0x3] }
 0x3e5   :  { %v2374_v36 = vadd.f32 %v2373_v20, %v10035_v62  ;;  %v2375_v52 = vpop.f32.mrb[106].mxu0 }
 0x3e6   :  { %v2376_v27 = vadd.f32 %v2375_v52, %v10031_v58  ;;  %v2377_v44 = vpop.f32.mrb[107].mxu0  ;;  %v2470_v54 = vmax.f32 %v2372_v17, 0.0  ;;  %v10200_v52 = vrot.slane %v7246_v18, %v8841_v7 }
 0x3e7   :  { %v2378_v50 = vadd.f32 %v2377_v44, %v10035_v62  ;;  %v2471_v60 = vmax.f32 %v2374_v36, 0.0 }
 0x3e8   :  { %v2472_v45 = vmax.f32 %v2376_v27, 0.0 }
 0x3e9   :  { %v2473_v22 = vmax.f32 %v2378_v50, 0.0  ;;  %v10204_v50 = vrot.slane %v7246_v18, %v8834_v5 }
 0x3ea   :  { %v2514_v19 = vpack.c.bf16 %v2472_v45, %v2470_v54 }
 0x3eb   :  { %v2515_v26 = vpack.c.bf16 %v2473_v22, %v2471_v60 }
 0x3ed   :  { %2864 = vmatprep.mubr.bf16.mxu1 %v2515_v26 }
 0x3ee   :  { %2865 = vmatmul.mubr.bf16.gmra.mrb[104].mxu1 %v2514_v19 }
 0x3f6   :  { %v2381_v56 = vpop.f32.mrb[108].mxu0 }
 0x3f7   :  { %v2382_v61 = vadd.f32 %v2381_v56, %v10031_v58  ;;  %v2383_v25 = vpop.f32.mrb[109].mxu0 }
 0x3f8   :  { %v2384_v57 = vadd.f32 %v2383_v25, %v10035_v62  ;;  %v2385_v42 = vpop.f32.mrb[110].mxu0 }
 0x3f9   :  { %v2386_v63 = vadd.f32 %v2385_v42, %v10031_v58  ;;  %v2387_v34 = vpop.f32.mrb[111].mxu0  ;;  %v2474_v55 = vmax.f32 %v2382_v61, 0.0 }
 0x3fa   :  { %v2388_v8 = vadd.f32 %v2387_v34, %v10035_v62  ;;  %v2475_v28 = vmax.f32 %v2384_v57, 0.0 }
 0x3fb   :  { %v2476_v30 = vmax.f32 %v2386_v63, 0.0 }
 0x3fc   :  { %v2477_v46 = vmax.f32 %v2388_v8, 0.0 }
 0x3fd   :  { %v2516_v40 = vpack.c.bf16 %v2476_v30, %v2474_v55 }
 0x3fe   :  { %v2517_v37 = vpack.c.bf16 %v2477_v46, %v2475_v28 }
 0x400   :  { %2874 = vmatprep.mubr.bf16.mxu1 %v2517_v37 }
 0x401   :  { %2875 = vmatmul.mubr.bf16.gmra.mrb[108].mxu1 %v2516_v40 }
 0x409   :  { %v2391_v17 = vpop.f32.mrb[112].mxu0 }
 0x40a   :  { %v2392_v20 = vadd.f32 %v2391_v17, %v10031_v58  ;;  %v2393_v36 = vpop.f32.mrb[113].mxu0 }
 0x40b   :  { %v2394_v27 = vadd.f32 %v2393_v36, %v10035_v62  ;;  %v2395_v44 = vpop.f32.mrb[114].mxu0 }
 0x40c   :  { %v2396_v54 = vadd.f32 %v2395_v44, %v10031_v58  ;;  %v2397_v45 = vpop.f32.mrb[115].mxu0  ;;  %v2478_v19 = vmax.f32 %v2392_v20, 0.0 }
 0x40d   :  { %v2398_v60 = vadd.f32 %v2397_v45, %v10035_v62  ;;  %v2766_v22 = vpop.f32.mrb[64].mxu1  ;;  %v2479_v25 = vmax.f32 %v2394_v27, 0.0 }
 0x40e   :  { %v2480_v26 = vmax.f32 %v2396_v54, 0.0  ;;  %v2767_v56 = vadd.f32 %v2766_v22, %v10200_v52  ;;  %v2768_v61 = vpop.f32.mrb[65].mxu1 }
 0x40f   :  { %v2481_v57 = vmax.f32 %v2398_v60, 0.0  ;;  %v2769_v42 = vadd.f32 %v2768_v61, %v10204_v50  ;;  %v2770_v63 = vpop.f32.mrb[66].mxu1 }
 0x410   :  { %v2518_v34 = vpack.c.bf16 %v2480_v26, %v2478_v19  ;;  %v2771_v8 = vadd.f32 %v2770_v63, %v10200_v52  ;;  %v2772_v55 = vpop.f32.mrb[67].mxu1  ;;  %v2925_v46 = vmax.f32 %v2767_v56, 0.0 }
 0x411   :  { %v2519_v30 = vpack.c.bf16 %v2481_v57, %v2479_v25  ;;  %v2773_v28 = vadd.f32 %v2772_v55, %v10204_v50  ;;  %v2926_v37 = vmax.f32 %v2769_v42, 0.0 }
 0x412   :  { %v2927_v40 = vmax.f32 %v2771_v8, 0.0 }
 0x413   :  { %v2928_v18 = vmax.f32 %v2773_v28, 0.0  ;;  %2884 = vmatprep.mubr.bf16.mxu1 %v2519_v30 }
 0x414   :  { %v2989_v17 = vpack.c.bf16 %v2927_v40, %v2925_v46  ;;  %2885 = vmatmul.mubr.bf16.gmra.mrb[112].mxu1 %v2518_v34 }
 0x415   :  { %v2990_v20 = vpack.c.bf16 %v2928_v18, %v2926_v37 }
 0x416   :  { %v2776_v36 = vpop.f32.mrb[68].mxu1 }
 0x417   :  { %v2777_v27 = vadd.f32 %v2776_v36, %v10200_v52  ;;  %v2778_v44 = vpop.f32.mrb[69].mxu1  ;;  %3622 = vmatprep.mubr.bf16.mxu0 %v2990_v20 }
 0x418   :  { %v2779_v54 = vadd.f32 %v2778_v44, %v10204_v50  ;;  %v2780_v45 = vpop.f32.mrb[70].mxu1  ;;  %3623 = vmatmul.mubr.bf16.vlgmr.msra.gmra.mrb[128].mxu0 %v2989_v17 }
 0x419   :  { %v2781_v60 = vadd.f32 %v2780_v45, %v10200_v52  ;;  %v2782_v22 = vpop.f32.mrb[71].mxu1  ;;  %v2929_v26 = vmax.f32 %v2777_v27, 0.0 }
 0x41a   :  { %v2783_v19 = vadd.f32 %v2782_v22, %v10204_v50  ;;  %v2930_v61 = vmax.f32 %v2779_v54, 0.0 }
 0x41b   :  { %v2931_v56 = vmax.f32 %v2781_v60, 0.0 }
 0x41c   :  { %v2932_v25 = vmax.f32 %v2783_v19, 0.0  ;;  %v2401_v57 = vpop.f32.mrb[116].mxu0 }
 0x41d   :  { %v2991_v42 = vpack.c.bf16 %v2931_v56, %v2929_v26  ;;  %v2402_v63 = vadd.f32 %v2401_v57, %v10031_v58  ;;  %v2403_v34 = vpop.f32.mrb[117].mxu0 }
 0x41e   :  { %v2992_v8 = vpack.c.bf16 %v2932_v25, %v2930_v61  ;;  %v2404_v55 = vadd.f32 %v2403_v34, %v10035_v62  ;;  %v2405_v30 = vpop.f32.mrb[118].mxu0 }
 0x41f   :  { %v2406_v28 = vadd.f32 %v2405_v30, %v10031_v58  ;;  %v2407_v46 = vpop.f32.mrb[119].mxu0  ;;  %v2482_v37 = vmax.f32 %v2402_v63, 0.0 }
 0x420   :  { %v2408_v40 = vadd.f32 %v2407_v46, %v10035_v62  ;;  %3632 = vmatprep.mubr.bf16.mxu0 %v2992_v8  ;;  %v2483_v17 = vmax.f32 %v2404_v55, 0.0 }
 0x421   :  { %v2484_v18 = vmax.f32 %v2406_v28, 0.0  ;;  %3633 = vmatmul.mubr.bf16.gmra.mrb[132].mxu0 %v2991_v42 }
 0x422   :  { %v2485_v20 = vmax.f32 %v2408_v40, 0.0 }
 0x423   :  { %v2520_v36 = vpack.c.bf16 %v2484_v18, %v2482_v37 }
 0x424   :  { %v2521_v27 = vpack.c.bf16 %v2485_v20, %v2483_v17 }
 0x426   :  { %2894 = vmatprep.mubr.bf16.mxu1 %v2521_v27 }
 0x427   :  { %2895 = vmatmul.mubr.bf16.gmra.mrb[116].mxu1 %v2520_v36 }
 0x429   :  { %v2786_v44 = vpop.f32.mrb[72].mxu1 }
 0x42a   :  { %v2787_v54 = vadd.f32 %v2786_v44, %v10200_v52  ;;  %v2788_v45 = vpop.f32.mrb[73].mxu1 }
 0x42b   :  { %v2789_v60 = vadd.f32 %v2788_v45, %v10204_v50  ;;  %v2790_v22 = vpop.f32.mrb[74].mxu1  ;;  %v8141_v45 = vld [vmem:[%s12452_s1 + $0x500] ss:$8 sps:$4 sm:$0xff]  }
 0x42c   :  { %v2791_v19 = vadd.f32 %v2790_v22, %v10200_v52  ;;  %v2792_v26 = vpop.f32.mrb[75].mxu1  ;;  %v2933_v61 = vmax.f32 %v2787_v54, 0.0  ;;  %v8146_v22 = vld [vmem:[%s12452_s1 + $0x514] ss:$8 sps:$4 sm:$0xff]  }
 0x42d   :  { %v2793_v56 = vadd.f32 %v2792_v26, %v10204_v50  ;;  %v2934_v57 = vmax.f32 %v2789_v60, 0.0  ;;  %v8143_v60 = vld [vmem:[%s12452_s1 + $0x504] ss:$8 sps:$4 sm:$0xff]  }
 0x42e   :  { %v2935_v25 = vmax.f32 %v2791_v19, 0.0  ;;  %4162 = vmatprep.subr.bf16.mxu1 %v8143_v60  ;;  %v8144_v19 = vld [vmem:[%s12452_s1 + $0x510] ss:$8 sps:$4 sm:$0xff]  }
 0x42f   :  { %v2936_v42 = vmax.f32 %v2793_v56, 0.0  ;;  %v2411_v63 = vpop.f32.mrb[120].mxu0  ;;  %4163 = vmatpush1.bf16.msra.mxu1 %v8141_v45  ;;  %v8149_v56 = vld [vmem:[%s12452_s1 + $0x524] ss:$8 sps:$4 sm:$0xff]  }
 0x430   :  { %v2993_v34 = vpack.c.bf16 %v2935_v25, %v2933_v61  ;;  %v2412_v8 = vadd.f32 %v2411_v63, %v10031_v58  ;;  %v2413_v55 = vpop.f32.mrb[121].mxu0  ;;  %4164 = vmatprep.subr.bf16.mxu1 %v8146_v22  ;;  %v8150_v22 = vld [vmem:[%s12452_s1 + $0x530] ss:$8 sps:$4 sm:$0xff]  }
 0x431   :  { %v2994_v30 = vpack.c.bf16 %v2936_v42, %v2934_v57  ;;  %v2414_v28 = vadd.f32 %v2413_v55, %v10035_v62  ;;  %v2415_v46 = vpop.f32.mrb[122].mxu0 }
 0x432   :  { %v2416_v40 = vadd.f32 %v2415_v46, %v10031_v58  ;;  %v2417_v37 = vpop.f32.mrb[123].mxu0  ;;  %v2486_v17 = vmax.f32 %v2412_v8, 0.0  ;;  %v8147_v8 = vld [vmem:[%s12452_s1 + $0x520] ss:$8 sps:$4 sm:$0xff]  }
 0x433   :  { %v2418_v18 = vadd.f32 %v2417_v37, %v10035_v62  ;;  %3642 = vmatprep.mubr.bf16.mxu0 %v2994_v30  ;;  %v2487_v36 = vmax.f32 %v2414_v28, 0.0  ;;  %4165 = vmatpush1.bf16.msra.mxu1 %v8144_v19 }
 0x434   :  { %v2488_v20 = vmax.f32 %v2416_v40, 0.0  ;;  %3643 = vmatmul.mubr.bf16.gmra.mrb[136].mxu0 %v2993_v34  ;;  %4166 = vmatprep.subr.bf16.mxu1 %v8149_v56 }
 0x435   :  { %v2489_v27 = vmax.f32 %v2418_v18, 0.0 }
 0x436   :  { %v2522_v44 = vpack.c.bf16 %v2488_v20, %v2486_v17 }
 0x437   :  { %v2523_v54 = vpack.c.bf16 %v2489_v27, %v2487_v36  ;;  %4167 = vmatpush1.bf16.msra.mxu1 %v8147_v8  ;;  %v8161_v8 = vld [vmem:[%s12452_s1 + $0x564] ss:$8 sps:$4 sm:$0xff]  }
 0x439   :  { %2904 = vmatprep.mubr.bf16.mxu1 %v2523_v54  ;;  %v8152_v54 = vld [vmem:[%s12452_s1 + $0x534] ss:$8 sps:$4 sm:$0xff]  }
 0x43a   :  { %2905 = vmatmul.mubr.bf16.gmra.mrb[120].mxu1 %v2522_v44  ;;  %4168 = vmatprep.subr.bf16.mxu1 %v8152_v54 }
 0x43b   :  { %4169 = vmatpush1.bf16.msra.mxu1 %v8150_v22 }
 0x43c   :  { %v2796_v26 = vpop.f32.mrb[76].mxu1 }
 0x43d   :  { %v2797_v61 = vadd.f32 %v2796_v26, %v10200_v52  ;;  %v2798_v25 = vpop.f32.mrb[77].mxu1 }
 0x43e   :  { %v2799_v57 = vadd.f32 %v2798_v25, %v10204_v50  ;;  %v2800_v42 = vpop.f32.mrb[78].mxu1 }
 0x43f   :  { %v2801_v63 = vadd.f32 %v2800_v42, %v10200_v52  ;;  %v2802_v34 = vpop.f32.mrb[79].mxu1  ;;  %v2937_v30 = vmax.f32 %v2797_v61, 0.0  ;;  %v8153_v42 = vld [vmem:[%s12452_s1 + $0x540] ss:$8 sps:$4 sm:$0xff]  }
 0x440   :  { %v2803_v55 = vadd.f32 %v2802_v34, %v10204_v50  ;;  %v2938_v46 = vmax.f32 %v2799_v57, 0.0  ;;  %v8155_v57 = vld [vmem:[%s12452_s1 + $0x544] ss:$8 sps:$4 sm:$0xff]   ;;  %v8158_v34 = vld [vmem:[%s12452_s1 + $0x554] ss:$8 sps:$4 sm:$0xff]  }
 0x441   :  { %v2939_v28 = vmax.f32 %v2801_v63, 0.0  ;;  %4170 = vmatprep.subr.bf16.mxu1 %v8155_v57  ;;  %v8171_v57 = vld [vmem:[%s12452_s1 + $0x5a0] ss:$8 sps:$4 sm:$0xff]  }
 0x442   :  { %v2940_v40 = vmax.f32 %v2803_v55, 0.0  ;;  %v2421_v37 = vpop.f32.mrb[124].mxu0  ;;  %4171 = vmatpush1.bf16.msra.mxu1 %v8153_v42  ;;  %v8176_v42 = vld [vmem:[%s12452_s1 + $0x5b4] ss:$8 sps:$4 sm:$0xff]  }
 0x443   :  { %v2995_v18 = vpack.c.bf16 %v2939_v28, %v2937_v30  ;;  %v2422_v17 = vadd.f32 %v2421_v37, %v10031_v58  ;;  %v2423_v20 = vpop.f32.mrb[125].mxu0  ;;  %4172 = vmatprep.subr.bf16.mxu1 %v8158_v34  ;;  %v8159_v30 = vld [vmem:[%s12452_s1 + $0x560] ss:$8 sps:$4 sm:$0xff]  }
 0x444   :  { %v2996_v36 = vpack.c.bf16 %v2940_v40, %v2938_v46  ;;  %v2424_v27 = vadd.f32 %v2423_v20, %v10035_v62  ;;  %v2425_v44 = vpop.f32.mrb[126].mxu0 }
 0x445   :  { %v2426_v45 = vadd.f32 %v2425_v44, %v10031_v58  ;;  %v2427_v60 = vpop.f32.mrb[127].mxu0  ;;  %v2490_v26 = vmax.f32 %v2422_v17, 0.0  ;;  %v8164_v44 = vld [vmem:[%s12452_s1 + $0x574] ss:$8 sps:$4 sm:$0xff]  }
 0x446   :  { %v2428_v19 = vadd.f32 %v2427_v60, %v10035_v62  ;;  %3652 = vmatprep.mubr.bf16.mxu0 %v2996_v36  ;;  %v2491_v61 = vmax.f32 %v2424_v27, 0.0  ;;  %v8156_v62 = vld [vmem:[%s12452_s1 + $0x550] ss:$8 sps:$4 sm:$0xff]  }
 0x447   :  { %v2492_v56 = vmax.f32 %v2426_v45, 0.0  ;;  %3653 = vmatmul.mubr.bf16.gmra.mrb[140].mxu0 %v2995_v18  ;;  %4173 = vmatpush1.bf16.msra.mxu1 %v8156_v62  ;;  %v8162_v60 = vld [vmem:[%s12452_s1 + $0x570] ss:$8 sps:$4 sm:$0xff]  }
 0x448   :  { %v2493_v25 = vmax.f32 %v2428_v19, 0.0  ;;  %4174 = vmatprep.subr.bf16.mxu1 %v8161_v8  ;;  %v8174_v8 = vld [vmem:[%s12452_s1 + $0x5b0] ss:$8 sps:$4 sm:$0xff]  }
 0x449   :  { %v2524_v58 = vpack.c.bf16 %v2492_v56, %v2490_v26  ;;  %v8167_v26 = vld [vmem:[%s12452_s1 + $0x584] ss:$8 sps:$4 sm:$0xff]   ;;  %v8165_v56 = vld [vmem:[%s12452_s1 + $0x580] ss:$8 sps:$4 sm:$0xff]  }
 0x44a   :  { %v2525_v63 = vpack.c.bf16 %v2493_v25, %v2491_v61  ;;  %v8168_v61 = vld [vmem:[%s12452_s1 + $0x590] ss:$8 sps:$4 sm:$0xff]   ;;  %v8170_v25 = vld [vmem:[%s12452_s1 + $0x594] ss:$8 sps:$4 sm:$0xff]  }
 0x44b   :  { %4175 = vmatpush1.bf16.msra.mxu1 %v8159_v30 }
 0x44c   :  { %2914 = vmatprep.mubr.bf16.mxu1 %v2525_v63  ;;  %4176 = vmatprep.subr.bf16.mxu1 %v8164_v44  ;;  %v8177_v44 = vld [vmem:[%s12452_s1 + $0x5c0] ss:$8 sps:$4 sm:$0xff]  }
 0x44d   :  { %2915 = vmatmul.mubr.bf16.gmra.mrb[124].mxu1 %v2524_v58  ;;  %v8173_v58 = vld [vmem:[%s12452_s1 + $0x5a4] ss:$8 sps:$4 sm:$0xff]  }
 0x44f   :  { %v2806_v55 = vpop.f32.mrb[80].mxu1  ;;  %4177 = vmatpush1.bf16.msra.mxu1 %v8162_v60  ;;  %v8180_v60 = vld [vmem:[%s12452_s1 + $0x5d0] ss:$8 sps:$4 sm:$0xff]  }
 0x450   :  { %v2807_v28 = vadd.f32 %v2806_v55, %v10200_v52  ;;  %v2808_v46 = vpop.f32.mrb[81].mxu1  ;;  %4178 = vmatprep.subr.bf16.mxu1 %v8167_v26 }
 0x451   :  { %v2809_v40 = vadd.f32 %v2808_v46, %v10204_v50  ;;  %v2810_v37 = vpop.f32.mrb[82].mxu1 }
 0x452   :  { %v2811_v18 = vadd.f32 %v2810_v37, %v10200_v52  ;;  %v2812_v17 = vpop.f32.mrb[83].mxu1  ;;  %v2941_v36 = vmax.f32 %v2807_v28, 0.0 }
 0x453   :  { %v2813_v20 = vadd.f32 %v2812_v17, %v10204_v50  ;;  %v2942_v54 = vmax.f32 %v2809_v40, 0.0  ;;  %4179 = vmatpush1.bf16.msra.mxu1 %v8165_v56 }
 0x454   :  { %v2943_v27 = vmax.f32 %v2811_v18, 0.0  ;;  %4180 = vmatprep.subr.bf16.mxu1 %v8170_v25 }
 0x455   :  { %v2944_v45 = vmax.f32 %v2813_v20, 0.0 }
 0x456   :  { %v2997_v22 = vpack.c.bf16 %v2943_v27, %v2941_v36  ;;  %v8179_v36 = vld [vmem:[%s12452_s1 + $0x5c4] ss:$8 sps:$4 sm:$0xff]  }
 0x457   :  { %v2998_v19 = vpack.c.bf16 %v2944_v45, %v2942_v54  ;;  %4181 = vmatpush1.bf16.msra.mxu1 %v8168_v61  ;;  %v8182_v45 = vld [vmem:[%s12452_s1 + $0x5d4] ss:$8 sps:$4 sm:$0xff]  }
 0x458   :  { %4182 = vmatprep.subr.bf16.mxu1 %v8173_v58 }
 0x459   :  { %3662 = vmatprep.mubr.bf16.mxu0 %v2998_v19  ;;  %v8183_v19 = vld [vmem:[%s12452_s1 + $0x5e0] ss:$8 sps:$4 sm:$0xff]  }
 0x45a   :  { %3663 = vmatmul.mubr.bf16.gmra.mrb[144].mxu0 %v2997_v22  ;;  %v8185_v22 = vld [vmem:[%s12452_s1 + $0x5e4] ss:$8 sps:$4 sm:$0xff]  }
 0x45b   :  { %4183 = vmatpush1.bf16.msra.mxu1 %v8171_v57 }
 0x45c   :  { %4184 = vmatprep.subr.bf16.mxu1 %v8176_v42 }
 0x45f   :  { %4185 = vmatpush1.bf16.msra.mxu1 %v8174_v8 }
 0x460   :  { %4186 = vmatprep.subr.bf16.mxu1 %v8179_v36 }
 0x462   :  { %v2816_v63 = vpop.f32.mrb[84].mxu1 }
 0x463   :  { %v2817_v62 = vadd.f32 %v2816_v63, %v10200_v52  ;;  %v2818_v34 = vpop.f32.mrb[85].mxu1  ;;  %4187 = vmatpush1.bf16.msra.mxu1 %v8177_v44 }
 0x464   :  { %v2819_v55 = vadd.f32 %v2818_v34, %v10204_v50  ;;  %v2820_v30 = vpop.f32.mrb[86].mxu1  ;;  %4188 = vmatprep.subr.bf16.mxu1 %v8182_v45  ;;  %v8188_v34 = vld [vmem:[%s12452_s1 + $0x5f4] ss:$8 sps:$4 sm:$0xff]  }
 0x465   :  { %v2821_v28 = vadd.f32 %v2820_v30, %v10200_v52  ;;  %v2822_v46 = vpop.f32.mrb[87].mxu1  ;;  %v2945_v37 = vmax.f32 %v2817_v62, 0.0  ;;  %v8186_v62 = vld [vmem:[%s12452_s1 + $0x5f0] ss:$8 sps:$4 sm:$0xff]  }
 0x466   :  { %v2823_v40 = vadd.f32 %v2822_v46, %v10204_v50  ;;  %v2946_v17 = vmax.f32 %v2819_v55, 0.0 }
 0x467   :  { %v2947_v18 = vmax.f32 %v2821_v28, 0.0  ;;  %4189 = vmatpush1.bf16.msra.mxu1 %v8180_v60 }
 0x468   :  { %v2948_v20 = vmax.f32 %v2823_v40, 0.0  ;;  %4190 = vmatprep.subr.bf16.mxu1 %v8185_v22 }
 0x469   :  { %v2999_v27 = vpack.c.bf16 %v2947_v18, %v2945_v37 }
 0x46a   :  { %v3000_v54 = vpack.c.bf16 %v2948_v20, %v2946_v17 }
 0x46b   :  { %4191 = vmatpush1.bf16.msra.mxu1 %v8183_v19 }
 0x46c   :  { %3672 = vmatprep.mubr.bf16.mxu0 %v3000_v54  ;;  %4192 = vmatprep.subr.bf16.mxu1 %v8188_v34 }
 0x46d   :  { %3673 = vmatmul.mubr.bf16.gmra.mrb[148].mxu0 %v2999_v27 }
 0x46f   :  { %4193 = vmatpush1.bf16.msra.mxu1 %v8186_v62 }
 0x475   :  { %v2826_v26 = vpop.f32.mrb[88].mxu1 }
 0x476   :  { %v2827_v56 = vadd.f32 %v2826_v26, %v10200_v52  ;;  %v2828_v61 = vpop.f32.mrb[89].mxu1 }
 0x477   :  { %v2829_v25 = vadd.f32 %v2828_v61, %v10204_v50  ;;  %v2830_v57 = vpop.f32.mrb[90].mxu1 }
 0x478   :  { %v2831_v58 = vadd.f32 %v2830_v57, %v10200_v52  ;;  %v2832_v42 = vpop.f32.mrb[91].mxu1  ;;  %v2949_v8 = vmax.f32 %v2827_v56, 0.0 }
 0x479   :  { %v2833_v63 = vadd.f32 %v2832_v42, %v10204_v50  ;;  %v2950_v30 = vmax.f32 %v2829_v25, 0.0 }
 0x47a   :  { %v2951_v55 = vmax.f32 %v2831_v58, 0.0 }
 0x47b   :  { %v2952_v28 = vmax.f32 %v2833_v63, 0.0 }
 0x47c   :  { %v3001_v46 = vpack.c.bf16 %v2951_v55, %v2949_v8 }
 0x47d   :  { %v3002_v40 = vpack.c.bf16 %v2952_v28, %v2950_v30 }
 0x47f   :  { %3682 = vmatprep.mubr.bf16.mxu0 %v3002_v40 }
 0x480   :  { %3683 = vmatmul.mubr.bf16.gmra.mrb[152].mxu0 %v3001_v46 }
 0x488   :  { %v2836_v37 = vpop.f32.mrb[92].mxu1 }
 0x489   :  { %v2837_v18 = vadd.f32 %v2836_v37, %v10200_v52  ;;  %v2838_v17 = vpop.f32.mrb[93].mxu1 }
 0x48a   :  { %v2839_v20 = vadd.f32 %v2838_v17, %v10204_v50  ;;  %v2840_v36 = vpop.f32.mrb[94].mxu1 }
 0x48b   :  { %v2841_v27 = vadd.f32 %v2840_v36, %v10200_v52  ;;  %v2842_v44 = vpop.f32.mrb[95].mxu1  ;;  %v2953_v45 = vmax.f32 %v2837_v18, 0.0 }
 0x48c   :  { %v2843_v54 = vadd.f32 %v2842_v44, %v10204_v50  ;;  %v2954_v22 = vmax.f32 %v2839_v20, 0.0 }
 0x48d   :  { %v2955_v60 = vmax.f32 %v2841_v27, 0.0 }
 0x48e   :  { %v2956_v19 = vmax.f32 %v2843_v54, 0.0 }
 0x48f   :  { %v3003_v26 = vpack.c.bf16 %v2955_v60, %v2953_v45 }
 0x490   :  { %v3004_v56 = vpack.c.bf16 %v2956_v19, %v2954_v22 }
 0x492   :  { %3692 = vmatprep.mubr.bf16.mxu0 %v3004_v56 }
 0x493   :  { %3693 = vmatmul.mubr.bf16.gmra.mrb[156].mxu0 %v3003_v26 }
 0x49b   :  { %v2846_v61 = vpop.f32.mrb[96].mxu1 }
 0x49c   :  { %v2847_v25 = vadd.f32 %v2846_v61, %v10200_v52  ;;  %v2848_v57 = vpop.f32.mrb[97].mxu1 }
 0x49d   :  { %v2849_v58 = vadd.f32 %v2848_v57, %v10204_v50  ;;  %v2850_v42 = vpop.f32.mrb[98].mxu1 }
 0x49e   :  { %v2851_v63 = vadd.f32 %v2850_v42, %v10200_v52  ;;  %v2852_v62 = vpop.f32.mrb[99].mxu1  ;;  %v2957_v8 = vmax.f32 %v2847_v25, 0.0 }
 0x49f   :  { %v2853_v34 = vadd.f32 %v2852_v62, %v10204_v50  ;;  %v2958_v30 = vmax.f32 %v2849_v58, 0.0 }
 0x4a0   :  { %v2959_v55 = vmax.f32 %v2851_v63, 0.0 }
 0x4a1   :  { %v2960_v28 = vmax.f32 %v2853_v34, 0.0 }
 0x4a2   :  { %v3005_v46 = vpack.c.bf16 %v2959_v55, %v2957_v8 }
 0x4a3   :  { %v3006_v40 = vpack.c.bf16 %v2960_v28, %v2958_v30 }
 0x4a5   :  { %3702 = vmatprep.mubr.bf16.mxu0 %v3006_v40 }
 0x4a6   :  { %3703 = vmatmul.mubr.bf16.gmra.mrb[160].mxu0 %v3005_v46 }
 0x4ae   :  { %v2856_v37 = vpop.f32.mrb[100].mxu1 }
 0x4af   :  { %v2857_v18 = vadd.f32 %v2856_v37, %v10200_v52  ;;  %v2858_v17 = vpop.f32.mrb[101].mxu1 }
 0x4b0   :  { %v2859_v20 = vadd.f32 %v2858_v17, %v10204_v50  ;;  %v2860_v36 = vpop.f32.mrb[102].mxu1 }
 0x4b1   :  { %v2861_v27 = vadd.f32 %v2860_v36, %v10200_v52  ;;  %v2862_v44 = vpop.f32.mrb[103].mxu1  ;;  %v2961_v45 = vmax.f32 %v2857_v18, 0.0 }
 0x4b2   :  { %v2863_v54 = vadd.f32 %v2862_v44, %v10204_v50  ;;  %v2962_v22 = vmax.f32 %v2859_v20, 0.0 }
 0x4b3   :  { %v2963_v60 = vmax.f32 %v2861_v27, 0.0 }
 0x4b4   :  { %v2964_v19 = vmax.f32 %v2863_v54, 0.0  ;;  %v3054_v54 = vld [vmem:[%s12455_s4] sm:$0x77] }
 0x4b5   :  { %v3007_v26 = vpack.c.bf16 %v2963_v60, %v2961_v45 }
 0x4b6   :  { %v3008_v56 = vpack.c.bf16 %v2964_v19, %v2962_v22  ;;  %v3059_v19 = vrot.slane %v3054_v54, %v8841_v7 }
 0x4b8   :  { %3712 = vmatprep.mubr.bf16.mxu0 %v3008_v56 }
 0x4b9   :  { %3713 = vmatmul.mubr.bf16.gmra.mrb[164].mxu0 %v3007_v26  ;;  %v12681_v26 = vsub.s32 4, %v8826_v2 }
 0x4bb   :  { %v3063_v56 = vrot.slane %v3054_v54, %v12681_v26 }
 0x4c1   :  { %v2866_v61 = vpop.f32.mrb[104].mxu1 }
 0x4c2   :  { %v2867_v25 = vadd.f32 %v2866_v61, %v10200_v52  ;;  %v2868_v57 = vpop.f32.mrb[105].mxu1 }
 0x4c3   :  { %v2869_v58 = vadd.f32 %v2868_v57, %v10204_v50  ;;  %v2870_v42 = vpop.f32.mrb[106].mxu1 }
 0x4c4   :  { %v2871_v63 = vadd.f32 %v2870_v42, %v10200_v52  ;;  %v2872_v62 = vpop.f32.mrb[107].mxu1  ;;  %v2965_v8 = vmax.f32 %v2867_v25, 0.0  ;;  %v12682_v42 = vsub.s32 5, %v8826_v2 }
 0x4c5   :  { %v2873_v34 = vadd.f32 %v2872_v62, %v10204_v50  ;;  %v2966_v30 = vmax.f32 %v2869_v58, 0.0  ;;  %v3141_v58 = vrot.slane %v3054_v54, %v8834_v5 }
 0x4c6   :  { %v2967_v55 = vmax.f32 %v2871_v63, 0.0  ;;  %v3145_v63 = vrot.slane %v3054_v54, %v12682_v42 }
 0x4c7   :  { %v2968_v28 = vmax.f32 %v2873_v34, 0.0  ;;  %v10374_v34 = vrot.slane %v3059_v19, %v8841_v7 }
 0x4c8   :  { %v3009_v46 = vpack.c.bf16 %v2967_v55, %v2965_v8  ;;  %v10377_v8 = vrot.slane %v3063_v56, %v8841_v7  ;;  %v10380_v55 = vrot.slane %v3141_v58, %v8834_v5 }
 0x4c9   :  { %v3010_v40 = vpack.c.bf16 %v2968_v28, %v2966_v30  ;;  %v3287_v30 = vrot.slane %v3054_v54, %v8852_v15  ;;  %v12683_v28 = vsub.s32 6, %v8826_v2 }
 0x4ca   :  { %v3077_v2 = vmul.f32 %v10377_v8, %v8921_v43 }
 0x4cb   :  { %3722 = vmatprep.mubr.bf16.mxu0 %v3010_v40  ;;  %v10386_v40 = vrot.slane %v3145_v63, %v8834_v5 }
 0x4cc   :  { %3723 = vmatmul.mubr.bf16.gmra.mrb[168].mxu0 %v3009_v46  ;;  %v3291_v46 = vrot.slane %v3054_v54, %v12683_v28  ;;  %v3079_v28 = vmul.f32 %v10377_v8, %v8901_v33 }
 0x4d4   :  { %v2876_v37 = vpop.f32.mrb[108].mxu1 }
 0x4d5   :  { %v2877_v18 = vadd.f32 %v2876_v37, %v10200_v52  ;;  %v2878_v17 = vpop.f32.mrb[109].mxu1  ;;  %v3074_v37 = vmul.f32 %v10374_v34, %v8896_v31 }
 0x4d6   :  { %v2879_v20 = vadd.f32 %v2878_v17, %v10204_v50  ;;  %v2880_v36 = vpop.f32.mrb[110].mxu1  ;;  %v3156_v17 = vmul.f32 %v10380_v55, %v8829_v3 }
 0x4d7   :  { %v2881_v27 = vadd.f32 %v2880_v36, %v10200_v52  ;;  %v2882_v44 = vpop.f32.mrb[111].mxu1  ;;  %v2969_v60 = vmax.f32 %v2877_v18, 0.0  ;;  %v3075_v18 = vmul.f32 %v10377_v8, %v8896_v31  ;;  %v3076_v36 = vmul.f32 %v10374_v34, %v8921_v43 }
 0x4d8   :  { %v2883_v45 = vadd.f32 %v2882_v44, %v10204_v50  ;;  %v2970_v61 = vmax.f32 %v2879_v20, 0.0  ;;  %v10395_v20 = vrot.slane %v3287_v30, %v8852_v15  ;;  %v10404_v44 = vrot.slane %v3291_v46, %v8852_v15 }
 0x4d9   :  { %v2971_v22 = vmax.f32 %v2881_v27, 0.0  ;;  %v3157_v27 = vmul.f32 %v10386_v40, %v8829_v3  ;;  %v3220_v54 = vadd.f32 %v3156_v17, %v3074_v37  ;;  %v7343_v3 = vld [vmem:[%s12454_s2 + $0x5] ss:$8 sm:$0x3]  ;;  %v3078_v30 = vmul.f32 %v10374_v34, %v8901_v33 }
 0x4da   :  { %v2972_v25 = vmax.f32 %v2883_v45, 0.0  ;;  %v3302_v31 = vmul.f32 %v10395_v20, %v8831_v4  ;;  %v3158_v45 = vmul.f32 %v10380_v55, %v8845_v10  ;;  %v3303_v43 = vmul.f32 %v10404_v44, %v8831_v4 }
 0x4db   :  { %v3011_v57 = vpack.c.bf16 %v2971_v22, %v2969_v60  ;;  %v3159_v60 = vmul.f32 %v10386_v40, %v8845_v10  ;;  %v3221_v22 = vadd.f32 %v3157_v27, %v3075_v18  ;;  %v3304_v10 = vmul.f32 %v10395_v20, %v8875_v24 }
 0x4dc   :  { %v3012_v62 = vpack.c.bf16 %v2972_v25, %v2970_v61  ;;  %v3222_v26 = vadd.f32 %v3158_v45, %v3076_v36  ;;  %v3306_v61 = vmul.f32 %v10395_v20, %v8848_v13  ;;  %v3305_v58 = vmul.f32 %v10404_v44, %v8875_v24 }
 0x4dd   :  { %v3223_v56 = vadd.f32 %v3159_v60, %v3077_v2  ;;  %v3307_v4 = vmul.f32 %v10404_v44, %v8848_v13  ;;  %v10433_v18 = vrot.slane %v7343_v3, %v8841_v7  ;;  %v3367_v24 = vadd.f32 %v3303_v43, %v3221_v22 }
 0x4de   :  { %3732 = vmatprep.mubr.bf16.mxu0 %v3012_v62  ;;  %v3366_v62 = vadd.f32 %v3302_v31, %v3220_v54  ;;  %v3160_v13 = vmul.f32 %v10380_v55, %v8935_v49  ;;  %v10439_v2 = vrot.slane %v7343_v3, %v8834_v5  ;;  %v3368_v27 = vadd.f32 %v3304_v10, %v3222_v26 }
 0x4df   :  { %3733 = vmatmul.mubr.bf16.gmra.mrb[172].mxu0 %v3011_v57  ;;  %v3369_v54 = vadd.f32 %v3305_v58, %v3223_v56 }
 0x4e0   :  { %v3224_v56 = vadd.f32 %v3160_v13, %v3078_v30  ;;  %v3308_v30 = vmul.f32 %v10395_v20, %v8983_v9 }
 0x4e7   :  { %v2886_v19 = vpop.f32.mrb[112].mxu1 }
 0x4e8   :  { %v2887_v25 = vadd.f32 %v2886_v19, %v10200_v52  ;;  %v2888_v57 = vpop.f32.mrb[113].mxu1  ;;  %v3161_v19 = vmul.f32 %v10386_v40, %v8935_v49  ;;  %v3162_v49 = vmul.f32 %v10380_v55, %v8960_v39 }
 0x4e9   :  { %v2889_v42 = vadd.f32 %v2888_v57, %v10204_v50  ;;  %v2890_v63 = vpop.f32.mrb[114].mxu1 }
 0x4ea   :  { %v2891_v46 = vadd.f32 %v2890_v63, %v10200_v52  ;;  %v2892_v37 = vpop.f32.mrb[115].mxu1  ;;  %v2973_v31 = vmax.f32 %v2887_v25, 0.0 }
 0x4eb   :  { %v2893_v17 = vadd.f32 %v2892_v37, %v10204_v50  ;;  %v3624_v36 = vpop.f32.mrb[128].mxu0  ;;  %v2974_v57 = vmax.f32 %v2889_v42, 0.0  ;;  %v3080_v37 = vmul.f32 %v10374_v34, %v8953_v29 }
 0x4ec   :  { %v2975_v33 = vmax.f32 %v2891_v46, 0.0  ;;  %v3625_v45 = vadd.f32 %v3624_v36, %v3366_v62  ;;  %v3626_v60 = vpop.f32.mrb[129].mxu0  ;;  %v3225_v62 = vadd.f32 %v3161_v19, %v3079_v28  ;;  %v3081_v46 = vmul.f32 %v10377_v8, %v8953_v29 }
 0x4ed   :  { %v2976_v22 = vmax.f32 %v2893_v17, 0.0  ;;  %v3627_v43 = vadd.f32 %v3626_v60, %v3367_v24  ;;  %v3628_v63 = vpop.f32.mrb[130].mxu0  ;;  %v3163_v24 = vmul.f32 %v10386_v40, %v8960_v39  ;;  %v8481_v60 = vmov 3  }
 0x4ee   :  { %v3013_v41 = vpack.c.bf16 %v2975_v33, %v2973_v31  ;;  %v3796_v3 = vadd.f32 %v10433_v18, %v3625_v45  ;;  %v3629_v59 = vadd.f32 %v3628_v63, %v3368_v27  ;;  %v3630_v26 = vpop.f32.mrb[131].mxu0  ;;  %v3370_v27 = vadd.f32 %v3306_v61, %v3224_v56  ;;  %7859 = vset.pattern.permute.xlu1 %v8481_v60  ;;  %v10470_v61 = vld [vmem:[%s12451_s0] sm:$0xff] }
 0x4ef   :  { %v3014_v25 = vpack.c.bf16 %v2976_v22, %v2974_v57  ;;  %v3797_v10 = vadd.f32 %v10439_v2, %v3627_v43  ;;  %v3631_v58 = vadd.f32 %v3630_v26, %v3369_v54  ;;  %v3226_v31 = vadd.f32 %v3162_v49, %v3080_v37  ;;  %7858 = vset.pattern.permute.xlu0 %v8481_v60 }
 0x4f0   :  { %v3798_v42 = vadd.f32 %v10433_v18, %v3629_v59  ;;  %v3860_v13 = vmax.f32 %v3796_v3, 0.0  ;;  %v3309_v59 = vmul.f32 %v10404_v44, %v8983_v9  ;;  %v3371_v45 = vadd.f32 %v3307_v4, %v3225_v62  ;;  %v10464_v9 = vld [vmem:[%s12451_s0 + $0x8] sm:$0xff]  ;;  %5654 = vperm.xlu0 %7858, %v10470_v61  }
 0x4f1   :  { %v3799_v17 = vadd.f32 %v10439_v2, %v3631_v58  ;;  %3742 = vmatprep.mubr.bf16.mxu0 %v3014_v25  ;;  %v3861_v28 = vmax.f32 %v3797_v10, 0.0  ;;  %v3227_v39 = vadd.f32 %v3163_v24, %v3081_v46  ;;  %v3372_v22 = vadd.f32 %v3308_v30, %v3226_v31  ;;  %5658 = vperm.xlu1 %7859, %v10464_v9   ;;  %v10479_v58 = vld [vmem:[%s12451_s0 + $0x20] sm:$0xff]  ;;  %v10489_v31 = vld [vmem:[%s12451_s0 + $0x48] sm:$0xff] }
 0x4f2   :  { %v3862_v36 = vmax.f32 %v3798_v42, 0.0  ;;  %3743 = vmatmul.mubr.bf16.gmra.mrb[176].mxu0 %v3013_v41 }
 0x4f3   :  { %v3863_v54 = vmax.f32 %v3799_v17, 0.0  ;;  %v3373_v63 = vadd.f32 %v3309_v59, %v3227_v39 }
 0x4f4   :  { %v3924_v29 = vpack.c.bf16 %v3862_v36, %v3860_v13  ;;  %v3634_v33 = vpop.f32.mrb[132].mxu0  ;;  %5670 = vperm.xlu0 %7858, %v10479_v58  }
 0x4f5   :  { %v3635_v19 = vadd.f32 %v3634_v33, %v3370_v27  ;;  %v3636_v57 = vpop.f32.mrb[133].mxu0  ;;  %v3925_v41 = vpack.c.bf16 %v3863_v54, %v3861_v28 }
 0x4f6   :  { %v3637_v4 = vadd.f32 %v3636_v57, %v3371_v45  ;;  %v3638_v43 = vpop.f32.mrb[134].mxu0  ;;  %v3164_v45 = vmul.f32 %v10380_v55, %v9010_v51  ;;  %v3310_v57 = vmul.f32 %v10395_v20, %v8869_v21 }
 0x4f7   :  { %v3800_v37 = vadd.f32 %v10433_v18, %v3635_v19  ;;  %v3639_v3 = vadd.f32 %v3638_v43, %v3372_v22  ;;  %v3640_v26 = vpop.f32.mrb[135].mxu0  ;;  %4194 = vmatprep.mubr.bf16.mxu1 %v3925_v41  ;;  %v3165_v22 = vmul.f32 %v10386_v40, %v9010_v51  ;;  %v3082_v43 = vmul.f32 %v10374_v34, %v9002_v47  ;;  %v12684_v51 = vld [vmem:[#allocation6_spill] sm:$0xff] }
 0x4f8   :  { %v3801_v56 = vadd.f32 %v10439_v2, %v3637_v4  ;;  %v3641_v25 = vadd.f32 %v3640_v26, %v3373_v63  ;;  %4195 = vmatmul.mubr.bf16.vlgmr.msra.gmra.mrb[128].mxu1 %v3924_v29  ;;  %5690 = vperm.xlu0 %7858, %v10489_v31   ;;  %v8482_v26 = vmov 4  }
 0x4f9   :  { %v3802_v10 = vadd.f32 %v10433_v18, %v3639_v3  ;;  %v3864_v62 = vmax.f32 %v3800_v37, 0.0  ;;  %v3083_v37 = vmul.f32 %v10377_v8, %v9002_v47  ;;  %v3084_v3 = vmul.f32 %v10374_v34, %v8975_v6  ;;  %7860 = vset.pattern.permute.xlu1 %v8482_v26 }
 0x4fa   :  { %v3803_v49 = vadd.f32 %v10439_v2, %v3641_v25  ;;  %v2896_v42 = vpop.f32.mrb[116].mxu1  ;;  %v3865_v30 = vmax.f32 %v3801_v56, 0.0  ;;  %v3228_v25 = vadd.f32 %v3164_v45, %v3082_v43  ;;  %5818 = vperm.xlu1 %7860, %v10470_v61  }
 0x4fb   :  { %v3866_v46 = vmax.f32 %v3802_v10, 0.0  ;;  %v2897_v24 = vadd.f32 %v2896_v42, %v10200_v52  ;;  %v2898_v17 = vpop.f32.mrb[117].mxu1  ;;  %v3166_v10 = vmul.f32 %v10380_v55, %v12684_v51  ;;  %v3229_v47 = vadd.f32 %v3165_v22, %v3083_v37 }
 0x4fc   :  { %v3867_v13 = vmax.f32 %v3803_v49, 0.0  ;;  %v2899_v36 = vadd.f32 %v2898_v17, %v10204_v50  ;;  %v2900_v27 = vpop.f32.mrb[118].mxu1  ;;  %v10512_v49 = vld [vmem:[%s12451_s0 + $0x50] sm:$0xff]  ;;  %v3311_v42 = vmul.f32 %v10404_v44, %v8869_v21  ;;  %v10529_v21 = vld [vmem:[%s12451_s0 + $0x60] sm:$0xff] }
 0x4fd   :  { %v2901_v59 = vadd.f32 %v2900_v27, %v10200_v52  ;;  %v2902_v28 = vpop.f32.mrb[119].mxu1  ;;  %v3926_v54 = vpack.c.bf16 %v3866_v46, %v3864_v62  ;;  %v2977_v39 = vmax.f32 %v2897_v24, 0.0  ;;  %5694 = vperm.xlu0 %7858, %v10512_v49   ;;  %v3085_v62 = vmul.f32 %v10377_v8, %v8975_v6  ;;  %v12685_v24 = vld [vmem:[#allocation8_spill] sm:$0xff] }
 0x4fe   :  { %v2903_v29 = vadd.f32 %v2902_v28, %v10204_v50  ;;  %v3927_v33 = vpack.c.bf16 %v3867_v13, %v3865_v30  ;;  %v2978_v41 = vmax.f32 %v2899_v36, 0.0  ;;  %v3167_v46 = vmul.f32 %v10386_v40, %v12684_v51  ;;  %5822 = vperm.xlu1 %7860, %v10464_v9  }
 0x4ff   :  { %v2979_v19 = vmax.f32 %v2901_v59, 0.0  ;;  %v3312_v17 = vmul.f32 %v10395_v20, %v12685_v24  ;;  %v3313_v30 = vmul.f32 %v10404_v44, %v12685_v24  ;;  %v3374_v13 = vadd.f32 %v3310_v57, %v3228_v25 }
 0x500   :  { %v2980_v4 = vmax.f32 %v2903_v29, 0.0  ;;  %4204 = vmatprep.mubr.bf16.mxu1 %v3927_v33  ;;  %v3230_v36 = vadd.f32 %v3166_v10, %v3084_v3  ;;  %v3375_v27 = vadd.f32 %v3311_v42, %v3229_v47  ;;  %v3231_v59 = vadd.f32 %v3167_v46, %v3085_v62  ;;  %v10553_v42 = vld [vmem:[%s12451_s0 + $0x90] sm:$0xff] }
 0x501   :  { %v3015_v63 = vpack.c.bf16 %v2979_v19, %v2977_v39  ;;  %4205 = vmatmul.mubr.bf16.gmra.mrb[132].mxu1 %v3926_v54  ;;  %5702 = vperm.xlu0 %7858, %v10529_v21  }
 0x502   :  { %v3016_v56 = vpack.c.bf16 %v2980_v4, %v2978_v41  ;;  %v3376_v29 = vadd.f32 %v3312_v17, %v3230_v36  ;;  %v3377_v39 = vadd.f32 %v3313_v30, %v3231_v59  ;;  %7861 = vset.pattern.permute.xlu1 %v8481_v60  ;;  %v10537_v41 = vld [vmem:[%s12451_s0 + $0x88] sm:$0xff]  ;;  %v10560_v30 = vld [vmem:[%s12451_s0 + $0x18] sm:$0xff] }
 0x504   :  { %3752 = vmatprep.mubr.bf16.mxu0 %v3016_v56 }
 0x505   :  { %3753 = vmatmul.mubr.bf16.gmra.mrb[180].mxu0 %v3015_v63  ;;  %5722 = vperm.xlu0 %7858, %v10537_v41   ;;  %v10544_v63 = vld [vmem:[%s12451_s0 + $0x10] sm:$0xff] }
 0x506   :  { %5662 = vperm.xlu1 %7861, %v10544_v63  }
 0x507   :  { %v3644_v6 = vpop.f32.mrb[136].mxu0 }
 0x508   :  { %v3645_v28 = vadd.f32 %v3644_v6, %v3374_v13  ;;  %v3646_v54 = vpop.f32.mrb[137].mxu0 }
 0x509   :  { %v3647_v33 = vadd.f32 %v3646_v54, %v3375_v27  ;;  %v3648_v45 = vpop.f32.mrb[138].mxu0  ;;  %5726 = vperm.xlu0 %7858, %v10553_v42  }
 0x50a   :  { %v3804_v19 = vadd.f32 %v10433_v18, %v3645_v28  ;;  %v3649_v57 = vadd.f32 %v3648_v45, %v3376_v29  ;;  %v3650_v22 = vpop.f32.mrb[139].mxu0  ;;  %5666 = vperm.xlu1 %7861, %v10560_v30   ;;  %v12686_v28 = vld [vmem:[#allocation11_spill] sm:$0xff] }
 0x50b   :  { %v3805_v4 = vadd.f32 %v10439_v2, %v3647_v33  ;;  %v3651_v43 = vadd.f32 %v3650_v22, %v3377_v39  ;;  %v3168_v54 = vmul.f32 %v10380_v55, %v12686_v28  ;;  %v3169_v45 = vmul.f32 %v10386_v40, %v12686_v28  ;;  %v10572_v39 = vld [vmem:[%s12451_s0 + $0xa0] sm:$0xff]  ;;  %v12687_v22 = vld [vmem:[#allocation9_spill] sm:$0xff] }
 0x50c   :  { %v3806_v37 = vadd.f32 %v10433_v18, %v3649_v57  ;;  %v3868_v25 = vmax.f32 %v3804_v19, 0.0  ;;  %v3316_v28 = vmul.f32 %v10395_v20, %v9100_v38 }
 0x50d   :  { %v3807_v3 = vadd.f32 %v10439_v2, %v3651_v43  ;;  %v2906_v56 = vpop.f32.mrb[120].mxu1  ;;  %v3869_v62 = vmax.f32 %v3805_v4, 0.0  ;;  %5734 = vperm.xlu0 %7858, %v10572_v39   ;;  %v3086_v4 = vmul.f32 %v10374_v34, %v12687_v22  ;;  %v12688_v43 = vld [vmem:[#allocation3_spill] sm:$0xff] }
 0x50e   :  { %v3870_v51 = vmax.f32 %v3806_v37, 0.0  ;;  %v2907_v10 = vadd.f32 %v2906_v56, %v10200_v52  ;;  %v2908_v47 = vpop.f32.mrb[121].mxu1  ;;  %v3088_v37 = vmul.f32 %v10374_v34, %v12688_v43  ;;  %7862 = vset.pattern.permute.xlu1 %v8482_v26  ;;  %v3087_v56 = vmul.f32 %v10377_v8, %v12687_v22 }
 0x50f   :  { %v3871_v46 = vmax.f32 %v3807_v3, 0.0  ;;  %v2909_v24 = vadd.f32 %v2908_v47, %v10204_v50  ;;  %v2910_v17 = vpop.f32.mrb[122].mxu1  ;;  %5826 = vperm.xlu1 %7862, %v10544_v63  }
 0x510   :  { %v2911_v13 = vadd.f32 %v2910_v17, %v10200_v52  ;;  %v2912_v36 = vpop.f32.mrb[123].mxu1  ;;  %v3928_v6 = vpack.c.bf16 %v3870_v51, %v3868_v25  ;;  %v2981_v29 = vmax.f32 %v2907_v10, 0.0  ;;  %v3089_v25 = vmul.f32 %v10377_v8, %v12688_v43  ;;  %v8189_v51 = vld [vmem:[%s12452_s1 + $0x600] ss:$8 sps:$4 sm:$0xff]   ;;  %v8191_v10 = vld [vmem:[%s12452_s1 + $0x604] ss:$8 sps:$4 sm:$0xff]  }
 0x511   :  { %v2913_v27 = vadd.f32 %v2912_v36, %v10204_v50  ;;  %v3929_v59 = vpack.c.bf16 %v3871_v46, %v3869_v62  ;;  %v2982_v19 = vmax.f32 %v2909_v24, 0.0  ;;  %v3232_v62 = vadd.f32 %v3168_v54, %v3086_v4  ;;  %v12689_v46 = vld [vmem:[#allocation12_spill] sm:$0xff]  ;;  %v12690_v17 = vld [vmem:[#allocation13_spill] sm:$0xff]  ;;  %4657 = vmatprep.subr.bf16.mxu0 %v8191_v10 }
 0x512   :  { %v2983_v33 = vmax.f32 %v2911_v13, 0.0  ;;  %v3314_v24 = vmul.f32 %v10395_v20, %v12689_v46  ;;  %v3170_v13 = vmul.f32 %v10380_v55, %v12690_v17  ;;  %v3233_v36 = vadd.f32 %v3169_v45, %v3087_v56  ;;  %4658 = vmatpush1.bf16.msra.mxu0 %v8189_v51  ;;  %v8192_v45 = vld [vmem:[%s12452_s1 + $0x610] ss:$8 sps:$4 sm:$0xff]   ;;  %v8197_v43 = vld [vmem:[%s12452_s1 + $0x624] ss:$8 sps:$4 sm:$0xff]  }
 0x513   :  { %v2984_v57 = vmax.f32 %v2913_v27, 0.0  ;;  %4214 = vmatprep.mubr.bf16.mxu1 %v3929_v59  ;;  %v3171_v27 = vmul.f32 %v10386_v40, %v12690_v17  ;;  %v10602_v59 = vld [vmem:[%s12451_s0 + $0xc8] sm:$0xff]  ;;  %v3317_v54 = vmul.f32 %v10404_v44, %v9100_v38  ;;  %5830 = vperm.xlu1 %7862, %v10560_v30   ;;  %v10622_v38 = vld [vmem:[%s12451_s0 + $0xd0] sm:$0xff] }
 0x514   :  { %v3017_v3 = vpack.c.bf16 %v2983_v33, %v2981_v29  ;;  %4215 = vmatmul.mubr.bf16.gmra.mrb[136].mxu1 %v3928_v6  ;;  %v3315_v6 = vmul.f32 %v10404_v44, %v12689_v46  ;;  %5754 = vperm.xlu0 %7858, %v10602_v59   ;;  %v3378_v29 = vadd.f32 %v3314_v24, %v3232_v62  ;;  %v8483_v62 = vmov 5  }
 0x515   :  { %v3018_v47 = vpack.c.bf16 %v2984_v57, %v2982_v19  ;;  %v3234_v33 = vadd.f32 %v3170_v13, %v3088_v37  ;;  %v8194_v19 = vld [vmem:[%s12452_s1 + $0x614] ss:$8 sps:$4 sm:$0xff]   ;;  %v3235_v4 = vadd.f32 %v3171_v27, %v3089_v25  ;;  %v8195_v25 = vld [vmem:[%s12452_s1 + $0x620] ss:$8 sps:$4 sm:$0xff]  }
 0x516   :  { %v3379_v22 = vadd.f32 %v3315_v6, %v3233_v36  ;;  %4659 = vmatprep.subr.bf16.mxu0 %v8194_v19  ;;  %v10635_v6 = vld [vmem:[%s12451_s0 + $0xe0] sm:$0xff] }
 0x517   :  { %3762 = vmatprep.mubr.bf16.mxu0 %v3018_v47  ;;  %v3380_v56 = vadd.f32 %v3316_v28, %v3234_v33  ;;  %v3381_v47 = vadd.f32 %v3317_v54, %v3235_v4  ;;  %7863 = vset.pattern.permute.xlu1 %v8483_v62 }
 0x518   :  { %3763 = vmatmul.mubr.bf16.gmra.mrb[184].mxu0 %v3017_v3  ;;  %5758 = vperm.xlu0 %7858, %v10622_v38  }
 0x519   :  { %4660 = vmatpush1.bf16.msra.mxu0 %v8192_v45  ;;  %6014 = vperm.xlu1 %7863, %v10470_v61  }
 0x51a   :  { %v3654_v57 = vpop.f32.mrb[140].mxu0  ;;  %4661 = vmatprep.subr.bf16.mxu0 %v8197_v43 }
 0x51b   :  { %v3655_v37 = vadd.f32 %v3654_v57, %v3378_v29  ;;  %v3656_v3 = vpop.f32.mrb[141].mxu0 }
 0x51c   :  { %v3657_v51 = vadd.f32 %v3656_v3, %v3379_v22  ;;  %v3658_v10 = vpop.f32.mrb[142].mxu0  ;;  %5766 = vperm.xlu0 %7858, %v10635_v6  }
 0x51d   :  { %v3808_v46 = vadd.f32 %v10433_v18, %v3655_v37  ;;  %v3659_v24 = vadd.f32 %v3658_v10, %v3380_v56  ;;  %v3660_v17 = vpop.f32.mrb[143].mxu0  ;;  %4662 = vmatpush1.bf16.msra.mxu0 %v8195_v25  ;;  %6022 = vperm.xlu1 %7863, %v10544_v63   ;;  %v10648_v56 = vld [vmem:[%s12451_s0 + $0x28] sm:$0xff]  ;;  %v3172_v10 = vmul.f32 %v10380_v55, %v9128_v53 }
 0x51e   :  { %v3809_v13 = vadd.f32 %v10439_v2, %v3657_v51  ;;  %v3661_v36 = vadd.f32 %v3660_v17, %v3381_v47  ;;  %v3090_v17 = vmul.f32 %v10374_v34, %v9116_v35 }
 0x51f   :  { %v3810_v27 = vadd.f32 %v10433_v18, %v3659_v24  ;;  %v3872_v29 = vmax.f32 %v3808_v46, 0.0 }
 0x520   :  { %v3811_v28 = vadd.f32 %v10439_v2, %v3661_v36  ;;  %v2916_v54 = vpop.f32.mrb[124].mxu1  ;;  %v3873_v19 = vmax.f32 %v3809_v13, 0.0  ;;  %7894 = vset.pattern.permute.xlu0 %v8482_v26  ;;  %v12691_v13 = vld [vmem:[#allocation4_spill] sm:$0xff] }
 0x521   :  { %v3874_v33 = vmax.f32 %v3810_v27, 0.0  ;;  %v2917_v61 = vadd.f32 %v2916_v54, %v10200_v52  ;;  %v2918_v45 = vpop.f32.mrb[125].mxu1  ;;  %5838 = vperm.xlu0 %7894, %v10648_v56   ;;  %6026 = vperm.xlu1 %7863, %v10560_v30   ;;  %v3091_v27 = vmul.f32 %v10377_v8, %v9116_v35  ;;  %v8200_v30 = vld [vmem:[%s12452_s1 + $0x634] ss:$8 sps:$4 sm:$0xff]   ;;  %v3236_v35 = vadd.f32 %v3172_v10, %v3090_v17 }
 0x522   :  { %v3875_v57 = vmax.f32 %v3811_v28, 0.0  ;;  %v2919_v22 = vadd.f32 %v2918_v45, %v10204_v50  ;;  %v2920_v4 = vpop.f32.mrb[126].mxu1  ;;  %v3093_v28 = vmul.f32 %v10377_v8, %v12691_v13  ;;  %v10674_v54 = vld [vmem:[%s12451_s0 + $0x30] sm:$0xff]  ;;  %v12693_v45 = vld [vmem:[#allocation15_spill] sm:$0xff]  ;;  %4663 = vmatprep.subr.bf16.mxu0 %v8200_v30 }
 0x523   :  { %v2921_v43 = vadd.f32 %v2920_v4, %v10200_v52  ;;  %v2922_v37 = vpop.f32.mrb[127].mxu1  ;;  %v3930_v3 = vpack.c.bf16 %v3874_v33, %v3872_v29  ;;  %v2985_v47 = vmax.f32 %v2917_v61, 0.0  ;;  %v3173_v52 = vmul.f32 %v10386_v40, %v9128_v53  ;;  %v8198_v53 = vld [vmem:[%s12452_s1 + $0x630] ss:$8 sps:$4 sm:$0xff]  }
 0x524   :  { %v2923_v63 = vadd.f32 %v2922_v37, %v10204_v50  ;;  %v3931_v51 = vpack.c.bf16 %v3875_v57, %v3873_v19  ;;  %v2986_v46 = vmax.f32 %v2919_v22, 0.0  ;;  %v3092_v50 = vmul.f32 %v10374_v34, %v12691_v13  ;;  %v12692_v33 = vld [vmem:[#allocation14_spill] sm:$0xff]  ;;  %v8203_v57 = vld [vmem:[%s12452_s1 + $0x644] ss:$8 sps:$4 sm:$0xff]   ;;  %4664 = vmatpush1.bf16.msra.mxu0 %v8198_v53 }
 0x525   :  { %v2987_v25 = vmax.f32 %v2921_v43, 0.0  ;;  %5842 = vperm.xlu0 %7894, %v10674_v54   ;;  %v3318_v61 = vmul.f32 %v10395_v20, %v12692_v33  ;;  %v3174_v19 = vmul.f32 %v10380_v55, %v12693_v45  ;;  %v3237_v22 = vadd.f32 %v3173_v52, %v3091_v27  ;;  %7864 = vset.pattern.permute.xlu1 %v8481_v60 }
 0x526   :  { %v2988_v24 = vmax.f32 %v2923_v63, 0.0  ;;  %4224 = vmatprep.mubr.bf16.mxu1 %v3931_v51  ;;  %v3319_v4 = vmul.f32 %v10404_v44, %v12692_v33  ;;  %v3175_v43 = vmul.f32 %v10386_v40, %v12693_v45  ;;  %v3320_v37 = vmul.f32 %v10395_v20, %v9172_v32  ;;  %5674 = vperm.xlu1 %7864, %v10648_v56   ;;  %v8206_v51 = vld [vmem:[%s12452_s1 + $0x654] ss:$8 sps:$4 sm:$0xff]  }
 0x527   :  { %v3019_v36 = vpack.c.bf16 %v2987_v25, %v2985_v47  ;;  %4225 = vmatmul.mubr.bf16.gmra.mrb[140].mxu1 %v3930_v3  ;;  %v8201_v3 = vld [vmem:[%s12452_s1 + $0x640] ss:$8 sps:$4 sm:$0xff]   ;;  %v3321_v63 = vmul.f32 %v10404_v44, %v9172_v32  ;;  %v3382_v10 = vadd.f32 %v3318_v61, %v3236_v35  ;;  %v3238_v47 = vadd.f32 %v3174_v19, %v3092_v50  ;;  %v8204_v32 = vld [vmem:[%s12452_s1 + $0x650] ss:$8 sps:$4 sm:$0xff]   ;;  %v8209_v50 = vld [vmem:[%s12452_s1 + $0x664] ss:$8 sps:$4 sm:$0xff]  }
 0x528   :  { %v3020_v29 = vpack.c.bf16 %v2988_v24, %v2986_v46  ;;  %4665 = vmatprep.subr.bf16.mxu0 %v8203_v57  ;;  %v3383_v52 = vadd.f32 %v3319_v4, %v3237_v22  ;;  %v3239_v46 = vadd.f32 %v3175_v43, %v3093_v28  ;;  %v10713_v35 = vld [vmem:[%s12451_s0 + $0x68] sm:$0xff]  ;;  %v10726_v43 = vld [vmem:[%s12451_s0 + $0x70] sm:$0xff] }
 0x529   :  { %5858 = vperm.xlu0 %7894, %v10512_v49   ;;  %v3384_v13 = vadd.f32 %v3320_v37, %v3238_v47  ;;  %4666 = vmatpush1.bf16.msra.mxu0 %v8201_v3  ;;  %v8207_v19 = vld [vmem:[%s12452_s1 + $0x660] ss:$8 sps:$4 sm:$0xff]   ;;  %v8210_v47 = vld [vmem:[%s12452_s1 + $0x670] ss:$8 sps:$4 sm:$0xff]  }
 0x52a   :  { %3772 = vmatprep.mubr.bf16.mxu0 %v3020_v29  ;;  %v3385_v53 = vadd.f32 %v3321_v63, %v3239_v46  ;;  %7865 = vset.pattern.permute.xlu1 %v8482_v26  ;;  %v3094_v46 = vmul.f32 %v10374_v34, %v9191_v12 }
 0x52b   :  { %3773 = vmatmul.mubr.bf16.gmra.mrb[188].mxu0 %v3019_v36  ;;  %4667 = vmatprep.subr.bf16.mxu0 %v8206_v51 }
 0x52c   :  { %5834 = vperm.xlu1 %7865, %v10479_v58  }
 0x52d   :  { %v3664_v25 = vpop.f32.mrb[144].mxu0  ;;  %5870 = vperm.xlu0 %7894, %v10713_v35   ;;  %4668 = vmatpush1.bf16.msra.mxu0 %v8204_v32  ;;  %v10750_v32 = vld [vmem:[%s12451_s0 + $0x38] sm:$0xff] }
 0x52e   :  { %v3665_v24 = vadd.f32 %v3664_v25, %v3382_v10  ;;  %v3666_v17 = vpop.f32.mrb[145].mxu0  ;;  %4669 = vmatprep.subr.bf16.mxu0 %v8209_v50  ;;  %v3176_v10 = vmul.f32 %v10380_v55, %v9203_v14  ;;  %v8212_v25 = vld [vmem:[%s12452_s1 + $0x674] ss:$8 sps:$4 sm:$0xff]  }
 0x52f   :  { %v3667_v36 = vadd.f32 %v3666_v17, %v3383_v52  ;;  %v3668_v27 = vpop.f32.mrb[146].mxu0  ;;  %v3177_v52 = vmul.f32 %v10386_v40, %v9203_v14  ;;  %v12694_v17 = vld [vmem:[#allocation5_spill] sm:$0xff]  ;;  %v8215_v14 = vld [vmem:[%s12452_s1 + $0x684] ss:$8 sps:$4 sm:$0xff]  }
 0x530   :  { %v3812_v28 = vadd.f32 %v10433_v18, %v3665_v24  ;;  %v3669_v30 = vadd.f32 %v3668_v27, %v3384_v13  ;;  %v3670_v29 = vpop.f32.mrb[147].mxu0  ;;  %7866 = vset.pattern.permute.xlu1 %v8481_v60  ;;  %v3095_v24 = vmul.f32 %v10377_v8, %v9191_v12  ;;  %v3096_v13 = vmul.f32 %v10374_v34, %v12694_v17 }
 0x531   :  { %v3813_v33 = vadd.f32 %v10439_v2, %v3667_v36  ;;  %v3671_v61 = vadd.f32 %v3670_v29, %v3385_v53  ;;  %5874 = vperm.xlu0 %7894, %v10726_v43   ;;  %5678 = vperm.xlu1 %7866, %v10674_v54   ;;  %v12695_v36 = vld [vmem:[#allocation16_spill] sm:$0xff]  ;;  %v12696_v53 = vld [vmem:[#allocation17_spill] sm:$0xff]  ;;  %v3097_v50 = vmul.f32 %v10377_v8, %v12694_v17 }
 0x532   :  { %v3814_v45 = vadd.f32 %v10433_v18, %v3669_v30  ;;  %v3876_v22 = vmax.f32 %v3812_v28, 0.0  ;;  %4670 = vmatpush1.bf16.msra.mxu0 %v8207_v19  ;;  %v3322_v27 = vmul.f32 %v10395_v20, %v12695_v36  ;;  %v3178_v12 = vmul.f32 %v10380_v55, %v12696_v53  ;;  %v8213_v28 = vld [vmem:[%s12452_s1 + $0x680] ss:$8 sps:$4 sm:$0xff]  }
 0x533   :  { %v3815_v57 = vadd.f32 %v10439_v2, %v3671_v61  ;;  %v3877_v37 = vmax.f32 %v3813_v33, 0.0  ;;  %4671 = vmatprep.subr.bf16.mxu0 %v8212_v25  ;;  %v3241_v30 = vadd.f32 %v3177_v52, %v3095_v24  ;;  %v3323_v29 = vmul.f32 %v10404_v44, %v12695_v36  ;;  %v8218_v61 = vld [vmem:[%s12452_s1 + $0x694] ss:$8 sps:$4 sm:$0xff]   ;;  %v8219_v36 = vld [vmem:[%s12452_s1 + $0x6a0] ss:$8 sps:$4 sm:$0xff]  }
 0x534   :  { %v3878_v4 = vmax.f32 %v3814_v45, 0.0  ;;  %v3179_v33 = vmul.f32 %v10386_v40, %v12696_v53  ;;  %v10775_v45 = vld [vmem:[%s12451_s0 + $0xa8] sm:$0xff]  ;;  %v3324_v19 = vmul.f32 %v10395_v20, %v9244_v48 }
 0x535   :  { %v3879_v3 = vmax.f32 %v3815_v57, 0.0  ;;  %5890 = vperm.xlu0 %7894, %v10553_v42   ;;  %5682 = vperm.xlu1 %7866, %v10750_v32   ;;  %v3240_v42 = vadd.f32 %v3176_v10, %v3094_v46  ;;  %v3325_v57 = vmul.f32 %v10404_v44, %v9244_v48  ;;  %v8221_v10 = vld [vmem:[%s12452_s1 + $0x6a4] ss:$8 sps:$4 sm:$0xff]   ;;  %v10793_v48 = vld [vmem:[%s12451_s0 + $0xb0] sm:$0xff] }
 0x536   :  { %v3932_v63 = vpack.c.bf16 %v3878_v4, %v3876_v22  ;;  %4672 = vmatpush1.bf16.msra.mxu0 %v8210_v47  ;;  %v3242_v4 = vadd.f32 %v3178_v12, %v3096_v13  ;;  %v8224_v12 = vld [vmem:[%s12452_s1 + $0x6b4] ss:$8 sps:$4 sm:$0xff]  }
 0x537   :  { %v3933_v51 = vpack.c.bf16 %v3879_v3, %v3877_v37  ;;  %4673 = vmatprep.subr.bf16.mxu0 %v8215_v14  ;;  %v3386_v22 = vadd.f32 %v3322_v27, %v3240_v42  ;;  %v8216_v37 = vld [vmem:[%s12452_s1 + $0x690] ss:$8 sps:$4 sm:$0xff]  }
 0x538   :  { %v3388_v52 = vadd.f32 %v3324_v19, %v3242_v4  ;;  %v3181_v4 = vmul.f32 %v10386_v40, %v9275_v16 }
 0x539   :  { %4234 = vmatprep.mubr.bf16.mxu1 %v3933_v51  ;;  %5902 = vperm.xlu0 %7894, %v10775_v45   ;;  %v3243_v51 = vadd.f32 %v3179_v33, %v3097_v50  ;;  %v8222_v33 = vld [vmem:[%s12452_s1 + $0x6b0] ss:$8 sps:$4 sm:$0xff]  }
 0x53a   :  { %4235 = vmatmul.mubr.bf16.gmra.mrb[144].mxu1 %v3932_v63  ;;  %7867 = vset.pattern.permute.xlu1 %v8482_v26  ;;  %v3387_v63 = vadd.f32 %v3323_v29, %v3241_v30 }
 0x53b   :  { %4674 = vmatpush1.bf16.msra.mxu0 %v8213_v28  ;;  %5846 = vperm.xlu1 %7867, %v10750_v32   ;;  %v3389_v17 = vadd.f32 %v3325_v57, %v3243_v51  ;;  %v8458_v57 = vld [vmem:[%s12451_s0 + $0xe8] sm:$0xff] }
 0x53c   :  { %4675 = vmatprep.subr.bf16.mxu0 %v8218_v61 }
 0x53d   :  { %5906 = vperm.xlu0 %7894, %v10793_v48  }
 0x53f   :  { %4676 = vmatpush1.bf16.msra.mxu0 %v8216_v37  ;;  %7868 = vset.pattern.permute.xlu1 %v8483_v62  ;;  %v8225_v37 = vld [vmem:[%s12452_s1 + $0x6c0] ss:$8 sps:$4 sm:$0xff]  }
 0x540   :  { %v3674_v3 = vpop.f32.mrb[148].mxu0  ;;  %6034 = vperm.xlu1 %7868, %v10648_v56   ;;  %4677 = vmatprep.subr.bf16.mxu0 %v8221_v10 }
 0x541   :  { %v3675_v47 = vadd.f32 %v3674_v3, %v3386_v22  ;;  %v3676_v25 = vpop.f32.mrb[149].mxu0  ;;  %5922 = vperm.xlu0 %7894, %v10622_v38   ;;  %v3180_v22 = vmul.f32 %v10380_v55, %v9275_v16  ;;  %v12697_v3 = vld [vmem:[#allocation18_spill] sm:$0xff]  ;;  %v12698_v16 = vld [vmem:[#allocation7_spill] sm:$0xff] }
 0x542   :  { %v3677_v46 = vadd.f32 %v3676_v25, %v3387_v63  ;;  %v3678_v24 = vpop.f32.mrb[150].mxu0  ;;  %v3098_v63 = vmul.f32 %v10374_v34, %v12697_v3  ;;  %v3099_v51 = vmul.f32 %v10377_v8, %v12697_v3  ;;  %v3100_v10 = vmul.f32 %v10374_v34, %v12698_v16  ;;  %v8230_v25 = vld [vmem:[%s12452_s1 + $0x6d4] ss:$8 sps:$4 sm:$0xff]  }
 0x543   :  { %v3816_v13 = vadd.f32 %v10433_v18, %v3675_v47  ;;  %v3679_v14 = vadd.f32 %v3678_v24, %v3388_v52  ;;  %v3680_v42 = vpop.f32.mrb[151].mxu0  ;;  %4678 = vmatpush1.bf16.msra.mxu0 %v8219_v36  ;;  %v10836_v47 = vld [vmem:[%s12451_s0 + $0x40] sm:$0xff] }
 0x544   :  { %v3817_v27 = vadd.f32 %v10439_v2, %v3677_v46  ;;  %v3681_v53 = vadd.f32 %v3680_v42, %v3389_v17  ;;  %6038 = vperm.xlu1 %7868, %v10674_v54   ;;  %4679 = vmatprep.subr.bf16.mxu0 %v8224_v12  ;;  %v8227_v54 = vld [vmem:[%s12452_s1 + $0x6c4] ss:$8 sps:$4 sm:$0xff]   ;;  %v3244_v52 = vadd.f32 %v3180_v22, %v3098_v63  ;;  %v8228_v12 = vld [vmem:[%s12452_s1 + $0x6d0] ss:$8 sps:$4 sm:$0xff]  }
 0x545   :  { %v3818_v50 = vadd.f32 %v10433_v18, %v3679_v14  ;;  %v3880_v30 = vmax.f32 %v3816_v13, 0.0  ;;  %5934 = vperm.xlu0 %7894, %v8458_v57   ;;  %v12699_v46 = vld [vmem:[#allocation19_spill] sm:$0xff]  ;;  %v12700_v17 = vld [vmem:[#allocation20_spill] sm:$0xff]  ;;  %v3245_v42 = vadd.f32 %v3181_v4, %v3099_v51 }
 0x546   :  { %v3819_v28 = vadd.f32 %v10439_v2, %v3681_v53  ;;  %v3881_v61 = vmax.f32 %v3817_v27, 0.0  ;;  %v3326_v24 = vmul.f32 %v10395_v20, %v12699_v46  ;;  %v3182_v13 = vmul.f32 %v10380_v55, %v12700_v17  ;;  %v8460_v14 = vld [vmem:[%s12451_s0 + $0xf0] sm:$0xff]  ;;  %v8231_v57 = vld [vmem:[%s12452_s1 + $0x6e0] ss:$8 sps:$4 sm:$0xff]  }
 0x547   :  { %v3882_v29 = vmax.f32 %v3818_v50, 0.0  ;;  %4680 = vmatpush1.bf16.msra.mxu0 %v8222_v33  ;;  %v3327_v36 = vmul.f32 %v10404_v44, %v12699_v46  ;;  %v3101_v27 = vmul.f32 %v10377_v8, %v12698_v16  ;;  %v3183_v53 = vmul.f32 %v10386_v40, %v12700_v17  ;;  %v12701_v50 = vld [vmem:[#allocation21_spill] sm:$0xff] }
 0x548   :  { %v3883_v56 = vmax.f32 %v3819_v28, 0.0  ;;  %7869 = vset.pattern.permute.xlu1 %v8481_v60  ;;  %4681 = vmatprep.subr.bf16.mxu0 %v8227_v54  ;;  %v3328_v28 = vmul.f32 %v10395_v20, %v12701_v50  ;;  %v3246_v33 = vadd.f32 %v3182_v13, %v3100_v10  ;;  %v8236_v54 = vld [vmem:[%s12452_s1 + $0x6f4] ss:$8 sps:$4 sm:$0xff]   ;;  %v8234_v46 = vld [vmem:[%s12452_s1 + $0x6f0] ss:$8 sps:$4 sm:$0xff]  }
 0x549   :  { %v3934_v19 = vpack.c.bf16 %v3882_v29, %v3880_v30  ;;  %5686 = vperm.xlu1 %7869, %v10836_v47   ;;  %5938 = vperm.xlu0 %7894, %v8460_v14   ;;  %v3329_v30 = vmul.f32 %v10404_v44, %v12701_v50  ;;  %v3390_v29 = vadd.f32 %v3326_v24, %v3244_v52 }
 0x54a   :  { %v3935_v38 = vpack.c.bf16 %v3883_v56, %v3881_v61  ;;  %v3391_v56 = vadd.f32 %v3327_v36, %v3245_v42  ;;  %v3185_v50 = vmul.f32 %v10386_v40, %v9335_v23 }
 0x54b   :  { %4682 = vmatpush1.bf16.msra.mxu0 %v8225_v37  ;;  %v3392_v37 = vadd.f32 %v3328_v28, %v3246_v33  ;;  %v12702_v28 = vld [vmem:[#allocation22_spill] sm:$0xff] }
 0x54c   :  { %4244 = vmatprep.mubr.bf16.mxu1 %v3935_v38  ;;  %4683 = vmatprep.subr.bf16.mxu0 %v8230_v25  ;;  %v8233_v38 = vld [vmem:[%s12452_s1 + $0x6e4] ss:$8 sps:$4 sm:$0xff]  }
 0x54d   :  { %4245 = vmatmul.mubr.bf16.gmra.mrb[148].mxu1 %v3934_v19  ;;  %7870 = vset.pattern.permute.xlu1 %v8482_v26  ;;  %v3247_v19 = vadd.f32 %v3183_v53, %v3101_v27  ;;  %v8461_v27 = vld [vmem:[%s12451_s0 + $0x58] sm:$0xff] }
 0x54e   :  { %5850 = vperm.xlu1 %7870, %v10836_v47   ;;  %7898 = vset.pattern.permute.xlu0 %v8483_v62 }
 0x54f   :  { %4684 = vmatpush1.bf16.msra.mxu0 %v8228_v12  ;;  %6018 = vperm.xlu0 %7898, %v10464_v9   ;;  %v3393_v51 = vadd.f32 %v3329_v30, %v3247_v19  ;;  %v3184_v12 = vmul.f32 %v10380_v55, %v9335_v23  ;;  %v3102_v30 = vmul.f32 %v10374_v34, %v12702_v28 }
 0x550   :  { %4685 = vmatprep.subr.bf16.mxu0 %v8233_v38 }
 0x551   :  { %v3248_v33 = vadd.f32 %v3184_v12, %v3102_v30 }
 0x552   :  { %5854 = vperm.xlu1 %7870, %v10489_v31  }
 0x553   :  { %v3684_v61 = vpop.f32.mrb[152].mxu0  ;;  %4686 = vmatpush1.bf16.msra.mxu0 %v8231_v57  ;;  %6030 = vperm.xlu0 %7898, %v10479_v58   ;;  %v12705_v57 = vld [vmem:[#allocation24_spill] sm:$0xff] }
 0x554   :  { %v3685_v22 = vadd.f32 %v3684_v61, %v3390_v29  ;;  %v3686_v4 = vpop.f32.mrb[153].mxu0  ;;  %4687 = vmatprep.subr.bf16.mxu0 %v8236_v54  ;;  %v3103_v29 = vmul.f32 %v10377_v8, %v12702_v28  ;;  %v3186_v23 = vmul.f32 %v10380_v55, %v12705_v57  ;;  %v12706_v54 = vld [vmem:[#allocation26_spill] sm:$0xff] }
 0x555   :  { %v3687_v3 = vadd.f32 %v3686_v4, %v3391_v56  ;;  %v3688_v63 = vpop.f32.mrb[154].mxu0  ;;  %v12704_v56 = vld [vmem:[#allocation10_spill] sm:$0xff] }
 0x556   :  { %v3820_v16 = vadd.f32 %v10433_v18, %v3685_v22  ;;  %v3689_v10 = vadd.f32 %v3688_v63, %v3392_v37  ;;  %v3690_v25 = vpop.f32.mrb[155].mxu0  ;;  %7871 = vset.pattern.permute.xlu1 %v8481_v60  ;;  %v3104_v19 = vmul.f32 %v10374_v34, %v12704_v56  ;;  %v3249_v38 = vadd.f32 %v3185_v50, %v3103_v29 }
 0x557   :  { %v3821_v52 = vadd.f32 %v10439_v2, %v3687_v3  ;;  %v3691_v9 = vadd.f32 %v3690_v25, %v3393_v51  ;;  %4688 = vmatpush1.bf16.msra.mxu0 %v8234_v46  ;;  %5698 = vperm.xlu1 %7871, %v8461_v27   ;;  %v3105_v4 = vmul.f32 %v10377_v8, %v12704_v56 }
 0x558   :  { %v3822_v24 = vadd.f32 %v10433_v18, %v3689_v10  ;;  %v3884_v13 = vmax.f32 %v3820_v16, 0.0  ;;  %6042 = vperm.xlu0 %7898, %v10750_v32   ;;  %v12703_v32 = vld [vmem:[#allocation23_spill] sm:$0xff]  ;;  %v3187_v37 = vmul.f32 %v10386_v40, %v12705_v57  ;;  %v3332_v3 = vmul.f32 %v10395_v20, %v12706_v54  ;;  %v12708_v57 = vld [vmem:[#allocation28_spill] sm:$0xff] }
 0x559   :  { %v3823_v17 = vadd.f32 %v10439_v2, %v3691_v9  ;;  %v3885_v42 = vmax.f32 %v3821_v52, 0.0  ;;  %v3330_v61 = vmul.f32 %v10395_v20, %v12703_v32  ;;  %v3331_v22 = vmul.f32 %v10404_v44, %v12703_v32 }
 0x55a   :  { %v3886_v14 = vmax.f32 %v3822_v24, 0.0  ;;  %v3333_v63 = vmul.f32 %v10404_v44, %v12706_v54  ;;  %v3251_v25 = vadd.f32 %v3187_v37, %v3105_v4  ;;  %v12710_v37 = vld [vmem:[#allocation31_spill] sm:$0xff] }
 0x55b   :  { %v3887_v36 = vmax.f32 %v3823_v17, 0.0  ;;  %7872 = vset.pattern.permute.xlu1 %v8482_v26  ;;  %v3394_v51 = vadd.f32 %v3330_v61, %v3248_v33  ;;  %v3395_v10 = vadd.f32 %v3331_v22, %v3249_v38  ;;  %v12707_v61 = vld [vmem:[#allocation30_spill] sm:$0xff]  ;;  %v12709_v22 = vld [vmem:[#allocation25_spill] sm:$0xff]  ;;  %v3108_v54 = vmul.f32 %v10374_v34, %v12710_v37 }
 0x55c   :  { %v3936_v53 = vpack.c.bf16 %v3886_v14, %v3884_v13  ;;  %5862 = vperm.xlu1 %7872, %v8461_v27   ;;  %6050 = vperm.xlu0 %7898, %v10489_v31   ;;  %v3250_v31 = vadd.f32 %v3186_v23, %v3104_v19  ;;  %v3397_v13 = vadd.f32 %v3333_v63, %v3251_v25  ;;  %v12712_v25 = vld [vmem:[#allocation33_spill] sm:$0xff] }
 0x55d   :  { %v3937_v58 = vpack.c.bf16 %v3887_v36, %v3885_v42  ;;  %v3188_v56 = vmul.f32 %v10380_v55, %v12707_v61  ;;  %v3189_v19 = vmul.f32 %v10386_v40, %v12707_v61  ;;  %v3107_v23 = vmul.f32 %v10377_v8, %v12708_v57 }
 0x55e   :  { %v3396_v46 = vadd.f32 %v3332_v3, %v3250_v31  ;;  %v3334_v4 = vmul.f32 %v10395_v20, %v12709_v22  ;;  %v12711_v3 = vld [vmem:[#allocation32_spill] sm:$0xff]  ;;  %v3109_v31 = vmul.f32 %v10377_v8, %v12710_v37 }
 0x55f   :  { %4254 = vmatprep.mubr.bf16.mxu1 %v3937_v58  ;;  %v3253_v63 = vadd.f32 %v3189_v19, %v3107_v23  ;;  %v12713_v23 = vld [vmem:[#allocation35_spill] sm:$0xff] }
 0x560   :  { %4255 = vmatmul.mubr.bf16.gmra.mrb[152].mxu1 %v3936_v53  ;;  %7873 = vset.pattern.permute.xlu1 %v8483_v62 }
 0x561   :  { %6046 = vperm.xlu1 %7873, %v10836_v47   ;;  %6062 = vperm.xlu0 %7898, %v10529_v21   ;;  %v10923_v47 = vld [vmem:[%s12451_s0 + $0x78] sm:$0xff] }
 0x565   :  { %6054 = vperm.xlu1 %7873, %v10512_v49   ;;  %6074 = vperm.xlu0 %7898, %v10923_v47  }
 0x566   :  { %v3694_v16 = vpop.f32.mrb[156].mxu0 }
 0x567   :  { %v3695_v52 = vadd.f32 %v3694_v16, %v3394_v51  ;;  %v3696_v9 = vpop.f32.mrb[157].mxu0  ;;  %v3335_v51 = vmul.f32 %v10404_v44, %v12709_v22  ;;  %v3191_v16 = vmul.f32 %v10386_v40, %v12711_v3  ;;  %v3193_v22 = vmul.f32 %v10386_v40, %v12713_v23 }
 0x568   :  { %v3697_v24 = vadd.f32 %v3696_v9, %v3395_v10  ;;  %v3698_v17 = vpop.f32.mrb[158].mxu0  ;;  %v10956_v10 = vld [vmem:[%s12451_s0 + $0xb8] sm:$0xff]  ;;  %v3337_v9 = vmul.f32 %v10404_v44, %v12712_v25 }
 0x569   :  { %v3824_v14 = vadd.f32 %v10433_v18, %v3695_v52  ;;  %v3699_v42 = vadd.f32 %v3698_v17, %v3396_v46  ;;  %v3700_v36 = vpop.f32.mrb[159].mxu0  ;;  %6058 = vperm.xlu1 %7873, %v8461_v27   ;;  %6082 = vperm.xlu0 %7898, %v10537_v41   ;;  %v3106_v27 = vmul.f32 %v10374_v34, %v12708_v57 }
 0x56a   :  { %v3825_v53 = vadd.f32 %v10439_v2, %v3697_v24  ;;  %v3701_v58 = vadd.f32 %v3700_v36, %v3397_v13  ;;  %v3336_v52 = vmul.f32 %v10395_v20, %v12712_v25  ;;  %v3399_v13 = vadd.f32 %v3335_v51, %v3253_v63  ;;  %v12716_v63 = vld [vmem:[#allocation36_spill] sm:$0xff] }
 0x56b   :  { %v3826_v12 = vadd.f32 %v10433_v18, %v3699_v42  ;;  %v3888_v28 = vmax.f32 %v3824_v14, 0.0  ;;  %v3252_v38 = vadd.f32 %v3188_v56, %v3106_v27  ;;  %v3255_v14 = vadd.f32 %v3191_v16, %v3109_v31  ;;  %v12717_v31 = vld [vmem:[#allocation37_spill] sm:$0xff] }
 0x56c   :  { %v3827_v50 = vadd.f32 %v10439_v2, %v3701_v58  ;;  %v3889_v49 = vmax.f32 %v3825_v53, 0.0  ;;  %v3112_v51 = vmul.f32 %v10374_v34, %v12716_v63  ;;  %v3194_v16 = vmul.f32 %v10380_v55, %v12717_v31 }
 0x56d   :  { %v3890_v30 = vmax.f32 %v3826_v12, 0.0  ;;  %7874 = vset.pattern.permute.xlu1 %v8481_v60  ;;  %6094 = vperm.xlu0 %7898, %v10572_v39   ;;  %v3190_v39 = vmul.f32 %v10380_v55, %v12711_v3  ;;  %v3398_v46 = vadd.f32 %v3334_v4, %v3252_v38  ;;  %v3192_v38 = vmul.f32 %v10380_v55, %v12713_v23  ;;  %v12715_v3 = vld [vmem:[#allocation27_spill] sm:$0xff] }
 0x56e   :  { %v3891_v29 = vmax.f32 %v3827_v50, 0.0  ;;  %5706 = vperm.xlu1 %7874, %v10713_v35   ;;  %v3401_v50 = vadd.f32 %v3337_v9, %v3255_v14  ;;  %v3195_v9 = vmul.f32 %v10386_v40, %v12717_v31  ;;  %v3258_v14 = vadd.f32 %v3194_v16, %v3112_v51  ;;  %v12722_v31 = vld [vmem:[#allocation40_spill] sm:$0xff] }
 0x56f   :  { %v3938_v33 = vpack.c.bf16 %v3890_v30, %v3888_v28  ;;  %v3254_v24 = vadd.f32 %v3190_v39, %v3108_v54  ;;  %v3338_v39 = vmul.f32 %v10395_v20, %v12715_v3  ;;  %v3116_v16 = vmul.f32 %v10374_v34, %v12722_v31 }
 0x570   :  { %v3939_v32 = vpack.c.bf16 %v3891_v29, %v3889_v49 }
 0x571   :  { %6106 = vperm.xlu0 %7898, %v10956_v10   ;;  %v3400_v53 = vadd.f32 %v3336_v52, %v3254_v24  ;;  %v3339_v52 = vmul.f32 %v10404_v44, %v12715_v3 }
 0x572   :  { %4264 = vmatprep.mubr.bf16.mxu1 %v3939_v32  ;;  %7875 = vset.pattern.permute.xlu1 %v8482_v26 }
 0x573   :  { %4265 = vmatmul.mubr.bf16.gmra.mrb[156].mxu1 %v3938_v33  ;;  %5866 = vperm.xlu1 %7875, %v10529_v21  }
 0x575   :  { %6114 = vperm.xlu0 %7898, %v10602_v59  }
 0x577   :  { %7876 = vset.pattern.permute.xlu1 %v8481_v60 }
 0x578   :  { %5710 = vperm.xlu1 %7876, %v10726_v43  }
 0x579   :  { %v3704_v17 = vpop.f32.mrb[160].mxu0  ;;  %6126 = vperm.xlu0 %7898, %v10635_v6   ;;  %v12714_v6 = vld [vmem:[#allocation34_spill] sm:$0xff] }
 0x57a   :  { %v3705_v42 = vadd.f32 %v3704_v17, %v3398_v46  ;;  %v3706_v36 = vpop.f32.mrb[161].mxu0  ;;  %v3110_v4 = vmul.f32 %v10374_v34, %v12714_v6  ;;  %v3111_v37 = vmul.f32 %v10377_v8, %v12714_v6  ;;  %v12718_v46 = vld [vmem:[#allocation38_spill] sm:$0xff] }
 0x57b   :  { %v3707_v58 = vadd.f32 %v3706_v36, %v3399_v13  ;;  %v3708_v12 = vpop.f32.mrb[162].mxu0  ;;  %v3340_v24 = vmul.f32 %v10395_v20, %v12718_v46  ;;  %v3341_v17 = vmul.f32 %v10404_v44, %v12718_v46  ;;  %v3117_v46 = vmul.f32 %v10377_v8, %v12722_v31  ;;  %v12727_v31 = vld [vmem:[#allocation49_spill] sm:$0xff] }
 0x57c   :  { %v3828_v28 = vadd.f32 %v10433_v18, %v3705_v42  ;;  %v3709_v30 = vadd.f32 %v3708_v12, %v3400_v53  ;;  %v3710_v49 = vpop.f32.mrb[163].mxu0  ;;  %5714 = vperm.xlu1 %7876, %v10923_v47   ;;  %v3256_v54 = vadd.f32 %v3192_v38, %v3110_v4  ;;  %v3257_v25 = vadd.f32 %v3193_v22, %v3111_v37  ;;  %v12719_v22 = vld [vmem:[#allocation41_spill] sm:$0xff]  ;;  %v12720_v37 = vld [vmem:[#allocation39_spill] sm:$0xff] }
 0x57d   :  { %v3829_v21 = vadd.f32 %v10439_v2, %v3707_v58  ;;  %v3711_v29 = vadd.f32 %v3710_v49, %v3401_v50  ;;  %v3404_v50 = vadd.f32 %v3340_v24, %v3258_v14  ;;  %v3196_v6 = vmul.f32 %v10380_v55, %v12719_v22 }
 0x57e   :  { %v3830_v59 = vadd.f32 %v10433_v18, %v3709_v30  ;;  %v3892_v32 = vmax.f32 %v3828_v28, 0.0  ;;  %v3402_v13 = vadd.f32 %v3338_v39, %v3256_v54  ;;  %v3403_v36 = vadd.f32 %v3339_v52, %v3257_v25  ;;  %v12723_v25 = vld [vmem:[#allocation43_spill] sm:$0xff] }
 0x57f   :  { %v3831_v33 = vadd.f32 %v10439_v2, %v3711_v29  ;;  %v3893_v56 = vmax.f32 %v3829_v21, 0.0  ;;  %v3197_v4 = vmul.f32 %v10386_v40, %v12719_v22  ;;  %v3114_v54 = vmul.f32 %v10374_v34, %v12720_v37 }
 0x580   :  { %v3894_v61 = vmax.f32 %v3830_v59, 0.0  ;;  %7877 = vset.pattern.permute.xlu1 %v8482_v26  ;;  %v3115_v3 = vmul.f32 %v10377_v8, %v12720_v37  ;;  %v3198_v52 = vmul.f32 %v10380_v55, %v12723_v25  ;;  %v3199_v24 = vmul.f32 %v10386_v40, %v12723_v25  ;;  %v12728_v25 = vld [vmem:[#allocation42_spill] sm:$0xff] }
 0x581   :  { %v3895_v19 = vmax.f32 %v3831_v33, 0.0  ;;  %5878 = vperm.xlu1 %7877, %v10923_v47   ;;  %v3113_v47 = vmul.f32 %v10377_v8, %v12716_v63  ;;  %v3260_v39 = vadd.f32 %v3196_v6, %v3114_v54  ;;  %v12721_v63 = vld [vmem:[#allocation29_spill] sm:$0xff] }
 0x582   :  { %v3940_v57 = vpack.c.bf16 %v3894_v61, %v3892_v32  ;;  %v3342_v51 = vmul.f32 %v10395_v20, %v12721_v63 }
 0x583   :  { %v3941_v27 = vpack.c.bf16 %v3895_v19, %v3893_v56  ;;  %v3259_v53 = vadd.f32 %v3195_v9, %v3113_v47  ;;  %v3261_v47 = vadd.f32 %v3197_v4, %v3115_v3  ;;  %v3343_v9 = vmul.f32 %v10404_v44, %v12721_v63  ;;  %v12725_v4 = vld [vmem:[#allocation48_spill] sm:$0xff]  ;;  %v12726_v3 = vld [vmem:[#allocation46_spill] sm:$0xff] }
 0x584   :  { %v3200_v37 = vmul.f32 %v10380_v55, %v12725_v4  ;;  %v3201_v54 = vmul.f32 %v10386_v40, %v12725_v4  ;;  %v3119_v63 = vmul.f32 %v10377_v8, %v12726_v3 }
 0x585   :  { %4274 = vmatprep.mubr.bf16.mxu1 %v3941_v27  ;;  %7878 = vset.pattern.permute.xlu1 %v8483_v62  ;;  %v3405_v49 = vadd.f32 %v3341_v17, %v3259_v53  ;;  %v12724_v17 = vld [vmem:[#allocation45_spill] sm:$0xff] }
 0x586   :  { %4275 = vmatmul.mubr.bf16.gmra.mrb[160].mxu1 %v3940_v57  ;;  %6066 = vperm.xlu1 %7878, %v10713_v35   ;;  %v8464_v57 = vld [vmem:[%s12451_s0 + $0x80] sm:$0xff]  ;;  %v3345_v14 = vmul.f32 %v10404_v44, %v12724_v17 }
 0x58a   :  { %6070 = vperm.xlu1 %7878, %v10726_v43  }
 0x58c   :  { %v3714_v42 = vpop.f32.mrb[164].mxu0 }
 0x58d   :  { %v3715_v58 = vadd.f32 %v3714_v42, %v3402_v13  ;;  %v3716_v12 = vpop.f32.mrb[165].mxu0  ;;  %v3344_v13 = vmul.f32 %v10395_v20, %v12724_v17  ;;  %v3406_v42 = vadd.f32 %v3342_v51, %v3260_v39  ;;  %v3118_v39 = vmul.f32 %v10374_v34, %v12726_v3 }
 0x58e   :  { %v3717_v28 = vadd.f32 %v3716_v12, %v3403_v36  ;;  %v3718_v30 = vpop.f32.mrb[166].mxu0  ;;  %7879 = vset.pattern.permute.xlu1 %v8481_v60  ;;  %v3262_v36 = vadd.f32 %v3198_v52, %v3116_v16  ;;  %v3263_v12 = vadd.f32 %v3199_v24, %v3117_v46  ;;  %v3346_v16 = vmul.f32 %v10395_v20, %v12727_v31 }
 0x58f   :  { %v3832_v21 = vadd.f32 %v10433_v18, %v3715_v58  ;;  %v3719_v29 = vadd.f32 %v3718_v30, %v3404_v50  ;;  %v3720_v59 = vpop.f32.mrb[167].mxu0  ;;  %5718 = vperm.xlu1 %7879, %v8464_v57   ;;  %v3407_v58 = vadd.f32 %v3343_v9, %v3261_v47  ;;  %v3264_v51 = vadd.f32 %v3200_v37, %v3118_v39  ;;  %v12729_v47 = vld [vmem:[#allocation50_spill] sm:$0xff]  ;;  %v12731_v37 = vld [vmem:[#allocation53_spill] sm:$0xff] }
 0x590   :  { %v3833_v33 = vadd.f32 %v10439_v2, %v3717_v28  ;;  %v3721_v35 = vadd.f32 %v3720_v59, %v3405_v49  ;;  %v3408_v30 = vadd.f32 %v3344_v13, %v3262_v36  ;;  %v3120_v52 = vmul.f32 %v10374_v34, %v12728_v25  ;;  %v12730_v13 = vld [vmem:[#allocation51_spill] sm:$0xff] }
 0x591   :  { %v3834_v32 = vadd.f32 %v10433_v18, %v3719_v29  ;;  %v3896_v56 = vmax.f32 %v3832_v21, 0.0  ;;  %v3409_v29 = vadd.f32 %v3345_v14, %v3263_v12  ;;  %v3202_v9 = vmul.f32 %v10380_v55, %v12729_v47  ;;  %v8467_v39 = vld [vmem:[%s12451_s0 + $0xa0] sm:$0xff] }
 0x592   :  { %v3835_v61 = vadd.f32 %v10439_v2, %v3721_v35  ;;  %v3897_v43 = vmax.f32 %v3833_v33, 0.0  ;;  %v3265_v46 = vadd.f32 %v3201_v54, %v3119_v63  ;;  %v3347_v24 = vmul.f32 %v10404_v44, %v12727_v31  ;;  %v12732_v63 = vld [vmem:[#allocation52_spill] sm:$0xff] }
 0x593   :  { %v3898_v19 = vmax.f32 %v3834_v32, 0.0  ;;  %7880 = vset.pattern.permute.xlu1 %v8482_v26  ;;  %v3203_v17 = vmul.f32 %v10386_v40, %v12729_v47  ;;  %v3348_v14 = vmul.f32 %v10395_v20, %v12730_v13  ;;  %v3349_v36 = vmul.f32 %v10404_v44, %v12730_v13  ;;  %v12734_v47 = vld [vmem:[#allocation44_spill] sm:$0xff] }
 0x594   :  { %v3899_v27 = vmax.f32 %v3835_v61, 0.0  ;;  %5882 = vperm.xlu1 %7880, %v8464_v57   ;;  %v3204_v54 = vmul.f32 %v10380_v55, %v12731_v37  ;;  %v3205_v3 = vmul.f32 %v10386_v40, %v12731_v37  ;;  %v3123_v31 = vmul.f32 %v10377_v8, %v12732_v63 }
 0x595   :  { %v3942_v23 = vpack.c.bf16 %v3898_v19, %v3896_v56  ;;  %v3125_v13 = vmul.f32 %v10377_v8, %v12734_v47 }
 0x596   :  { %v3943_v38 = vpack.c.bf16 %v3899_v27, %v3897_v43 }
 0x598   :  { %4284 = vmatprep.mubr.bf16.mxu1 %v3943_v38  ;;  %5886 = vperm.xlu1 %7880, %v10537_v41   ;;  %v8465_v41 = vld [vmem:[%s12451_s0 + $0x98] sm:$0xff] }
 0x599   :  { %4285 = vmatmul.mubr.bf16.gmra.mrb[164].mxu1 %v3942_v23 }
 0x59c   :  { %7881 = vset.pattern.permute.xlu1 %v8481_v60 }
 0x59d   :  { %5730 = vperm.xlu1 %7881, %v8465_v41  }
 0x59f   :  { %v3724_v53 = vpop.f32.mrb[168].mxu0 }
 0x5a0   :  { %v3725_v50 = vadd.f32 %v3724_v53, %v3406_v42  ;;  %v3726_v28 = vpop.f32.mrb[169].mxu0  ;;  %v8466_v42 = vld [vmem:[%s12451_s0 + $0x90] sm:$0xff]  ;;  %v3410_v53 = vadd.f32 %v3346_v16, %v3264_v51  ;;  %v3122_v51 = vmul.f32 %v10374_v34, %v12732_v63 }
 0x5a1   :  { %v3727_v49 = vadd.f32 %v3726_v28, %v3407_v58  ;;  %v3728_v21 = vpop.f32.mrb[170].mxu0  ;;  %7882 = vset.pattern.permute.xlu1 %v8482_v26  ;;  %v3266_v58 = vadd.f32 %v3202_v9, %v3120_v52  ;;  %v3124_v9 = vmul.f32 %v10374_v34, %v12734_v47  ;;  %v5659_v47 = vpop.permute.xlu1 %5658 }
 0x5a2   :  { %v3836_v59 = vadd.f32 %v10433_v18, %v3725_v50  ;;  %v3729_v33 = vadd.f32 %v3728_v21, %v3408_v30  ;;  %v3730_v35 = vpop.f32.mrb[171].mxu0  ;;  %5894 = vperm.xlu1 %7882, %v8465_v41   ;;  %v3411_v50 = vadd.f32 %v3347_v24, %v3265_v46  ;;  %v3268_v16 = vadd.f32 %v3204_v54, %v3122_v51  ;;  %v12735_v46 = vld [vmem:[#allocation55_spill] sm:$0xff] }
 0x5a3   :  { %v3837_v32 = vadd.f32 %v10439_v2, %v3727_v49  ;;  %v3731_v61 = vadd.f32 %v3730_v35, %v3409_v29  ;;  %v3412_v21 = vadd.f32 %v3348_v14, %v3266_v58  ;;  %v3206_v24 = vmul.f32 %v10380_v55, %v12735_v46 }
 0x5a4   :  { %v3838_v56 = vadd.f32 %v10433_v18, %v3729_v33  ;;  %v3900_v43 = vmax.f32 %v3836_v59, 0.0  ;;  %v3207_v14 = vmul.f32 %v10386_v40, %v12735_v46 }
 0x5a5   :  { %v3839_v19 = vadd.f32 %v10439_v2, %v3731_v61  ;;  %v3901_v23 = vmax.f32 %v3837_v32, 0.0 }
 0x5a6   :  { %v3902_v27 = vmax.f32 %v3838_v56, 0.0  ;;  %7883 = vset.pattern.permute.xlu1 %v8483_v62 }
 0x5a7   :  { %v3903_v38 = vmax.f32 %v3839_v19, 0.0  ;;  %6078 = vperm.xlu1 %7883, %v8464_v57   ;;  %v3121_v57 = vmul.f32 %v10377_v8, %v12728_v25  ;;  %v12733_v25 = vld [vmem:[#allocation54_spill] sm:$0xff] }
 0x5a8   :  { %v3944_v22 = vpack.c.bf16 %v3902_v27, %v3900_v43  ;;  %v3350_v52 = vmul.f32 %v10395_v20, %v12733_v25 }
 0x5a9   :  { %v3945_v6 = vpack.c.bf16 %v3903_v38, %v3901_v23  ;;  %v3267_v28 = vadd.f32 %v3203_v17, %v3121_v57  ;;  %v3269_v57 = vadd.f32 %v3205_v3, %v3123_v31  ;;  %v3351_v17 = vmul.f32 %v10404_v44, %v12733_v25 }
 0x5aa   :  { %v3414_v58 = vadd.f32 %v3350_v52, %v3268_v16 }
 0x5ab   :  { %4294 = vmatprep.mubr.bf16.mxu1 %v3945_v6  ;;  %6086 = vperm.xlu1 %7883, %v8466_v42   ;;  %v3413_v33 = vadd.f32 %v3349_v36, %v3267_v28  ;;  %v12736_v42 = vld [vmem:[#allocation56_spill] sm:$0xff]  ;;  %v3415_v28 = vadd.f32 %v3351_v17, %v3269_v57  ;;  %v11136_v57 = vld [vmem:[%s12456_s8] sm:$0x7] }
 0x5ac   :  { %4295 = vmatmul.mubr.bf16.gmra.mrb[168].mxu1 %v3944_v22  ;;  %v3352_v36 = vmul.f32 %v10395_v20, %v12736_v42 }
 0x5af   :  { %6090 = vperm.xlu1 %7883, %v8465_v41  }
 0x5b2   :  { %v3734_v12 = vpop.f32.mrb[172].mxu0 }
 0x5b3   :  { %v3735_v30 = vadd.f32 %v3734_v12, %v3410_v53  ;;  %v3736_v49 = vpop.f32.mrb[173].mxu0  ;;  %7884 = vset.pattern.permute.xlu1 %v8481_v60  ;;  %v3353_v53 = vmul.f32 %v10404_v44, %v12736_v42  ;;  %v3270_v12 = vadd.f32 %v3206_v24, %v3124_v9  ;;  %v12737_v24 = vld [vmem:[#allocation58_spill] sm:$0xff] }
 0x5b4   :  { %v3737_v29 = vadd.f32 %v3736_v49, %v3411_v50  ;;  %v3738_v59 = vpop.f32.mrb[174].mxu0  ;;  %5738 = vperm.xlu1 %7884, %v10775_v45   ;;  %v7376_v49 = vld [vmem:[%s12454_s2 + $0x6] ss:$8 sm:$0x3] }
 0x5b5   :  { %v3840_v35 = vadd.f32 %v10433_v18, %v3735_v30  ;;  %v3739_v32 = vadd.f32 %v3738_v59, %v3412_v21  ;;  %v3740_v61 = vpop.f32.mrb[175].mxu0  ;;  %v3271_v30 = vadd.f32 %v3207_v14, %v3125_v13  ;;  %v3416_v59 = vadd.f32 %v3352_v36, %v3270_v12 }
 0x5b6   :  { %v3841_v56 = vadd.f32 %v10439_v2, %v3737_v29  ;;  %v3741_v19 = vadd.f32 %v3740_v61, %v3413_v33  ;;  %v3209_v14 = vmul.f32 %v10386_v40, %v12737_v24  ;;  %v11145_v12 = vrot.slane %v11136_v57, %v8841_v7 }
 0x5b7   :  { %v3842_v43 = vadd.f32 %v10433_v18, %v3739_v32  ;;  %v3904_v23 = vmax.f32 %v3840_v35, 0.0  ;;  %v3417_v32 = vadd.f32 %v3353_v53, %v3271_v30  ;;  %v12738_v53 = vld [vmem:[#allocation57_spill] sm:$0xff]  ;;  %v12739_v30 = vld [vmem:[#allocation47_spill] sm:$0xff] }
 0x5b8   :  { %v3843_v27 = vadd.f32 %v10439_v2, %v3741_v19  ;;  %v3905_v38 = vmax.f32 %v3841_v56, 0.0  ;;  %7885 = vset.pattern.permute.xlu1 %v8482_v26 }
 0x5b9   :  { %v3906_v41 = vmax.f32 %v3842_v43, 0.0  ;;  %5898 = vperm.xlu1 %7885, %v8467_v39   ;;  %v11116_v43 = vrot.slane %v7376_v49, %v8841_v7 }
 0x5ba   :  { %v3907_v22 = vmax.f32 %v3843_v27, 0.0 }
 0x5bb   :  { %v3946_v6 = vpack.c.bf16 %v3906_v41, %v3904_v23  ;;  %v11120_v41 = vrot.slane %v7376_v49, %v8834_v5  ;;  %v3128_v49 = vmul.f32 %v10374_v34, %v12739_v30 }
 0x5bc   :  { %v3947_v4 = vpack.c.bf16 %v3907_v22, %v3905_v38 }
 0x5bd   :  { %7886 = vset.pattern.permute.xlu1 %v8481_v60 }
 0x5be   :  { %4304 = vmatprep.mubr.bf16.mxu1 %v3947_v4  ;;  %5742 = vperm.xlu1 %7886, %v10793_v48  }
 0x5bf   :  { %4305 = vmatmul.mubr.bf16.gmra.mrb[172].mxu1 %v3946_v6 }
 0x5c2   :  { %5746 = vperm.xlu1 %7886, %v10956_v10  }
 0x5c5   :  { %v3744_v50 = vpop.f32.mrb[176].mxu0 }
 0x5c6   :  { %v3745_v21 = vadd.f32 %v3744_v50, %v3414_v58  ;;  %v3746_v29 = vpop.f32.mrb[177].mxu0  ;;  %7887 = vset.pattern.permute.xlu1 %v8482_v26  ;;  %v3126_v58 = vmul.f32 %v10374_v34, %v12738_v53 }
 0x5c7   :  { %v3747_v33 = vadd.f32 %v3746_v29, %v3415_v28  ;;  %v3748_v35 = vpop.f32.mrb[178].mxu0  ;;  %5910 = vperm.xlu1 %7887, %v10956_v10   ;;  %v3208_v10 = vmul.f32 %v10380_v55, %v12737_v24  ;;  %v3127_v28 = vmul.f32 %v10377_v8, %v12738_v53  ;;  %v11153_v29 = vpop.permute.xlu1 %5818 }
 0x5c8   :  { %v3844_v61 = vadd.f32 %v10433_v18, %v3745_v21  ;;  %v3749_v56 = vadd.f32 %v3748_v35, %v3416_v59  ;;  %v3750_v19 = vpop.f32.mrb[179].mxu0  ;;  %v12740_v21 = vld [vmem:[#allocation60_spill] sm:$0xff]  ;;  %v12741_v35 = vld [vmem:[#allocation59_spill] sm:$0xff] }
 0x5c9   :  { %v3845_v27 = vadd.f32 %v10439_v2, %v3747_v33  ;;  %v3751_v23 = vadd.f32 %v3750_v19, %v3417_v32  ;;  %v3272_v33 = vadd.f32 %v3208_v10, %v3126_v58  ;;  %v3354_v32 = vmul.f32 %v10395_v20, %v12741_v35 }
 0x5ca   :  { %v3846_v38 = vadd.f32 %v10433_v18, %v3749_v56  ;;  %v3908_v4 = vmax.f32 %v3844_v61, 0.0  ;;  %v11159_v61 = vrot.slane %v11136_v57, %v8834_v5  ;;  %v3273_v19 = vadd.f32 %v3209_v14, %v3127_v28 }
 0x5cb   :  { %v3847_v22 = vadd.f32 %v10439_v2, %v3751_v23  ;;  %v4196_v6 = vpop.f32.mrb[128].mxu1  ;;  %v3909_v39 = vmax.f32 %v3845_v27, 0.0  ;;  %7888 = vset.pattern.permute.xlu1 %v8483_v62  ;;  %v3355_v27 = vmul.f32 %v10404_v44, %v12741_v35  ;;  %v12742_v23 = vld [vmem:[#allocation61_spill] sm:$0xff] }
 0x5cc   :  { %v3910_v37 = vmax.f32 %v3846_v38, 0.0  ;;  %v4197_v54 = vadd.f32 %v4196_v6, %v11116_v43  ;;  %v4198_v3 = vpop.f32.mrb[129].mxu1  ;;  %6098 = vperm.xlu1 %7888, %v10775_v45   ;;  %v3210_v45 = vmul.f32 %v10380_v55, %v12740_v21  ;;  %v3356_v38 = vmul.f32 %v10395_v20, %v12742_v23 }
 0x5cd   :  { %v3911_v63 = vmax.f32 %v3847_v22, 0.0  ;;  %v4199_v51 = vadd.f32 %v4198_v3, %v11120_v41  ;;  %v4200_v31 = vpop.f32.mrb[130].mxu1  ;;  %v3211_v22 = vmul.f32 %v10386_v40, %v12740_v21 }
 0x5ce   :  { %v4201_v16 = vadd.f32 %v4200_v31, %v11116_v43  ;;  %v4202_v25 = vpop.f32.mrb[131].mxu1  ;;  %v3948_v52 = vpack.c.bf16 %v3910_v37, %v3908_v4  ;;  %v4355_v17 = vmax.f32 %v4197_v54, 0.0  ;;  %v5786_v37 = vmul.f32 %v11145_v12, %v5659_v47  ;;  %v5823_v31 = vpop.permute.xlu1 %5822 }
 0x5cf   :  { %v4203_v9 = vadd.f32 %v4202_v25, %v11120_v41  ;;  %v3949_v46 = vpack.c.bf16 %v3911_v63, %v3909_v39  ;;  %v4356_v42 = vmax.f32 %v4199_v51, 0.0  ;;  %v3274_v39 = vadd.f32 %v3210_v45, %v3128_v49 }
 0x5d0   :  { %v4357_v13 = vmax.f32 %v4201_v16, 0.0  ;;  %6102 = vperm.xlu1 %7888, %v10793_v48   ;;  %v3129_v63 = vmul.f32 %v10377_v8, %v12739_v30  ;;  %v3357_v51 = vmul.f32 %v10404_v44, %v12742_v23  ;;  %v3418_v25 = vadd.f32 %v3354_v32, %v3272_v33 }
 0x5d1   :  { %v4358_v36 = vmax.f32 %v4203_v9, 0.0  ;;  %4314 = vmatprep.mubr.bf16.mxu1 %v3949_v46  ;;  %v3419_v46 = vadd.f32 %v3355_v27, %v3273_v19  ;;  %v3420_v24 = vadd.f32 %v3356_v38, %v3274_v39  ;;  %v12743_v39 = vld [vmem:[#allocation64_spill] sm:$0xff] }
 0x5d2   :  { %v4419_v50 = vpack.c.bf16 %v4357_v13, %v4355_v17  ;;  %4315 = vmatmul.mubr.bf16.gmra.mrb[176].mxu1 %v3948_v52  ;;  %v5950_v52 = vmul.f32 %v11159_v61, %v5823_v31  ;;  %v3275_v10 = vadd.f32 %v3211_v22, %v3129_v63  ;;  %v5663_v35 = vpop.permute.xlu1 %5662  ;;  %v3212_v63 = vmul.f32 %v10380_v55, %v12743_v39 }
 0x5d3   :  { %v4420_v59 = vpack.c.bf16 %v4358_v36, %v4356_v42  ;;  %v11182_v36 = vld [vmem:[%s12451_s0 + $0xc0] sm:$0xff]  ;;  %v3213_v31 = vmul.f32 %v10386_v40, %v12743_v39 }
 0x5d4   :  { %v4206_v56 = vpop.f32.mrb[132].mxu1  ;;  %7889 = vset.pattern.permute.xlu1 %v8481_v60  ;;  %v11185_v53 = vadd.f32 %v5950_v52, %v5786_v37  ;;  %v3421_v49 = vadd.f32 %v3357_v51, %v3275_v10  ;;  %v8469_v51 = vld [vmem:[%s12451_s0 + $0xc8] sm:$0xff] }
 0x5d5   :  { %v4207_v6 = vadd.f32 %v4206_v56, %v11116_v43  ;;  %v4208_v4 = vpop.f32.mrb[133].mxu1  ;;  %4689 = vmatprep.mubr.bf16.mxu0 %v4420_v59  ;;  %5750 = vperm.xlu1 %7889, %v11182_v36  }
 0x5d6   :  { %v4209_v54 = vadd.f32 %v4208_v4, %v11120_v41  ;;  %v4210_v3 = vpop.f32.mrb[134].mxu1  ;;  %4690 = vmatmul.mubr.bf16.vlgmr.msra.gmra.mrb[192].mxu0 %v4419_v50 }
 0x5d7   :  { %v4211_v48 = vadd.f32 %v4210_v3, %v11116_v43  ;;  %v4212_v16 = vpop.f32.mrb[135].mxu1  ;;  %v4359_v17 = vmax.f32 %v4207_v6, 0.0 }
 0x5d8   :  { %v4213_v47 = vadd.f32 %v4212_v16, %v11120_v41  ;;  %v3754_v9 = vpop.f32.mrb[180].mxu0  ;;  %v4360_v58 = vmax.f32 %v4209_v54, 0.0  ;;  %v5667_v54 = vpop.permute.xlu1 %5666 }
 0x5d9   :  { %v4361_v13 = vmax.f32 %v4211_v48, 0.0  ;;  %v3755_v14 = vadd.f32 %v3754_v9, %v3418_v25  ;;  %v3756_v42 = vpop.f32.mrb[181].mxu0  ;;  %7890 = vset.pattern.permute.xlu1 %v8482_v26  ;;  %v12744_v48 = vld [vmem:[#allocation62_spill] sm:$0xff]  ;;  %v5787_v25 = vmul.f32 %v11145_v12, %v5663_v35 }
 0x5da   :  { %v4362_v50 = vmax.f32 %v4213_v47, 0.0  ;;  %v3757_v28 = vadd.f32 %v3756_v42, %v3419_v46  ;;  %v3758_v30 = vpop.f32.mrb[182].mxu0  ;;  %5914 = vperm.xlu1 %7890, %v11182_v36   ;;  %v3130_v16 = vmul.f32 %v10374_v34, %v12744_v48  ;;  %v3131_v52 = vmul.f32 %v10377_v8, %v12744_v48  ;;  %v12745_v47 = vld [vmem:[#allocation65_spill] sm:$0xff]  ;;  %v12746_v46 = vld [vmem:[#allocation66_spill] sm:$0xff] }
 0x5db   :  { %v4421_v21 = vpack.c.bf16 %v4361_v13, %v4359_v17  ;;  %v3848_v45 = vadd.f32 %v10433_v18, %v3755_v14  ;;  %v3759_v59 = vadd.f32 %v3758_v30, %v3420_v24  ;;  %v3760_v33 = vpop.f32.mrb[183].mxu0  ;;  %v3132_v9 = vmul.f32 %v10374_v34, %v12745_v47  ;;  %v11220_v30 = vld [vmem:[%s12451_s0 + $0xd8] sm:$0xff] }
 0x5dc   :  { %v4422_v32 = vpack.c.bf16 %v4362_v50, %v4360_v58  ;;  %v3849_v56 = vadd.f32 %v10439_v2, %v3757_v28  ;;  %v3761_v19 = vadd.f32 %v3760_v33, %v3421_v49  ;;  %v3214_v24 = vmul.f32 %v10380_v55, %v12746_v46  ;;  %v5827_v10 = vpop.permute.xlu1 %5826 }
 0x5dd   :  { %v3850_v27 = vadd.f32 %v10433_v18, %v3759_v59  ;;  %v3912_v38 = vmax.f32 %v3848_v45, 0.0  ;;  %v3276_v17 = vadd.f32 %v3212_v63, %v3130_v16  ;;  %v5951_v13 = vmul.f32 %v11159_v61, %v5827_v10  ;;  %v12747_v45 = vld [vmem:[#allocation63_spill] sm:$0xff] }
 0x5de   :  { %v3851_v23 = vadd.f32 %v10439_v2, %v3761_v19  ;;  %4699 = vmatprep.mubr.bf16.mxu0 %v4422_v32  ;;  %v3913_v6 = vmax.f32 %v3849_v56, 0.0  ;;  %5918 = vperm.xlu1 %7890, %v8469_v51   ;;  %v3277_v42 = vadd.f32 %v3213_v31, %v3131_v52  ;;  %v3360_v58 = vmul.f32 %v10395_v20, %v9675_v1 }
 0x5df   :  { %v3914_v22 = vmax.f32 %v3850_v27, 0.0  ;;  %4700 = vmatmul.mubr.bf16.gmra.mrb[196].mxu0 %v4421_v21  ;;  %v3133_v50 = vmul.f32 %v10377_v8, %v12745_v47  ;;  %v3215_v28 = vmul.f32 %v10386_v40, %v12746_v46  ;;  %v3358_v59 = vmul.f32 %v10395_v20, %v12747_v45 }
 0x5e0   :  { %v3915_v4 = vmax.f32 %v3851_v23, 0.0  ;;  %v5788_v33 = vmul.f32 %v11145_v12, %v5667_v54  ;;  %v5983_v35 = vadd.f32 %v5951_v13, %v5787_v25  ;;  %v3359_v19 = vmul.f32 %v10404_v44, %v12747_v45 }
 0x5e1   :  { %v3950_v37 = vpack.c.bf16 %v3914_v22, %v3912_v38  ;;  %v3278_v27 = vadd.f32 %v3214_v24, %v3132_v9  ;;  %v3361_v23 = vmul.f32 %v10404_v44, %v9675_v1  ;;  %v5831_v38 = vpop.permute.xlu1 %5830  ;;  %v3279_v51 = vadd.f32 %v3215_v28, %v3133_v50 }
 0x5e2   :  { %v3951_v3 = vpack.c.bf16 %v3915_v4, %v3913_v6  ;;  %7891 = vset.pattern.permute.xlu1 %v8481_v60  ;;  %v3422_v4 = vadd.f32 %v3358_v59, %v3276_v17  ;;  %v3423_v39 = vadd.f32 %v3359_v19, %v3277_v42 }
 0x5e3   :  { %5762 = vperm.xlu1 %7891, %v11220_v30   ;;  %v3424_v63 = vadd.f32 %v3360_v58, %v3278_v27  ;;  %v3425_v24 = vadd.f32 %v3361_v23, %v3279_v51  ;;  %v8245_v51 = vld [vmem:[%s12452_s1 + $0x724] ss:$8 sps:$4 sm:$0xff]  }
 0x5e4   :  { %4324 = vmatprep.mubr.bf16.mxu1 %v3951_v3 }
 0x5e5   :  { %4325 = vmatmul.mubr.bf16.gmra.mrb[180].mxu1 %v3950_v37  ;;  %v5952_v37 = vmul.f32 %v11159_v61, %v5831_v38  ;;  %v11237_v10 = vpop.permute.xlu1 %6014 }
 0x5e7   :  { %v4216_v14 = vpop.f32.mrb[136].mxu1  ;;  %7892 = vset.pattern.permute.xlu1 %v8482_v26  ;;  %v5984_v1 = vadd.f32 %v5952_v37, %v5788_v33 }
 0x5e8   :  { %v4217_v49 = vadd.f32 %v4216_v14, %v11116_v43  ;;  %v4218_v21 = vpop.f32.mrb[137].mxu1  ;;  %5926 = vperm.xlu1 %7892, %v11220_v30  }
 0x5e9   :  { %v4219_v32 = vadd.f32 %v4218_v21, %v11120_v41  ;;  %v4220_v56 = vpop.f32.mrb[138].mxu1  ;;  %v11244_v21 = vrot.slane %v11136_v57, %v8852_v15  ;;  %v6023_v59 = vpop.permute.xlu1 %6022  ;;  %v8237_v15 = vld [vmem:[%s12452_s1 + $0x700] ss:$8 sps:$4 sm:$0xff]   ;;  %v8239_v57 = vld [vmem:[%s12452_s1 + $0x704] ss:$8 sps:$4 sm:$0xff]  }
 0x5ea   :  { %v4221_v22 = vadd.f32 %v4220_v56, %v11116_v43  ;;  %v4222_v6 = vpop.f32.mrb[139].mxu1  ;;  %v4363_v31 = vmax.f32 %v4217_v49, 0.0  ;;  %5395 = vmatprep.subr.bf16.mxu1 %v8239_v57 }
 0x5eb   :  { %v4223_v54 = vadd.f32 %v4222_v6, %v11120_v41  ;;  %v3764_v3 = vpop.f32.mrb[184].mxu0  ;;  %v4364_v52 = vmax.f32 %v4219_v32, 0.0  ;;  %v6147_v56 = vmul.f32 %v11244_v21, %v6023_v59  ;;  %v8471_v6 = vld [vmem:[%s12451_s0 + $0xd0] sm:$0xff]  ;;  %5396 = vmatpush1.bf16.msra.mxu1 %v8237_v15 }
 0x5ec   :  { %v4365_v48 = vmax.f32 %v4221_v22, 0.0  ;;  %v3765_v16 = vadd.f32 %v3764_v3, %v3422_v4  ;;  %v3766_v25 = vpop.f32.mrb[185].mxu0  ;;  %7893 = vset.pattern.permute.xlu1 %v8483_v62  ;;  %v3216_v22 = vmul.f32 %v10380_v55, %v9695_v0  ;;  %v8240_v3 = vld [vmem:[%s12452_s1 + $0x710] ss:$8 sps:$4 sm:$0xff]  }
 0x5ed   :  { %v4366_v47 = vmax.f32 %v4223_v54, 0.0  ;;  %v3767_v9 = vadd.f32 %v3766_v25, %v3423_v39  ;;  %v3768_v46 = vpop.f32.mrb[186].mxu0  ;;  %6110 = vperm.xlu1 %7893, %v11182_v36   ;;  %v11250_v38 = vadd.f32 %v6147_v56, %v5983_v35  ;;  %v6027_v4 = vpop.permute.xlu1 %6026  ;;  %v3217_v35 = vmul.f32 %v10386_v40, %v9695_v0  ;;  %v8242_v39 = vld [vmem:[%s12452_s1 + $0x714] ss:$8 sps:$4 sm:$0xff]  }
 0x5ee   :  { %v4423_v17 = vpack.c.bf16 %v4365_v48, %v4363_v31  ;;  %v3852_v13 = vadd.f32 %v10433_v18, %v3765_v16  ;;  %v3769_v14 = vadd.f32 %v3768_v46, %v3424_v63  ;;  %v3770_v42 = vpop.f32.mrb[187].mxu0  ;;  %v6148_v37 = vmul.f32 %v11244_v21, %v6027_v4  ;;  %v12748_v48 = vld [vmem:[#allocation68_spill] sm:$0xff]  ;;  %v12749_v25 = vld [vmem:[#allocation69_spill] sm:$0xff]  ;;  %5397 = vmatprep.subr.bf16.mxu1 %v8242_v39 }
 0x5ef   :  { %v4424_v58 = vpack.c.bf16 %v4366_v47, %v4364_v52  ;;  %v3853_v50 = vadd.f32 %v10439_v2, %v3767_v9  ;;  %v3771_v28 = vadd.f32 %v3770_v42, %v3425_v24  ;;  %v3134_v54 = vmul.f32 %v10374_v34, %v9685_v11  ;;  %5398 = vmatpush1.bf16.msra.mxu1 %v8240_v3  ;;  %v8243_v42 = vld [vmem:[%s12452_s1 + $0x720] ss:$8 sps:$4 sm:$0xff]  }
 0x5f0   :  { %v3854_v49 = vadd.f32 %v10433_v18, %v3769_v14  ;;  %v3916_v33 = vmax.f32 %v3852_v13, 0.0  ;;  %v3135_v0 = vmul.f32 %v10377_v8, %v9685_v11  ;;  %v11276_v63 = vadd.f32 %v6148_v37, %v5984_v1  ;;  %v12750_v13 = vld [vmem:[#allocation67_spill] sm:$0xff]  ;;  %5399 = vmatprep.subr.bf16.mxu1 %v8245_v51 }
 0x5f1   :  { %v3855_v45 = vadd.f32 %v10439_v2, %v3771_v28  ;;  %4709 = vmatprep.mubr.bf16.mxu0 %v4424_v58  ;;  %v3917_v19 = vmax.f32 %v3853_v50, 0.0  ;;  %6118 = vperm.xlu1 %7893, %v8471_v6   ;;  %v3280_v31 = vadd.f32 %v3216_v22, %v3134_v54  ;;  %v3362_v16 = vmul.f32 %v10395_v20, %v12748_v48  ;;  %v11286_v47 = vpop.permute.xlu1 %5674 }
 0x5f2   :  { %v3918_v32 = vmax.f32 %v3854_v49, 0.0  ;;  %4710 = vmatmul.mubr.bf16.gmra.mrb[200].mxu0 %v4423_v17  ;;  %v3218_v52 = vmul.f32 %v10380_v55, %v12749_v25  ;;  %v3281_v11 = vadd.f32 %v3217_v35, %v3135_v0  ;;  %v3363_v1 = vmul.f32 %v10404_v44, %v12748_v48  ;;  %v12751_v55 = vld [vmem:[#allocation70_spill] sm:$0xff] }
 0x5f3   :  { %v3919_v27 = vmax.f32 %v3855_v45, 0.0  ;;  %v3219_v46 = vmul.f32 %v10386_v40, %v12749_v25  ;;  %v3136_v14 = vmul.f32 %v10374_v34, %v12750_v13  ;;  %v3137_v40 = vmul.f32 %v10377_v8, %v12750_v13  ;;  %v11313_v8 = vld [vmem:[%s12451_s0 + $0xe8] sm:$0xff]  ;;  %5400 = vmatpush1.bf16.msra.mxu1 %v8243_v42  ;;  %v8473_v25 = vld [vmem:[%s12451_s0 + $0xe0] sm:$0xff]  ;;  %v8254_v42 = vld [vmem:[%s12452_s1 + $0x754] ss:$8 sps:$4 sm:$0xff]  }
 0x5f4   :  { %v3952_v23 = vpack.c.bf16 %v3918_v32, %v3916_v33  ;;  %v3365_v28 = vmul.f32 %v10404_v44, %v12751_v55  ;;  %v3426_v45 = vadd.f32 %v3362_v16, %v3280_v31  ;;  %v3427_v56 = vadd.f32 %v3363_v1, %v3281_v11 }
 0x5f5   :  { %v3953_v36 = vpack.c.bf16 %v3919_v27, %v3917_v19  ;;  %6122 = vperm.xlu1 %7893, %v11220_v30   ;;  %v3364_v30 = vmul.f32 %v10395_v20, %v12751_v55  ;;  %v3282_v20 = vadd.f32 %v3218_v52, %v3136_v14  ;;  %v11307_v59 = vpop.permute.xlu1 %5834  ;;  %v3283_v19 = vadd.f32 %v3219_v46, %v3137_v40  ;;  %v8246_v52 = vld [vmem:[%s12452_s1 + $0x730] ss:$8 sps:$4 sm:$0xff]   ;;  %v8249_v14 = vld [vmem:[%s12452_s1 + $0x740] ss:$8 sps:$4 sm:$0xff]  }
 0x5f6   :  { %v8475_v40 = vld [vmem:[%s12451_s0 + $0xf8] sm:$0xff] }
 0x5f7   :  { %4334 = vmatprep.mubr.bf16.mxu1 %v3953_v36  ;;  %v3428_v57 = vadd.f32 %v3364_v30, %v3282_v20  ;;  %v3429_v35 = vadd.f32 %v3365_v28, %v3283_v19  ;;  %v8474_v30 = vld [vmem:[%s12451_s0 + $0xf0] sm:$0xff]  ;;  %v8255_v20 = vld [vmem:[%s12452_s1 + $0x760] ss:$8 sps:$4 sm:$0xff]  }
 0x5f8   :  { %4335 = vmatmul.mubr.bf16.gmra.mrb[184].mxu1 %v3952_v23 }
 0x5f9   :  { %7895 = vset.pattern.permute.xlu1 %v8481_v60  ;;  %v11317_v0 = vpop.permute.xlu1 %5678 }
 0x5fa   :  { %v4226_v9 = vpop.f32.mrb[140].mxu1  ;;  %5770 = vperm.xlu1 %7895, %v11313_v8   ;;  %12752 = vst [vmem:[#allocation6_spill] sm:$0xff] %v11317_v0 }
 0x5fb   :  { %v4227_v24 = vadd.f32 %v4226_v9, %v11116_v43  ;;  %v4228_v17 = vpop.f32.mrb[141].mxu1  ;;  %v8248_v9 = vld [vmem:[%s12452_s1 + $0x734] ss:$8 sps:$4 sm:$0xff]  }
 0x5fc   :  { %v4229_v58 = vadd.f32 %v4228_v17, %v11120_v41  ;;  %v4230_v50 = vpop.f32.mrb[142].mxu1  ;;  %5401 = vmatprep.subr.bf16.mxu1 %v8248_v9  ;;  %v8272_v9 = vld [vmem:[%s12452_s1 + $0x7b4] ss:$8 sps:$4 sm:$0xff]  }
 0x5fd   :  { %v4231_v34 = vadd.f32 %v4230_v50, %v11116_v43  ;;  %v4232_v49 = vpop.f32.mrb[143].mxu1  ;;  %v4367_v44 = vmax.f32 %v4227_v24, 0.0  ;;  %5402 = vmatpush1.bf16.msra.mxu1 %v8246_v52  ;;  %v8257_v50 = vld [vmem:[%s12452_s1 + $0x764] ss:$8 sps:$4 sm:$0xff]  }
 0x5fe   :  { %v4233_v33 = vadd.f32 %v4232_v49, %v11120_v41  ;;  %v3774_v32 = vpop.f32.mrb[188].mxu0  ;;  %v4368_v36 = vmax.f32 %v4229_v58, 0.0  ;;  %7896 = vset.pattern.permute.xlu1 %v8482_v26  ;;  %v8252_v58 = vld [vmem:[%s12452_s1 + $0x750] ss:$8 sps:$4 sm:$0xff]  }
 0x5ff   :  { %v4369_v27 = vmax.f32 %v4231_v34, 0.0  ;;  %v3775_v23 = vadd.f32 %v3774_v32, %v3426_v45  ;;  %v3776_v15 = vpop.f32.mrb[189].mxu0  ;;  %5930 = vperm.xlu1 %7896, %v8473_v25  }
 0x600   :  { %v4370_v22 = vmax.f32 %v4233_v33, 0.0  ;;  %v3777_v6 = vadd.f32 %v3776_v15, %v3427_v56  ;;  %v3778_v4 = vpop.f32.mrb[190].mxu0  ;;  %v8260_v56 = vld [vmem:[%s12452_s1 + $0x774] ss:$8 sps:$4 sm:$0xff]  }
 0x601   :  { %v4425_v37 = vpack.c.bf16 %v4369_v27, %v4367_v44  ;;  %v3856_v54 = vadd.f32 %v10433_v18, %v3775_v23  ;;  %v3779_v3 = vadd.f32 %v3778_v4, %v3428_v57  ;;  %v3780_v39 = vpop.f32.mrb[191].mxu0 }
 0x602   :  { %v4426_v51 = vpack.c.bf16 %v4370_v22, %v4368_v36  ;;  %v3857_v31 = vadd.f32 %v10439_v2, %v3777_v6  ;;  %v3781_v48 = vadd.f32 %v3780_v39, %v3429_v35  ;;  %v8258_v36 = vld [vmem:[%s12452_s1 + $0x770] ss:$8 sps:$4 sm:$0xff]  }
 0x603   :  { %v3858_v16 = vadd.f32 %v10433_v18, %v3779_v3  ;;  %v3920_v1 = vmax.f32 %v3856_v54, 0.0  ;;  %v11332_v18 = vpop.permute.xlu1 %5682  ;;  %7897 = vset.pattern.permute.xlu1 %v8481_v60  ;;  %v8263_v54 = vld [vmem:[%s12452_s1 + $0x784] ss:$8 sps:$4 sm:$0xff]  }
 0x604   :  { %v3859_v11 = vadd.f32 %v10439_v2, %v3781_v48  ;;  %4719 = vmatprep.mubr.bf16.mxu0 %v4426_v51  ;;  %12753 = vst [vmem:[#allocation8_spill] sm:$0xff] %v11332_v18  ;;  %v3921_v24 = vmax.f32 %v3857_v31, 0.0  ;;  %v8251_v2 = vld [vmem:[%s12452_s1 + $0x744] ss:$8 sps:$4 sm:$0xff]   ;;  %5774 = vperm.xlu1 %7897, %v8474_v30   ;;  %v8267_v48 = vld [vmem:[%s12452_s1 + $0x7a0] ss:$8 sps:$4 sm:$0xff]  }
 0x605   :  { %v3922_v46 = vmax.f32 %v3858_v16, 0.0  ;;  %4720 = vmatmul.mubr.bf16.gmra.mrb[204].mxu0 %v4425_v37  ;;  %5403 = vmatprep.subr.bf16.mxu1 %v8251_v2  ;;  %v8261_v37 = vld [vmem:[%s12452_s1 + $0x780] ss:$8 sps:$4 sm:$0xff]   ;;  %v8269_v51 = vld [vmem:[%s12452_s1 + $0x7a4] ss:$8 sps:$4 sm:$0xff]  }
 0x606   :  { %v3923_v17 = vmax.f32 %v3859_v11, 0.0  ;;  %5404 = vmatpush1.bf16.msra.mxu1 %v8249_v14  ;;  %v8275_v30 = vld [vmem:[%s12452_s1 + $0x7c4] ss:$8 sps:$4 sm:$0xff]  }
 0x607   :  { %v3954_v13 = vpack.c.bf16 %v3922_v46, %v3920_v1  ;;  %v11347_v60 = vpop.permute.xlu1 %5846  ;;  %5405 = vmatprep.subr.bf16.mxu1 %v8254_v42 }
 0x608   :  { %v3955_v55 = vpack.c.bf16 %v3923_v17, %v3921_v24  ;;  %12754 = vst [vmem:[#allocation11_spill] sm:$0xff] %v11347_v60  ;;  %5778 = vperm.xlu1 %7897, %v8475_v40  }
 0x60a   :  { %4344 = vmatprep.mubr.bf16.mxu1 %v3955_v55  ;;  %5406 = vmatpush1.bf16.msra.mxu1 %v8252_v58 }
 0x60b   :  { %4345 = vmatmul.mubr.bf16.gmra.mrb[188].mxu1 %v3954_v13  ;;  %v11358_v34 = vpop.permute.xlu1 %6034  ;;  %5407 = vmatprep.subr.bf16.mxu1 %v8257_v50  ;;  %v8270_v13 = vld [vmem:[%s12452_s1 + $0x7b0] ss:$8 sps:$4 sm:$0xff]  }
 0x60c   :  { %7899 = vset.pattern.permute.xlu1 %v8482_v26 }
 0x60d   :  { %v4236_v28 = vpop.f32.mrb[144].mxu1  ;;  %5942 = vperm.xlu1 %7899, %v8475_v40  }
 0x60e   :  { %v4237_v49 = vadd.f32 %v4236_v28, %v11116_v43  ;;  %v4238_v45 = vpop.f32.mrb[145].mxu1  ;;  %5408 = vmatpush1.bf16.msra.mxu1 %v8255_v20  ;;  %v8273_v28 = vld [vmem:[%s12452_s1 + $0x7c0] ss:$8 sps:$4 sm:$0xff]   ;;  %v8278_v20 = vld [vmem:[%s12452_s1 + $0x7d4] ss:$8 sps:$4 sm:$0xff]  }
 0x60f   :  { %v4239_v33 = vadd.f32 %v4238_v45, %v11120_v41  ;;  %v4240_v32 = vpop.f32.mrb[146].mxu1  ;;  %v11371_v23 = vpop.permute.xlu1 %6038  ;;  %5409 = vmatprep.subr.bf16.mxu1 %v8260_v56  ;;  %v8276_v45 = vld [vmem:[%s12452_s1 + $0x7d0] ss:$8 sps:$4 sm:$0xff]   ;;  %v8281_v56 = vld [vmem:[%s12452_s1 + $0x7e4] ss:$8 sps:$4 sm:$0xff]  }
 0x610   :  { %v4241_v19 = vadd.f32 %v4240_v32, %v11116_v43  ;;  %v4242_v44 = vpop.f32.mrb[147].mxu1  ;;  %12755 = vst [vmem:[#allocation9_spill] sm:$0xff] %v11371_v23  ;;  %v4371_v15 = vmax.f32 %v4237_v49, 0.0  ;;  %v8279_v32 = vld [vmem:[%s12452_s1 + $0x7e0] ss:$8 sps:$4 sm:$0xff]  }
 0x611   :  { %v4243_v27 = vadd.f32 %v4242_v44, %v11120_v41  ;;  %v4372_v22 = vmax.f32 %v4239_v33, 0.0  ;;  %7900 = vset.pattern.permute.xlu1 %v8483_v62  ;;  %v8266_v62 = vld [vmem:[%s12452_s1 + $0x794] ss:$8 sps:$4 sm:$0xff]  }
 0x612   :  { %v4373_v57 = vmax.f32 %v4241_v19, 0.0  ;;  %6130 = vperm.xlu1 %7900, %v11313_v8   ;;  %5410 = vmatpush1.bf16.msra.mxu1 %v8258_v36  ;;  %v8264_v8 = vld [vmem:[%s12452_s1 + $0x790] ss:$8 sps:$4 sm:$0xff]   ;;  %v8284_v44 = vld [vmem:[%s12452_s1 + $0x7f4] ss:$8 sps:$4 sm:$0xff]  }
 0x613   :  { %v4374_v6 = vmax.f32 %v4243_v27, 0.0  ;;  %v11377_v26 = vpop.permute.xlu1 %5686  ;;  %5411 = vmatprep.subr.bf16.mxu1 %v8263_v54  ;;  %v8282_v36 = vld [vmem:[%s12452_s1 + $0x7f0] ss:$8 sps:$4 sm:$0xff]  }
 0x614   :  { %v4427_v4 = vpack.c.bf16 %v4373_v57, %v4371_v15  ;;  %12756 = vst [vmem:[#allocation3_spill] sm:$0xff] %v11377_v26 }
 0x615   :  { %v4428_v35 = vpack.c.bf16 %v4374_v6, %v4372_v22 }
 0x616   :  { %5412 = vmatpush1.bf16.msra.mxu1 %v8261_v37 }
 0x617   :  { %4729 = vmatprep.mubr.bf16.mxu0 %v4428_v35  ;;  %v11386_v3 = vpop.permute.xlu1 %5850  ;;  %5413 = vmatprep.subr.bf16.mxu1 %v8266_v62 }
 0x618   :  { %4730 = vmatmul.mubr.bf16.gmra.mrb[208].mxu0 %v4427_v4  ;;  %12757 = vst [vmem:[#allocation12_spill] sm:$0xff] %v11386_v3 }
 0x61a   :  { %5414 = vmatpush1.bf16.msra.mxu1 %v8264_v8 }
 0x61b   :  { %v11394_v39 = vpop.permute.xlu1 %5854  ;;  %5415 = vmatprep.subr.bf16.mxu1 %v8269_v51 }
 0x61e   :  { %5416 = vmatpush1.bf16.msra.mxu1 %v8267_v48 }
 0x61f   :  { %v11403_v52 = vpop.permute.xlu1 %5698  ;;  %5417 = vmatprep.subr.bf16.mxu1 %v8272_v9 }
 0x620   :  { %v4246_v31 = vpop.f32.mrb[148].mxu1  ;;  %12758 = vst [vmem:[#allocation13_spill] sm:$0xff] %v11403_v52 }
 0x621   :  { %v4247_v16 = vadd.f32 %v4246_v31, %v11116_v43  ;;  %v4248_v25 = vpop.f32.mrb[149].mxu1 }
 0x622   :  { %v4249_v11 = vadd.f32 %v4248_v25, %v11120_v41  ;;  %v4250_v1 = vpop.f32.mrb[150].mxu1  ;;  %5418 = vmatpush1.bf16.msra.mxu1 %v8270_v13 }
 0x623   :  { %v4251_v46 = vadd.f32 %v4250_v1, %v11116_v43  ;;  %v4252_v24 = vpop.f32.mrb[151].mxu1  ;;  %v4375_v14 = vmax.f32 %v4247_v16, 0.0  ;;  %v11414_v55 = vpop.permute.xlu1 %5862  ;;  %5419 = vmatprep.subr.bf16.mxu1 %v8275_v30 }
 0x624   :  { %v4253_v17 = vadd.f32 %v4252_v24, %v11120_v41  ;;  %12759 = vst [vmem:[#allocation4_spill] sm:$0xff] %v11414_v55  ;;  %v4376_v42 = vmax.f32 %v4249_v11, 0.0  ;;  %v11456_v11 = vpop.permute.xlu0 %5654 }
 0x625   :  { %v4377_v2 = vmax.f32 %v4251_v46, 0.0  ;;  %v5953_v46 = vmul.f32 %v11159_v61, %v11307_v59 }
 0x626   :  { %v4378_v58 = vmax.f32 %v4253_v17, 0.0  ;;  %5420 = vmatpush1.bf16.msra.mxu1 %v8273_v28 }
 0x627   :  { %v4429_v50 = vpack.c.bf16 %v4377_v2, %v4375_v14  ;;  %v11422_v49 = vpop.permute.xlu1 %6046  ;;  %5421 = vmatprep.subr.bf16.mxu1 %v8278_v20 }
 0x628   :  { %v4430_v40 = vpack.c.bf16 %v4378_v58, %v4376_v42  ;;  %12760 = vst [vmem:[#allocation14_spill] sm:$0xff] %v11422_v49  ;;  %v5671_v24 = vpop.permute.xlu0 %5670 }
 0x629   :  { %v5789_v13 = vmul.f32 %v11145_v12, %v5671_v24 }
 0x62a   :  { %4739 = vmatprep.mubr.bf16.mxu0 %v4430_v40  ;;  %5422 = vmatpush1.bf16.msra.mxu1 %v8276_v45 }
 0x62b   :  { %4740 = vmatmul.mubr.bf16.gmra.mrb[212].mxu0 %v4429_v50  ;;  %v11430_v33 = vpop.permute.xlu1 %6054  ;;  %5423 = vmatprep.subr.bf16.mxu1 %v8281_v56  ;;  %v11466_v42 = vadd.f32 %v5953_v46, %v5789_v13 }
 0x62c   :  { %12761 = vst [vmem:[#allocation15_spill] sm:$0xff] %v11430_v33  ;;  %v11473_v20 = vpop.permute.xlu0 %5690 }
 0x62e   :  { %5424 = vmatpush1.bf16.msra.mxu1 %v8279_v32 }
 0x62f   :  { %v11438_v19 = vpop.permute.xlu1 %6058  ;;  %5425 = vmatprep.subr.bf16.mxu1 %v8284_v44 }
 0x630   :  { %12762 = vst [vmem:[#allocation5_spill] sm:$0xff] %v11438_v19 }
 0x632   :  { %5426 = vmatpush1.bf16.msra.mxu1 %v8282_v36 }
 0x633   :  { %v4256_v27 = vpop.f32.mrb[152].mxu1  ;;  %v11448_v4 = vpop.permute.xlu1 %5706 }
 0x634   :  { %v4257_v15 = vadd.f32 %v4256_v27, %v11116_v43  ;;  %v4258_v57 = vpop.f32.mrb[153].mxu1 }
 0x635   :  { %v4259_v22 = vadd.f32 %v4258_v57, %v11120_v41  ;;  %v4260_v6 = vpop.f32.mrb[154].mxu1 }
 0x636   :  { %v4261_v35 = vadd.f32 %v4260_v6, %v11116_v43  ;;  %v4262_v37 = vpop.f32.mrb[155].mxu1  ;;  %v4379_v62 = vmax.f32 %v4257_v15, 0.0 }
 0x637   :  { %v4263_v54 = vadd.f32 %v4262_v37, %v11120_v41  ;;  %v4380_v51 = vmax.f32 %v4259_v22, 0.0  ;;  %v11452_v48 = vpop.permute.xlu1 %5866  ;;  %v11477_v22 = vpop.permute.xlu0 %5694 }
 0x638   :  { %v4381_v8 = vmax.f32 %v4261_v35, 0.0 }
 0x639   :  { %v4382_v31 = vmax.f32 %v4263_v54, 0.0 }
 0x63a   :  { %v4431_v16 = vpack.c.bf16 %v4381_v8, %v4379_v62 }
 0x63b   :  { %v4432_v25 = vpack.c.bf16 %v4382_v31, %v4380_v51  ;;  %v11454_v9 = vpop.permute.xlu1 %5710  ;;  %v11479_v35 = vpop.permute.xlu0 %5702 }
 0x63d   :  { %4749 = vmatprep.mubr.bf16.mxu0 %v4432_v25 }
 0x63e   :  { %4750 = vmatmul.mubr.bf16.gmra.mrb[216].mxu0 %v4431_v16 }
 0x63f   :  { %v11458_v1 = vpop.permute.xlu1 %5714  ;;  %v5723_v8 = vpop.permute.xlu0 %5722 }
 0x640   :  { %v5802_v31 = vmul.f32 %v11145_v12, %v5723_v8 }
 0x643   :  { %v11462_v17 = vpop.permute.xlu1 %5878 }
 0x646   :  { %v4266_v14 = vpop.f32.mrb[156].mxu1 }
 0x647   :  { %v4267_v2 = vadd.f32 %v4266_v14, %v11116_v43  ;;  %v4268_v30 = vpop.f32.mrb[157].mxu1  ;;  %v11470_v45 = vpop.permute.xlu1 %6066 }
 0x648   :  { %v4269_v58 = vadd.f32 %v4268_v30, %v11120_v41  ;;  %v4270_v50 = vpop.f32.mrb[158].mxu1  ;;  %v11486_v14 = vpop.permute.xlu0 %5726 }
 0x649   :  { %v4271_v40 = vadd.f32 %v4270_v50, %v11116_v43  ;;  %v4272_v28 = vpop.f32.mrb[159].mxu1  ;;  %v4383_v32 = vmax.f32 %v4267_v2, 0.0 }
 0x64a   :  { %v4273_v59 = vadd.f32 %v4272_v28, %v11120_v41  ;;  %v4384_v44 = vmax.f32 %v4269_v58, 0.0 }
 0x64b   :  { %v4385_v56 = vmax.f32 %v4271_v40, 0.0  ;;  %v11475_v57 = vpop.permute.xlu1 %6070 }
 0x64c   :  { %v4386_v27 = vmax.f32 %v4273_v59, 0.0 }
 0x64d   :  { %v4433_v15 = vpack.c.bf16 %v4385_v56, %v4383_v32 }
 0x64e   :  { %v4434_v36 = vpack.c.bf16 %v4386_v27, %v4384_v44  ;;  %v5735_v44 = vpop.permute.xlu0 %5734 }
 0x64f   :  { %v5719_v6 = vpop.permute.xlu1 %5718 }
 0x650   :  { %4759 = vmatprep.mubr.bf16.mxu0 %v4434_v36  ;;  %v5801_v37 = vmul.f32 %v11145_v12, %v5719_v6 }
 0x651   :  { %4760 = vmatmul.mubr.bf16.gmra.mrb[220].mxu0 %v4433_v15 }
 0x652   :  { %v11495_v8 = vpop.permute.xlu0 %5754 }
 0x653   :  { %v5883_v54 = vpop.permute.xlu1 %5882 }
 0x654   :  { %v5965_v62 = vmul.f32 %v11159_v61, %v5883_v54 }
 0x656   :  { %v5997_v51 = vadd.f32 %v5965_v62, %v5801_v37 }
 0x657   :  { %v5887_v25 = vpop.permute.xlu1 %5886 }
 0x658   :  { %v5966_v13 = vmul.f32 %v11159_v61, %v5887_v25 }
 0x659   :  { %v4276_v16 = vpop.f32.mrb[160].mxu1 }
 0x65a   :  { %v4277_v46 = vadd.f32 %v4276_v16, %v11116_v43  ;;  %v4278_v24 = vpop.f32.mrb[161].mxu1  ;;  %v11490_v40 = vadd.f32 %v5966_v13, %v5802_v31 }
 0x65b   :  { %v4279_v2 = vadd.f32 %v4278_v24, %v11120_v41  ;;  %v4280_v30 = vpop.f32.mrb[162].mxu1  ;;  %v5731_v59 = vpop.permute.xlu1 %5730 }
 0x65c   :  { %v4281_v58 = vadd.f32 %v4280_v30, %v11116_v43  ;;  %v4282_v50 = vpop.f32.mrb[163].mxu1  ;;  %v4387_v32 = vmax.f32 %v4277_v46, 0.0  ;;  %v5804_v6 = vmul.f32 %v11145_v12, %v5731_v59  ;;  %v11498_v46 = vpop.permute.xlu0 %5758 }
 0x65d   :  { %v4283_v28 = vadd.f32 %v4282_v50, %v11120_v41  ;;  %v4388_v27 = vmax.f32 %v4279_v2, 0.0 }
 0x65e   :  { %v4389_v56 = vmax.f32 %v4281_v58, 0.0 }
 0x65f   :  { %v4390_v15 = vmax.f32 %v4283_v28, 0.0  ;;  %v5895_v54 = vpop.permute.xlu1 %5894  ;;  %v5790_v28 = vmul.f32 %v11145_v12, %v11286_v47 }
 0x660   :  { %v4435_v36 = vpack.c.bf16 %v4389_v56, %v4387_v32  ;;  %v5968_v62 = vmul.f32 %v11159_v61, %v5895_v54  ;;  %v11504_v2 = vpop.permute.xlu0 %5766 }
 0x661   :  { %v4436_v37 = vpack.c.bf16 %v4390_v15, %v4388_v27 }
 0x662   :  { %v6000_v31 = vadd.f32 %v5968_v62, %v5804_v6 }
 0x663   :  { %4769 = vmatprep.mubr.bf16.mxu0 %v4436_v37  ;;  %v6079_v16 = vpop.permute.xlu1 %6078 }
 0x664   :  { %4770 = vmatmul.mubr.bf16.gmra.mrb[224].mxu0 %v4435_v36  ;;  %v6161_v25 = vmul.f32 %v11244_v21, %v6079_v16  ;;  %v5839_v15 = vpop.permute.xlu0 %5838 }
 0x665   :  { %v5954_v6 = vmul.f32 %v11159_v61, %v5839_v15  ;;  %v5795_v15 = vmul.f32 %v11145_v12, %v11477_v22 }
 0x666   :  { %v11500_v24 = vadd.f32 %v6161_v25, %v5997_v51 }
 0x667   :  { %v11502_v13 = vpop.permute.xlu1 %6086  ;;  %v11516_v25 = vadd.f32 %v5954_v6, %v5790_v28 }
 0x668   :  { %12763 = vst [vmem:[#allocation16_spill] sm:$0xff] %v11500_v24  ;;  %v11518_v24 = vpop.permute.xlu0 %5842 }
 0x669   :  { %12765 = vst [vmem:[#allocation18_spill] sm:$0xff] %v11516_v25  ;;  %12766 = vst [vmem:[#allocation7_spill] sm:$0xff] %v11518_v24 }
 0x66b   :  { %v6091_v59 = vpop.permute.xlu1 %6090 }
 0x66c   :  { %v4286_v30 = vpop.f32.mrb[164].mxu1  ;;  %v6164_v27 = vmul.f32 %v11244_v21, %v6091_v59 }
 0x66d   :  { %v4287_v58 = vadd.f32 %v4286_v30, %v11116_v43  ;;  %v4288_v50 = vpop.f32.mrb[165].mxu1 }
 0x66e   :  { %v4289_v32 = vadd.f32 %v4288_v50, %v11120_v41  ;;  %v4290_v56 = vpop.f32.mrb[166].mxu1  ;;  %v11514_v54 = vadd.f32 %v6164_v27, %v6000_v31 }
 0x66f   :  { %v4291_v51 = vadd.f32 %v4290_v56, %v11116_v43  ;;  %v4292_v36 = vpop.f32.mrb[167].mxu1  ;;  %v4391_v62 = vmax.f32 %v4287_v58, 0.0  ;;  %v5739_v47 = vpop.permute.xlu1 %5738  ;;  %v5805_v56 = vmul.f32 %v11145_v12, %v5735_v44 }
 0x670   :  { %v4293_v37 = vadd.f32 %v4292_v36, %v11120_v41  ;;  %12764 = vst [vmem:[#allocation17_spill] sm:$0xff] %v11514_v54  ;;  %v4392_v30 = vmax.f32 %v4289_v32, 0.0  ;;  %v5859_v58 = vpop.permute.xlu0 %5858  ;;  %v5806_v55 = vmul.f32 %v11145_v12, %v5739_v47 }
 0x671   :  { %v4393_v16 = vmax.f32 %v4291_v51, 0.0  ;;  %v5959_v28 = vmul.f32 %v11159_v61, %v5859_v58 }
 0x672   :  { %v4394_v50 = vmax.f32 %v4293_v37, 0.0 }
 0x673   :  { %v4437_v59 = vpack.c.bf16 %v4393_v16, %v4391_v62  ;;  %v5899_v33 = vpop.permute.xlu1 %5898  ;;  %v11527_v32 = vadd.f32 %v5959_v28, %v5795_v15 }
 0x674   :  { %v4438_v19 = vpack.c.bf16 %v4394_v50, %v4392_v30  ;;  %v5969_v31 = vmul.f32 %v11159_v61, %v5899_v33  ;;  %v11529_v36 = vpop.permute.xlu0 %5870  ;;  %v5803_v30 = vmul.f32 %v11145_v12, %v11486_v14 }
 0x675   :  { %12767 = vst [vmem:[#allocation19_spill] sm:$0xff] %v11527_v32 }
 0x676   :  { %4779 = vmatprep.mubr.bf16.mxu0 %v4438_v19  ;;  %v11525_v27 = vadd.f32 %v5969_v31, %v5805_v56 }
 0x677   :  { %4780 = vmatmul.mubr.bf16.gmra.mrb[228].mxu0 %v4437_v59  ;;  %v5743_v51 = vpop.permute.xlu1 %5742 }
 0x678   :  { %v11531_v44 = vpop.permute.xlu0 %5874 }
 0x67b   :  { %v5747_v6 = vpop.permute.xlu1 %5746 }
 0x67c   :  { %v5808_v33 = vmul.f32 %v11145_v12, %v5747_v6  ;;  %v5891_v31 = vpop.permute.xlu0 %5890 }
 0x67d   :  { %v5967_v28 = vmul.f32 %v11159_v61, %v5891_v31 }
 0x67f   :  { %v4296_v37 = vpop.f32.mrb[168].mxu1  ;;  %v5911_v50 = vpop.permute.xlu1 %5910  ;;  %v11545_v14 = vadd.f32 %v5967_v28, %v5803_v30  ;;  %v5811_v30 = vmul.f32 %v11145_v12, %v11498_v46 }
 0x680   :  { %v4297_v22 = vadd.f32 %v4296_v37, %v11116_v43  ;;  %v4298_v19 = vpop.f32.mrb[169].mxu1  ;;  %v5972_v15 = vmul.f32 %v11159_v61, %v5911_v50  ;;  %v5903_v49 = vpop.permute.xlu0 %5902 }
 0x681   :  { %v4299_v62 = vadd.f32 %v4298_v19, %v11120_v41  ;;  %v4300_v16 = vpop.f32.mrb[170].mxu1  ;;  %v5970_v3 = vmul.f32 %v11159_v61, %v5903_v49 }
 0x682   :  { %v4301_v59 = vadd.f32 %v4300_v16, %v11116_v43  ;;  %v4302_v56 = vpop.f32.mrb[171].mxu1  ;;  %v4395_v37 = vmax.f32 %v4297_v22, 0.0  ;;  %v11542_v6 = vadd.f32 %v5972_v15, %v5808_v33 }
 0x683   :  { %v4303_v58 = vadd.f32 %v4302_v56, %v11120_v41  ;;  %v4396_v19 = vmax.f32 %v4299_v62, 0.0  ;;  %v11547_v52 = vpop.permute.xlu1 %6098  ;;  %v5807_v56 = vmul.f32 %v11145_v12, %v5743_v51  ;;  %v11551_v22 = vadd.f32 %v5970_v3, %v5806_v55 }
 0x684   :  { %v4397_v54 = vmax.f32 %v4301_v59, 0.0  ;;  %v5907_v62 = vpop.permute.xlu0 %5906 }
 0x685   :  { %v4398_v32 = vmax.f32 %v4303_v58, 0.0  ;;  %v5971_v47 = vmul.f32 %v11159_v61, %v5907_v62 }
 0x686   :  { %v4439_v16 = vpack.c.bf16 %v4397_v54, %v4395_v37 }
 0x687   :  { %v4440_v50 = vpack.c.bf16 %v4398_v32, %v4396_v19  ;;  %v11553_v33 = vpop.permute.xlu1 %6102  ;;  %v11558_v59 = vadd.f32 %v5971_v47, %v5807_v56 }
 0x688   :  { %v5923_v32 = vpop.permute.xlu0 %5922 }
 0x689   :  { %4789 = vmatprep.mubr.bf16.mxu0 %v4440_v50  ;;  %v5975_v49 = vmul.f32 %v11159_v61, %v5923_v32 }
 0x68a   :  { %4790 = vmatmul.mubr.bf16.gmra.mrb[232].mxu0 %v4439_v16  ;;  %v5810_v16 = vmul.f32 %v11145_v12, %v11495_v8 }
 0x68b   :  { %v5751_v54 = vpop.permute.xlu1 %5750  ;;  %v11562_v51 = vadd.f32 %v5975_v49, %v5811_v30 }
 0x68c   :  { %v5809_v15 = vmul.f32 %v11145_v12, %v5751_v54  ;;  %v11565_v58 = vpop.permute.xlu0 %5934 }
 0x68f   :  { %v5915_v3 = vpop.permute.xlu1 %5914 }
 0x690   :  { %v5973_v31 = vmul.f32 %v11159_v61, %v5915_v3  ;;  %v11574_v32 = vpop.permute.xlu0 %5938 }
 0x692   :  { %v4306_v55 = vpop.f32.mrb[172].mxu1  ;;  %v6005_v50 = vadd.f32 %v5973_v31, %v5809_v15 }
 0x693   :  { %v4307_v28 = vadd.f32 %v4306_v55, %v11116_v43  ;;  %v4308_v37 = vpop.f32.mrb[173].mxu1  ;;  %v5919_v47 = vpop.permute.xlu1 %5918 }
 0x694   :  { %v4309_v46 = vadd.f32 %v4308_v37, %v11120_v41  ;;  %v4310_v19 = vpop.f32.mrb[174].mxu1  ;;  %v5974_v54 = vmul.f32 %v11159_v61, %v5919_v47  ;;  %v6019_v15 = vpop.permute.xlu0 %6018 }
 0x695   :  { %v4311_v56 = vadd.f32 %v4310_v19, %v11116_v43  ;;  %v4312_v62 = vpop.f32.mrb[175].mxu1  ;;  %v4399_v49 = vmax.f32 %v4307_v28, 0.0  ;;  %v6146_v31 = vmul.f32 %v11244_v21, %v6019_v15 }
 0x696   :  { %v4313_v30 = vadd.f32 %v4312_v62, %v11120_v41  ;;  %v4400_v55 = vmax.f32 %v4309_v46, 0.0  ;;  %v11576_v37 = vadd.f32 %v5974_v54, %v5810_v16 }
 0x697   :  { %v4401_v3 = vmax.f32 %v4311_v56, 0.0  ;;  %v5763_v60 = vpop.permute.xlu1 %5762  ;;  %v11581_v62 = vadd.f32 %v6146_v31, %v11185_v53  ;;  %v5797_v31 = vmul.f32 %v11145_v12, %v11479_v35 }
 0x698   :  { %v4402_v26 = vmax.f32 %v4313_v30, 0.0  ;;  %v5812_v19 = vmul.f32 %v11145_v12, %v5763_v60  ;;  %v6031_v46 = vpop.permute.xlu0 %6030  ;;  %v5794_v30 = vmul.f32 %v11145_v12, %v11473_v20 }
 0x699   :  { %v4441_v23 = vpack.c.bf16 %v4401_v3, %v4399_v49  ;;  %v6149_v16 = vmul.f32 %v11244_v21, %v6031_v46  ;;  %v7441_v49 = vld [vmem:[%s12454_s2 + $0x7] ss:$8 sm:$0x3]  ;;  %v4914_v3 = vld [vmem:[%s12457_s5] sm:$0x3] }
 0x69a   :  { %v4442_v8 = vpack.c.bf16 %v4402_v26, %v4400_v55  ;;  %v5958_v26 = vmul.f32 %v11159_v61, %v11394_v39  ;;  %v5800_v39 = vmul.f32 %v11145_v12, %v11458_v1  ;;  %v11613_v46 = vrot.slane %v7441_v49, %v8841_v7 }
 0x69b   :  { %v5927_v47 = vpop.permute.xlu1 %5926  ;;  %v11590_v54 = vadd.f32 %v6149_v16, %v11466_v42  ;;  %v5964_v42 = vmul.f32 %v11159_v61, %v11462_v17 }
 0x69c   :  { %4799 = vmatprep.mubr.bf16.mxu0 %v4442_v8  ;;  %v5976_v28 = vmul.f32 %v11159_v61, %v5927_v47  ;;  %v5961_v8 = vmul.f32 %v11159_v61, %v11452_v48  ;;  %v5990_v15 = vadd.f32 %v5958_v26, %v5794_v30  ;;  %v11621_v48 = vrot.slane %v7441_v49, %v8834_v5 }
 0x69d   :  { %4800 = vmatmul.mubr.bf16.gmra.mrb[236].mxu0 %v4441_v23  ;;  %v11593_v23 = vpop.permute.xlu0 %6042  ;;  %v5978_v49 = vmul.f32 %v11159_v61, %v11565_v58 }
 0x69e   :  { %v6008_v56 = vadd.f32 %v5976_v28, %v5812_v19  ;;  %12768 = vst [vmem:[#allocation20_spill] sm:$0xff] %v11593_v23  ;;  %v5993_v23 = vadd.f32 %v5961_v8, %v5797_v31 }
 0x69f   :  { %v6111_v60 = vpop.permute.xlu1 %6110 }
 0x6a0   :  { %v6169_v53 = vmul.f32 %v11244_v21, %v6111_v60  ;;  %v11618_v60 = vrot.slane %v4914_v3, %v8841_v7 }
 0x6a1   :  { %v6051_v17 = vpop.permute.xlu0 %6050 }
 0x6a2   :  { %v11605_v20 = vadd.f32 %v6169_v53, %v6005_v50  ;;  %v6154_v35 = vmul.f32 %v11244_v21, %v6051_v17  ;;  %v11626_v53 = vrot.slane %v4914_v3, %v8834_v5 }
 0x6a3   :  { %v6119_v19 = vpop.permute.xlu1 %6118 }
 0x6a4   :  { %12769 = vst [vmem:[#allocation21_spill] sm:$0xff] %v11605_v20  ;;  %v6171_v1 = vmul.f32 %v11244_v21, %v6119_v19  ;;  %v11634_v18 = vadd.f32 %v6154_v35, %v5990_v15 }
 0x6a5   :  { %v4316_v55 = vpop.f32.mrb[176].mxu1 }
 0x6a6   :  { %v4317_v47 = vadd.f32 %v4316_v55, %v11116_v43  ;;  %v4318_v28 = vpop.f32.mrb[177].mxu1  ;;  %v5996_v55 = vadd.f32 %v5964_v42, %v5800_v39  ;;  %v11629_v19 = vadd.f32 %v6171_v1, %v11562_v51  ;;  %12771 = vst [vmem:[#allocation23_spill] sm:$0xff] %v11634_v18  ;;  %v6063_v42 = vpop.permute.xlu0 %6062 }
 0x6a7   :  { %v4319_v50 = vadd.f32 %v4318_v28, %v11120_v41  ;;  %v4320_v16 = vpop.f32.mrb[178].mxu1  ;;  %v6123_v17 = vpop.permute.xlu1 %6122  ;;  %v6157_v8 = vmul.f32 %v11244_v21, %v6063_v42 }
 0x6a8   :  { %v4321_v26 = vadd.f32 %v4320_v16, %v11116_v43  ;;  %v4322_v30 = vpop.f32.mrb[179].mxu1  ;;  %12770 = vst [vmem:[#allocation22_spill] sm:$0xff] %v11629_v19  ;;  %v4403_v24 = vmax.f32 %v4317_v47, 0.0  ;;  %v6172_v39 = vmul.f32 %v11244_v21, %v6123_v17 }
 0x6a9   :  { %v4323_v28 = vadd.f32 %v4322_v30, %v11120_v41  ;;  %v4691_v20 = vpop.f32.mrb[192].mxu0  ;;  %v4404_v51 = vmax.f32 %v4319_v50, 0.0  ;;  %v11644_v17 = vadd.f32 %v6157_v8, %v5993_v23  ;;  %v5813_v23 = vmul.f32 %v11145_v12, %v11504_v2 }
 0x6aa   :  { %v4405_v16 = vmax.f32 %v4321_v26, 0.0  ;;  %v4692_v0 = vadd.f32 %v4691_v20, %v11613_v46  ;;  %v4693_v3 = vpop.f32.mrb[193].mxu0  ;;  %v11641_v47 = vadd.f32 %v6172_v39, %v6008_v56  ;;  %v6075_v42 = vpop.permute.xlu0 %6074 }
 0x6ab   :  { %v4406_v1 = vmax.f32 %v4323_v28, 0.0  ;;  %v4694_v30 = vadd.f32 %v4693_v3, %v11621_v48  ;;  %v4695_v19 = vpop.f32.mrb[194].mxu0  ;;  %v5771_v50 = vpop.permute.xlu1 %5770  ;;  %v6160_v56 = vmul.f32 %v11244_v21, %v6075_v42 }
 0x6ac   :  { %v4443_v31 = vpack.c.bf16 %v4405_v16, %v4403_v24  ;;  %v4850_v58 = vmax.f32 %v4692_v0, 0.0  ;;  %v4696_v15 = vadd.f32 %v4695_v19, %v11613_v46  ;;  %v4697_v35 = vpop.f32.mrb[195].mxu0  ;;  %v5814_v25 = vmul.f32 %v11145_v12, %v5771_v50 }
 0x6ad   :  { %v4444_v26 = vpack.c.bf16 %v4406_v1, %v4404_v51  ;;  %v4851_v20 = vmax.f32 %v4694_v30, 0.0  ;;  %v4698_v18 = vadd.f32 %v4697_v35, %v11621_v48  ;;  %v11656_v8 = vadd.f32 %v6160_v56, %v5996_v55 }
 0x6ae   :  { %v4926_v28 = vmul.f32 %v11618_v60, %v4850_v58  ;;  %v4852_v3 = vmax.f32 %v4696_v15, 0.0  ;;  %v11653_v39 = vadd.f32 %v5978_v49, %v5814_v25  ;;  %v5979_v55 = vmul.f32 %v11159_v61, %v11574_v32 }
 0x6af   :  { %v4927_v0 = vmul.f32 %v11626_v53, %v4851_v20  ;;  %v4853_v24 = vmax.f32 %v4698_v18, 0.0  ;;  %4809 = vmatprep.mubr.bf16.mxu0 %v4444_v26  ;;  %v5931_v15 = vpop.permute.xlu1 %5930  ;;  %v6083_v26 = vpop.permute.xlu0 %6082 }
 0x6b0   :  { %v4928_v19 = vmul.f32 %v11618_v60, %v4852_v3  ;;  %v5157_v16 = vpack.c.bf16 %v4852_v3, %v4850_v58  ;;  %4810 = vmatmul.mubr.bf16.gmra.mrb[240].mxu0 %v4443_v31  ;;  %v5977_v35 = vmul.f32 %v11159_v61, %v5931_v15  ;;  %v6162_v2 = vmul.f32 %v11244_v21, %v6083_v26 }
 0x6b1   :  { %v4929_v51 = vmul.f32 %v11626_v53, %v4853_v24  ;;  %v5158_v1 = vpack.c.bf16 %v4853_v24, %v4851_v20  ;;  %v4990_v30 = vadd.f32 %v4927_v0, %v4926_v28 }
 0x6b2   :  { %v4701_v18 = vpop.f32.mrb[196].mxu0  ;;  %v11664_v20 = vadd.f32 %v5977_v35, %v5813_v23  ;;  %v11668_v0 = vadd.f32 %v6162_v2, %v11490_v40 }
 0x6b3   :  { %v4702_v50 = vadd.f32 %v4701_v18, %v11613_v46  ;;  %v4703_v58 = vpop.f32.mrb[197].mxu0  ;;  %5427 = vmatprep.mubr.bf16.mxu1 %v5158_v1  ;;  %4991 = vadd.xlane.f32.xlu1 %v4990_v30  ;;  %v4993_v31 = vadd.f32 %v4929_v51, %v4928_v19  ;;  %v5775_v24 = vpop.permute.xlu1 %5774 }
 0x6b4   :  { %v4704_v25 = vadd.f32 %v4703_v58, %v11621_v48  ;;  %v4705_v49 = vpop.f32.mrb[198].mxu0  ;;  %5428 = vmatmul.mubr.bf16.vlgmr.msra.gmra.mrb[192].mxu1 %v5157_v16  ;;  %v5815_v51 = vmul.f32 %v11145_v12, %v5775_v24  ;;  %v6095_v16 = vpop.permute.xlu0 %6094 }
 0x6b5   :  { %v4854_v28 = vmax.f32 %v4702_v50, 0.0  ;;  %v4706_v3 = vadd.f32 %v4705_v49, %v11613_v46  ;;  %v4707_v42 = vpop.f32.mrb[199].mxu0  ;;  %4994 = vadd.xlane.f32.xlu0 %v4993_v31  ;;  %v6165_v23 = vmul.f32 %v11244_v21, %v6095_v16 }
 0x6b6   :  { %v4855_v56 = vmax.f32 %v4704_v25, 0.0  ;;  %v4708_v19 = vadd.f32 %v4707_v42, %v11621_v48  ;;  %v11675_v35 = vadd.f32 %v5979_v55, %v5815_v51 }
 0x6b7   :  { %v4930_v1 = vmul.f32 %v11618_v60, %v4854_v28  ;;  %v4856_v32 = vmax.f32 %v4706_v3, 0.0  ;;  %v11680_v31 = vadd.f32 %v6165_v23, %v11525_v27  ;;  %v5779_v2 = vpop.permute.xlu1 %5778 }
 0x6b8   :  { %v4931_v30 = vmul.f32 %v11626_v53, %v4855_v56  ;;  %v4857_v15 = vmax.f32 %v4708_v19, 0.0  ;;  %v4326_v18 = vpop.f32.mrb[180].mxu1  ;;  %v6107_v19 = vpop.permute.xlu0 %6106 }
 0x6b9   :  { %v4932_v40 = vmul.f32 %v11618_v60, %v4856_v32  ;;  %v5159_v26 = vpack.c.bf16 %v4856_v32, %v4854_v28  ;;  %v4327_v50 = vadd.f32 %v4326_v18, %v11116_v43  ;;  %v4328_v58 = vpop.f32.mrb[181].mxu1  ;;  %v6168_v28 = vmul.f32 %v11244_v21, %v6107_v19 }
 0x6ba   :  { %v4933_v25 = vmul.f32 %v11626_v53, %v4857_v15  ;;  %v5160_v49 = vpack.c.bf16 %v4857_v15, %v4855_v56  ;;  %v4329_v3 = vadd.f32 %v4328_v58, %v11120_v41  ;;  %v4330_v42 = vpop.f32.mrb[182].mxu1  ;;  %v4996_v24 = vadd.f32 %v4931_v30, %v4930_v1 }
 0x6bb   :  { %v4331_v55 = vadd.f32 %v4330_v42, %v11116_v43  ;;  %v4332_v51 = vpop.f32.mrb[183].mxu1  ;;  %v5816_v32 = vmul.f32 %v11145_v12, %v5779_v2  ;;  %v4407_v23 = vmax.f32 %v4327_v50, 0.0  ;;  %v11689_v56 = vadd.f32 %v6168_v28, %v11542_v6  ;;  %v5943_v1 = vpop.permute.xlu1 %5942 }
 0x6bc   :  { %v4333_v16 = vadd.f32 %v4332_v51, %v11120_v41  ;;  %4997 = vadd.xlane.f32.xlu0 %v4996_v24  ;;  %5437 = vmatprep.mubr.bf16.mxu1 %v5160_v49  ;;  %v4999_v27 = vadd.f32 %v4933_v25, %v4932_v40  ;;  %v4408_v30 = vmax.f32 %v4329_v3, 0.0  ;;  %v5980_v58 = vmul.f32 %v11159_v61, %v5943_v1  ;;  %v6115_v42 = vpop.permute.xlu0 %6114 }
 0x6bd   :  { %v4409_v18 = vmax.f32 %v4331_v55, 0.0  ;;  %5438 = vmatmul.mubr.bf16.gmra.mrb[196].mxu1 %v5159_v26  ;;  %v6170_v24 = vmul.f32 %v11244_v21, %v6115_v42  ;;  %v19_v26 = vstv %s12458_s6 }
 0x6be   :  { %v4410_v15 = vmax.f32 %v4333_v16, 0.0  ;;  %5000 = vadd.xlane.f32.xlu1 %v4999_v27  ;;  %v11693_v40 = vadd.f32 %v5980_v58, %v5816_v32  ;;  %20 = vst [vmem:[#allocation2] sm:$0x1] %v19_v26 }
 0x6bf   :  { %v4445_v19 = vpack.c.bf16 %v4409_v18, %v4407_v23  ;;  %v11699_v6 = vadd.f32 %v6170_v24, %v11576_v37 }
 0x6c0   :  { %v4446_v49 = vpack.c.bf16 %v4410_v15, %v4408_v30 }
 0x6c2   :  { %4819 = vmatprep.mubr.bf16.mxu0 %v4446_v49 }
 0x6c3   :  { %4820 = vmatmul.mubr.bf16.gmra.mrb[244].mxu0 %v4445_v19 }
 0x6c5   :  { %v4711_v50 = vpop.f32.mrb[200].mxu0 }
 0x6c6   :  { %v4712_v2 = vadd.f32 %v4711_v50, %v11613_v46  ;;  %v4713_v25 = vpop.f32.mrb[201].mxu0 }
 0x6c7   :  { %v4714_v3 = vadd.f32 %v4713_v25, %v11621_v48  ;;  %v4715_v55 = vpop.f32.mrb[202].mxu0 }
 0x6c8   :  { %v4858_v51 = vmax.f32 %v4712_v2, 0.0  ;;  %v4716_v28 = vadd.f32 %v4715_v55, %v11613_v46  ;;  %v4717_v16 = vpop.f32.mrb[203].mxu0 }
 0x6c9   :  { %v4859_v27 = vmax.f32 %v4714_v3, 0.0  ;;  %v4718_v32 = vadd.f32 %v4717_v16, %v11621_v48 }
 0x6ca   :  { %v4934_v37 = vmul.f32 %v11618_v60, %v4858_v51  ;;  %v4860_v23 = vmax.f32 %v4716_v28, 0.0 }
 0x6cb   :  { %v4935_v18 = vmul.f32 %v11626_v53, %v4859_v27  ;;  %v4861_v1 = vmax.f32 %v4718_v32, 0.0  ;;  %v4336_v30 = vpop.f32.mrb[184].mxu1 }
 0x6cc   :  { %v4936_v15 = vmul.f32 %v11618_v60, %v4860_v23  ;;  %v5161_v58 = vpack.c.bf16 %v4860_v23, %v4858_v51  ;;  %v4337_v42 = vadd.f32 %v4336_v30, %v11116_v43  ;;  %v4338_v19 = vpop.f32.mrb[185].mxu1 }
 0x6cd   :  { %v4937_v24 = vmul.f32 %v11626_v53, %v4861_v1  ;;  %v5162_v49 = vpack.c.bf16 %v4861_v1, %v4859_v27  ;;  %v4339_v26 = vadd.f32 %v4338_v19, %v11120_v41  ;;  %v4340_v50 = vpop.f32.mrb[186].mxu1  ;;  %v5002_v2 = vadd.f32 %v4935_v18, %v4934_v37 }
 0x6ce   :  { %v4341_v25 = vadd.f32 %v4340_v50, %v11116_v43  ;;  %v4342_v3 = vpop.f32.mrb[187].mxu1  ;;  %v4411_v16 = vmax.f32 %v4337_v42, 0.0 }
 0x6cf   :  { %v4343_v55 = vadd.f32 %v4342_v3, %v11120_v41  ;;  %5003 = vadd.xlane.f32.xlu0 %v5002_v2  ;;  %5447 = vmatprep.mubr.bf16.mxu1 %v5162_v49  ;;  %v5005_v28 = vadd.f32 %v4937_v24, %v4936_v15  ;;  %v4412_v32 = vmax.f32 %v4339_v26, 0.0 }
 0x6d0   :  { %v4413_v51 = vmax.f32 %v4341_v25, 0.0  ;;  %5448 = vmatmul.mubr.bf16.gmra.mrb[200].mxu1 %v5161_v58 }
 0x6d1   :  { %v4414_v23 = vmax.f32 %v4343_v55, 0.0  ;;  %5006 = vadd.xlane.f32.xlu1 %v5005_v28 }
 0x6d2   :  { %v4447_v30 = vpack.c.bf16 %v4413_v51, %v4411_v16 }
 0x6d3   :  { %v4448_v27 = vpack.c.bf16 %v4414_v23, %v4412_v32 }
 0x6d5   :  { %4829 = vmatprep.mubr.bf16.mxu0 %v4448_v27 }
 0x6d6   :  { %4830 = vmatmul.mubr.bf16.gmra.mrb[248].mxu0 %v4447_v30 }
 0x6d8   :  { %v4721_v1 = vpop.f32.mrb[204].mxu0 }
 0x6d9   :  { %v4722_v37 = vadd.f32 %v4721_v1, %v11613_v46  ;;  %v4723_v18 = vpop.f32.mrb[205].mxu0 }
 0x6da   :  { %v4724_v19 = vadd.f32 %v4723_v18, %v11621_v48  ;;  %v4725_v50 = vpop.f32.mrb[206].mxu0 }
 0x6db   :  { %v4862_v2 = vmax.f32 %v4722_v37, 0.0  ;;  %v4726_v15 = vadd.f32 %v4725_v50, %v11613_v46  ;;  %v4727_v42 = vpop.f32.mrb[207].mxu0 }
 0x6dc   :  { %v4863_v24 = vmax.f32 %v4724_v19, 0.0  ;;  %v4728_v58 = vadd.f32 %v4727_v42, %v11621_v48 }
 0x6dd   :  { %v4938_v49 = vmul.f32 %v11618_v60, %v4862_v2  ;;  %v4864_v26 = vmax.f32 %v4726_v15, 0.0 }
 0x6de   :  { %v4939_v25 = vmul.f32 %v11626_v53, %v4863_v24  ;;  %v4865_v3 = vmax.f32 %v4728_v58, 0.0  ;;  %v4346_v55 = vpop.f32.mrb[188].mxu1 }
 0x6df   :  { %v4940_v28 = vmul.f32 %v11618_v60, %v4864_v26  ;;  %v5163_v16 = vpack.c.bf16 %v4864_v26, %v4862_v2  ;;  %v4347_v51 = vadd.f32 %v4346_v55, %v11116_v43  ;;  %v4348_v32 = vpop.f32.mrb[189].mxu1 }
 0x6e0   :  { %v4941_v23 = vmul.f32 %v11626_v53, %v4865_v3  ;;  %v5164_v30 = vpack.c.bf16 %v4865_v3, %v4863_v24  ;;  %v4349_v27 = vadd.f32 %v4348_v32, %v11120_v41  ;;  %v4350_v1 = vpop.f32.mrb[190].mxu1  ;;  %v5008_v37 = vadd.f32 %v4939_v25, %v4938_v49 }
 0x6e1   :  { %v4351_v18 = vadd.f32 %v4350_v1, %v11116_v43  ;;  %v4352_v19 = vpop.f32.mrb[191].mxu1  ;;  %v4415_v42 = vmax.f32 %v4347_v51, 0.0 }
 0x6e2   :  { %v4353_v50 = vadd.f32 %v4352_v19, %v11120_v41  ;;  %5009 = vadd.xlane.f32.xlu0 %v5008_v37  ;;  %5457 = vmatprep.mubr.bf16.mxu1 %v5164_v30  ;;  %v5011_v15 = vadd.f32 %v4941_v23, %v4940_v28  ;;  %v4416_v58 = vmax.f32 %v4349_v27, 0.0 }
 0x6e3   :  { %v4417_v2 = vmax.f32 %v4351_v18, 0.0  ;;  %5458 = vmatmul.mubr.bf16.gmra.mrb[204].mxu1 %v5163_v16 }
 0x6e4   :  { %v4418_v26 = vmax.f32 %v4353_v50, 0.0  ;;  %5012 = vadd.xlane.f32.xlu1 %v5011_v15 }
 0x6e5   :  { %v4449_v55 = vpack.c.bf16 %v4417_v2, %v4415_v42 }
 0x6e6   :  { %v4450_v24 = vpack.c.bf16 %v4418_v26, %v4416_v58  ;;  %v8285_v58 = vld [vmem:[%s12459_s7 + $0x40] sm:$0xff]  }
 0x6e7   :  { %v8286_v26 = vld [vmem:[%s12459_s7] sm:$0xff]   ;;  %7598 = vmatprep.subr.bf16.mxu0 %v8285_v58  ;;  %7782 = vmatprep.subr.bf16.mxu1 %v8285_v58 }
 0x6e8   :  { %4839 = vmatprep.mubr.bf16.mxu0 %v4450_v24  ;;  %7599 = vmatpush3.bf16.msra.mxu0 %v8286_v26  ;;  %v8288_v24 = vld [vmem:[%s12459_s7 + $0x8] sm:$0xff]  }
 0x6e9   :  { %4840 = vmatmul.mubr.bf16.gmra.mrb[252].mxu0 %v4449_v55  ;;  %v8287_v55 = vld [vmem:[%s12459_s7 + $0x48] sm:$0xff]   ;;  %7790 = vmatpush3.bf16.msra.mxu1 %v8286_v26  ;;  %v8294_v26 = vld [vmem:[%s12459_s7 + $0x20] sm:$0xff]  }
 0x6ea   :  { %7600 = vmatprep.subr.bf16.mxu0 %v8287_v55  ;;  %7783 = vmatprep.subr.bf16.mxu1 %v8287_v55 }
 0x6eb   :  { %v4731_v3 = vpop.f32.mrb[208].mxu0 }
 0x6ec   :  { %v4732_v49 = vadd.f32 %v4731_v3, %v11613_v46  ;;  %v4733_v43 = vpop.f32.mrb[209].mxu0  ;;  %v8289_v3 = vld [vmem:[%s12459_s7 + $0x50] sm:$0xff]   ;;  %7601 = vmatpush3.bf16.msra.mxu0 %v8288_v24 }
 0x6ed   :  { %v4734_v25 = vadd.f32 %v4733_v43, %v11621_v48  ;;  %v4735_v41 = vpop.f32.mrb[210].mxu0  ;;  %7791 = vmatpush3.bf16.msra.mxu1 %v8288_v24  ;;  %7602 = vmatprep.subr.bf16.mxu0 %v8289_v3 }
 0x6ee   :  { %v4866_v32 = vmax.f32 %v4732_v49, 0.0  ;;  %v4736_v28 = vadd.f32 %v4735_v41, %v11613_v46  ;;  %v4737_v51 = vpop.f32.mrb[211].mxu0  ;;  %v8290_v49 = vld [vmem:[%s12459_s7 + $0x10] sm:$0xff]   ;;  %7784 = vmatprep.subr.bf16.mxu1 %v8289_v3 }
 0x6ef   :  { %v4867_v23 = vmax.f32 %v4734_v25, 0.0  ;;  %v4738_v16 = vadd.f32 %v4737_v51, %v11621_v48  ;;  %v8291_v25 = vld [vmem:[%s12459_s7 + $0x58] sm:$0xff]  }
 0x6f0   :  { %v4942_v30 = vmul.f32 %v11618_v60, %v4866_v32  ;;  %v4868_v27 = vmax.f32 %v4736_v28, 0.0  ;;  %7603 = vmatpush3.bf16.msra.mxu0 %v8290_v49 }
 0x6f1   :  { %v4943_v1 = vmul.f32 %v11626_v53, %v4867_v23  ;;  %v4869_v37 = vmax.f32 %v4738_v16, 0.0  ;;  %7792 = vmatpush3.bf16.msra.mxu1 %v8290_v49  ;;  %7604 = vmatprep.subr.bf16.mxu0 %v8291_v25 }
 0x6f2   :  { %v4944_v18 = vmul.f32 %v11618_v60, %v4868_v27  ;;  %v5165_v19 = vpack.c.bf16 %v4868_v27, %v4866_v32  ;;  %7785 = vmatprep.subr.bf16.mxu1 %v8291_v25  ;;  %v8296_v25 = vld [vmem:[%s12459_s7 + $0x28] sm:$0xff]  }
 0x6f3   :  { %v4945_v50 = vmul.f32 %v11626_v53, %v4869_v37  ;;  %v5166_v15 = vpack.c.bf16 %v4869_v37, %v4867_v23  ;;  %v5014_v42 = vadd.f32 %v4943_v1, %v4942_v30  ;;  %v8292_v23 = vld [vmem:[%s12459_s7 + $0x18] sm:$0xff]  }
 0x6f4   :  { %7605 = vmatpush3.bf16.msra.mxu0 %v8292_v23 }
 0x6f5   :  { %5015 = vadd.xlane.f32.xlu0 %v5014_v42  ;;  %5467 = vmatprep.mubr.bf16.mxu1 %v5166_v15  ;;  %v5017_v2 = vadd.f32 %v4945_v50, %v4944_v18  ;;  %v8293_v18 = vld [vmem:[%s12459_s7 + $0x60] sm:$0xff]  }
 0x6f6   :  { %5468 = vmatmul.mubr.bf16.gmra.mrb[208].mxu1 %v5165_v19  ;;  %7606 = vmatprep.subr.bf16.mxu0 %v8293_v18 }
 0x6f7   :  { %5018 = vadd.xlane.f32.xlu1 %v5017_v2  ;;  %7793 = vmatpush3.bf16.msra.mxu1 %v8292_v23  ;;  %v8300_v23 = vld [vmem:[%s12459_s7 + $0x38] sm:$0xff]  }
 0x6f8   :  { %7786 = vmatprep.subr.bf16.mxu1 %v8293_v18  ;;  %7607 = vmatpush3.bf16.msra.mxu0 %v8294_v26 }
 0x6fb   :  { %7794 = vmatpush3.bf16.msra.mxu1 %v8294_v26 }
 0x6fe   :  { %v4741_v43 = vpop.f32.mrb[212].mxu0 }
 0x6ff   :  { %v4742_v41 = vadd.f32 %v4741_v43, %v11613_v46  ;;  %v4743_v32 = vpop.f32.mrb[213].mxu0  ;;  %v8295_v43 = vld [vmem:[%s12459_s7 + $0x68] sm:$0xff]  }
 0x700   :  { %v4744_v28 = vadd.f32 %v4743_v32, %v11621_v48  ;;  %v4745_v51 = vpop.f32.mrb[214].mxu0  ;;  %7608 = vmatprep.subr.bf16.mxu0 %v8295_v43  ;;  %7787 = vmatprep.subr.bf16.mxu1 %v8295_v43  ;;  %v8298_v32 = vld [vmem:[%s12459_s7 + $0x30] sm:$0xff]  }
 0x701   :  { %v4870_v16 = vmax.f32 %v4742_v41, 0.0  ;;  %v4746_v30 = vadd.f32 %v4745_v51, %v11613_v46  ;;  %v4747_v27 = vpop.f32.mrb[215].mxu0  ;;  %v8297_v41 = vld [vmem:[%s12459_s7 + $0x70] sm:$0xff]   ;;  %7609 = vmatpush3.bf16.msra.mxu0 %v8296_v25  ;;  %7795 = vmatpush3.bf16.msra.mxu1 %v8296_v25 }
 0x702   :  { %v4871_v1 = vmax.f32 %v4744_v28, 0.0  ;;  %v4748_v37 = vadd.f32 %v4747_v27, %v11621_v48  ;;  %7610 = vmatprep.subr.bf16.mxu0 %v8297_v41  ;;  %v8299_v28 = vld [vmem:[%s12459_s7 + $0x78] sm:$0xff]   ;;  %7788 = vmatprep.subr.bf16.mxu1 %v8297_v41 }
 0x703   :  { %v4946_v19 = vmul.f32 %v11618_v60, %v4870_v16  ;;  %v4872_v50 = vmax.f32 %v4746_v30, 0.0 }
 0x704   :  { %v4947_v15 = vmul.f32 %v11626_v53, %v4871_v1  ;;  %v4873_v42 = vmax.f32 %v4748_v37, 0.0 }
 0x705   :  { %v4948_v2 = vmul.f32 %v11618_v60, %v4872_v50  ;;  %v5167_v58 = vpack.c.bf16 %v4872_v50, %v4870_v16  ;;  %7611 = vmatpush3.bf16.msra.mxu0 %v8298_v32  ;;  %7796 = vmatpush3.bf16.msra.mxu1 %v8298_v32 }
 0x706   :  { %v4949_v55 = vmul.f32 %v11626_v53, %v4873_v42  ;;  %v5168_v24 = vpack.c.bf16 %v4873_v42, %v4871_v1  ;;  %v5020_v3 = vadd.f32 %v4947_v15, %v4946_v19  ;;  %7612 = vmatprep.subr.bf16.mxu0 %v8299_v28  ;;  %7789 = vmatprep.subr.bf16.mxu1 %v8299_v28 }
 0x708   :  { %5021 = vadd.xlane.f32.xlu0 %v5020_v3  ;;  %5477 = vmatprep.mubr.bf16.mxu1 %v5168_v24  ;;  %v5023_v49 = vadd.f32 %v4949_v55, %v4948_v2 }
 0x709   :  { %5478 = vmatmul.mubr.bf16.gmra.mrb[212].mxu1 %v5167_v58  ;;  %7613 = vmatpush3.bf16.msra.mxu0 %v8300_v23 }
 0x70a   :  { %5024 = vadd.xlane.f32.xlu1 %v5023_v49  ;;  %7797 = vmatpush3.bf16.msra.mxu1 %v8300_v23 }
 0x711   :  { %v4751_v51 = vpop.f32.mrb[216].mxu0 }
 0x712   :  { %v4752_v16 = vadd.f32 %v4751_v51, %v11613_v46  ;;  %v4753_v30 = vpop.f32.mrb[217].mxu0 }
 0x713   :  { %v4754_v27 = vadd.f32 %v4753_v30, %v11621_v48  ;;  %v4755_v1 = vpop.f32.mrb[218].mxu0 }
 0x714   :  { %v4874_v37 = vmax.f32 %v4752_v16, 0.0  ;;  %v4756_v18 = vadd.f32 %v4755_v1, %v11613_v46  ;;  %v4757_v19 = vpop.f32.mrb[219].mxu0 }
 0x715   :  { %v4875_v50 = vmax.f32 %v4754_v27, 0.0  ;;  %v4758_v15 = vadd.f32 %v4757_v19, %v11621_v48 }
 0x716   :  { %v4950_v42 = vmul.f32 %v11618_v60, %v4874_v37  ;;  %v4876_v2 = vmax.f32 %v4756_v18, 0.0 }
 0x717   :  { %v4951_v58 = vmul.f32 %v11626_v53, %v4875_v50  ;;  %v4877_v26 = vmax.f32 %v4758_v15, 0.0 }
 0x718   :  { %v4952_v55 = vmul.f32 %v11618_v60, %v4876_v2  ;;  %v5169_v24 = vpack.c.bf16 %v4876_v2, %v4874_v37 }
 0x719   :  { %v4953_v3 = vmul.f32 %v11626_v53, %v4877_v26  ;;  %v5170_v49 = vpack.c.bf16 %v4877_v26, %v4875_v50  ;;  %v5026_v43 = vadd.f32 %v4951_v58, %v4950_v42 }
 0x71b   :  { %5027 = vadd.xlane.f32.xlu0 %v5026_v43  ;;  %5487 = vmatprep.mubr.bf16.mxu1 %v5170_v49  ;;  %v5029_v25 = vadd.f32 %v4953_v3, %v4952_v55 }
 0x71c   :  { %5488 = vmatmul.mubr.bf16.gmra.mrb[216].mxu1 %v5169_v24 }
 0x71d   :  { %5030 = vadd.xlane.f32.xlu1 %v5029_v25 }
 0x724   :  { %v4761_v41 = vpop.f32.mrb[220].mxu0 }
 0x725   :  { %v4762_v32 = vadd.f32 %v4761_v41, %v11613_v46  ;;  %v4763_v28 = vpop.f32.mrb[221].mxu0 }
 0x726   :  { %v4764_v51 = vadd.f32 %v4763_v28, %v11621_v48  ;;  %v4765_v23 = vpop.f32.mrb[222].mxu0 }
 0x727   :  { %v4878_v16 = vmax.f32 %v4762_v32, 0.0  ;;  %v4766_v30 = vadd.f32 %v4765_v23, %v11613_v46  ;;  %v4767_v27 = vpop.f32.mrb[223].mxu0  ;;  %v11808_v23 = vpop.permute.xlu1 %6130 }
 0x728   :  { %v4879_v1 = vmax.f32 %v4764_v51, 0.0  ;;  %v4768_v37 = vadd.f32 %v4767_v27, %v11621_v48 }
 0x729   :  { %v4954_v18 = vmul.f32 %v11618_v60, %v4878_v16  ;;  %v4880_v19 = vmax.f32 %v4766_v30, 0.0 }
 0x72a   :  { %v4955_v50 = vmul.f32 %v11626_v53, %v4879_v1  ;;  %v4881_v15 = vmax.f32 %v4768_v37, 0.0  ;;  %v11812_v37 = vpop.permute.xlu0 %6126 }
 0x72b   :  { %v4956_v42 = vmul.f32 %v11618_v60, %v4880_v19  ;;  %v5171_v2 = vpack.c.bf16 %v4880_v19, %v4878_v16 }
 0x72c   :  { %v4957_v58 = vmul.f32 %v11626_v53, %v4881_v15  ;;  %v5172_v26 = vpack.c.bf16 %v4881_v15, %v4879_v1  ;;  %v5032_v55 = vadd.f32 %v4955_v50, %v4954_v18 }
 0x72e   :  { %5033 = vadd.xlane.f32.xlu0 %v5032_v55  ;;  %5497 = vmatprep.mubr.bf16.mxu1 %v5172_v26  ;;  %v5035_v24 = vadd.f32 %v4957_v58, %v4956_v42  ;;  %v11816_v42 = vld [vmem:[#allocation2] ss:$0 sm:$0xff] }
 0x72f   :  { %5498 = vmatmul.mubr.bf16.gmra.mrb[220].mxu1 %v5171_v2 }
 0x730   :  { %5036 = vadd.xlane.f32.xlu1 %v5035_v24 }
 0x737   :  { %v4771_v3 = vpop.f32.mrb[224].mxu0 }
 0x738   :  { %v4772_v49 = vadd.f32 %v4771_v3, %v11613_v46  ;;  %v4773_v43 = vpop.f32.mrb[225].mxu0 }
 0x739   :  { %v4774_v25 = vadd.f32 %v4773_v43, %v11621_v48  ;;  %v4775_v41 = vpop.f32.mrb[226].mxu0 }
 0x73a   :  { %v4882_v32 = vmax.f32 %v4772_v49, 0.0  ;;  %v4776_v28 = vadd.f32 %v4775_v41, %v11613_v46  ;;  %v4777_v51 = vpop.f32.mrb[227].mxu0 }
 0x73b   :  { %v4883_v16 = vmax.f32 %v4774_v25, 0.0  ;;  %v4778_v30 = vadd.f32 %v4777_v51, %v11621_v48 }
 0x73c   :  { %v4958_v27 = vmul.f32 %v11618_v60, %v4882_v32  ;;  %v4884_v1 = vmax.f32 %v4776_v28, 0.0 }
 0x73d   :  { %v4959_v18 = vmul.f32 %v11626_v53, %v4883_v16  ;;  %v4885_v19 = vmax.f32 %v4778_v30, 0.0 }
 0x73e   :  { %v4960_v50 = vmul.f32 %v11618_v60, %v4884_v1  ;;  %v5173_v15 = vpack.c.bf16 %v4884_v1, %v4882_v32 }
 0x73f   :  { %v4961_v2 = vmul.f32 %v11626_v53, %v4885_v19  ;;  %v5174_v58 = vpack.c.bf16 %v4885_v19, %v4883_v16  ;;  %v5038_v26 = vadd.f32 %v4959_v18, %v4958_v27 }
 0x740   :  { %v4992_v55 = vpop.xlane.xlu1 %4991 }
 0x741   :  { %v5093_v24 = vadd.f32 %v11816_v42, %v4992_v55  ;;  %5039 = vadd.xlane.f32.xlu0 %v5038_v26  ;;  %5507 = vmatprep.mubr.bf16.mxu1 %v5174_v58  ;;  %v5041_v3 = vadd.f32 %v4961_v2, %v4960_v50 }
 0x742   :  { %v4995_v49 = vpop.xlane.xlu0 %4994  ;;  %5508 = vmatmul.mubr.bf16.gmra.mrb[224].mxu1 %v5173_v15 }
 0x743   :  { %v5125_v43 = vand.u32 2147483647, %v5093_v24  ;;  %v5094_v25 = vadd.f32 %v11816_v42, %v4995_v49  ;;  %5042 = vadd.xlane.f32.xlu1 %v5041_v3 }
 0x745   :  { %7011 = vst.msk [vmem:[%s12460_s13] sm:$0xff] %vm7010_vm0, %v5125_v43  ;;  %v5126_v41 = vand.u32 2147483647, %v5094_v25 }
 0x747   :  { %7012 = vst.msk [vmem:[%s12460_s13 + $0x8] sm:$0xff] %vm7010_vm0, %v5126_v41 }
 0x749   :  { %v4998_v32 = vpop.xlane.xlu0 %4997 }
 0x74a   :  { %v5095_v28 = vadd.f32 %v11816_v42, %v4998_v32  ;;  %v4781_v51 = vpop.f32.mrb[228].mxu0 }
 0x74b   :  { %v4782_v16 = vadd.f32 %v4781_v51, %v11613_v46  ;;  %v4783_v30 = vpop.f32.mrb[229].mxu0  ;;  %v5001_v27 = vpop.xlane.xlu1 %5000 }
 0x74c   :  { %v5127_v1 = vand.u32 2147483647, %v5095_v28  ;;  %v4784_v18 = vadd.f32 %v4783_v30, %v11621_v48  ;;  %v5096_v19 = vadd.f32 %v11816_v42, %v5001_v27  ;;  %v4785_v50 = vpop.f32.mrb[230].mxu0 }
 0x74d   :  { %v4886_v15 = vmax.f32 %v4782_v16, 0.0  ;;  %v4786_v2 = vadd.f32 %v4785_v50, %v11613_v46  ;;  %v4787_v58 = vpop.f32.mrb[231].mxu0 }
 0x74e   :  { %7013 = vst.msk [vmem:[%s12460_s13 + $0x10] sm:$0xff] %vm7010_vm0, %v5127_v1  ;;  %v4887_v26 = vmax.f32 %v4784_v18, 0.0  ;;  %v5128_v55 = vand.u32 2147483647, %v5096_v19  ;;  %v4788_v24 = vadd.f32 %v4787_v58, %v11621_v48 }
 0x74f   :  { %v4962_v3 = vmul.f32 %v11618_v60, %v4886_v15  ;;  %v4888_v49 = vmax.f32 %v4786_v2, 0.0 }
 0x750   :  { %v4963_v43 = vmul.f32 %v11626_v53, %v4887_v26  ;;  %7014 = vst.msk [vmem:[%s12460_s13 + $0x18] sm:$0xff] %vm7010_vm0, %v5128_v55  ;;  %v4889_v25 = vmax.f32 %v4788_v24, 0.0 }
 0x751   :  { %v4964_v41 = vmul.f32 %v11618_v60, %v4888_v49  ;;  %v5175_v32 = vpack.c.bf16 %v4888_v49, %v4886_v15 }
 0x752   :  { %v4965_v28 = vmul.f32 %v11626_v53, %v4889_v25  ;;  %v5176_v51 = vpack.c.bf16 %v4889_v25, %v4887_v26  ;;  %v5044_v16 = vadd.f32 %v4963_v43, %v4962_v3 }
 0x754   :  { %5045 = vadd.xlane.f32.xlu0 %v5044_v16  ;;  %5517 = vmatprep.mubr.bf16.mxu1 %v5176_v51  ;;  %v5047_v30 = vadd.f32 %v4965_v28, %v4964_v41 }
 0x755   :  { %5518 = vmatmul.mubr.bf16.gmra.mrb[228].mxu1 %v5175_v32 }
 0x756   :  { %5048 = vadd.xlane.f32.xlu1 %v5047_v30 }
 0x75c   :  { %v5004_v27 = vpop.xlane.xlu0 %5003 }
 0x75d   :  { %v5097_v1 = vadd.f32 %v11816_v42, %v5004_v27  ;;  %v4791_v18 = vpop.f32.mrb[232].mxu0 }
 0x75e   :  { %v4792_v19 = vadd.f32 %v4791_v18, %v11613_v46  ;;  %v4793_v50 = vpop.f32.mrb[233].mxu0  ;;  %v5007_v2 = vpop.xlane.xlu1 %5006 }
 0x75f   :  { %v5129_v58 = vand.u32 2147483647, %v5097_v1  ;;  %v4794_v15 = vadd.f32 %v4793_v50, %v11621_v48  ;;  %v5098_v55 = vadd.f32 %v11816_v42, %v5007_v2  ;;  %v4795_v26 = vpop.f32.mrb[234].mxu0 }
 0x760   :  { %v4890_v24 = vmax.f32 %v4792_v19, 0.0  ;;  %v4796_v3 = vadd.f32 %v4795_v26, %v11613_v46  ;;  %v4797_v49 = vpop.f32.mrb[235].mxu0 }
 0x761   :  { %7015 = vst.msk [vmem:[%s12460_s13 + $0x20] sm:$0xff] %vm7010_vm0, %v5129_v58  ;;  %v4891_v43 = vmax.f32 %v4794_v15, 0.0  ;;  %v5130_v25 = vand.u32 2147483647, %v5098_v55  ;;  %v4798_v41 = vadd.f32 %v4797_v49, %v11621_v48 }
 0x762   :  { %v4966_v32 = vmul.f32 %v11618_v60, %v4890_v24  ;;  %v4892_v28 = vmax.f32 %v4796_v3, 0.0 }
 0x763   :  { %v4967_v51 = vmul.f32 %v11626_v53, %v4891_v43  ;;  %7016 = vst.msk [vmem:[%s12460_s13 + $0x28] sm:$0xff] %vm7010_vm0, %v5130_v25  ;;  %v4893_v16 = vmax.f32 %v4798_v41, 0.0 }
 0x764   :  { %v4968_v30 = vmul.f32 %v11618_v60, %v4892_v28  ;;  %v5177_v27 = vpack.c.bf16 %v4892_v28, %v4890_v24 }
 0x765   :  { %v4969_v1 = vmul.f32 %v11626_v53, %v4893_v16  ;;  %v5178_v18 = vpack.c.bf16 %v4893_v16, %v4891_v43  ;;  %v5050_v19 = vadd.f32 %v4967_v51, %v4966_v32 }
 0x767   :  { %5051 = vadd.xlane.f32.xlu0 %v5050_v19  ;;  %5527 = vmatprep.mubr.bf16.mxu1 %v5178_v18  ;;  %v5053_v50 = vadd.f32 %v4969_v1, %v4968_v30 }
 0x768   :  { %5528 = vmatmul.mubr.bf16.gmra.mrb[232].mxu1 %v5177_v27 }
 0x769   :  { %5054 = vadd.xlane.f32.xlu1 %v5053_v50 }
 0x76f   :  { %v5010_v2 = vpop.xlane.xlu0 %5009 }
 0x770   :  { %v5099_v58 = vadd.f32 %v11816_v42, %v5010_v2  ;;  %v4801_v15 = vpop.f32.mrb[236].mxu0 }
 0x771   :  { %v4802_v55 = vadd.f32 %v4801_v15, %v11613_v46  ;;  %v4803_v26 = vpop.f32.mrb[237].mxu0  ;;  %v5013_v3 = vpop.xlane.xlu1 %5012 }
 0x772   :  { %v5131_v49 = vand.u32 2147483647, %v5099_v58  ;;  %v4804_v24 = vadd.f32 %v4803_v26, %v11621_v48  ;;  %v5100_v25 = vadd.f32 %v11816_v42, %v5013_v3  ;;  %v4805_v43 = vpop.f32.mrb[238].mxu0  ;;  %v5949_v26 = vmul.f32 %v11159_v61, %v11153_v29 }
 0x773   :  { %v4894_v41 = vmax.f32 %v4802_v55, 0.0  ;;  %v4806_v32 = vadd.f32 %v4805_v43, %v11613_v46  ;;  %v4807_v28 = vpop.f32.mrb[239].mxu0  ;;  %v5785_v3 = vmul.f32 %v11145_v12, %v11456_v11 }
 0x774   :  { %7017 = vst.msk [vmem:[%s12460_s13 + $0x30] sm:$0xff] %vm7010_vm0, %v5131_v49  ;;  %v4895_v51 = vmax.f32 %v4804_v24, 0.0  ;;  %v5132_v16 = vand.u32 2147483647, %v5100_v25  ;;  %v4808_v30 = vadd.f32 %v4807_v28, %v11621_v48  ;;  %v6145_v24 = vmul.f32 %v11244_v21, %v11237_v10 }
 0x775   :  { %v4970_v27 = vmul.f32 %v11618_v60, %v4894_v41  ;;  %v4896_v1 = vmax.f32 %v4806_v32, 0.0  ;;  %v5981_v25 = vadd.f32 %v5949_v26, %v5785_v3  ;;  %v7507_v32 = vld [vmem:[%s12454_s2 + $0x10] ss:$8 sm:$0x3] }
 0x776   :  { %v4971_v18 = vmul.f32 %v11626_v53, %v4895_v51  ;;  %7018 = vst.msk [vmem:[%s12460_s13 + $0x38] sm:$0xff] %vm7010_vm0, %v5132_v16  ;;  %v4897_v19 = vmax.f32 %v4808_v30, 0.0 }
 0x777   :  { %v4972_v50 = vmul.f32 %v11618_v60, %v4896_v1  ;;  %v5179_v2 = vpack.c.bf16 %v4896_v1, %v4894_v41  ;;  %v11889_v43 = vadd.f32 %v6145_v24, %v5981_v25 }
 0x778   :  { %v4973_v58 = vmul.f32 %v11626_v53, %v4897_v19  ;;  %v5180_v15 = vpack.c.bf16 %v4897_v19, %v4895_v51  ;;  %v5056_v55 = vadd.f32 %v4971_v18, %v4970_v27  ;;  %v11899_v18 = vrot.slane %v7507_v32, %v8841_v7 }
 0x77a   :  { %5057 = vadd.xlane.f32.xlu0 %v5056_v55  ;;  %5537 = vmatprep.mubr.bf16.mxu1 %v5180_v15  ;;  %v5059_v49 = vadd.f32 %v4973_v58, %v4972_v50  ;;  %v11903_v58 = vrot.slane %v7507_v32, %v8834_v5 }
 0x77b   :  { %5538 = vmatmul.mubr.bf16.gmra.mrb[236].mxu1 %v5179_v2 }
 0x77c   :  { %5060 = vadd.xlane.f32.xlu1 %v5059_v49 }
 0x782   :  { %v5016_v41 = vpop.xlane.xlu0 %5015 }
 0x783   :  { %v5101_v29 = vadd.f32 %v11816_v42, %v5016_v41  ;;  %v4811_v28 = vpop.f32.mrb[240].mxu0 }
 0x784   :  { %v4812_v11 = vadd.f32 %v4811_v28, %v11613_v46  ;;  %v4813_v51 = vpop.f32.mrb[241].mxu0  ;;  %v5019_v16 = vpop.xlane.xlu1 %5018 }
 0x785   :  { %v5133_v30 = vand.u32 2147483647, %v5101_v29  ;;  %v4814_v27 = vadd.f32 %v4813_v51, %v11621_v48  ;;  %v5102_v10 = vadd.f32 %v11816_v42, %v5019_v16  ;;  %v4815_v1 = vpop.f32.mrb[242].mxu0 }
 0x786   :  { %v4898_v19 = vmax.f32 %v4812_v11, 0.0  ;;  %v4816_v50 = vadd.f32 %v4815_v1, %v11613_v46  ;;  %v4817_v2 = vpop.f32.mrb[243].mxu0 }
 0x787   :  { %7019 = vst.msk [vmem:[%s12460_s13 + $0x40] sm:$0xff] %vm7010_vm0, %v5133_v30  ;;  %v4899_v15 = vmax.f32 %v4814_v27, 0.0  ;;  %v5134_v55 = vand.u32 2147483647, %v5102_v10  ;;  %v4818_v26 = vadd.f32 %v4817_v2, %v11621_v48  ;;  %v5429_v3 = vpop.f32.mrb[192].mxu1 }
 0x788   :  { %v4974_v7 = vmul.f32 %v11618_v60, %v4898_v19  ;;  %v4900_v49 = vmax.f32 %v4816_v50, 0.0  ;;  %v5431_v24 = vpop.f32.mrb[193].mxu1  ;;  %v5430_v41 = vadd.f32 %v5429_v3, %v11899_v18 }
 0x789   :  { %v4975_v25 = vmul.f32 %v11626_v53, %v4899_v15  ;;  %7020 = vst.msk [vmem:[%s12460_s13 + $0x48] sm:$0xff] %vm7010_vm0, %v5134_v55  ;;  %v4901_v5 = vmax.f32 %v4818_v26, 0.0  ;;  %v5433_v32 = vpop.f32.mrb[194].mxu1  ;;  %v5432_v11 = vadd.f32 %v5431_v24, %v11903_v58 }
 0x78a   :  { %v4976_v29 = vmul.f32 %v11618_v60, %v4900_v49  ;;  %v5181_v28 = vpack.c.bf16 %v4900_v49, %v4898_v19  ;;  %v5434_v51 = vadd.f32 %v5433_v32, %v11899_v18  ;;  %v5435_v16 = vpop.f32.mrb[195].mxu1 }
 0x78b   :  { %v4977_v30 = vmul.f32 %v11626_v53, %v4901_v5  ;;  %v5182_v27 = vpack.c.bf16 %v4901_v5, %v4899_v15  ;;  %v5436_v10 = vadd.f32 %v5435_v16, %v11903_v58  ;;  %v5062_v1 = vadd.f32 %v4975_v25, %v4974_v7 }
 0x78c   :  { %v5588_v50 = vpack.c.bf16 %v5434_v51, %v5430_v41 }
 0x78d   :  { %v5589_v2 = vpack.c.bf16 %v5436_v10, %v5432_v11  ;;  %5063 = vadd.xlane.f32.xlu0 %v5062_v1  ;;  %5547 = vmatprep.mubr.bf16.mxu1 %v5182_v27  ;;  %v5065_v55 = vadd.f32 %v4977_v30, %v4976_v29 }
 0x78e   :  { %5548 = vmatmul.mubr.bf16.gmra.mrb[240].mxu1 %v5181_v28 }
 0x78f   :  { %6337 = vmatprep.mubr.bf16.mxu0 %v5589_v2  ;;  %5066 = vadd.xlane.f32.xlu1 %v5065_v55 }
 0x790   :  { %v5439_v19 = vpop.f32.mrb[196].mxu1  ;;  %6338 = vmatmul.mubr.bf16.vlgmr.msra.gmra.mrb[0].mxu0 %v5588_v50 }
 0x791   :  { %v5441_v26 = vpop.f32.mrb[197].mxu1  ;;  %v5440_v49 = vadd.f32 %v5439_v19, %v11899_v18 }
 0x792   :  { %v5443_v3 = vpop.f32.mrb[198].mxu1  ;;  %v5442_v5 = vadd.f32 %v5441_v26, %v11903_v58 }
 0x793   :  { %v5444_v24 = vadd.f32 %v5443_v3, %v11899_v18  ;;  %v5445_v15 = vpop.f32.mrb[199].mxu1 }
 0x794   :  { %v5446_v7 = vadd.f32 %v5445_v15, %v11903_v58 }
 0x795   :  { %v5590_v25 = vpack.c.bf16 %v5444_v24, %v5440_v49  ;;  %v5022_v41 = vpop.xlane.xlu0 %5021 }
 0x796   :  { %v5591_v32 = vpack.c.bf16 %v5446_v7, %v5442_v5  ;;  %v5103_v29 = vadd.f32 %v11816_v42, %v5022_v41  ;;  %v4821_v28 = vpop.f32.mrb[244].mxu0 }
 0x797   :  { %v4822_v11 = vadd.f32 %v4821_v28, %v11613_v46  ;;  %v4823_v51 = vpop.f32.mrb[245].mxu0  ;;  %v5025_v16 = vpop.xlane.xlu1 %5024 }
 0x798   :  { %v5135_v30 = vand.u32 2147483647, %v5103_v29  ;;  %v4824_v27 = vadd.f32 %v4823_v51, %v11621_v48  ;;  %v5104_v10 = vadd.f32 %v11816_v42, %v5025_v16  ;;  %v4825_v1 = vpop.f32.mrb[246].mxu0  ;;  %6345 = vmatprep.mubr.bf16.mxu0 %v5591_v32 }
 0x799   :  { %v4902_v50 = vmax.f32 %v4822_v11, 0.0  ;;  %v4826_v2 = vadd.f32 %v4825_v1, %v11613_v46  ;;  %v4827_v55 = vpop.f32.mrb[247].mxu0  ;;  %6346 = vmatmul.mubr.bf16.gmra.mrb[4].mxu0 %v5590_v25 }
 0x79a   :  { %7021 = vst.msk [vmem:[%s12460_s13 + $0x50] sm:$0xff] %vm7010_vm0, %v5135_v30  ;;  %v4903_v19 = vmax.f32 %v4824_v27, 0.0  ;;  %v5136_v26 = vand.u32 2147483647, %v5104_v10  ;;  %v4828_v3 = vadd.f32 %v4827_v55, %v11621_v48 }
 0x79b   :  { %v4978_v49 = vmul.f32 %v11618_v60, %v4902_v50  ;;  %v4904_v24 = vmax.f32 %v4826_v2, 0.0 }
 0x79c   :  { %v4979_v15 = vmul.f32 %v11626_v53, %v4903_v19  ;;  %7022 = vst.msk [vmem:[%s12460_s13 + $0x58] sm:$0xff] %vm7010_vm0, %v5136_v26  ;;  %v4905_v5 = vmax.f32 %v4828_v3, 0.0 }
 0x79d   :  { %v4980_v7 = vmul.f32 %v11618_v60, %v4904_v24  ;;  %v5183_v25 = vpack.c.bf16 %v4904_v24, %v4902_v50 }
 0x79e   :  { %v4981_v41 = vmul.f32 %v11626_v53, %v4905_v5  ;;  %v5184_v32 = vpack.c.bf16 %v4905_v5, %v4903_v19  ;;  %v5068_v29 = vadd.f32 %v4979_v15, %v4978_v49 }
 0x7a0   :  { %5069 = vadd.xlane.f32.xlu0 %v5068_v29  ;;  %5557 = vmatprep.mubr.bf16.mxu1 %v5184_v32  ;;  %v5071_v28 = vadd.f32 %v4981_v41, %v4980_v7 }
 0x7a1   :  { %5558 = vmatmul.mubr.bf16.gmra.mrb[244].mxu1 %v5183_v25 }
 0x7a2   :  { %5072 = vadd.xlane.f32.xlu1 %v5071_v28 }
 0x7a3   :  { %v5449_v11 = vpop.f32.mrb[200].mxu1 }
 0x7a4   :  { %v5451_v51 = vpop.f32.mrb[201].mxu1  ;;  %v5450_v30 = vadd.f32 %v5449_v11, %v11899_v18 }
 0x7a5   :  { %v5453_v16 = vpop.f32.mrb[202].mxu1  ;;  %v5452_v1 = vadd.f32 %v5451_v51, %v11903_v58 }
 0x7a6   :  { %v5454_v27 = vadd.f32 %v5453_v16, %v11899_v18  ;;  %v5455_v10 = vpop.f32.mrb[203].mxu1 }
 0x7a7   :  { %v5456_v50 = vadd.f32 %v5455_v10, %v11903_v58 }
 0x7a8   :  { %v5592_v2 = vpack.c.bf16 %v5454_v27, %v5450_v30  ;;  %v5028_v55 = vpop.xlane.xlu0 %5027 }
 0x7a9   :  { %v5593_v19 = vpack.c.bf16 %v5456_v50, %v5452_v1  ;;  %v5105_v26 = vadd.f32 %v11816_v42, %v5028_v55  ;;  %v4831_v3 = vpop.f32.mrb[248].mxu0 }
 0x7aa   :  { %v4832_v49 = vadd.f32 %v4831_v3, %v11613_v46  ;;  %v4833_v24 = vpop.f32.mrb[249].mxu0  ;;  %v5031_v15 = vpop.xlane.xlu1 %5030 }
 0x7ab   :  { %v5137_v5 = vand.u32 2147483647, %v5105_v26  ;;  %v4834_v7 = vadd.f32 %v4833_v24, %v11621_v48  ;;  %v5106_v25 = vadd.f32 %v11816_v42, %v5031_v15  ;;  %v4835_v41 = vpop.f32.mrb[250].mxu0  ;;  %6353 = vmatprep.mubr.bf16.mxu0 %v5593_v19 }
 0x7ac   :  { %v4906_v32 = vmax.f32 %v4832_v49, 0.0  ;;  %v4836_v29 = vadd.f32 %v4835_v41, %v11613_v46  ;;  %v4837_v28 = vpop.f32.mrb[251].mxu0  ;;  %6354 = vmatmul.mubr.bf16.gmra.mrb[8].mxu0 %v5592_v2 }
 0x7ad   :  { %7023 = vst.msk [vmem:[%s12460_s13 + $0x60] sm:$0xff] %vm7010_vm0, %v5137_v5  ;;  %v4907_v11 = vmax.f32 %v4834_v7, 0.0  ;;  %v5138_v51 = vand.u32 2147483647, %v5106_v25  ;;  %v4838_v16 = vadd.f32 %v4837_v28, %v11621_v48 }
 0x7ae   :  { %v4982_v30 = vmul.f32 %v11618_v60, %v4906_v32  ;;  %v4908_v27 = vmax.f32 %v4836_v29, 0.0 }
 0x7af   :  { %v4983_v10 = vmul.f32 %v11626_v53, %v4907_v11  ;;  %7024 = vst.msk [vmem:[%s12460_s13 + $0x68] sm:$0xff] %vm7010_vm0, %v5138_v51  ;;  %v4909_v1 = vmax.f32 %v4838_v16, 0.0 }
 0x7b0   :  { %v4984_v50 = vmul.f32 %v11618_v60, %v4908_v27  ;;  %v5185_v2 = vpack.c.bf16 %v4908_v27, %v4906_v32 }
 0x7b1   :  { %v4985_v55 = vmul.f32 %v11626_v53, %v4909_v1  ;;  %v5186_v19 = vpack.c.bf16 %v4909_v1, %v4907_v11  ;;  %v5074_v26 = vadd.f32 %v4983_v10, %v4982_v30 }
 0x7b3   :  { %5075 = vadd.xlane.f32.xlu0 %v5074_v26  ;;  %5567 = vmatprep.mubr.bf16.mxu1 %v5186_v19  ;;  %v5077_v3 = vadd.f32 %v4985_v55, %v4984_v50 }
 0x7b4   :  { %5568 = vmatmul.mubr.bf16.gmra.mrb[248].mxu1 %v5185_v2 }
 0x7b5   :  { %5078 = vadd.xlane.f32.xlu1 %v5077_v3 }
 0x7b6   :  { %v5459_v49 = vpop.f32.mrb[204].mxu1 }
 0x7b7   :  { %v5461_v24 = vpop.f32.mrb[205].mxu1  ;;  %v5460_v5 = vadd.f32 %v5459_v49, %v11899_v18 }
 0x7b8   :  { %v5463_v15 = vpop.f32.mrb[206].mxu1  ;;  %v5462_v41 = vadd.f32 %v5461_v24, %v11903_v58 }
 0x7b9   :  { %v5464_v7 = vadd.f32 %v5463_v15, %v11899_v18  ;;  %v5465_v25 = vpop.f32.mrb[207].mxu1 }
 0x7ba   :  { %v5466_v32 = vadd.f32 %v5465_v25, %v11903_v58 }
 0x7bb   :  { %v5594_v29 = vpack.c.bf16 %v5464_v7, %v5460_v5  ;;  %v5034_v28 = vpop.xlane.xlu0 %5033 }
 0x7bc   :  { %v5595_v11 = vpack.c.bf16 %v5466_v32, %v5462_v41  ;;  %v5107_v51 = vadd.f32 %v11816_v42, %v5034_v28  ;;  %v4841_v16 = vpop.f32.mrb[252].mxu0 }
 0x7bd   :  { %v4842_v30 = vadd.f32 %v4841_v16, %v11613_v46  ;;  %v4843_v27 = vpop.f32.mrb[253].mxu0  ;;  %v5037_v10 = vpop.xlane.xlu1 %5036 }
 0x7be   :  { %v5139_v1 = vand.u32 2147483647, %v5107_v51  ;;  %v4844_v50 = vadd.f32 %v4843_v27, %v11621_v48  ;;  %v5108_v2 = vadd.f32 %v11816_v42, %v5037_v10  ;;  %v4845_v55 = vpop.f32.mrb[254].mxu0  ;;  %6361 = vmatprep.mubr.bf16.mxu0 %v5595_v11 }
 0x7bf   :  { %v4910_v19 = vmax.f32 %v4842_v30, 0.0  ;;  %v4846_v26 = vadd.f32 %v4845_v55, %v11613_v46  ;;  %v4847_v3 = vpop.f32.mrb[255].mxu0  ;;  %6362 = vmatmul.mubr.bf16.gmra.mrb[12].mxu0 %v5594_v29 }
 0x7c0   :  { %7025 = vst.msk [vmem:[%s12460_s13 + $0x70] sm:$0xff] %vm7010_vm0, %v5139_v1  ;;  %v4911_v49 = vmax.f32 %v4844_v50, 0.0  ;;  %v5140_v24 = vand.u32 2147483647, %v5108_v2  ;;  %v4848_v15 = vadd.f32 %v4847_v3, %v11621_v48 }
 0x7c1   :  { %v4986_v5 = vmul.f32 %v11618_v60, %v4910_v19  ;;  %v4912_v7 = vmax.f32 %v4846_v26, 0.0 }
 0x7c2   :  { %v4987_v25 = vmul.f32 %v11626_v53, %v4911_v49  ;;  %7026 = vst.msk [vmem:[%s12460_s13 + $0x78] sm:$0xff] %vm7010_vm0, %v5140_v24  ;;  %v4913_v46 = vmax.f32 %v4848_v15, 0.0  ;;  %v8476_v15 = vld [vmem:[%s12451_s0 + $0xf0] sm:$0xff] }
 0x7c3   :  { %v4988_v41 = vmul.f32 %v11618_v60, %v4912_v7  ;;  %v5187_v32 = vpack.c.bf16 %v4912_v7, %v4910_v19  ;;  %v8477_v7 = vld [vmem:[%s12451_s0 + $0xf8] sm:$0xff] }
 0x7c4   :  { %v4989_v29 = vmul.f32 %v11626_v53, %v4913_v46  ;;  %v5188_v28 = vpack.c.bf16 %v4913_v46, %v4911_v49  ;;  %v5080_v11 = vadd.f32 %v4987_v25, %v4986_v5 }
 0x7c6   :  { %5577 = vmatprep.mubr.bf16.mxu1 %v5188_v28  ;;  %5081 = vadd.xlane.f32.xlu0 %v5080_v11  ;;  %v5083_v48 = vadd.f32 %v4989_v29, %v4988_v41 }
 0x7c7   :  { %5578 = vmatmul.mubr.bf16.gmra.mrb[252].mxu1 %v5187_v32 }
 0x7c8   :  { %5084 = vadd.xlane.f32.xlu1 %v5083_v48 }
 0x7c9   :  { %v5469_v51 = vpop.f32.mrb[208].mxu1 }
 0x7ca   :  { %v5471_v16 = vpop.f32.mrb[209].mxu1  ;;  %v5470_v27 = vadd.f32 %v5469_v51, %v11899_v18 }
 0x7cb   :  { %v5473_v30 = vpop.f32.mrb[210].mxu1  ;;  %v5472_v60 = vadd.f32 %v5471_v16, %v11903_v58 }
 0x7cc   :  { %v5474_v10 = vadd.f32 %v5473_v30, %v11899_v18  ;;  %v5475_v1 = vpop.f32.mrb[211].mxu1 }
 0x7cd   :  { %v5476_v50 = vadd.f32 %v5475_v1, %v11903_v58 }
 0x7ce   :  { %v5596_v53 = vpack.c.bf16 %v5474_v10, %v5470_v27  ;;  %v5040_v2 = vpop.xlane.xlu0 %5039 }
 0x7cf   :  { %v5597_v55 = vpack.c.bf16 %v5476_v50, %v5472_v60  ;;  %v5109_v19 = vadd.f32 %v11816_v42, %v5040_v2  ;;  %v5798_v50 = vmul.f32 %v11145_v12, %v11448_v4  ;;  %v6158_v2 = vmul.f32 %v11244_v21, %v11470_v45 }
 0x7d0   :  { %v5043_v26 = vpop.xlane.xlu1 %5042  ;;  %v5963_v4 = vmul.f32 %v11159_v61, %v11531_v44 }
 0x7d1   :  { %v5141_v3 = vand.u32 2147483647, %v5109_v19  ;;  %v5110_v49 = vadd.f32 %v11816_v42, %v5043_v26  ;;  %6369 = vmatprep.mubr.bf16.mxu0 %v5597_v55 }
 0x7d2   :  { %6370 = vmatmul.mubr.bf16.gmra.mrb[16].mxu0 %v5596_v53  ;;  %v5962_v53 = vmul.f32 %v11159_v61, %v11529_v36 }
 0x7d3   :  { %7027 = vst.msk [vmem:[%s12460_s13 + $0x80] sm:$0xff] %vm7010_vm0, %v5141_v3  ;;  %v5142_v24 = vand.u32 2147483647, %v5110_v49  ;;  %v5799_v49 = vmul.f32 %v11145_v12, %v11454_v9 }
 0x7d4   :  { %v5994_v55 = vadd.f32 %v5962_v53, %v5798_v50 }
 0x7d5   :  { %7028 = vst.msk [vmem:[%s12460_s13 + $0x88] sm:$0xff] %vm7010_vm0, %v5142_v24 }
 0x7d6   :  { %v12028_v26 = vadd.f32 %v6158_v2, %v5994_v55 }
 0x7d9   :  { %6134 = vperm.xlu1 %7900, %v8476_v15  }
 0x7dc   :  { %v5479_v5 = vpop.f32.mrb[212].mxu1  ;;  %6138 = vperm.xlu0 %7898, %v8477_v7  }
 0x7dd   :  { %v5481_v25 = vpop.f32.mrb[213].mxu1  ;;  %v5480_v41 = vadd.f32 %v5479_v5, %v11899_v18 }
 0x7de   :  { %v5483_v46 = vpop.f32.mrb[214].mxu1  ;;  %v5482_v28 = vadd.f32 %v5481_v25, %v11903_v58 }
 0x7df   :  { %v5484_v32 = vadd.f32 %v5483_v46, %v11899_v18  ;;  %v5485_v29 = vpop.f32.mrb[215].mxu1 }
 0x7e0   :  { %v5486_v11 = vadd.f32 %v5485_v29, %v11903_v58 }
 0x7e1   :  { %v5598_v48 = vpack.c.bf16 %v5484_v32, %v5480_v41  ;;  %v5046_v51 = vpop.xlane.xlu0 %5045  ;;  %v6159_v41 = vmul.f32 %v11244_v21, %v11475_v57  ;;  %v5995_v32 = vadd.f32 %v5963_v4, %v5799_v49 }
 0x7e2   :  { %v5599_v16 = vpack.c.bf16 %v5486_v11, %v5482_v28  ;;  %v5111_v30 = vadd.f32 %v11816_v42, %v5046_v51 }
 0x7e3   :  { %v5049_v27 = vpop.xlane.xlu1 %5048  ;;  %v12046_v51 = vadd.f32 %v6159_v41, %v5995_v32 }
 0x7e4   :  { %v5143_v10 = vand.u32 2147483647, %v5111_v30  ;;  %v5112_v1 = vadd.f32 %v11816_v42, %v5049_v27  ;;  %6377 = vmatprep.mubr.bf16.mxu0 %v5599_v16 }
 0x7e5   :  { %6378 = vmatmul.mubr.bf16.gmra.mrb[20].mxu0 %v5598_v48 }
 0x7e6   :  { %7029 = vst.msk [vmem:[%s12460_s13 + $0x90] sm:$0xff] %vm7010_vm0, %v5143_v10  ;;  %v5144_v60 = vand.u32 2147483647, %v5112_v1 }
 0x7e8   :  { %7030 = vst.msk [vmem:[%s12460_s13 + $0x98] sm:$0xff] %vm7010_vm0, %v5144_v60 }
 0x7ef   :  { %v5489_v19 = vpop.f32.mrb[216].mxu1 }
 0x7f0   :  { %v5491_v3 = vpop.f32.mrb[217].mxu1  ;;  %v5490_v24 = vadd.f32 %v5489_v19, %v11899_v18 }
 0x7f1   :  { %v5493_v36 = vpop.f32.mrb[218].mxu1  ;;  %v5492_v7 = vadd.f32 %v5491_v3, %v11903_v58 }
 0x7f2   :  { %v5494_v15 = vadd.f32 %v5493_v36, %v11899_v18  ;;  %v5495_v5 = vpop.f32.mrb[219].mxu1 }
 0x7f3   :  { %v5496_v45 = vadd.f32 %v5495_v5, %v11903_v58 }
 0x7f4   :  { %v5600_v25 = vpack.c.bf16 %v5494_v15, %v5490_v24  ;;  %v5052_v46 = vpop.xlane.xlu0 %5051  ;;  %v6163_v24 = vmul.f32 %v11244_v21, %v11502_v13  ;;  %v12071_v15 = vld [vmem:[%s12461_s10] sm:$0xff]  }
 0x7f5   :  { %v5601_v9 = vpack.c.bf16 %v5496_v45, %v5492_v7  ;;  %v5113_v29 = vadd.f32 %v11816_v42, %v5052_v46  ;;  %7734 = vmatprep.subr.bf16.mxu1 %v12071_v15 }
 0x7f6   :  { %v5055_v44 = vpop.xlane.xlu1 %5054  ;;  %v12075_v5 = vadd.f32 %v6163_v24, %v11545_v14 }
 0x7f7   :  { %v5145_v28 = vand.u32 2147483647, %v5113_v29  ;;  %v5114_v11 = vadd.f32 %v11816_v42, %v5055_v44  ;;  %6385 = vmatprep.mubr.bf16.mxu0 %v5601_v9 }
 0x7f8   :  { %6386 = vmatmul.mubr.bf16.gmra.mrb[24].mxu0 %v5600_v25 }
 0x7f9   :  { %7031 = vst.msk [vmem:[%s12460_s13 + $0xa0] sm:$0xff] %vm7010_vm0, %v5145_v28  ;;  %v5146_v48 = vand.u32 2147483647, %v5114_v11 }
 0x7fb   :  { %7032 = vst.msk [vmem:[%s12460_s13 + $0xa8] sm:$0xff] %vm7010_vm0, %v5146_v48 }
 0x802   :  { %v5499_v57 = vpop.f32.mrb[220].mxu1 }
 0x803   :  { %v5501_v16 = vpop.f32.mrb[221].mxu1  ;;  %v5500_v27 = vadd.f32 %v5499_v57, %v11899_v18 }
 0x804   :  { %v5503_v30 = vpop.f32.mrb[222].mxu1  ;;  %v5502_v60 = vadd.f32 %v5501_v16, %v11903_v58 }
 0x805   :  { %v5504_v10 = vadd.f32 %v5503_v30, %v11899_v18  ;;  %v5505_v1 = vpop.f32.mrb[223].mxu1 }
 0x806   :  { %v5506_v50 = vadd.f32 %v5505_v1, %v11903_v58 }
 0x807   :  { %v5602_v53 = vpack.c.bf16 %v5504_v10, %v5500_v27  ;;  %v5058_v2 = vpop.xlane.xlu0 %5057 }
 0x808   :  { %v5603_v55 = vpack.c.bf16 %v5506_v50, %v5502_v60  ;;  %v5115_v19 = vadd.f32 %v11816_v42, %v5058_v2 }
 0x809   :  { %v5061_v3 = vpop.xlane.xlu1 %5060 }
 0x80a   :  { %v5147_v49 = vand.u32 2147483647, %v5115_v19  ;;  %v5116_v4 = vadd.f32 %v11816_v42, %v5061_v3  ;;  %6393 = vmatprep.mubr.bf16.mxu0 %v5603_v55 }
 0x80b   :  { %6394 = vmatmul.mubr.bf16.gmra.mrb[28].mxu0 %v5602_v53 }
 0x80c   :  { %7033 = vst.msk [vmem:[%s12460_s13 + $0xb0] sm:$0xff] %vm7010_vm0, %v5147_v49  ;;  %v5148_v36 = vand.u32 2147483647, %v5116_v4 }
 0x80e   :  { %7034 = vst.msk [vmem:[%s12460_s13 + $0xb8] sm:$0xff] %vm7010_vm0, %v5148_v36 }
 0x815   :  { %v5509_v7 = vpop.f32.mrb[224].mxu1 }
 0x816   :  { %v5511_v45 = vpop.f32.mrb[225].mxu1  ;;  %v5510_v13 = vadd.f32 %v5509_v7, %v11899_v18  ;;  %v6166_v7 = vmul.f32 %v11244_v21, %v11547_v52 }
 0x817   :  { %v5513_v25 = vpop.f32.mrb[226].mxu1  ;;  %v5512_v32 = vadd.f32 %v5511_v45, %v11903_v58 }
 0x818   :  { %v5514_v46 = vadd.f32 %v5513_v25, %v11899_v18  ;;  %v5515_v41 = vpop.f32.mrb[227].mxu1  ;;  %v12108_v25 = vadd.f32 %v6166_v7, %v11551_v22 }
 0x819   :  { %v5516_v9 = vadd.f32 %v5515_v41, %v11903_v58 }
 0x81a   :  { %v5604_v29 = vpack.c.bf16 %v5514_v46, %v5510_v13  ;;  %v5064_v44 = vpop.xlane.xlu0 %5063  ;;  %v6167_v13 = vmul.f32 %v11244_v21, %v11553_v33 }
 0x81b   :  { %v5605_v28 = vpack.c.bf16 %v5516_v9, %v5512_v32  ;;  %v5117_v11 = vadd.f32 %v11816_v42, %v5064_v44 }
 0x81c   :  { %v5067_v48 = vpop.xlane.xlu1 %5066 }
 0x81d   :  { %v5149_v14 = vand.u32 2147483647, %v5117_v11  ;;  %v5118_v57 = vadd.f32 %v11816_v42, %v5067_v48  ;;  %6401 = vmatprep.mubr.bf16.mxu0 %v5605_v28  ;;  %v12117_v11 = vadd.f32 %v6167_v13, %v11558_v59 }
 0x81e   :  { %6402 = vmatmul.mubr.bf16.gmra.mrb[32].mxu0 %v5604_v29 }
 0x81f   :  { %7035 = vst.msk [vmem:[%s12460_s13 + $0xc0] sm:$0xff] %vm7010_vm0, %v5149_v14  ;;  %v5150_v16 = vand.u32 2147483647, %v5118_v57 }
 0x821   :  { %7036 = vst.msk [vmem:[%s12460_s13 + $0xc8] sm:$0xff] %vm7010_vm0, %v5150_v16 }
 0x828   :  { %v5519_v30 = vpop.f32.mrb[228].mxu1 }
 0x829   :  { %v5521_v27 = vpop.f32.mrb[229].mxu1  ;;  %v5520_v1 = vadd.f32 %v5519_v30, %v11899_v18 }
 0x82a   :  { %v5523_v10 = vpop.f32.mrb[230].mxu1  ;;  %v5522_v53 = vadd.f32 %v5521_v27, %v11903_v58 }
 0x82b   :  { %v5524_v60 = vadd.f32 %v5523_v10, %v11899_v18  ;;  %v5525_v50 = vpop.f32.mrb[231].mxu1 }
 0x82c   :  { %v5526_v2 = vadd.f32 %v5525_v50, %v11903_v58 }
 0x82d   :  { %v5606_v55 = vpack.c.bf16 %v5524_v60, %v5520_v1  ;;  %v5070_v19 = vpop.xlane.xlu0 %5069 }
 0x82e   :  { %v5607_v3 = vpack.c.bf16 %v5526_v2, %v5522_v53  ;;  %v5119_v49 = vadd.f32 %v11816_v42, %v5070_v19 }
 0x82f   :  { %v5073_v4 = vpop.xlane.xlu1 %5072 }
 0x830   :  { %v5151_v36 = vand.u32 2147483647, %v5119_v49  ;;  %v5120_v24 = vadd.f32 %v11816_v42, %v5073_v4  ;;  %6409 = vmatprep.mubr.bf16.mxu0 %v5607_v3 }
 0x831   :  { %6410 = vmatmul.mubr.bf16.gmra.mrb[36].mxu0 %v5606_v55 }
 0x832   :  { %7037 = vst.msk [vmem:[%s12460_s13 + $0xd0] sm:$0xff] %vm7010_vm0, %v5151_v36  ;;  %v5152_v45 = vand.u32 2147483647, %v5120_v24 }
 0x834   :  { %7038 = vst.msk [vmem:[%s12460_s13 + $0xd8] sm:$0xff] %vm7010_vm0, %v5152_v45 }
 0x83b   :  { %v5529_v46 = vpop.f32.mrb[232].mxu1 }
 0x83c   :  { %v5531_v52 = vpop.f32.mrb[233].mxu1  ;;  %v5530_v32 = vadd.f32 %v5529_v46, %v11899_v18 }
 0x83d   :  { %v5533_v41 = vpop.f32.mrb[234].mxu1  ;;  %v5532_v44 = vadd.f32 %v5531_v52, %v11903_v58 }
 0x83e   :  { %v5534_v9 = vadd.f32 %v5533_v41, %v11899_v18  ;;  %v5535_v29 = vpop.f32.mrb[235].mxu1 }
 0x83f   :  { %v5536_v28 = vadd.f32 %v5535_v29, %v11903_v58 }
 0x840   :  { %v5608_v22 = vpack.c.bf16 %v5534_v9, %v5530_v32  ;;  %v5076_v48 = vpop.xlane.xlu0 %5075 }
 0x841   :  { %v5609_v14 = vpack.c.bf16 %v5536_v28, %v5532_v44  ;;  %v5121_v33 = vadd.f32 %v11816_v42, %v5076_v48 }
 0x842   :  { %v5079_v57 = vpop.xlane.xlu1 %5078 }
 0x843   :  { %v5153_v16 = vand.u32 2147483647, %v5121_v33  ;;  %v5122_v30 = vadd.f32 %v11816_v42, %v5079_v57  ;;  %6417 = vmatprep.mubr.bf16.mxu0 %v5609_v14  ;;  %v12150_v33 = vld [vmem:[%s12462_s9] ss:$0 sm:$0xff] }
 0x844   :  { %6418 = vmatmul.mubr.bf16.gmra.mrb[40].mxu0 %v5608_v22 }
 0x845   :  { %7039 = vst.msk [vmem:[%s12460_s13 + $0xe0] sm:$0xff] %vm7010_vm0, %v5153_v16  ;;  %v5154_v27 = vand.u32 2147483647, %v5122_v30 }
 0x847   :  { %7040 = vst.msk [vmem:[%s12460_s13 + $0xe8] sm:$0xff] %vm7010_vm0, %v5154_v27 }
 0x84e   :  { %v5539_v59 = vpop.f32.mrb[236].mxu1 }
 0x84f   :  { %v5541_v10 = vpop.f32.mrb[237].mxu1  ;;  %v5540_v60 = vadd.f32 %v5539_v59, %v11899_v18  ;;  %v8302_v59 = vld [vmem:[%s12461_s10 + $0x8] sm:$0xff]  }
 0x850   :  { %v5543_v1 = vpop.f32.mrb[238].mxu1  ;;  %v5542_v2 = vadd.f32 %v5541_v10, %v11903_v58 }
 0x851   :  { %v5544_v50 = vadd.f32 %v5543_v1, %v11899_v18  ;;  %v5545_v53 = vpop.f32.mrb[239].mxu1 }
 0x852   :  { %v5546_v55 = vadd.f32 %v5545_v53, %v11903_v58 }
 0x853   :  { %v5610_v19 = vpack.c.bf16 %v5544_v50, %v5540_v60  ;;  %v5082_v3 = vpop.xlane.xlu0 %5081 }
 0x854   :  { %v5611_v49 = vpack.c.bf16 %v5546_v55, %v5542_v2  ;;  %v5123_v4 = vadd.f32 %v11816_v42, %v5082_v3 }
 0x855   :  { %v5085_v36 = vpop.xlane.xlu1 %5084 }
 0x856   :  { %v5155_v24 = vand.u32 2147483647, %v5123_v4  ;;  %v5124_v7 = vadd.f32 %v11816_v42, %v5085_v36  ;;  %6425 = vmatprep.mubr.bf16.mxu0 %v5611_v49 }
 0x857   :  { %6426 = vmatmul.mubr.bf16.gmra.mrb[44].mxu0 %v5610_v19 }
 0x858   :  { %7041 = vst.msk [vmem:[%s12460_s13 + $0xf0] sm:$0xff] %vm7010_vm0, %v5155_v24  ;;  %v5156_v45 = vand.u32 2147483647, %v5124_v7 }
 0x85a   :  { %7042 = vst.msk [vmem:[%s12460_s13 + $0xf8] sm:$0xff] %vm7010_vm0, %v5156_v45 }
 0x861   :  { %v5549_v13 = vpop.f32.mrb[240].mxu1 }
 0x862   :  { %v5551_v46 = vpop.f32.mrb[241].mxu1  ;;  %v5550_v32 = vadd.f32 %v5549_v13, %v11899_v18 }
 0x863   :  { %v5553_v52 = vpop.f32.mrb[242].mxu1  ;;  %v7614_v41 = vpop.f32.mrb[0].mxu0  ;;  %v5552_v44 = vadd.f32 %v5551_v46, %v11903_v58  ;;  %v8305_v46 = vld [vmem:[%s12461_s10 + $0x20] sm:$0xff]  }
 0x864   :  { %v5554_v42 = vadd.f32 %v5553_v52, %v11899_v18  ;;  %v5555_v9 = vpop.f32.mrb[243].mxu1  ;;  %v7615_v29 = vpop.f32.mrb[1].mxu0 }
 0x865   :  { %v5556_v28 = vadd.f32 %v5555_v9, %v11903_v58  ;;  %v7616_v22 = vadd.f32 %v7615_v29, %v7614_v41  ;;  %v7617_v48 = vpop.f32.mrb[2].mxu0 }
 0x866   :  { %v5612_v14 = vpack.c.bf16 %v5554_v42, %v5550_v32  ;;  %v7618_v57 = vpop.f32.mrb[3].mxu0 }
 0x867   :  { %v5613_v16 = vpack.c.bf16 %v5556_v28, %v5552_v44  ;;  %v6340_v30 = vadd.f32 %v7616_v22, %v11889_v43  ;;  %v7619_v27 = vadd.f32 %v7618_v57, %v7617_v48  ;;  %v8303_v43 = vld [vmem:[%s12461_s10 + $0x10] sm:$0xff]   ;;  %v8306_v22 = vld [vmem:[%s12461_s10 + $0x28] sm:$0xff]  }
 0x868   :  { %v8307_v57 = vld [vmem:[%s12461_s10 + $0x30] sm:$0xff]  }
 0x869   :  { %v6473_v10 = vadd.f32 %v12150_v33, %v6340_v30  ;;  %v6343_v1 = vadd.f32 %v7619_v27, %v11581_v62  ;;  %6433 = vmatprep.mubr.bf16.mxu1 %v5613_v16  ;;  %v6150_v16 = vmul.f32 %v11244_v21, %v11358_v34 }
 0x86a   :  { %6434 = vmatmul.mubr.bf16.vlgmr.msra.gmra.mrb[0].mxu1 %v5612_v14 }
 0x86b   :  { %v6474_v60 = vadd.f32 %v12150_v33, %v6343_v1  ;;  %7735 = vmatpush3.bf16.msra.mxu1 %v12071_v15  ;;  %v6505_v53 = vmax.f32 %v6473_v10, 0.0  ;;  %v8304_v15 = vld [vmem:[%s12461_s10 + $0x18] sm:$0xff]  }
 0x86c   :  { %v7620_v50 = vpop.f32.mrb[4].mxu0  ;;  %7736 = vmatprep.subr.bf16.mxu1 %v8302_v59 }
 0x86d   :  { %v6506_v2 = vmax.f32 %v6474_v60, 0.0  ;;  %v7621_v55 = vpop.f32.mrb[5].mxu0 }
 0x86e   :  { %v7622_v19 = vadd.f32 %v7621_v55, %v7620_v50  ;;  %v7623_v3 = vpop.f32.mrb[6].mxu0 }
 0x86f   :  { %v7624_v49 = vpop.f32.mrb[7].mxu0  ;;  %7737 = vmatpush3.bf16.msra.mxu1 %v8302_v59  ;;  %v12163_v62 = vpack.c.bf16 %v6506_v2, %v6505_v53  ;;  %v8308_v59 = vld [vmem:[%s12461_s10 + $0x38] sm:$0xff]  }
 0x870   :  { %v6348_v4 = vadd.f32 %v7622_v19, %v11250_v38  ;;  %v7625_v36 = vadd.f32 %v7624_v49, %v7623_v3  ;;  %7738 = vmatprep.subr.bf16.mxu1 %v8303_v43 }
 0x872   :  { %v6475_v24 = vadd.f32 %v12150_v33, %v6348_v4  ;;  %v6351_v7 = vadd.f32 %v7625_v36, %v11276_v63 }
 0x873   :  { %7739 = vmatpush3.bf16.msra.mxu1 %v8303_v43  ;;  %v12772_v43 = vld [vmem:[#allocation18_spill] sm:$0xff] }
 0x874   :  { %v6476_v45 = vadd.f32 %v12150_v33, %v6351_v7  ;;  %v5559_v13 = vpop.f32.mrb[244].mxu1  ;;  %7740 = vmatprep.subr.bf16.mxu1 %v8304_v15  ;;  %v6507_v52 = vmax.f32 %v6475_v24, 0.0  ;;  %v6182_v53 = vadd.f32 %v6150_v16, %v12772_v43 }
 0x875   :  { %v5561_v38 = vpop.f32.mrb[245].mxu1  ;;  %v5560_v42 = vadd.f32 %v5559_v13, %v11899_v18 }
 0x876   :  { %v6508_v41 = vmax.f32 %v6476_v45, 0.0  ;;  %v5563_v32 = vpop.f32.mrb[246].mxu1  ;;  %v5562_v44 = vadd.f32 %v5561_v38, %v11903_v58  ;;  %v12773_v38 = vld [vmem:[#allocation6_spill] sm:$0xff] }
 0x877   :  { %v5564_v9 = vadd.f32 %v5563_v32, %v11899_v18  ;;  %v5565_v29 = vpop.f32.mrb[247].mxu1  ;;  %7741 = vmatpush3.bf16.msra.mxu1 %v8304_v15 }
 0x878   :  { %v12177_v63 = vpack.c.bf16 %v6508_v41, %v6507_v52  ;;  %v5566_v28 = vadd.f32 %v5565_v29, %v11903_v58  ;;  %7742 = vmatprep.subr.bf16.mxu1 %v8305_v46  ;;  %v5791_v52 = vmul.f32 %v11145_v12, %v12773_v38  ;;  %v12774_v41 = vld [vmem:[#allocation7_spill] sm:$0xff]  ;;  %v12775_v29 = vld [vmem:[#allocation8_spill] sm:$0xff] }
 0x879   :  { %v5614_v48 = vpack.c.bf16 %v5564_v9, %v5560_v42  ;;  %v5955_v32 = vmul.f32 %v11159_v61, %v12774_v41  ;;  %v12779_v41 = vld [vmem:[#allocation3_spill] sm:$0xff] }
 0x87a   :  { %v5615_v14 = vpack.c.bf16 %v5566_v28, %v5562_v44  ;;  %v5792_v44 = vmul.f32 %v11145_v12, %v12775_v29  ;;  %v12776_v28 = vld [vmem:[#allocation11_spill] sm:$0xff] }
 0x87b   :  { %7743 = vmatpush3.bf16.msra.mxu1 %v8305_v46 }
 0x87c   :  { %6441 = vmatprep.mubr.bf16.mxu1 %v5615_v14  ;;  %7744 = vmatprep.subr.bf16.mxu1 %v8306_v22 }
 0x87d   :  { %6442 = vmatmul.mubr.bf16.gmra.mrb[4].mxu1 %v5614_v48  ;;  %v12777_v48 = vld [vmem:[#allocation9_spill] sm:$0xff] }
 0x87e   :  { %v6151_v14 = vmul.f32 %v11244_v21, %v12777_v48 }
 0x87f   :  { %v7626_v30 = vpop.f32.mrb[8].mxu0  ;;  %7745 = vmatpush3.bf16.msra.mxu1 %v8306_v22  ;;  %v5956_v22 = vmul.f32 %v11159_v61, %v12776_v28 }
 0x880   :  { %v7627_v27 = vpop.f32.mrb[9].mxu0  ;;  %7746 = vmatprep.subr.bf16.mxu1 %v8307_v57 }
 0x881   :  { %v7628_v10 = vadd.f32 %v7627_v27, %v7626_v30  ;;  %v7629_v1 = vpop.f32.mrb[10].mxu0  ;;  %v5988_v16 = vadd.f32 %v5956_v22, %v5792_v44  ;;  %v12778_v30 = vld [vmem:[#allocation20_spill] sm:$0xff]  ;;  %v12781_v22 = vld [vmem:[#allocation14_spill] sm:$0xff] }
 0x882   :  { %v7630_v60 = vpop.f32.mrb[11].mxu0  ;;  %v6152_v27 = vmul.f32 %v11244_v21, %v12778_v30  ;;  %v6153_v48 = vmul.f32 %v11244_v21, %v12781_v22 }
 0x883   :  { %v6356_v50 = vadd.f32 %v7628_v10, %v11590_v54  ;;  %v7631_v2 = vadd.f32 %v7630_v60, %v7629_v1  ;;  %7747 = vmatpush3.bf16.msra.mxu1 %v8307_v57  ;;  %v5987_v57 = vadd.f32 %v5955_v32, %v5791_v52  ;;  %v5793_v32 = vmul.f32 %v11145_v12, %v12779_v41 }
 0x884   :  { %7748 = vmatprep.subr.bf16.mxu1 %v8308_v59 }
 0x885   :  { %v6477_v34 = vadd.f32 %v12150_v33, %v6356_v50  ;;  %v6359_v55 = vadd.f32 %v7631_v2, %v6182_v53  ;;  %v6183_v1 = vadd.f32 %v6151_v14, %v5987_v57  ;;  %v6184_v53 = vadd.f32 %v6152_v27, %v5988_v16 }
 0x887   :  { %v6478_v19 = vadd.f32 %v12150_v33, %v6359_v55  ;;  %v5569_v3 = vpop.f32.mrb[248].mxu1  ;;  %7749 = vmatpush3.bf16.msra.mxu1 %v8308_v59  ;;  %v6509_v4 = vmax.f32 %v6477_v34, 0.0 }
 0x888   :  { %v5571_v49 = vpop.f32.mrb[249].mxu1  ;;  %v5570_v24 = vadd.f32 %v5569_v3, %v11899_v18 }
 0x889   :  { %v6510_v36 = vmax.f32 %v6478_v19, 0.0  ;;  %v5573_v15 = vpop.f32.mrb[250].mxu1  ;;  %v5572_v45 = vadd.f32 %v5571_v49, %v11903_v58 }
 0x88a   :  { %v5574_v54 = vadd.f32 %v5573_v15, %v11899_v18  ;;  %v5575_v7 = vpop.f32.mrb[251].mxu1 }
 0x88b   :  { %v5576_v13 = vadd.f32 %v5575_v7, %v11903_v58  ;;  %v6539_v46 = vpack.c.bf16 %v6510_v36, %v6509_v4 }
 0x88c   :  { %v5616_v42 = vpack.c.bf16 %v5574_v54, %v5570_v24 }
 0x88d   :  { %v5617_v9 = vpack.c.bf16 %v5576_v13, %v5572_v45 }
 0x88f   :  { %6449 = vmatprep.mubr.bf16.mxu1 %v5617_v9 }
 0x890   :  { %6450 = vmatmul.mubr.bf16.gmra.mrb[8].mxu1 %v5616_v42  ;;  %v12780_v42 = vld [vmem:[#allocation12_spill] sm:$0xff] }
 0x891   :  { %v5957_v9 = vmul.f32 %v11159_v61, %v12780_v42 }
 0x892   :  { %v7632_v59 = vpop.f32.mrb[12].mxu0 }
 0x893   :  { %v7633_v10 = vpop.f32.mrb[13].mxu0  ;;  %v5989_v28 = vadd.f32 %v5957_v9, %v5793_v32 }
 0x894   :  { %v7634_v60 = vadd.f32 %v7633_v10, %v7632_v59  ;;  %v7635_v50 = vpop.f32.mrb[14].mxu0 }
 0x895   :  { %v7636_v43 = vpop.f32.mrb[15].mxu0  ;;  %v6185_v57 = vadd.f32 %v6153_v48, %v5989_v28 }
 0x896   :  { %v6364_v2 = vadd.f32 %v7634_v60, %v6183_v1  ;;  %v7637_v34 = vadd.f32 %v7636_v43, %v7635_v50  ;;  %v12782_v1 = vld [vmem:[#allocation23_spill] sm:$0xff] }
 0x898   :  { %v6479_v55 = vadd.f32 %v12150_v33, %v6364_v2  ;;  %v6367_v19 = vadd.f32 %v7637_v34, %v6184_v53  ;;  %v12783_v2 = vld [vmem:[#allocation13_spill] sm:$0xff] }
 0x899   :  { %v5796_v34 = vmul.f32 %v11145_v12, %v12783_v2 }
 0x89a   :  { %v6480_v3 = vadd.f32 %v12150_v33, %v6367_v19  ;;  %v5579_v49 = vpop.f32.mrb[252].mxu1  ;;  %v6511_v36 = vmax.f32 %v6479_v55, 0.0  ;;  %v12784_v55 = vld [vmem:[#allocation4_spill] sm:$0xff] }
 0x89b   :  { %v5581_v4 = vpop.f32.mrb[253].mxu1  ;;  %v5580_v54 = vadd.f32 %v5579_v49, %v11899_v18  ;;  %v5960_v19 = vmul.f32 %v11159_v61, %v12784_v55 }
 0x89c   :  { %v6512_v15 = vmax.f32 %v6480_v3, 0.0  ;;  %v5583_v24 = vpop.f32.mrb[254].mxu1  ;;  %v5582_v38 = vadd.f32 %v5581_v4, %v11903_v58  ;;  %v12785_v3 = vld [vmem:[#allocation15_spill] sm:$0xff] }
 0x89d   :  { %v5584_v7 = vadd.f32 %v5583_v24, %v11899_v18  ;;  %v5585_v45 = vpop.f32.mrb[255].mxu1  ;;  %v6155_v49 = vmul.f32 %v11244_v21, %v12785_v3  ;;  %v5992_v4 = vadd.f32 %v5960_v19, %v5796_v34  ;;  %v12787_v24 = vld [vmem:[#allocation19_spill] sm:$0xff] }
 0x89e   :  { %v6540_v13 = vpack.c.bf16 %v6512_v15, %v6511_v36  ;;  %v5586_v52 = vadd.f32 %v5585_v45, %v11903_v58  ;;  %v12786_v36 = vld [vmem:[#allocation5_spill] sm:$0xff] }
 0x89f   :  { %v5618_v29 = vpack.c.bf16 %v5584_v7, %v5580_v54  ;;  %v6187_v54 = vadd.f32 %v6155_v49, %v12787_v24 }
 0x8a0   :  { %v5619_v44 = vpack.c.bf16 %v5586_v52, %v5582_v38 }
 0x8a2   :  { %6457 = vmatprep.mubr.bf16.mxu1 %v5619_v44 }
 0x8a3   :  { %6458 = vmatmul.mubr.bf16.gmra.mrb[12].mxu1 %v5618_v29 }
 0x8a4   :  { %7750 = vmatprep.mubr.bf16.mxu1 %v12163_v62 }
 0x8a5   :  { %v7638_v18 = vpop.f32.mrb[16].mxu0 }
 0x8a6   :  { %v7639_v14 = vpop.f32.mrb[17].mxu0 }
 0x8a7   :  { %v7640_v58 = vadd.f32 %v7639_v14, %v7638_v18  ;;  %v7641_v16 = vpop.f32.mrb[18].mxu0 }
 0x8a8   :  { %v7642_v30 = vpop.f32.mrb[19].mxu0 }
 0x8a9   :  { %v6372_v27 = vadd.f32 %v7640_v58, %v6185_v57  ;;  %v7643_v59 = vadd.f32 %v7642_v30, %v7641_v16 }
 0x8ab   :  { %v6481_v10 = vadd.f32 %v12150_v33, %v6372_v27  ;;  %v6375_v60 = vadd.f32 %v7643_v59, %v12782_v1  ;;  %7751 = vmatmul.mubr.bf16.vlgmr.msra.gmra.mrb[16].mxu1 %v12177_v63  ;;  %v6156_v63 = vmul.f32 %v11244_v21, %v12786_v36 }
 0x8ac   :  { %7754 = vmatprep.mubr.bf16.mxu1 %v6539_v46 }
 0x8ad   :  { %v6482_v50 = vadd.f32 %v12150_v33, %v6375_v60  ;;  %v6513_v43 = vmax.f32 %v6481_v10, 0.0  ;;  %v6188_v38 = vadd.f32 %v6156_v63, %v5992_v4 }
 0x8af   :  { %v6514_v53 = vmax.f32 %v6482_v50, 0.0 }
 0x8b1   :  { %v6541_v62 = vpack.c.bf16 %v6514_v53, %v6513_v43 }
 0x8b3   :  { %7755 = vmatmul.mubr.bf16.gmra.mrb[20].mxu1 %v6540_v13 }
 0x8b4   :  { %7758 = vmatprep.mubr.bf16.mxu1 %v6541_v62 }
 0x8b8   :  { %v7644_v46 = vpop.f32.mrb[20].mxu0 }
 0x8b9   :  { %v7645_v15 = vpop.f32.mrb[21].mxu0 }
 0x8ba   :  { %v7646_v7 = vadd.f32 %v7645_v15, %v7644_v46  ;;  %v7647_v45 = vpop.f32.mrb[22].mxu0  ;;  %v12788_v15 = vld [vmem:[#allocation16_spill] sm:$0xff] }
 0x8bb   :  { %v7648_v13 = vpop.f32.mrb[23].mxu0 }
 0x8bc   :  { %v6380_v12 = vadd.f32 %v7646_v7, %v6187_v54  ;;  %v7649_v52 = vadd.f32 %v7648_v13, %v7647_v45 }
 0x8be   :  { %v6483_v61 = vadd.f32 %v12150_v33, %v6380_v12  ;;  %v6383_v41 = vadd.f32 %v7649_v52, %v6188_v38 }
 0x8c0   :  { %v6484_v32 = vadd.f32 %v12150_v33, %v6383_v41  ;;  %v6515_v42 = vmax.f32 %v6483_v61, 0.0 }
 0x8c2   :  { %v6516_v9 = vmax.f32 %v6484_v32, 0.0 }
 0x8c4   :  { %v6542_v29 = vpack.c.bf16 %v6516_v9, %v6515_v42 }
 0x8c6   :  { %7759 = vmatmul.mubr.bf16.gmra.mrb[24].mxu1 %v6542_v29 }
 0x8cb   :  { %v7650_v44 = vpop.f32.mrb[24].mxu0 }
 0x8cc   :  { %v7651_v28 = vpop.f32.mrb[25].mxu0 }
 0x8cd   :  { %v7652_v22 = vadd.f32 %v7651_v28, %v7650_v44  ;;  %v7653_v48 = vpop.f32.mrb[26].mxu0  ;;  %v12789_v44 = vld [vmem:[#allocation17_spill] sm:$0xff] }
 0x8ce   :  { %v7654_v18 = vpop.f32.mrb[27].mxu0 }
 0x8cf   :  { %v6388_v14 = vadd.f32 %v7652_v22, %v11644_v17  ;;  %v7655_v57 = vadd.f32 %v7654_v18, %v7653_v48 }
 0x8d1   :  { %v6485_v58 = vadd.f32 %v12150_v33, %v6388_v14  ;;  %v6391_v16 = vadd.f32 %v7655_v57, %v12028_v26 }
 0x8d3   :  { %v6486_v30 = vadd.f32 %v12150_v33, %v6391_v16  ;;  %v6517_v27 = vmax.f32 %v6485_v58, 0.0 }
 0x8d5   :  { %v6518_v59 = vmax.f32 %v6486_v30, 0.0 }
 0x8d7   :  { %v6543_v10 = vpack.c.bf16 %v6518_v59, %v6517_v27 }
 0x8d9   :  { %7762 = vmatprep.mubr.bf16.mxu1 %v6543_v10 }
 0x8de   :  { %v7656_v1 = vpop.f32.mrb[28].mxu0 }
 0x8df   :  { %v7657_v60 = vpop.f32.mrb[29].mxu0 }
 0x8e0   :  { %v7658_v50 = vadd.f32 %v7657_v60, %v7656_v1  ;;  %v7659_v43 = vpop.f32.mrb[30].mxu0 }
 0x8e1   :  { %v7660_v53 = vpop.f32.mrb[31].mxu0 }
 0x8e2   :  { %v6396_v62 = vadd.f32 %v7658_v50, %v12046_v51  ;;  %v7661_v2 = vadd.f32 %v7660_v53, %v7659_v43 }
 0x8e4   :  { %v6487_v17 = vadd.f32 %v12150_v33, %v6396_v62  ;;  %v6399_v34 = vadd.f32 %v7661_v2, %v11656_v8 }
 0x8e6   :  { %v6488_v26 = vadd.f32 %v12150_v33, %v6399_v34  ;;  %v6519_v55 = vmax.f32 %v6487_v17, 0.0 }
 0x8e8   :  { %v6520_v19 = vmax.f32 %v6488_v26, 0.0 }
 0x8ea   :  { %v6544_v3 = vpack.c.bf16 %v6520_v19, %v6519_v55 }
 0x8ec   :  { %7763 = vmatmul.mubr.bf16.gmra.mrb[28].mxu1 %v6544_v3 }
 0x8f1   :  { %v7662_v49 = vpop.f32.mrb[32].mxu0 }
 0x8f2   :  { %v7663_v4 = vpop.f32.mrb[33].mxu0 }
 0x8f3   :  { %v7664_v36 = vadd.f32 %v7663_v4, %v7662_v49  ;;  %v7665_v63 = vpop.f32.mrb[34].mxu0 }
 0x8f4   :  { %v7666_v46 = vpop.f32.mrb[35].mxu0 }
 0x8f5   :  { %v6404_v24 = vadd.f32 %v7664_v36, %v12788_v15  ;;  %v7667_v54 = vadd.f32 %v7666_v46, %v7665_v63 }
 0x8f7   :  { %v6489_v51 = vadd.f32 %v12150_v33, %v6404_v24  ;;  %v6407_v7 = vadd.f32 %v7667_v54, %v11668_v0  ;;  %v12790_v54 = vld [vmem:[#allocation21_spill] sm:$0xff] }
 0x8f9   :  { %v6490_v8 = vadd.f32 %v12150_v33, %v6407_v7  ;;  %v6521_v45 = vmax.f32 %v6489_v51, 0.0 }
 0x8fb   :  { %v6522_v13 = vmax.f32 %v6490_v8, 0.0 }
 0x8fd   :  { %v6545_v38 = vpack.c.bf16 %v6522_v13, %v6521_v45 }
 0x8ff   :  { %7766 = vmatprep.mubr.bf16.mxu1 %v6545_v38 }
 0x904   :  { %v7668_v12 = vpop.f32.mrb[36].mxu0 }
 0x905   :  { %v7669_v52 = vpop.f32.mrb[37].mxu0 }
 0x906   :  { %v7670_v61 = vadd.f32 %v7669_v52, %v7668_v12  ;;  %v7671_v41 = vpop.f32.mrb[38].mxu0 }
 0x907   :  { %v7672_v32 = vpop.f32.mrb[39].mxu0 }
 0x908   :  { %v6412_v42 = vadd.f32 %v7670_v61, %v12075_v5  ;;  %v7673_v9 = vadd.f32 %v7672_v32, %v7671_v41 }
 0x90a   :  { %v6491_v29 = vadd.f32 %v12150_v33, %v6412_v42  ;;  %v6415_v28 = vadd.f32 %v7673_v9, %v12789_v44  ;;  %v12791_v42 = vld [vmem:[#allocation22_spill] sm:$0xff] }
 0x90c   :  { %v6492_v0 = vadd.f32 %v12150_v33, %v6415_v28  ;;  %v6523_v22 = vmax.f32 %v6491_v29, 0.0 }
 0x90e   :  { %v6524_v48 = vmax.f32 %v6492_v0, 0.0 }
 0x910   :  { %v6546_v18 = vpack.c.bf16 %v6524_v48, %v6523_v22 }
 0x912   :  { %7767 = vmatmul.mubr.bf16.gmra.mrb[32].mxu1 %v6546_v18  ;;  %v6173_v18 = vmul.f32 %v11244_v21, %v11812_v37 }
 0x917   :  { %v7674_v14 = vpop.f32.mrb[40].mxu0 }
 0x918   :  { %v7675_v57 = vpop.f32.mrb[41].mxu0 }
 0x919   :  { %v7676_v58 = vadd.f32 %v7675_v57, %v7674_v14  ;;  %v7677_v16 = vpop.f32.mrb[42].mxu0  ;;  %v6174_v14 = vmul.f32 %v11244_v21, %v11808_v23  ;;  %v6135_v23 = vpop.permute.xlu1 %6134 }
 0x91a   :  { %v7678_v30 = vpop.f32.mrb[43].mxu0 }
 0x91b   :  { %v6420_v27 = vadd.f32 %v7676_v58, %v11680_v31  ;;  %v7679_v59 = vadd.f32 %v7678_v30, %v7677_v16  ;;  %v6205_v16 = vadd.f32 %v6173_v18, %v11664_v20  ;;  %v6175_v20 = vmul.f32 %v11244_v21, %v6135_v23 }
 0x91d   :  { %v6493_v5 = vadd.f32 %v12150_v33, %v6420_v27  ;;  %v6423_v10 = vadd.f32 %v7679_v59, %v12108_v25 }
 0x91f   :  { %v6494_v1 = vadd.f32 %v12150_v33, %v6423_v10  ;;  %v6525_v60 = vmax.f32 %v6493_v5, 0.0 }
 0x921   :  { %v6526_v50 = vmax.f32 %v6494_v1, 0.0 }
 0x923   :  { %v6547_v43 = vpack.c.bf16 %v6526_v50, %v6525_v60 }
 0x925   :  { %7770 = vmatprep.mubr.bf16.mxu1 %v6547_v43 }
 0x92a   :  { %v7680_v53 = vpop.f32.mrb[44].mxu0 }
 0x92b   :  { %v7681_v62 = vpop.f32.mrb[45].mxu0 }
 0x92c   :  { %v7682_v2 = vadd.f32 %v7681_v62, %v7680_v53  ;;  %v7683_v17 = vpop.f32.mrb[46].mxu0  ;;  %v6139_v62 = vpop.permute.xlu0 %6138 }
 0x92d   :  { %v7684_v34 = vpop.f32.mrb[47].mxu0 }
 0x92e   :  { %v6428_v26 = vadd.f32 %v7682_v2, %v12117_v11  ;;  %v7685_v55 = vadd.f32 %v7684_v34, %v7683_v17  ;;  %v6176_v2 = vmul.f32 %v11244_v21, %v6139_v62 }
 0x930   :  { %v6495_v31 = vadd.f32 %v12150_v33, %v6428_v26  ;;  %v6431_v19 = vadd.f32 %v7685_v55, %v11689_v56 }
 0x932   :  { %v6496_v25 = vadd.f32 %v12150_v33, %v6431_v19  ;;  %v6527_v3 = vmax.f32 %v6495_v31, 0.0  ;;  %v6208_v19 = vadd.f32 %v6176_v2, %v11693_v40 }
 0x934   :  { %v6528_v49 = vmax.f32 %v6496_v25, 0.0 }
 0x936   :  { %v6548_v4 = vpack.c.bf16 %v6528_v49, %v6527_v3 }
 0x938   :  { %7771 = vmatmul.mubr.bf16.gmra.mrb[36].mxu1 %v6548_v4 }
 0x93d   :  { %v7686_v36 = vpop.f32.mrb[0].mxu1 }
 0x93e   :  { %v7687_v63 = vpop.f32.mrb[1].mxu1 }
 0x93f   :  { %v7688_v46 = vadd.f32 %v7687_v63, %v7686_v36  ;;  %v7689_v15 = vpop.f32.mrb[2].mxu1  ;;  %v12288_v36 = vld [vmem:[%s12463_s11] ss:$0 sm:$0xff] }
 0x940   :  { %v7690_v24 = vpop.f32.mrb[3].mxu1 }
 0x941   :  { %v6436_v51 = vadd.f32 %v7688_v46, %v12790_v54  ;;  %v7691_v7 = vadd.f32 %v7690_v24, %v7689_v15 }
 0x943   :  { %v6497_v11 = vadd.f32 %v12150_v33, %v6436_v51  ;;  %v6439_v8 = vadd.f32 %v7691_v7, %v11699_v6 }
 0x945   :  { %v6498_v56 = vadd.f32 %v12150_v33, %v6439_v8  ;;  %v6529_v45 = vmax.f32 %v6497_v11, 0.0 }
 0x947   :  { %v6530_v13 = vmax.f32 %v6498_v56, 0.0 }
 0x949   :  { %v6549_v38 = vpack.c.bf16 %v6530_v13, %v6529_v45 }
 0x94b   :  { %7774 = vmatprep.mubr.bf16.mxu1 %v6549_v38 }
 0x950   :  { %v7692_v12 = vpop.f32.mrb[4].mxu1 }
 0x951   :  { %v7693_v52 = vpop.f32.mrb[5].mxu1 }
 0x952   :  { %v7694_v61 = vadd.f32 %v7693_v52, %v7692_v12  ;;  %v7695_v41 = vpop.f32.mrb[6].mxu1 }
 0x953   :  { %v7696_v32 = vpop.f32.mrb[7].mxu1 }
 0x954   :  { %v6444_v9 = vadd.f32 %v7694_v61, %v12791_v42  ;;  %v7697_v29 = vadd.f32 %v7696_v32, %v7695_v41 }
 0x956   :  { %v6499_v44 = vadd.f32 %v12150_v33, %v6444_v9  ;;  %v6447_v28 = vadd.f32 %v7697_v29, %v11641_v47  ;;  %v6206_v47 = vadd.f32 %v6174_v14, %v11653_v39  ;;  %v6207_v39 = vadd.f32 %v6175_v20, %v11675_v35 }
 0x958   :  { %v6500_v6 = vadd.f32 %v12150_v33, %v6447_v28  ;;  %v6531_v0 = vmax.f32 %v6499_v44, 0.0 }
 0x95a   :  { %v6532_v22 = vmax.f32 %v6500_v6, 0.0 }
 0x95c   :  { %v6550_v48 = vpack.c.bf16 %v6532_v22, %v6531_v0 }
 0x95e   :  { %7775 = vmatmul.mubr.bf16.gmra.mrb[40].mxu1 %v6550_v48 }
 0x963   :  { %v7698_v57 = vpop.f32.mrb[8].mxu1 }
 0x964   :  { %v7699_v58 = vpop.f32.mrb[9].mxu1 }
 0x965   :  { %v7700_v30 = vadd.f32 %v7699_v58, %v7698_v57  ;;  %v7701_v27 = vpop.f32.mrb[10].mxu1 }
 0x966   :  { %v7702_v59 = vpop.f32.mrb[11].mxu1 }
 0x967   :  { %v6452_v5 = vadd.f32 %v7700_v30, %v6205_v16  ;;  %v7703_v10 = vadd.f32 %v7702_v59, %v7701_v27 }
 0x969   :  { %v6501_v1 = vadd.f32 %v12150_v33, %v6452_v5  ;;  %v6455_v60 = vadd.f32 %v7703_v10, %v6206_v47 }
 0x96b   :  { %v6502_v50 = vadd.f32 %v12150_v33, %v6455_v60  ;;  %v6533_v37 = vmax.f32 %v6501_v1, 0.0 }
 0x96d   :  { %v6534_v43 = vmax.f32 %v6502_v50, 0.0 }
 0x96f   :  { %v6551_v53 = vpack.c.bf16 %v6534_v43, %v6533_v37 }
 0x971   :  { %7778 = vmatprep.mubr.bf16.mxu1 %v6551_v53 }
 0x976   :  { %v7704_v17 = vpop.f32.mrb[12].mxu1 }
 0x977   :  { %v7705_v34 = vpop.f32.mrb[13].mxu1 }
 0x978   :  { %v7706_v26 = vadd.f32 %v7705_v34, %v7704_v17  ;;  %v7707_v55 = vpop.f32.mrb[14].mxu1 }
 0x979   :  { %v7708_v31 = vpop.f32.mrb[15].mxu1 }
 0x97a   :  { %v6460_v25 = vadd.f32 %v7706_v26, %v6207_v39  ;;  %v7709_v3 = vadd.f32 %v7708_v31, %v7707_v55 }
 0x97c   :  { %v6503_v49 = vadd.f32 %v12150_v33, %v6460_v25  ;;  %v6463_v4 = vadd.f32 %v7709_v3, %v6208_v19 }
 0x97e   :  { %v6504_v21 = vadd.f32 %v12150_v33, %v6463_v4  ;;  %v7752_v63 = vpop.f32.mrb[16].mxu1  ;;  %v6535_v15 = vmax.f32 %v6503_v49, 0.0 }
 0x97f   :  { %v6667_v35 = vadd.f32 %v7752_v63, %v12288_v36  ;;  %v6658_v46 = vpop.f32.mrb[17].mxu1 }
 0x980   :  { %v6536_v24 = vmax.f32 %v6504_v21, 0.0  ;;  %v6659_v40 = vadd.f32 %v12288_v36, %v6658_v46  ;;  %v7753_v54 = vpop.f32.mrb[18].mxu1 }
 0x981   :  { %v7568_v51 = vmul.f32 -1.442695, %v6667_v35  ;;  %v6670_v7 = vadd.f32 %v7753_v54, %v12288_v36  ;;  %v6661_v11 = vpop.f32.mrb[19].mxu1 }
 0x982   :  { %v6552_v8 = vpack.c.bf16 %v6536_v24, %v6535_v15  ;;  %v7566_v56 = vmul.f32 -1.442695, %v6659_v40  ;;  %v6662_v45 = vadd.f32 %v12288_v36, %v6661_v11 }
 0x983   :  { %8309 = vpow2.f32 %v7568_v51  ;;  %v7569_v13 = vmul.f32 -1.442695, %v6670_v7 }
 0x984   :  { %8311 = vpow2.f32 %v7566_v56  ;;  %v7567_v33 = vmul.f32 -1.442695, %v6662_v45  ;;  %7779 = vmatmul.mubr.bf16.gmra.mrb[44].mxu1 %v6552_v8 }
 0x985   :  { %8313 = vpow2.f32 %v7569_v13 }
 0x986   :  { %8315 = vpow2.f32 %v7567_v33  ;;  %v7756_v38 = vpop.f32.mrb[20].mxu1 }
 0x987   :  { %v6683_v12 = vadd.f32 %v7756_v38, %v12288_v36  ;;  %v6674_v52 = vpop.f32.mrb[21].mxu1 }
 0x988   :  { %v6675_v61 = vadd.f32 %v12288_v36, %v6674_v52  ;;  %v7757_v41 = vpop.f32.mrb[22].mxu1 }
 0x989   :  { %v7572_v32 = vmul.f32 -1.442695, %v6683_v12  ;;  %v6686_v42 = vadd.f32 %v7757_v41, %v12288_v36  ;;  %v6677_v9 = vpop.f32.mrb[23].mxu1 }
 0x98a   :  { %v7570_v29 = vmul.f32 -1.442695, %v6675_v61  ;;  %v6678_v44 = vadd.f32 %v12288_v36, %v6677_v9 }
 0x98b   :  { %8317 = vpow2.f32 %v7572_v32  ;;  %v7573_v28 = vmul.f32 -1.442695, %v6686_v42 }
 0x98c   :  { %8319 = vpow2.f32 %v7570_v29  ;;  %v7571_v6 = vmul.f32 -1.442695, %v6678_v44 }
 0x98d   :  { %v8310_v0 = vpop.eup %8309  ;;  %8321 = vpow2.f32 %v7573_v28 }
 0x98e   :  { %v8312_v22 = vpop.eup %8311  ;;  %v6883_v48 = vadd.f32 1.0, %v8310_v0  ;;  %8323 = vpow2.f32 %v7571_v6 }
 0x98f   :  { %v8314_v18 = vpop.eup %8313  ;;  %v6881_v14 = vadd.f32 1.0, %v8312_v22 }
 0x990   :  { %v8316_v57 = vpop.eup %8315  ;;  %8325 = vrcp.f32 %v6883_v48  ;;  %v6884_v58 = vadd.f32 1.0, %v8314_v18 }
 0x991   :  { %8327 = vrcp.f32 %v6881_v14  ;;  %v6882_v16 = vadd.f32 1.0, %v8316_v57 }
 0x992   :  { %8329 = vrcp.f32 %v6884_v58 }
 0x993   :  { %8331 = vrcp.f32 %v6882_v16 }
 0x995   :  { %v8318_v30 = vpop.eup %8317 }
 0x996   :  { %v8320_v27 = vpop.eup %8319  ;;  %v6887_v59 = vadd.f32 1.0, %v8318_v30 }
 0x997   :  { %v8322_v47 = vpop.eup %8321  ;;  %v6885_v5 = vadd.f32 1.0, %v8320_v27 }
 0x998   :  { %v8324_v10 = vpop.eup %8323  ;;  %8333 = vrcp.f32 %v6887_v59  ;;  %v6888_v1 = vadd.f32 1.0, %v8322_v47 }
 0x999   :  { %8335 = vrcp.f32 %v6885_v5  ;;  %v6886_v60 = vadd.f32 1.0, %v8324_v10  ;;  %v7760_v50 = vpop.f32.mrb[24].mxu1 }
 0x99a   :  { %v8326_v37 = vpop.eup %8325  ;;  %8337 = vrcp.f32 %v6888_v1  ;;  %v6699_v43 = vadd.f32 %v7760_v50, %v12288_v36  ;;  %v6690_v53 = vpop.f32.mrb[25].mxu1 }
 0x99b   :  { %v8328_v23 = vpop.eup %8327  ;;  %6980 = vst.msk [vmem:[%s12464_s12 + $0x10] sm:$0xff] %vm6977_vm1, %v8326_v37  ;;  %8339 = vrcp.f32 %v6886_v60  ;;  %v6691_v62 = vadd.f32 %v12288_v36, %v6690_v53  ;;  %v7761_v20 = vpop.f32.mrb[26].mxu1 }
 0x99c   :  { %v8330_v2 = vpop.eup %8329  ;;  %6978 = vst.msk [vmem:[%s12464_s12] sm:$0xff] %vm6977_vm1, %v8328_v23  ;;  %v7576_v17 = vmul.f32 -1.442695, %v6699_v43  ;;  %v6702_v34 = vadd.f32 %v7761_v20, %v12288_v36  ;;  %v6693_v39 = vpop.f32.mrb[27].mxu1 }
 0x99d   :  { %v8332_v26 = vpop.eup %8331  ;;  %6981 = vst.msk [vmem:[%s12464_s12 + $0x18] sm:$0xff] %vm6977_vm1, %v8330_v2  ;;  %v7574_v55 = vmul.f32 -1.442695, %v6691_v62  ;;  %v6694_v31 = vadd.f32 %v12288_v36, %v6693_v39 }
 0x99e   :  { %6979 = vst.msk [vmem:[%s12464_s12 + $0x8] sm:$0xff] %vm6977_vm1, %v8332_v26  ;;  %8341 = vpow2.f32 %v7576_v17  ;;  %v7577_v19 = vmul.f32 -1.442695, %v6702_v34 }
 0x99f   :  { %8343 = vpow2.f32 %v7574_v55  ;;  %v7575_v25 = vmul.f32 -1.442695, %v6694_v31 }
 0x9a0   :  { %8345 = vpow2.f32 %v7577_v19 }
 0x9a1   :  { %8347 = vpow2.f32 %v7575_v25 }
 0x9a2   :  { %v8334_v3 = vpop.eup %8333 }
 0x9a3   :  { %v8336_v49 = vpop.eup %8335  ;;  %6984 = vst.msk [vmem:[%s12464_s12 + $0x30] sm:$0xff] %vm6977_vm1, %v8334_v3 }
 0x9a4   :  { %v8338_v4 = vpop.eup %8337  ;;  %6982 = vst.msk [vmem:[%s12464_s12 + $0x20] sm:$0xff] %vm6977_vm1, %v8336_v49 }
 0x9a5   :  { %v8340_v21 = vpop.eup %8339  ;;  %6985 = vst.msk [vmem:[%s12464_s12 + $0x38] sm:$0xff] %vm6977_vm1, %v8338_v4 }
 0x9a6   :  { %6983 = vst.msk [vmem:[%s12464_s12 + $0x28] sm:$0xff] %vm6977_vm1, %v8340_v21 }
 0x9a8   :  { %v8342_v63 = vpop.eup %8341 }
 0x9a9   :  { %v8344_v35 = vpop.eup %8343  ;;  %v6891_v46 = vadd.f32 1.0, %v8342_v63 }
 0x9aa   :  { %v8346_v15 = vpop.eup %8345  ;;  %v6889_v24 = vadd.f32 1.0, %v8344_v35 }
 0x9ab   :  { %v8348_v40 = vpop.eup %8347  ;;  %8349 = vrcp.f32 %v6891_v46  ;;  %v6892_v54 = vadd.f32 1.0, %v8346_v15 }
 0x9ac   :  { %8351 = vrcp.f32 %v6889_v24  ;;  %v6890_v51 = vadd.f32 1.0, %v8348_v40 }
 0x9ad   :  { %8353 = vrcp.f32 %v6892_v54 }
 0x9ae   :  { %8355 = vrcp.f32 %v6890_v51 }
 0x9b5   :  { %v8350_v7 = vpop.eup %8349 }
 0x9b6   :  { %v8352_v11 = vpop.eup %8351  ;;  %6988 = vst.msk [vmem:[%s12464_s12 + $0x50] sm:$0xff] %vm6977_vm1, %v8350_v7 }
 0x9b7   :  { %v8354_v8 = vpop.eup %8353  ;;  %6986 = vst.msk [vmem:[%s12464_s12 + $0x40] sm:$0xff] %vm6977_vm1, %v8352_v11 }
 0x9b8   :  { %v8356_v56 = vpop.eup %8355  ;;  %6989 = vst.msk [vmem:[%s12464_s12 + $0x58] sm:$0xff] %vm6977_vm1, %v8354_v8 }
 0x9b9   :  { %6987 = vst.msk [vmem:[%s12464_s12 + $0x48] sm:$0xff] %vm6977_vm1, %v8356_v56 }
 0x9bf   :  { %v7764_v45 = vpop.f32.mrb[28].mxu1 }
 0x9c0   :  { %v6715_v13 = vadd.f32 %v7764_v45, %v12288_v36  ;;  %v6706_v33 = vpop.f32.mrb[29].mxu1 }
 0x9c1   :  { %v6707_v38 = vadd.f32 %v12288_v36, %v6706_v33  ;;  %v7765_v12 = vpop.f32.mrb[30].mxu1 }
 0x9c2   :  { %v7580_v52 = vmul.f32 -1.442695, %v6715_v13  ;;  %v6718_v61 = vadd.f32 %v7765_v12, %v12288_v36  ;;  %v6709_v41 = vpop.f32.mrb[31].mxu1 }
 0x9c3   :  { %v7578_v32 = vmul.f32 -1.442695, %v6707_v38  ;;  %v6710_v42 = vadd.f32 %v12288_v36, %v6709_v41 }
 0x9c4   :  { %8357 = vpow2.f32 %v7580_v52  ;;  %v7581_v9 = vmul.f32 -1.442695, %v6718_v61 }
 0x9c5   :  { %8359 = vpow2.f32 %v7578_v32  ;;  %v7579_v29 = vmul.f32 -1.442695, %v6710_v42 }
 0x9c6   :  { %8361 = vpow2.f32 %v7581_v9 }
 0x9c7   :  { %8363 = vpow2.f32 %v7579_v29 }
 0x9ce   :  { %v8358_v44 = vpop.eup %8357 }
 0x9cf   :  { %v8360_v28 = vpop.eup %8359  ;;  %v6895_v6 = vadd.f32 1.0, %v8358_v44 }
 0x9d0   :  { %v8362_v0 = vpop.eup %8361  ;;  %v6893_v22 = vadd.f32 1.0, %v8360_v28 }
 0x9d1   :  { %v8364_v48 = vpop.eup %8363  ;;  %8365 = vrcp.f32 %v6895_v6  ;;  %v6896_v18 = vadd.f32 1.0, %v8362_v0 }
 0x9d2   :  { %8367 = vrcp.f32 %v6893_v22  ;;  %v6894_v14 = vadd.f32 1.0, %v8364_v48 }
 0x9d3   :  { %8369 = vrcp.f32 %v6896_v18 }
 0x9d4   :  { %8371 = vrcp.f32 %v6894_v14 }
 0x9db   :  { %v8366_v57 = vpop.eup %8365 }
 0x9dc   :  { %v8368_v58 = vpop.eup %8367  ;;  %6992 = vst.msk [vmem:[%s12464_s12 + $0x70] sm:$0xff] %vm6977_vm1, %v8366_v57 }
 0x9dd   :  { %v8370_v16 = vpop.eup %8369  ;;  %6990 = vst.msk [vmem:[%s12464_s12 + $0x60] sm:$0xff] %vm6977_vm1, %v8368_v58 }
 0x9de   :  { %v8372_v30 = vpop.eup %8371  ;;  %6993 = vst.msk [vmem:[%s12464_s12 + $0x78] sm:$0xff] %vm6977_vm1, %v8370_v16 }
 0x9df   :  { %6991 = vst.msk [vmem:[%s12464_s12 + $0x68] sm:$0xff] %vm6977_vm1, %v8372_v30 }
 0x9e5   :  { %v7768_v27 = vpop.f32.mrb[32].mxu1 }
 0x9e6   :  { %v6731_v59 = vadd.f32 %v7768_v27, %v12288_v36  ;;  %v6722_v47 = vpop.f32.mrb[33].mxu1 }
 0x9e7   :  { %v6723_v5 = vadd.f32 %v12288_v36, %v6722_v47  ;;  %v7769_v10 = vpop.f32.mrb[34].mxu1 }
 0x9e8   :  { %v7584_v1 = vmul.f32 -1.442695, %v6731_v59  ;;  %v6734_v60 = vadd.f32 %v7769_v10, %v12288_v36  ;;  %v6725_v50 = vpop.f32.mrb[35].mxu1 }
 0x9e9   :  { %v7582_v37 = vmul.f32 -1.442695, %v6723_v5  ;;  %v6726_v43 = vadd.f32 %v12288_v36, %v6725_v50 }
 0x9ea   :  { %8373 = vpow2.f32 %v7584_v1  ;;  %v7585_v53 = vmul.f32 -1.442695, %v6734_v60 }
 0x9eb   :  { %8375 = vpow2.f32 %v7582_v37  ;;  %v7583_v23 = vmul.f32 -1.442695, %v6726_v43 }
 0x9ec   :  { %8377 = vpow2.f32 %v7585_v53 }
 0x9ed   :  { %8379 = vpow2.f32 %v7583_v23 }
 0x9f4   :  { %v8374_v62 = vpop.eup %8373 }
 0x9f5   :  { %v8376_v20 = vpop.eup %8375  ;;  %v6899_v2 = vadd.f32 1.0, %v8374_v62 }
 0x9f6   :  { %v8378_v17 = vpop.eup %8377  ;;  %v6897_v34 = vadd.f32 1.0, %v8376_v20 }
 0x9f7   :  { %v8380_v39 = vpop.eup %8379  ;;  %8381 = vrcp.f32 %v6899_v2  ;;  %v6900_v26 = vadd.f32 1.0, %v8378_v17 }
 0x9f8   :  { %8383 = vrcp.f32 %v6897_v34  ;;  %v6898_v55 = vadd.f32 1.0, %v8380_v39 }
 0x9f9   :  { %8385 = vrcp.f32 %v6900_v26 }
 0x9fa   :  { %8387 = vrcp.f32 %v6898_v55 }
 0xa01   :  { %v8382_v31 = vpop.eup %8381 }
 0xa02   :  { %v8384_v19 = vpop.eup %8383  ;;  %6996 = vst.msk [vmem:[%s12464_s12 + $0x90] sm:$0xff] %vm6977_vm1, %v8382_v31 }
 0xa03   :  { %v8386_v25 = vpop.eup %8385  ;;  %6994 = vst.msk [vmem:[%s12464_s12 + $0x80] sm:$0xff] %vm6977_vm1, %v8384_v19 }
 0xa04   :  { %v8388_v3 = vpop.eup %8387  ;;  %6997 = vst.msk [vmem:[%s12464_s12 + $0x98] sm:$0xff] %vm6977_vm1, %v8386_v25 }
 0xa05   :  { %6995 = vst.msk [vmem:[%s12464_s12 + $0x88] sm:$0xff] %vm6977_vm1, %v8388_v3 }
 0xa0b   :  { %v7772_v49 = vpop.f32.mrb[36].mxu1 }
 0xa0c   :  { %v6747_v4 = vadd.f32 %v7772_v49, %v12288_v36  ;;  %v6738_v21 = vpop.f32.mrb[37].mxu1 }
 0xa0d   :  { %v6739_v63 = vadd.f32 %v12288_v36, %v6738_v21  ;;  %v7773_v35 = vpop.f32.mrb[38].mxu1 }
 0xa0e   :  { %v7588_v46 = vmul.f32 -1.442695, %v6747_v4  ;;  %v6750_v15 = vadd.f32 %v7773_v35, %v12288_v36  ;;  %v6741_v24 = vpop.f32.mrb[39].mxu1 }
 0xa0f   :  { %v7586_v40 = vmul.f32 -1.442695, %v6739_v63  ;;  %v6742_v54 = vadd.f32 %v12288_v36, %v6741_v24 }
 0xa10   :  { %8389 = vpow2.f32 %v7588_v46  ;;  %v7589_v51 = vmul.f32 -1.442695, %v6750_v15 }
 0xa11   :  { %8391 = vpow2.f32 %v7586_v40  ;;  %v7587_v7 = vmul.f32 -1.442695, %v6742_v54 }
 0xa12   :  { %8393 = vpow2.f32 %v7589_v51 }
 0xa13   :  { %8395 = vpow2.f32 %v7587_v7 }
 0xa1a   :  { %v8390_v11 = vpop.eup %8389 }
 0xa1b   :  { %v8392_v8 = vpop.eup %8391  ;;  %v6903_v56 = vadd.f32 1.0, %v8390_v11 }
 0xa1c   :  { %v8394_v45 = vpop.eup %8393  ;;  %v6901_v13 = vadd.f32 1.0, %v8392_v8 }
 0xa1d   :  { %v8396_v33 = vpop.eup %8395  ;;  %8397 = vrcp.f32 %v6903_v56  ;;  %v6904_v38 = vadd.f32 1.0, %v8394_v45 }
 0xa1e   :  { %8399 = vrcp.f32 %v6901_v13  ;;  %v6902_v12 = vadd.f32 1.0, %v8396_v33 }
 0xa1f   :  { %8401 = vrcp.f32 %v6904_v38 }
 0xa20   :  { %8403 = vrcp.f32 %v6902_v12 }
 0xa27   :  { %v8398_v52 = vpop.eup %8397 }
 0xa28   :  { %v8400_v61 = vpop.eup %8399  ;;  %7000 = vst.msk [vmem:[%s12464_s12 + $0xb0] sm:$0xff] %vm6977_vm1, %v8398_v52 }
 0xa29   :  { %v8402_v41 = vpop.eup %8401  ;;  %6998 = vst.msk [vmem:[%s12464_s12 + $0xa0] sm:$0xff] %vm6977_vm1, %v8400_v61 }
 0xa2a   :  { %v8404_v32 = vpop.eup %8403  ;;  %7001 = vst.msk [vmem:[%s12464_s12 + $0xb8] sm:$0xff] %vm6977_vm1, %v8402_v41 }
 0xa2b   :  { %6999 = vst.msk [vmem:[%s12464_s12 + $0xa8] sm:$0xff] %vm6977_vm1, %v8404_v32 }
 0xa31   :  { %v7776_v42 = vpop.f32.mrb[40].mxu1 }
 0xa32   :  { %v6763_v9 = vadd.f32 %v7776_v42, %v12288_v36  ;;  %v6754_v29 = vpop.f32.mrb[41].mxu1 }
 0xa33   :  { %v6755_v44 = vadd.f32 %v12288_v36, %v6754_v29  ;;  %v7777_v28 = vpop.f32.mrb[42].mxu1 }
 0xa34   :  { %v7592_v6 = vmul.f32 -1.442695, %v6763_v9  ;;  %v6766_v0 = vadd.f32 %v7777_v28, %v12288_v36  ;;  %v6757_v22 = vpop.f32.mrb[43].mxu1 }
 0xa35   :  { %v7590_v48 = vmul.f32 -1.442695, %v6755_v44  ;;  %v6758_v18 = vadd.f32 %v12288_v36, %v6757_v22 }
 0xa36   :  { %8405 = vpow2.f32 %v7592_v6  ;;  %v7593_v14 = vmul.f32 -1.442695, %v6766_v0 }
 0xa37   :  { %8407 = vpow2.f32 %v7590_v48  ;;  %v7591_v57 = vmul.f32 -1.442695, %v6758_v18 }
 0xa38   :  { %8409 = vpow2.f32 %v7593_v14 }
 0xa39   :  { %8411 = vpow2.f32 %v7591_v57 }
 0xa40   :  { %v8406_v58 = vpop.eup %8405 }
 0xa41   :  { %v8408_v16 = vpop.eup %8407  ;;  %v6907_v30 = vadd.f32 1.0, %v8406_v58 }
 0xa42   :  { %v8410_v27 = vpop.eup %8409  ;;  %v6905_v59 = vadd.f32 1.0, %v8408_v16 }
 0xa43   :  { %v8412_v47 = vpop.eup %8411  ;;  %8413 = vrcp.f32 %v6907_v30  ;;  %v6908_v5 = vadd.f32 1.0, %v8410_v27 }
 0xa44   :  { %8415 = vrcp.f32 %v6905_v59  ;;  %v6906_v10 = vadd.f32 1.0, %v8412_v47 }
 0xa45   :  { %8417 = vrcp.f32 %v6908_v5 }
 0xa46   :  { %8419 = vrcp.f32 %v6906_v10 }
 0xa4d   :  { %v8414_v1 = vpop.eup %8413 }
 0xa4e   :  { %v8416_v60 = vpop.eup %8415  ;;  %7004 = vst.msk [vmem:[%s12464_s12 + $0xd0] sm:$0xff] %vm6977_vm1, %v8414_v1 }
 0xa4f   :  { %v8418_v50 = vpop.eup %8417  ;;  %7002 = vst.msk [vmem:[%s12464_s12 + $0xc0] sm:$0xff] %vm6977_vm1, %v8416_v60 }
 0xa50   :  { %v8420_v37 = vpop.eup %8419  ;;  %7005 = vst.msk [vmem:[%s12464_s12 + $0xd8] sm:$0xff] %vm6977_vm1, %v8418_v50 }
 0xa51   :  { %7003 = vst.msk [vmem:[%s12464_s12 + $0xc8] sm:$0xff] %vm6977_vm1, %v8420_v37 }
 0xa57   :  { %v7780_v43 = vpop.f32.mrb[44].mxu1 }
 0xa58   :  { %v6779_v53 = vadd.f32 %v7780_v43, %v12288_v36  ;;  %v6770_v23 = vpop.f32.mrb[45].mxu1 }
 0xa59   :  { %v6771_v62 = vadd.f32 %v12288_v36, %v6770_v23  ;;  %v7781_v20 = vpop.f32.mrb[46].mxu1 }
 0xa5a   :  { %v7596_v2 = vmul.f32 -1.442695, %v6779_v53  ;;  %v6782_v17 = vadd.f32 %v7781_v20, %v12288_v36  ;;  %v6773_v34 = vpop.f32.mrb[47].mxu1 }
 0xa5b   :  { %v7594_v39 = vmul.f32 -1.442695, %v6771_v62  ;;  %v6774_v26 = vadd.f32 %v12288_v36, %v6773_v34 }
 0xa5c   :  { %8421 = vpow2.f32 %v7596_v2  ;;  %v7597_v55 = vmul.f32 -1.442695, %v6782_v17 }
 0xa5d   :  { %8423 = vpow2.f32 %v7594_v39  ;;  %v7595_v31 = vmul.f32 -1.442695, %v6774_v26 }
 0xa5e   :  { %8425 = vpow2.f32 %v7597_v55 }
 0xa5f   :  { %8427 = vpow2.f32 %v7595_v31 }
 0xa66   :  { %v8422_v19 = vpop.eup %8421 }
 0xa67   :  { %v8424_v25 = vpop.eup %8423  ;;  %v6911_v3 = vadd.f32 1.0, %v8422_v19 }
 0xa68   :  { %v8426_v49 = vpop.eup %8425  ;;  %v6909_v4 = vadd.f32 1.0, %v8424_v25 }
 0xa69   :  { %v8428_v21 = vpop.eup %8427  ;;  %8429 = vrcp.f32 %v6911_v3  ;;  %v6912_v63 = vadd.f32 1.0, %v8426_v49 }
 0xa6a   :  { %8431 = vrcp.f32 %v6909_v4  ;;  %v6910_v35 = vadd.f32 1.0, %v8428_v21 }
 0xa6b   :  { %8433 = vrcp.f32 %v6912_v63 }
 0xa6c   :  { %8435 = vrcp.f32 %v6910_v35 }
 0xa73   :  { %v8430_v46 = vpop.eup %8429 }
 0xa74   :  { %v8432_v36 = vpop.eup %8431  ;;  %7008 = vst.msk [vmem:[%s12464_s12 + $0xf0] sm:$0xff] %vm6977_vm1, %v8430_v46 }
 0xa75   :  { %v8434_v15 = vpop.eup %8433  ;;  %7006 = vst.msk [vmem:[%s12464_s12 + $0xe0] sm:$0xff] %vm6977_vm1, %v8432_v36 }
 0xa76   :  { %v8436_v24 = vpop.eup %8435  ;;  %7009 = vst.msk [vmem:[%s12464_s12 + $0xf8] sm:$0xff] %vm6977_vm1, %v8434_v15 }
 0xa77   :  { %7007 = vst.msk [vmem:[%s12464_s12 + $0xe8] sm:$0xff] %vm6977_vm1, %v8436_v24 }

</bundles_post_ra>
